<compile_context>
chip_gen: v5e
topology: v5e:2x2
jax: 0.10.0
libtpu: 0.0.40
codegen_flags: <defaults>
</compile_context>

<pallas_src>
import functools

import jax
import jax.numpy as jnp
from jax.experimental import pallas as pl
from jax.experimental.pallas import tpu as pltpu


def _round_up(x, m):
    return (x + m - 1) // m * m


def _pick_time_chunk(T, max_chunk):
    """Largest chunk <= max_chunk that divides T and keeps (8,128) tiling legal."""
    for cand in range(min(max_chunk, T), 0, -1):
        if T % cand == 0 and (cand % 8 == 0 or cand == T):
            return cand
    return T


def _lstm_head_kernel(x_ref,          # (bb, TC, H)  streamed feature chunk (f32)
                      wih_f_ref,      # (H,  4Hp)    forward input->hidden  (packed)
                      whh_f_ref,      # (Hp, 4Hp)    forward hidden->hidden (packed)
                      b_f_ref,        # (1,  4Hp)    forward b_ih + b_hh    (f32)
                      wih_r_ref,      # (H,  4Hp)    reverse input->hidden  (packed)
                      b_r_ref,        # (1,  4Hp)    reverse b_ih + b_hh    (f32)
                      fc1_w_ref,      # (2Hp, Hp)
                      fc1_b_ref,      # (1,   Hp)
                      fc2_w_ref,      # (Hp,  L)
                      fc2_b_ref,      # (1,   L)
                      out_ref,        # (bb,  L)
                      h_scr, c_scr,   # (bb, Hp) f32 carried LSTM state
                      *, hidden_pad, time_chunk, compute_dtype):
    Hp, TC = hidden_pad, time_chunk
    bb = x_ref.shape[0]
    t = pl.program_id(1)

    @pl.when(t == 0)
    def _init():
        h_scr[...] = jnp.zeros_like(h_scr)
        c_scr[...] = jnp.zeros_like(c_scr)

    def split_gates(g):               # PyTorch gate order: i, f, g, o (lane-aligned)
        return (jax.nn.sigmoid(g[:, 0 * Hp:1 * Hp]),
                jax.nn.sigmoid(g[:, 1 * Hp:2 * Hp]),
                jnp.tanh(g[:, 2 * Hp:3 * Hp]),
                jax.nn.sigmoid(g[:, 3 * Hp:4 * Hp]))

    # ---- hoisted input projection: one big MXU matmul per chunk --------------
    xc = x_ref[...]                                            # (bb, TC, H) f32
    x2d = xc.reshape(bb * TC, xc.shape[-1]).astype(compute_dtype)
    gates_x = jnp.dot(x2d, wih_f_ref[...], preferred_element_type=jnp.float32)
    gates_x = gates_x.reshape(bb, TC, 4 * Hp) + b_f_ref[...]   # bias folded once

    # ---- recurrence: only h @ W_hh left inside the (fully unrolled) loop -----
    whh_f = whh_f_ref[...]
    h = h_scr[...]
    c = c_scr[...]
    for s in range(TC):                                        # static unroll
        g = gates_x[:, s, :] + jnp.dot(h.astype(compute_dtype), whh_f,
                                       preferred_element_type=jnp.float32)
        gi, gf, gg, go = split_gates(g)
        c = gf * c + gi * gg
        h = go * jnp.tanh(c)
    h_scr[...] = h
    c_scr[...] = c

    # ---- last chunk: reverse first step + tanh + fc1 + fc2 -------------------
    @pl.when(t == pl.num_programs(1) - 1)
    def _finish():
        # output[:, -1, H:] is the reverse scan's first step: zero h0/c0, so the
        # h @ W_hh_r term vanishes and c_new = i * g.
        x_last = xc[:, TC - 1, :].astype(compute_dtype)        # == x[:, T-1, :]
        g_r = (jnp.dot(x_last, wih_r_ref[...], preferred_element_type=jnp.float32)
               + b_r_ref[...])
        ri, _rf, rg, ro = split_gates(g_r)
        h_rev = ro * jnp.tanh(ri * rg)

        feat = jnp.tanh(jnp.concatenate([h, h_rev], axis=-1)).astype(compute_dtype)
        y = (jnp.dot(feat, fc1_w_ref[...], preferred_element_type=jnp.float32)
             + fc1_b_ref[...])
        y = (jnp.dot(y.astype(compute_dtype), fc2_w_ref[...],
                     preferred_element_type=jnp.float32)
             + fc2_b_ref[...])
        out_ref[...] = y.astype(out_ref.dtype)


@functools.partial(jax.jit, static_argnames=("num_labels", "time_chunk", "compute_dtype"))
def roberta_lstm_head(features, params, *, num_labels, time_chunk=16,
                      compute_dtype=jnp.bfloat16):
    """features: (B, T, H) float32, batch_first (PyTorch convention)."""
    B, T, H = features.shape
    L = num_labels
    Hp = _round_up(H, 128)                 # per-gate lane-aligned width
    Bp = _round_up(B, 8)                   # sublane-aligned batch
    tc = _pick_time_chunk(T, time_chunk)
    n_chunks = T // tc
    # Split the batch into two "parallel" grid blocks when large enough
    # (one per TensorCore on v7x; a harmless nested loop on v5e/v6e).
    nb = 2 if (Bp >= 16 and Bp % 16 == 0) else 1
    bb = Bp // nb

    x_p = features if Bp == B else jnp.pad(features, ((0, Bp - B), (0, 0), (0, 0)))

    # ---- weight packing: transpose to (in, out), pad each gate to Hp lanes ---
    # (In production these would be pre-packed once; they are tiny vs. x.)
    def pack_lstm_w(w, in_pad):
        in_dim = w.shape[1]
        w4 = jnp.transpose(w.reshape(4, H, in_dim), (2, 0, 1))          # (in, 4, H)
        w4 = jnp.pad(w4, ((0, in_pad - in_dim), (0, 0), (0, Hp - H)))
        return w4.reshape(in_pad, 4 * Hp).astype(compute_dtype)

    def pack_lstm_b(b_ih, b_hh):
        b4 = jnp.pad((b_ih + b_hh).reshape(4, H), ((0, 0), (0, Hp - H)))
        return b4.reshape(1, 4 * Hp).astype(jnp.float32)

    wih_f = pack_lstm_w(params["w_ih_f"], H)
    whh_f = pack_lstm_w(params["w_hh_f"], Hp)
    b_f = pack_lstm_b(params["b_ih_f"], params["b_hh_f"])
    wih_r = pack_lstm_w(params["w_ih_r"], H)
    b_r = pack_lstm_b(params["b_ih_r"], params["b_hh_r"])
    # params["w_hh_r"] is intentionally unused (reverse first step has h0 = 0).

    fc1_wt = jnp.transpose(params["fc1_w"])                             # (2H, H)
    fc1_wt = jnp.pad(fc1_wt.reshape(2, H, H),
                     ((0, 0), (0, Hp - H), (0, Hp - H)))                # (2, Hp, Hp)
    fc1_w = fc1_wt.reshape(2 * Hp, Hp).astype(compute_dtype)
    fc1_b = jnp.pad(params["fc1_b"], (0, Hp - H)).reshape(1, Hp).astype(jnp.float32)
    fc2_w = jnp.pad(jnp.transpose(params["fc2_w"]),
                    ((0, Hp - H), (0, 0))).astype(compute_dtype)        # (Hp, L)
    fc2_b = params["fc2_b"].reshape(1, L).astype(jnp.float32)

    # ---- VMEM budget: weights (2x pipeline buffers), x block, gate temp ------
    wd = jnp.dtype(compute_dtype).itemsize
    w_bytes = ((wih_f.size + whh_f.size + wih_r.size + fc1_w.size + fc2_w.size) * wd
               + (b_f.size + b_r.size + fc1_b.size + fc2_b.size) * 4)
    x_bytes = bb * tc * H * 4
    gate_bytes = bb * tc * 4 * Hp * 4
    state_bytes = 2 * bb * Hp * 4 + bb * L * 4
    est = 2 * (w_bytes + x_bytes) + gate_bytes + state_bytes
    vmem_limit = int(min(max(est * 5 // 4, 32 * 1024 * 1024), 112 * 1024 * 1024))

    kernel = functools.partial(_lstm_head_kernel, hidden_pad=Hp, time_chunk=tc,
                               compute_dtype=compute_dtype)
    const = lambda b, t: (0, 0)

    out_p = pl.pallas_call(
        kernel,
        out_shape=jax.ShapeDtypeStruct((Bp, L), jnp.float32),
        grid_spec=pltpu.PrefetchScalarGridSpec(
            num_scalar_prefetch=0,
            grid=(nb, n_chunks),
            in_specs=[
                pl.BlockSpec((bb, tc, H), lambda b, t: (b, t, 0)),   # x (streamed over T)
                pl.BlockSpec((H, 4 * Hp), const),                    # W_ih fwd
                pl.BlockSpec((Hp, 4 * Hp), const),                   # W_hh fwd
                pl.BlockSpec((1, 4 * Hp), const),                    # b fwd
                pl.BlockSpec((H, 4 * Hp), const),                    # W_ih rev
                pl.BlockSpec((1, 4 * Hp), const),                    # b rev
                pl.BlockSpec((2 * Hp, Hp), const),                   # fc1 W
                pl.BlockSpec((1, Hp), const),                        # fc1 b
                pl.BlockSpec((Hp, L), const),                        # fc2 W
                pl.BlockSpec((1, L), const),                         # fc2 b
            ],
            out_specs=pl.BlockSpec((bb, L), lambda b, t: (b, 0)),
            scratch_shapes=[pltpu.VMEM((bb, Hp), jnp.float32),       # h carry
                            pltpu.VMEM((bb, Hp), jnp.float32)],      # c carry
        ),
        compiler_params=pltpu.CompilerParams(
            dimension_semantics=("parallel", "arbitrary"),
            vmem_limit_bytes=vmem_limit,
        ),
    )(x_p, wih_f, whh_f, b_f, wih_r, b_r, fc1_w, fc1_b, fc2_w, fc2_b)

    return out_p[:B]


def init_params(key, hidden_size, num_labels):
    """Deterministic synthetic parameters with PyTorch-compatible shapes."""
    H, L = hidden_size, num_labels
    ks = jax.random.split(key, 12)
    scale = 1.0 / jnp.sqrt(H)
    u = lambda k, shape: jax.random.uniform(k, shape, jnp.float32, -scale, scale)
    return {
        # nn.LSTM(H, H, bidirectional=True): per direction W_ih (4H, H), W_hh (4H, H)
        "w_ih_f": u(ks[0], (4 * H, H)), "w_hh_f": u(ks[1], (4 * H, H)),
        "b_ih_f": u(ks[2], (4 * H,)),   "b_hh_f": u(ks[3], (4 * H,)),
        "w_ih_r": u(ks[4], (4 * H, H)), "w_hh_r": u(ks[5], (4 * H, H)),
        "b_ih_r": u(ks[6], (4 * H,)),   "b_hh_r": u(ks[7], (4 * H,)),
        # fc1: Linear(2H, H), fc2: Linear(H, L)
        "fc1_w": u(ks[8], (H, 2 * H)),  "fc1_b": u(ks[9], (H,)),
        "fc2_w": u(ks[10], (L, H)),     "fc2_b": u(ks[11], (L,)),
    }


def _reference(features, params):
    """Pure-JAX f32 reference of the PyTorch forward (eval mode)."""
    B, T, H = features.shape

    def cell(x_t, h, c, wih, whh, b_ih, b_hh):
        gates = x_t @ wih.T + b_ih + h @ whh.T + b_hh
        i = jax.nn.sigmoid(gates[:, 0 * H:1 * H])
        f = jax.nn.sigmoid(gates[:, 1 * H:2 * H])
        g = jnp.tanh(gates[:, 2 * H:3 * H])
        o = jax.nn.sigmoid(gates[:, 3 * H:4 * H])
        c = f * c + i * g
        return o * jnp.tanh(c), c

    h = c = jnp.zeros((B, H), jnp.float32)
    for t in range(T):
        h, c = cell(features[:, t, :], h, c,
                    params["w_ih_f"], params["w_hh_f"],
                    params["b_ih_f"], params["b_hh_f"])
    h_rev, _ = cell(features[:, T - 1, :],
                    jnp.zeros((B, H)), jnp.zeros((B, H)),
                    params["w_ih_r"], params["w_hh_r"],
                    params["b_ih_r"], params["b_hh_r"])
    x = jnp.tanh(jnp.concatenate([h, h_rev], axis=-1))
    x = x @ params["fc1_w"].T + params["fc1_b"]
    x = x @ params["fc2_w"].T + params["fc2_b"]
    return x


if __name__ == "__main__":
    B, T, H, L = 2, 16, 32, 4   # batch, seq, hidden_size, num_labels

    key = jax.random.PRNGKey(0)
    k_feat, k_params = jax.random.split(key)
    features = jax.random.normal(k_feat, (B, T, H), jnp.float32)
    params = init_params(k_params, H, L)

    ref = _reference(features, params)

    # f32 compute path (tight check) — exercises the multi-chunk carry (2 chunks).
    out_f32 = roberta_lstm_head(features, params, num_labels=L, time_chunk=8,
                                compute_dtype=jnp.float32)
    out_f32 = jax.block_until_ready(out_f32)
    assert out_f32.shape == (B, L)
    assert jnp.allclose(out_f32, ref, atol=1e-3, rtol=1e-3), (out_f32, ref)

    # bf16 weights/operands on the MXU with f32 accumulation (loose check).
    out_bf16 = roberta_lstm_head(features, params, num_labels=L, time_chunk=8,
                                 compute_dtype=jnp.bfloat16)
    out_bf16 = jax.block_until_ready(out_bf16)
    assert out_bf16.shape == (B, L)
    assert jnp.allclose(out_bf16, ref, atol=1e-1, rtol=1e-1), (out_bf16, ref)

    print("KERNEL_OK")
</pallas_src>

<mosaic_0001>
module attributes {stable_mosaic.version = 11 : i64} {
  func.func @_lstm_head_kernel(%arg0: i32, %arg1: i32, %arg2: memref<8x8x32xf32, #tpu.memory_space<vmem>>, %arg3: memref<32x512xf32, #tpu.memory_space<vmem>>, %arg4: memref<128x512xf32, #tpu.memory_space<vmem>>, %arg5: memref<1x512xf32, #tpu.memory_space<vmem>>, %arg6: memref<32x512xf32, #tpu.memory_space<vmem>>, %arg7: memref<1x512xf32, #tpu.memory_space<vmem>>, %arg8: memref<256x128xf32, #tpu.memory_space<vmem>>, %arg9: memref<1x128xf32, #tpu.memory_space<vmem>>, %arg10: memref<128x4xf32, #tpu.memory_space<vmem>>, %arg11: memref<1x4xf32, #tpu.memory_space<vmem>>, %arg12: memref<8x4xf32, #tpu.memory_space<vmem>>, %arg13: memref<8x128xf32, #tpu.memory_space<vmem>>, %arg14: memref<8x128xf32, #tpu.memory_space<vmem>>) attributes {dimension_semantics = [#tpu.dimension_semantics<parallel>, #tpu.dimension_semantics<arbitrary>], iteration_bounds = array<i64: 1, 2>, scalar_prefetch = 0 : i64, scratch_operands = 2 : i64, tpu.core_type = #tpu.core_type<tc>, window_params = [{transform_indices = @transform_0, window_bounds = array<i64: 8, 8, 32>}, {pipeline_mode = #tpu.pipeline_mode<synchronous>, transform_indices = @transform_1, window_bounds = array<i64: 32, 512>}, {pipeline_mode = #tpu.pipeline_mode<synchronous>, transform_indices = @transform_2, window_bounds = array<i64: 128, 512>}, {pipeline_mode = #tpu.pipeline_mode<synchronous>, transform_indices = @transform_3, window_bounds = array<i64: 1, 512>}, {pipeline_mode = #tpu.pipeline_mode<synchronous>, transform_indices = @transform_4, window_bounds = array<i64: 32, 512>}, {pipeline_mode = #tpu.pipeline_mode<synchronous>, transform_indices = @transform_5, window_bounds = array<i64: 1, 512>}, {pipeline_mode = #tpu.pipeline_mode<synchronous>, transform_indices = @transform_6, window_bounds = array<i64: 256, 128>}, {pipeline_mode = #tpu.pipeline_mode<synchronous>, transform_indices = @transform_7, window_bounds = array<i64: 1, 128>}, {pipeline_mode = #tpu.pipeline_mode<synchronous>, transform_indices = @transform_8, window_bounds = array<i64: 128, 4>}, {pipeline_mode = #tpu.pipeline_mode<synchronous>, transform_indices = @transform_9, window_bounds = array<i64: 1, 4>}, {transform_indices = @transform_10, window_bounds = array<i64: 8, 4>}]} {
    %c0_i32 = arith.constant 0 : i32
    %0 = arith.cmpi eq, %arg1, %c0_i32 : i32
    %1 = arith.extui %0 : i1 to i32
    %c0_i32_0 = arith.constant 0 : i32
    %2 = arith.cmpi ne, %1, %c0_i32_0 : i32
    scf.if %2 {
      %cst_50 = arith.constant 0.000000e+00 : f32
      %252 = vector.broadcast %cst_50 : f32 to vector<8x128xf32>
      %c0_51 = arith.constant 0 : index
      %c0_52 = arith.constant 0 : index
      %253 = vector.load %arg13[%c0_51, %c0_52] : memref<8x128xf32, #tpu.memory_space<vmem>>, vector<8x128xf32>
      tpu.vector_store %arg13[%c0_51, %c0_52], %252 {strides = array<i32>} : memref<8x128xf32, #tpu.memory_space<vmem>>, vector<8x128xf32>,
      %cst_53 = arith.constant 0.000000e+00 : f32
      %254 = vector.broadcast %cst_53 : f32 to vector<8x128xf32>
      %c0_54 = arith.constant 0 : index
      %c0_55 = arith.constant 0 : index
      %255 = vector.load %arg14[%c0_54, %c0_55] : memref<8x128xf32, #tpu.memory_space<vmem>>, vector<8x128xf32>
      tpu.vector_store %arg14[%c0_54, %c0_55], %254 {strides = array<i32>} : memref<8x128xf32, #tpu.memory_space<vmem>>, vector<8x128xf32>,
    } else {
    }
    %c0 = arith.constant 0 : index
    %c0_1 = arith.constant 0 : index
    %c0_2 = arith.constant 0 : index
    %3 = vector.load %arg2[%c0, %c0_1, %c0_2] : memref<8x8x32xf32, #tpu.memory_space<vmem>>, vector<8x8x32xf32>
    %4 = vector.shape_cast %3 : vector<8x8x32xf32> to vector<64x32xf32>
    %c0_3 = arith.constant 0 : index
    %c0_4 = arith.constant 0 : index
    %5 = vector.load %arg3[%c0_3, %c0_4] : memref<32x512xf32, #tpu.memory_space<vmem>>, vector<32x512xf32>
    %cst = arith.constant dense<0.000000e+00> : vector<64x512xf32>
    %6 = tpu.matmul %4, %5, %cst {dimension_numbers = #tpu.dot_dimension_numbers<[1], [0], [0], [1], [0, 0, 1, 1], [], []>} : vector<64x32xf32>, vector<32x512xf32>, vector<64x512xf32> -> vector<64x512xf32>
    %7 = vector.shape_cast %6 : vector<64x512xf32> to vector<8x8x512xf32>
    %c0_5 = arith.constant 0 : index
    %c0_6 = arith.constant 0 : index
    %8 = vector.load %arg5[%c0_5, %c0_6] : memref<1x512xf32, #tpu.memory_space<vmem>>, vector<1x512xf32>
    %9 = vector.shape_cast %8 : vector<1x512xf32> to vector<1x1x512xf32>
    %10 = vector.broadcast %9 : vector<1x1x512xf32> to vector<8x8x512xf32>
    %11 = arith.addf %7, %10 : vector<8x8x512xf32>
    %c0_7 = arith.constant 0 : index
    %c0_8 = arith.constant 0 : index
    %12 = vector.load %arg4[%c0_7, %c0_8] : memref<128x512xf32, #tpu.memory_space<vmem>>, vector<128x512xf32>
    %c0_9 = arith.constant 0 : index
    %c0_10 = arith.constant 0 : index
    %13 = vector.load %arg13[%c0_9, %c0_10] : memref<8x128xf32, #tpu.memory_space<vmem>>, vector<8x128xf32>
    %c0_11 = arith.constant 0 : index
    %c0_12 = arith.constant 0 : index
    %14 = vector.load %arg14[%c0_11, %c0_12] : memref<8x128xf32, #tpu.memory_space<vmem>>, vector<8x128xf32>
    %15 = vector.extract_strided_slice %11 {offsets = [0, 0, 0], sizes = [8, 1, 512], strides = [1, 1, 1]} : vector<8x8x512xf32> to vector<8x1x512xf32>
    %16 = vector.shape_cast %15 : vector<8x1x512xf32> to vector<8x512xf32>
    %cst_13 = arith.constant dense<0.000000e+00> : vector<8x512xf32>
    %17 = tpu.matmul %13, %12, %cst_13 {dimension_numbers = #tpu.dot_dimension_numbers<[1], [0], [0], [1], [0, 0, 1, 1], [], []>} : vector<8x128xf32>, vector<128x512xf32>, vector<8x512xf32> -> vector<8x512xf32>
    %18 = arith.addf %16, %17 : vector<8x512xf32>
    %19 = vector.extract_strided_slice %18 {offsets = [0, 0], sizes = [8, 128], strides = [1, 1]} : vector<8x512xf32> to vector<8x128xf32>
    %20 = arith.negf %19 : vector<8x128xf32>
    %21 = math.exp %20 : vector<8x128xf32>
    %cst_14 = arith.constant 1.000000e+00 : f32
    %22 = vector.broadcast %cst_14 : f32 to vector<8x128xf32>
    %23 = arith.addf %22, %21 : vector<8x128xf32>
    %24 = arith.divf %22, %23 : vector<8x128xf32>
    %25 = vector.extract_strided_slice %18 {offsets = [0, 128], sizes = [8, 128], strides = [1, 1]} : vector<8x512xf32> to vector<8x128xf32>
    %26 = arith.negf %25 : vector<8x128xf32>
    %27 = math.exp %26 : vector<8x128xf32>
    %cst_15 = arith.constant 1.000000e+00 : f32
    %28 = vector.broadcast %cst_15 : f32 to vector<8x128xf32>
    %29 = arith.addf %28, %27 : vector<8x128xf32>
    %30 = arith.divf %28, %29 : vector<8x128xf32>
    %31 = vector.extract_strided_slice %18 {offsets = [0, 256], sizes = [8, 128], strides = [1, 1]} : vector<8x512xf32> to vector<8x128xf32>
    %32 = math.tanh %31 : vector<8x128xf32>
    %33 = vector.extract_strided_slice %18 {offsets = [0, 384], sizes = [8, 128], strides = [1, 1]} : vector<8x512xf32> to vector<8x128xf32>
    %34 = arith.negf %33 : vector<8x128xf32>
    %35 = math.exp %34 : vector<8x128xf32>
    %cst_16 = arith.constant 1.000000e+00 : f32
    %36 = vector.broadcast %cst_16 : f32 to vector<8x128xf32>
    %37 = arith.addf %36, %35 : vector<8x128xf32>
    %38 = arith.divf %36, %37 : vector<8x128xf32>
    %39 = arith.mulf %30, %14 : vector<8x128xf32>
    %40 = arith.mulf %24, %32 : vector<8x128xf32>
    %41 = arith.addf %39, %40 : vector<8x128xf32>
    %42 = math.tanh %41 : vector<8x128xf32>
    %43 = arith.mulf %38, %42 : vector<8x128xf32>
    %44 = vector.extract_strided_slice %11 {offsets = [0, 1, 0], sizes = [8, 1, 512], strides = [1, 1, 1]} : vector<8x8x512xf32> to vector<8x1x512xf32>
    %45 = vector.shape_cast %44 : vector<8x1x512xf32> to vector<8x512xf32>
    %cst_17 = arith.constant dense<0.000000e+00> : vector<8x512xf32>
    %46 = tpu.matmul %43, %12, %cst_17 {dimension_numbers = #tpu.dot_dimension_numbers<[1], [0], [0], [1], [0, 0, 1, 1], [], []>} : vector<8x128xf32>, vector<128x512xf32>, vector<8x512xf32> -> vector<8x512xf32>
    %47 = arith.addf %45, %46 : vector<8x512xf32>
    %48 = vector.extract_strided_slice %47 {offsets = [0, 0], sizes = [8, 128], strides = [1, 1]} : vector<8x512xf32> to vector<8x128xf32>
    %49 = arith.negf %48 : vector<8x128xf32>
    %50 = math.exp %49 : vector<8x128xf32>
    %cst_18 = arith.constant 1.000000e+00 : f32
    %51 = vector.broadcast %cst_18 : f32 to vector<8x128xf32>
    %52 = arith.addf %51, %50 : vector<8x128xf32>
    %53 = arith.divf %51, %52 : vector<8x128xf32>
    %54 = vector.extract_strided_slice %47 {offsets = [0, 128], sizes = [8, 128], strides = [1, 1]} : vector<8x512xf32> to vector<8x128xf32>
    %55 = arith.negf %54 : vector<8x128xf32>
    %56 = math.exp %55 : vector<8x128xf32>
    %cst_19 = arith.constant 1.000000e+00 : f32
    %57 = vector.broadcast %cst_19 : f32 to vector<8x128xf32>
    %58 = arith.addf %57, %56 : vector<8x128xf32>
    %59 = arith.divf %57, %58 : vector<8x128xf32>
    %60 = vector.extract_strided_slice %47 {offsets = [0, 256], sizes = [8, 128], strides = [1, 1]} : vector<8x512xf32> to vector<8x128xf32>
    %61 = math.tanh %60 : vector<8x128xf32>
    %62 = vector.extract_strided_slice %47 {offsets = [0, 384], sizes = [8, 128], strides = [1, 1]} : vector<8x512xf32> to vector<8x128xf32>
    %63 = arith.negf %62 : vector<8x128xf32>
    %64 = math.exp %63 : vector<8x128xf32>
    %cst_20 = arith.constant 1.000000e+00 : f32
    %65 = vector.broadcast %cst_20 : f32 to vector<8x128xf32>
    %66 = arith.addf %65, %64 : vector<8x128xf32>
    %67 = arith.divf %65, %66 : vector<8x128xf32>
    %68 = arith.mulf %59, %41 : vector<8x128xf32>
    %69 = arith.mulf %53, %61 : vector<8x128xf32>
    %70 = arith.addf %68, %69 : vector<8x128xf32>
    %71 = math.tanh %70 : vector<8x128xf32>
    %72 = arith.mulf %67, %71 : vector<8x128xf32>
    %73 = vector.extract_strided_slice %11 {offsets = [0, 2, 0], sizes = [8, 1, 512], strides = [1, 1, 1]} : vector<8x8x512xf32> to vector<8x1x512xf32>
    %74 = vector.shape_cast %73 : vector<8x1x512xf32> to vector<8x512xf32>
    %cst_21 = arith.constant dense<0.000000e+00> : vector<8x512xf32>
    %75 = tpu.matmul %72, %12, %cst_21 {dimension_numbers = #tpu.dot_dimension_numbers<[1], [0], [0], [1], [0, 0, 1, 1], [], []>} : vector<8x128xf32>, vector<128x512xf32>, vector<8x512xf32> -> vector<8x512xf32>
    %76 = arith.addf %74, %75 : vector<8x512xf32>
    %77 = vector.extract_strided_slice %76 {offsets = [0, 0], sizes = [8, 128], strides = [1, 1]} : vector<8x512xf32> to vector<8x128xf32>
    %78 = arith.negf %77 : vector<8x128xf32>
    %79 = math.exp %78 : vector<8x128xf32>
    %cst_22 = arith.constant 1.000000e+00 : f32
    %80 = vector.broadcast %cst_22 : f32 to vector<8x128xf32>
    %81 = arith.addf %80, %79 : vector<8x128xf32>
    %82 = arith.divf %80, %81 : vector<8x128xf32>
    %83 = vector.extract_strided_slice %76 {offsets = [0, 128], sizes = [8, 128], strides = [1, 1]} : vector<8x512xf32> to vector<8x128xf32>
    %84 = arith.negf %83 : vector<8x128xf32>
    %85 = math.exp %84 : vector<8x128xf32>
    %cst_23 = arith.constant 1.000000e+00 : f32
    %86 = vector.broadcast %cst_23 : f32 to vector<8x128xf32>
    %87 = arith.addf %86, %85 : vector<8x128xf32>
    %88 = arith.divf %86, %87 : vector<8x128xf32>
    %89 = vector.extract_strided_slice %76 {offsets = [0, 256], sizes = [8, 128], strides = [1, 1]} : vector<8x512xf32> to vector<8x128xf32>
    %90 = math.tanh %89 : vector<8x128xf32>
    %91 = vector.extract_strided_slice %76 {offsets = [0, 384], sizes = [8, 128], strides = [1, 1]} : vector<8x512xf32> to vector<8x128xf32>
    %92 = arith.negf %91 : vector<8x128xf32>
    %93 = math.exp %92 : vector<8x128xf32>
    %cst_24 = arith.constant 1.000000e+00 : f32
    %94 = vector.broadcast %cst_24 : f32 to vector<8x128xf32>
    %95 = arith.addf %94, %93 : vector<8x128xf32>
    %96 = arith.divf %94, %95 : vector<8x128xf32>
    %97 = arith.mulf %88, %70 : vector<8x128xf32>
    %98 = arith.mulf %82, %90 : vector<8x128xf32>
    %99 = arith.addf %97, %98 : vector<8x128xf32>
    %100 = math.tanh %99 : vector<8x128xf32>
    %101 = arith.mulf %96, %100 : vector<8x128xf32>
    %102 = vector.extract_strided_slice %11 {offsets = [0, 3, 0], sizes = [8, 1, 512], strides = [1, 1, 1]} : vector<8x8x512xf32> to vector<8x1x512xf32>
    %103 = vector.shape_cast %102 : vector<8x1x512xf32> to vector<8x512xf32>
    %cst_25 = arith.constant dense<0.000000e+00> : vector<8x512xf32>
    %104 = tpu.matmul %101, %12, %cst_25 {dimension_numbers = #tpu.dot_dimension_numbers<[1], [0], [0], [1], [0, 0, 1, 1], [], []>} : vector<8x128xf32>, vector<128x512xf32>, vector<8x512xf32> -> vector<8x512xf32>
    %105 = arith.addf %103, %104 : vector<8x512xf32>
    %106 = vector.extract_strided_slice %105 {offsets = [0, 0], sizes = [8, 128], strides = [1, 1]} : vector<8x512xf32> to vector<8x128xf32>
    %107 = arith.negf %106 : vector<8x128xf32>
    %108 = math.exp %107 : vector<8x128xf32>
    %cst_26 = arith.constant 1.000000e+00 : f32
    %109 = vector.broadcast %cst_26 : f32 to vector<8x128xf32>
    %110 = arith.addf %109, %108 : vector<8x128xf32>
    %111 = arith.divf %109, %110 : vector<8x128xf32>
    %112 = vector.extract_strided_slice %105 {offsets = [0, 128], sizes = [8, 128], strides = [1, 1]} : vector<8x512xf32> to vector<8x128xf32>
    %113 = arith.negf %112 : vector<8x128xf32>
    %114 = math.exp %113 : vector<8x128xf32>
    %cst_27 = arith.constant 1.000000e+00 : f32
    %115 = vector.broadcast %cst_27 : f32 to vector<8x128xf32>
    %116 = arith.addf %115, %114 : vector<8x128xf32>
    %117 = arith.divf %115, %116 : vector<8x128xf32>
    %118 = vector.extract_strided_slice %105 {offsets = [0, 256], sizes = [8, 128], strides = [1, 1]} : vector<8x512xf32> to vector<8x128xf32>
    %119 = math.tanh %118 : vector<8x128xf32>
    %120 = vector.extract_strided_slice %105 {offsets = [0, 384], sizes = [8, 128], strides = [1, 1]} : vector<8x512xf32> to vector<8x128xf32>
    %121 = arith.negf %120 : vector<8x128xf32>
    %122 = math.exp %121 : vector<8x128xf32>
    %cst_28 = arith.constant 1.000000e+00 : f32
    %123 = vector.broadcast %cst_28 : f32 to vector<8x128xf32>
    %124 = arith.addf %123, %122 : vector<8x128xf32>
    %125 = arith.divf %123, %124 : vector<8x128xf32>
    %126 = arith.mulf %117, %99 : vector<8x128xf32>
    %127 = arith.mulf %111, %119 : vector<8x128xf32>
    %128 = arith.addf %126, %127 : vector<8x128xf32>
    %129 = math.tanh %128 : vector<8x128xf32>
    %130 = arith.mulf %125, %129 : vector<8x128xf32>
    %131 = vector.extract_strided_slice %11 {offsets = [0, 4, 0], sizes = [8, 1, 512], strides = [1, 1, 1]} : vector<8x8x512xf32> to vector<8x1x512xf32>
    %132 = vector.shape_cast %131 : vector<8x1x512xf32> to vector<8x512xf32>
    %cst_29 = arith.constant dense<0.000000e+00> : vector<8x512xf32>
    %133 = tpu.matmul %130, %12, %cst_29 {dimension_numbers = #tpu.dot_dimension_numbers<[1], [0], [0], [1], [0, 0, 1, 1], [], []>} : vector<8x128xf32>, vector<128x512xf32>, vector<8x512xf32> -> vector<8x512xf32>
    %134 = arith.addf %132, %133 : vector<8x512xf32>
    %135 = vector.extract_strided_slice %134 {offsets = [0, 0], sizes = [8, 128], strides = [1, 1]} : vector<8x512xf32> to vector<8x128xf32>
    %136 = arith.negf %135 : vector<8x128xf32>
    %137 = math.exp %136 : vector<8x128xf32>
    %cst_30 = arith.constant 1.000000e+00 : f32
    %138 = vector.broadcast %cst_30 : f32 to vector<8x128xf32>
    %139 = arith.addf %138, %137 : vector<8x128xf32>
    %140 = arith.divf %138, %139 : vector<8x128xf32>
    %141 = vector.extract_strided_slice %134 {offsets = [0, 128], sizes = [8, 128], strides = [1, 1]} : vector<8x512xf32> to vector<8x128xf32>
    %142 = arith.negf %141 : vector<8x128xf32>
    %143 = math.exp %142 : vector<8x128xf32>
    %cst_31 = arith.constant 1.000000e+00 : f32
    %144 = vector.broadcast %cst_31 : f32 to vector<8x128xf32>
    %145 = arith.addf %144, %143 : vector<8x128xf32>
    %146 = arith.divf %144, %145 : vector<8x128xf32>
    %147 = vector.extract_strided_slice %134 {offsets = [0, 256], sizes = [8, 128], strides = [1, 1]} : vector<8x512xf32> to vector<8x128xf32>
    %148 = math.tanh %147 : vector<8x128xf32>
    %149 = vector.extract_strided_slice %134 {offsets = [0, 384], sizes = [8, 128], strides = [1, 1]} : vector<8x512xf32> to vector<8x128xf32>
    %150 = arith.negf %149 : vector<8x128xf32>
    %151 = math.exp %150 : vector<8x128xf32>
    %cst_32 = arith.constant 1.000000e+00 : f32
    %152 = vector.broadcast %cst_32 : f32 to vector<8x128xf32>
    %153 = arith.addf %152, %151 : vector<8x128xf32>
    %154 = arith.divf %152, %153 : vector<8x128xf32>
    %155 = arith.mulf %146, %128 : vector<8x128xf32>
    %156 = arith.mulf %140, %148 : vector<8x128xf32>
    %157 = arith.addf %155, %156 : vector<8x128xf32>
    %158 = math.tanh %157 : vector<8x128xf32>
    %159 = arith.mulf %154, %158 : vector<8x128xf32>
    %160 = vector.extract_strided_slice %11 {offsets = [0, 5, 0], sizes = [8, 1, 512], strides = [1, 1, 1]} : vector<8x8x512xf32> to vector<8x1x512xf32>
    %161 = vector.shape_cast %160 : vector<8x1x512xf32> to vector<8x512xf32>
    %cst_33 = arith.constant dense<0.000000e+00> : vector<8x512xf32>
    %162 = tpu.matmul %159, %12, %cst_33 {dimension_numbers = #tpu.dot_dimension_numbers<[1], [0], [0], [1], [0, 0, 1, 1], [], []>} : vector<8x128xf32>, vector<128x512xf32>, vector<8x512xf32> -> vector<8x512xf32>
    %163 = arith.addf %161, %162 : vector<8x512xf32>
    %164 = vector.extract_strided_slice %163 {offsets = [0, 0], sizes = [8, 128], strides = [1, 1]} : vector<8x512xf32> to vector<8x128xf32>
    %165 = arith.negf %164 : vector<8x128xf32>
    %166 = math.exp %165 : vector<8x128xf32>
    %cst_34 = arith.constant 1.000000e+00 : f32
    %167 = vector.broadcast %cst_34 : f32 to vector<8x128xf32>
    %168 = arith.addf %167, %166 : vector<8x128xf32>
    %169 = arith.divf %167, %168 : vector<8x128xf32>
    %170 = vector.extract_strided_slice %163 {offsets = [0, 128], sizes = [8, 128], strides = [1, 1]} : vector<8x512xf32> to vector<8x128xf32>
    %171 = arith.negf %170 : vector<8x128xf32>
    %172 = math.exp %171 : vector<8x128xf32>
    %cst_35 = arith.constant 1.000000e+00 : f32
    %173 = vector.broadcast %cst_35 : f32 to vector<8x128xf32>
    %174 = arith.addf %173, %172 : vector<8x128xf32>
    %175 = arith.divf %173, %174 : vector<8x128xf32>
    %176 = vector.extract_strided_slice %163 {offsets = [0, 256], sizes = [8, 128], strides = [1, 1]} : vector<8x512xf32> to vector<8x128xf32>
    %177 = math.tanh %176 : vector<8x128xf32>
    %178 = vector.extract_strided_slice %163 {offsets = [0, 384], sizes = [8, 128], strides = [1, 1]} : vector<8x512xf32> to vector<8x128xf32>
    %179 = arith.negf %178 : vector<8x128xf32>
    %180 = math.exp %179 : vector<8x128xf32>
    %cst_36 = arith.constant 1.000000e+00 : f32
    %181 = vector.broadcast %cst_36 : f32 to vector<8x128xf32>
    %182 = arith.addf %181, %180 : vector<8x128xf32>
    %183 = arith.divf %181, %182 : vector<8x128xf32>
    %184 = arith.mulf %175, %157 : vector<8x128xf32>
    %185 = arith.mulf %169, %177 : vector<8x128xf32>
    %186 = arith.addf %184, %185 : vector<8x128xf32>
    %187 = math.tanh %186 : vector<8x128xf32>
    %188 = arith.mulf %183, %187 : vector<8x128xf32>
    %189 = vector.extract_strided_slice %11 {offsets = [0, 6, 0], sizes = [8, 1, 512], strides = [1, 1, 1]} : vector<8x8x512xf32> to vector<8x1x512xf32>
    %190 = vector.shape_cast %189 : vector<8x1x512xf32> to vector<8x512xf32>
    %cst_37 = arith.constant dense<0.000000e+00> : vector<8x512xf32>
    %191 = tpu.matmul %188, %12, %cst_37 {dimension_numbers = #tpu.dot_dimension_numbers<[1], [0], [0], [1], [0, 0, 1, 1], [], []>} : vector<8x128xf32>, vector<128x512xf32>, vector<8x512xf32> -> vector<8x512xf32>
    %192 = arith.addf %190, %191 : vector<8x512xf32>
    %193 = vector.extract_strided_slice %192 {offsets = [0, 0], sizes = [8, 128], strides = [1, 1]} : vector<8x512xf32> to vector<8x128xf32>
    %194 = arith.negf %193 : vector<8x128xf32>
    %195 = math.exp %194 : vector<8x128xf32>
    %cst_38 = arith.constant 1.000000e+00 : f32
    %196 = vector.broadcast %cst_38 : f32 to vector<8x128xf32>
    %197 = arith.addf %196, %195 : vector<8x128xf32>
    %198 = arith.divf %196, %197 : vector<8x128xf32>
    %199 = vector.extract_strided_slice %192 {offsets = [0, 128], sizes = [8, 128], strides = [1, 1]} : vector<8x512xf32> to vector<8x128xf32>
    %200 = arith.negf %199 : vector<8x128xf32>
    %201 = math.exp %200 : vector<8x128xf32>
    %cst_39 = arith.constant 1.000000e+00 : f32
    %202 = vector.broadcast %cst_39 : f32 to vector<8x128xf32>
    %203 = arith.addf %202, %201 : vector<8x128xf32>
    %204 = arith.divf %202, %203 : vector<8x128xf32>
    %205 = vector.extract_strided_slice %192 {offsets = [0, 256], sizes = [8, 128], strides = [1, 1]} : vector<8x512xf32> to vector<8x128xf32>
    %206 = math.tanh %205 : vector<8x128xf32>
    %207 = vector.extract_strided_slice %192 {offsets = [0, 384], sizes = [8, 128], strides = [1, 1]} : vector<8x512xf32> to vector<8x128xf32>
    %208 = arith.negf %207 : vector<8x128xf32>
    %209 = math.exp %208 : vector<8x128xf32>
    %cst_40 = arith.constant 1.000000e+00 : f32
    %210 = vector.broadcast %cst_40 : f32 to vector<8x128xf32>
    %211 = arith.addf %210, %209 : vector<8x128xf32>
    %212 = arith.divf %210, %211 : vector<8x128xf32>
    %213 = arith.mulf %204, %186 : vector<8x128xf32>
    %214 = arith.mulf %198, %206 : vector<8x128xf32>
    %215 = arith.addf %213, %214 : vector<8x128xf32>
    %216 = math.tanh %215 : vector<8x128xf32>
    %217 = arith.mulf %212, %216 : vector<8x128xf32>
    %218 = vector.extract_strided_slice %11 {offsets = [0, 7, 0], sizes = [8, 1, 512], strides = [1, 1, 1]} : vector<8x8x512xf32> to vector<8x1x512xf32>
    %219 = vector.shape_cast %218 : vector<8x1x512xf32> to vector<8x512xf32>
    %cst_41 = arith.constant dense<0.000000e+00> : vector<8x512xf32>
    %220 = tpu.matmul %217, %12, %cst_41 {dimension_numbers = #tpu.dot_dimension_numbers<[1], [0], [0], [1], [0, 0, 1, 1], [], []>} : vector<8x128xf32>, vector<128x512xf32>, vector<8x512xf32> -> vector<8x512xf32>
    %221 = arith.addf %219, %220 : vector<8x512xf32>
    %222 = vector.extract_strided_slice %221 {offsets = [0, 0], sizes = [8, 128], strides = [1, 1]} : vector<8x512xf32> to vector<8x128xf32>
    %223 = arith.negf %222 : vector<8x128xf32>
    %224 = math.exp %223 : vector<8x128xf32>
    %cst_42 = arith.constant 1.000000e+00 : f32
    %225 = vector.broadcast %cst_42 : f32 to vector<8x128xf32>
    %226 = arith.addf %225, %224 : vector<8x128xf32>
    %227 = arith.divf %225, %226 : vector<8x128xf32>
    %228 = vector.extract_strided_slice %221 {offsets = [0, 128], sizes = [8, 128], strides = [1, 1]} : vector<8x512xf32> to vector<8x128xf32>
    %229 = arith.negf %228 : vector<8x128xf32>
    %230 = math.exp %229 : vector<8x128xf32>
    %cst_43 = arith.constant 1.000000e+00 : f32
    %231 = vector.broadcast %cst_43 : f32 to vector<8x128xf32>
    %232 = arith.addf %231, %230 : vector<8x128xf32>
    %233 = arith.divf %231, %232 : vector<8x128xf32>
    %234 = vector.extract_strided_slice %221 {offsets = [0, 256], sizes = [8, 128], strides = [1, 1]} : vector<8x512xf32> to vector<8x128xf32>
    %235 = math.tanh %234 : vector<8x128xf32>
    %236 = vector.extract_strided_slice %221 {offsets = [0, 384], sizes = [8, 128], strides = [1, 1]} : vector<8x512xf32> to vector<8x128xf32>
    %237 = arith.negf %236 : vector<8x128xf32>
    %238 = math.exp %237 : vector<8x128xf32>
    %cst_44 = arith.constant 1.000000e+00 : f32
    %239 = vector.broadcast %cst_44 : f32 to vector<8x128xf32>
    %240 = arith.addf %239, %238 : vector<8x128xf32>
    %241 = arith.divf %239, %240 : vector<8x128xf32>
    %242 = arith.mulf %233, %215 : vector<8x128xf32>
    %243 = arith.mulf %227, %235 : vector<8x128xf32>
    %244 = arith.addf %242, %243 : vector<8x128xf32>
    %245 = math.tanh %244 : vector<8x128xf32>
    %246 = arith.mulf %241, %245 : vector<8x128xf32>
    %c0_45 = arith.constant 0 : index
    %c0_46 = arith.constant 0 : index
    %247 = vector.load %arg13[%c0_45, %c0_46] : memref<8x128xf32, #tpu.memory_space<vmem>>, vector<8x128xf32>
    tpu.vector_store %arg13[%c0_45, %c0_46], %246 {strides = array<i32>} : memref<8x128xf32, #tpu.memory_space<vmem>>, vector<8x128xf32>,
    %c0_47 = arith.constant 0 : index
    %c0_48 = arith.constant 0 : index
    %248 = vector.load %arg14[%c0_47, %c0_48] : memref<8x128xf32, #tpu.memory_space<vmem>>, vector<8x128xf32>
    tpu.vector_store %arg14[%c0_47, %c0_48], %244 {strides = array<i32>} : memref<8x128xf32, #tpu.memory_space<vmem>>, vector<8x128xf32>,
    %c1_i32 = arith.constant 1 : i32
    %249 = arith.cmpi eq, %arg1, %c1_i32 : i32
    %250 = arith.extui %249 : i1 to i32
    %c0_i32_49 = arith.constant 0 : i32
    %251 = arith.cmpi ne, %250, %c0_i32_49 : i32
    scf.if %251 {
      %252 = vector.extract_strided_slice %3 {offsets = [0, 7, 0], sizes = [8, 1, 32], strides = [1, 1, 1]} : vector<8x8x32xf32> to vector<8x1x32xf32>
      %253 = vector.shape_cast %252 : vector<8x1x32xf32> to vector<8x32xf32>
      %c0_50 = arith.constant 0 : index
      %c0_51 = arith.constant 0 : index
      %254 = vector.load %arg6[%c0_50, %c0_51] : memref<32x512xf32, #tpu.memory_space<vmem>>, vector<32x512xf32>
      %cst_52 = arith.constant dense<0.000000e+00> : vector<8x512xf32>
      %255 = tpu.matmul %253, %254, %cst_52 {dimension_numbers = #tpu.dot_dimension_numbers<[1], [0], [0], [1], [0, 0, 1, 1], [], []>} : vector<8x32xf32>, vector<32x512xf32>, vector<8x512xf32> -> vector<8x512xf32>
      %c0_53 = arith.constant 0 : index
      %c0_54 = arith.constant 0 : index
      %256 = vector.load %arg7[%c0_53, %c0_54] : memref<1x512xf32, #tpu.memory_space<vmem>>, vector<1x512xf32>
      %257 = vector.broadcast %256 : vector<1x512xf32> to vector<8x512xf32>
      %258 = arith.addf %255, %257 : vector<8x512xf32>
      %259 = vector.extract_strided_slice %258 {offsets = [0, 0], sizes = [8, 128], strides = [1, 1]} : vector<8x512xf32> to vector<8x128xf32>
      %260 = arith.negf %259 : vector<8x128xf32>
      %261 = math.exp %260 : vector<8x128xf32>
      %cst_55 = arith.constant 1.000000e+00 : f32
      %262 = vector.broadcast %cst_55 : f32 to vector<8x128xf32>
      %263 = arith.addf %262, %261 : vector<8x128xf32>
      %264 = arith.divf %262, %263 : vector<8x128xf32>
      %265 = vector.extract_strided_slice %258 {offsets = [0, 256], sizes = [8, 128], strides = [1, 1]} : vector<8x512xf32> to vector<8x128xf32>
      %266 = math.tanh %265 : vector<8x128xf32>
      %267 = vector.extract_strided_slice %258 {offsets = [0, 384], sizes = [8, 128], strides = [1, 1]} : vector<8x512xf32> to vector<8x128xf32>
      %268 = arith.negf %267 : vector<8x128xf32>
      %269 = math.exp %268 : vector<8x128xf32>
      %cst_56 = arith.constant 1.000000e+00 : f32
      %270 = vector.broadcast %cst_56 : f32 to vector<8x128xf32>
      %271 = arith.addf %270, %269 : vector<8x128xf32>
      %272 = arith.divf %270, %271 : vector<8x128xf32>
      %273 = arith.mulf %264, %266 : vector<8x128xf32>
      %274 = math.tanh %273 : vector<8x128xf32>
      %275 = arith.mulf %272, %274 : vector<8x128xf32>
      %276 = tpu.concatenate %246, %275 in 1 : vector<8x128xf32>, vector<8x128xf32> -> vector<8x256xf32>
      %277 = math.tanh %276 : vector<8x256xf32>
      %c0_57 = arith.constant 0 : index
      %c0_58 = arith.constant 0 : index
      %278 = vector.load %arg8[%c0_57, %c0_58] : memref<256x128xf32, #tpu.memory_space<vmem>>, vector<256x128xf32>
      %cst_59 = arith.constant dense<0.000000e+00> : vector<8x128xf32>
      %279 = tpu.matmul %277, %278, %cst_59 {dimension_numbers = #tpu.dot_dimension_numbers<[1], [0], [0], [1], [0, 0, 1, 1], [], []>} : vector<8x256xf32>, vector<256x128xf32>, vector<8x128xf32> -> vector<8x128xf32>
      %c0_60 = arith.constant 0 : index
      %c0_61 = arith.constant 0 : index
      %280 = vector.load %arg9[%c0_60, %c0_61] : memref<1x128xf32, #tpu.memory_space<vmem>>, vector<1x128xf32>
      %281 = vector.broadcast %280 : vector<1x128xf32> to vector<8x128xf32>
      %282 = arith.addf %279, %281 : vector<8x128xf32>
      %c0_62 = arith.constant 0 : index
      %c0_63 = arith.constant 0 : index
      %283 = vector.load %arg10[%c0_62, %c0_63] : memref<128x4xf32, #tpu.memory_space<vmem>>, vector<128x4xf32>
      %cst_64 = arith.constant dense<0.000000e+00> : vector<8x4xf32>
      %284 = tpu.matmul %282, %283, %cst_64 {dimension_numbers = #tpu.dot_dimension_numbers<[1], [0], [0], [1], [0, 0, 1, 1], [], []>} : vector<8x128xf32>, vector<128x4xf32>, vector<8x4xf32> -> vector<8x4xf32>
      %c0_65 = arith.constant 0 : index
      %c0_66 = arith.constant 0 : index
      %285 = vector.load %arg11[%c0_65, %c0_66] : memref<1x4xf32, #tpu.memory_space<vmem>>, vector<1x4xf32>
      %286 = vector.broadcast %285 : vector<1x4xf32> to vector<8x4xf32>
      %287 = arith.addf %284, %286 : vector<8x4xf32>
      %c0_67 = arith.constant 0 : index
      %c0_68 = arith.constant 0 : index
      %288 = vector.load %arg12[%c0_67, %c0_68] : memref<8x4xf32, #tpu.memory_space<vmem>>, vector<8x4xf32>
      tpu.vector_store %arg12[%c0_67, %c0_68], %287 {strides = array<i32>} : memref<8x4xf32, #tpu.memory_space<vmem>>, vector<8x4xf32>,
    } else {
    }
    return
  }
  func.func @transform_0(%arg0: i32, %arg1: i32) -> (i32, i32, i32) {
    %c0_i32 = arith.constant 0 : i32
    %c0_i32_0 = arith.constant 0 : i32
    return %arg0, %arg1, %c0_i32 : i32, i32, i32
  }
  func.func @transform_1(%arg0: i32, %arg1: i32) -> (i32, i32) {
    %c0_i32 = arith.constant 0 : i32
    %c0_i32_0 = arith.constant 0 : i32
    %c0_i32_1 = arith.constant 0 : i32
    return %c0_i32, %c0_i32_0 : i32, i32
  }
  func.func @transform_2(%arg0: i32, %arg1: i32) -> (i32, i32) {
    %c0_i32 = arith.constant 0 : i32
    %c0_i32_0 = arith.constant 0 : i32
    %c0_i32_1 = arith.constant 0 : i32
    return %c0_i32, %c0_i32_0 : i32, i32
  }
  func.func @transform_3(%arg0: i32, %arg1: i32) -> (i32, i32) {
    %c0_i32 = arith.constant 0 : i32
    %c0_i32_0 = arith.constant 0 : i32
    %c0_i32_1 = arith.constant 0 : i32
    return %c0_i32, %c0_i32_0 : i32, i32
  }
  func.func @transform_4(%arg0: i32, %arg1: i32) -> (i32, i32) {
    %c0_i32 = arith.constant 0 : i32
    %c0_i32_0 = arith.constant 0 : i32
    %c0_i32_1 = arith.constant 0 : i32
    return %c0_i32, %c0_i32_0 : i32, i32
  }
  func.func @transform_5(%arg0: i32, %arg1: i32) -> (i32, i32) {
    %c0_i32 = arith.constant 0 : i32
    %c0_i32_0 = arith.constant 0 : i32
    %c0_i32_1 = arith.constant 0 : i32
    return %c0_i32, %c0_i32_0 : i32, i32
  }
  func.func @transform_6(%arg0: i32, %arg1: i32) -> (i32, i32) {
    %c0_i32 = arith.constant 0 : i32
    %c0_i32_0 = arith.constant 0 : i32
    %c0_i32_1 = arith.constant 0 : i32
    return %c0_i32, %c0_i32_0 : i32, i32
  }
  func.func @transform_7(%arg0: i32, %arg1: i32) -> (i32, i32) {
    %c0_i32 = arith.constant 0 : i32
    %c0_i32_0 = arith.constant 0 : i32
    %c0_i32_1 = arith.constant 0 : i32
    return %c0_i32, %c0_i32_0 : i32, i32
  }
  func.func @transform_8(%arg0: i32, %arg1: i32) -> (i32, i32) {
    %c0_i32 = arith.constant 0 : i32
    %c0_i32_0 = arith.constant 0 : i32
    %c0_i32_1 = arith.constant 0 : i32
    return %c0_i32, %c0_i32_0 : i32, i32
  }
  func.func @transform_9(%arg0: i32, %arg1: i32) -> (i32, i32) {
    %c0_i32 = arith.constant 0 : i32
    %c0_i32_0 = arith.constant 0 : i32
    %c0_i32_1 = arith.constant 0 : i32
    return %c0_i32, %c0_i32_0 : i32, i32
  }
  func.func @transform_10(%arg0: i32, %arg1: i32) -> (i32, i32) {
    %c0_i32 = arith.constant 0 : i32
    %c0_i32_0 = arith.constant 0 : i32
    return %arg0, %c0_i32 : i32, i32
  }
}

</mosaic_0001>

<bundles_post_ra>
// kernel: roberta_lstm_head.1
= control target key start
LH: loop header
LB: loop body
LE: loop exit
PB: predicated region body
PF: predicated region fallthrough
CT: control target
= control target key end

     0   :  { %s8694_s13 = smov 0   ;;  %s8696_s14 = smov 0   ;;  %s17615_s0 = inlined_call_operand.vmem [shape: f32[8,16,32], index: 0, kind: input, shape index: {}]   ;;  %s17616_s1 = inlined_call_operand.vmem [shape: f32[32,512], index: 1, kind: input, shape index: {}]   ;;  %s17617_s2 = inlined_call_operand.vmem [shape: f32[128,512], index: 2, kind: input, shape index: {}]   ;;  %s17618_s3 = inlined_call_operand.vmem [shape: f32[1,512], index: 3, kind: input, shape index: {}]   ;;  %s17619_s4 = inlined_call_operand.vmem [shape: f32[32,512], index: 4, kind: input, shape index: {}]   ;;  %s17620_s5 = inlined_call_operand.vmem [shape: f32[1,512], index: 5, kind: input, shape index: {}]   ;;  %s17621_s6 = inlined_call_operand.vmem [shape: f32[256,128], index: 6, kind: input, shape index: {}]   ;;  %s17622_s7 = inlined_call_operand.vmem [shape: f32[1,128], index: 7, kind: input, shape index: {}]   ;;  %s17623_s8 = inlined_call_operand.vmem [shape: f32[128,4], index: 8, kind: input, shape index: {}]   ;;  %s17624_s9 = inlined_call_operand.vmem [shape: f32[1,4], index: 9, kind: input, shape index: {}]   ;;  %s17625_s10 = inlined_call_operand.vmem [shape: f32[8,4], index: 10, kind: output, shape index: {}]  }
   0x1   :  { %s8698_s15 = smov 0   ;;  %s8700_s16 = smov 0  }
   0x2   :  { %s8702_s17 = smov 0  }
   0x3 LB: > { %s29_s18 = sadd.s32 1, %s8632_s16  ;;  %p48_p1 = scmp.ne.s32.totalorder %s8624_s14, %s8620_s13  ;;  %s8636_s17 = sphi %s8702_s17, %s20_s17   ;;  %s8632_s16 = sphi %s8700_s16, %s18912_s16   ;;  %s8628_s15 = sphi %s8698_s15, %s18911_s15   ;;  %s8624_s14 = sphi %s8696_s14, %s18910_s14   ;;  %s8620_s13 = sphi %s8694_s13, %s18909_s13  }
   0x4   : > { %p30_p0 = scmp.ge.s32.totalorder %s29_s18, 2  ;;  %p49_p2 = scmp.eq.s32.totalorder %s8636_s17, 0 }
   0x5   : > { %s41_s20 = sadd.s32 1, %s8624_s14  ;;  %p6954_p5 = scmp.ge.s32.totalorder %s8636_s17, 2 }
   0x6   : > { %s18914_s18 = smov (%p30_p0, %s29_s18), 0  ;;  %p50_p3 = por %p49_p2, %p48_p1 }
   0x7   : > { %s37_s19 = ssub.s32 %s8632_s16, %s18914_s18  ;;  %316 = sbr.rel (%p6954_p5) target bundleno = 24 (0x18), region = 52 }
   0x8   : > { %p39_p4 = scmp.eq.s32.totalorder %s37_s19, 0 }
   0xa   : > { %s8729_s21 = scalar_select %p39_p4, %s8624_s14, %s41_s20  }
   0xc   : > { %319 = sbr.rel (!%p50_p3) target bundleno = 24 (0x18), region = 56  ;;  %s321_s22 = sand.u32 (%p50_p3), 1, %s8624_s14  }
   0xd   : > { %s6956_s23 = sshll.u32 (%p50_p3), %s8632_s16, 3  ;;  %s6955_s24 = sshll.u32 (%p50_p3), %s321_s22, 6 }
   0xe   : > { %s328_s27 = scalar_lea.vmem (%p50_p3), %s17615_s0, %s6956_s23  ;;  %s323_s28 = scalar_lea.vmem (%p50_p3), [#allocation4], %s6955_s24 }
   0xf   : > { %v371_v0 = vld [vmem:[%s328_s27] sm:$0xff] (%p50_p3)  ;;  %v373_v1 = vld [vmem:[%s328_s27 + $0x10] sm:$0xff] (%p50_p3) }
  0x10   : > { %v375_v2 = vld [vmem:[%s328_s27 + $0x20] sm:$0xff] (%p50_p3)  ;;  %372 = vst [vmem:[%s323_s28] sm:$0xff] (%p50_p3), %v371_v0  ;;  %v377_v3 = vld [vmem:[%s328_s27 + $0x30] sm:$0xff] (%p50_p3) }
  0x11   : > { %374 = vst [vmem:[%s323_s28 + $0x8] sm:$0xff] %v373_v1  ;;  %v379_v4 = vld [vmem:[%s328_s27 + $0x40] sm:$0xff]  ;;  %v381_v5 = vld [vmem:[%s328_s27 + $0x50] sm:$0xff] }
  0x12   : > { %376 = vst [vmem:[%s323_s28 + $0x10] sm:$0xff] %v375_v2  ;;  %v383_v6 = vld [vmem:[%s328_s27 + $0x60] sm:$0xff]  ;;  %v385_v7 = vld [vmem:[%s328_s27 + $0x70] sm:$0xff] }
  0x13   : > { %378 = vst [vmem:[%s323_s28 + $0x18] sm:$0xff] %v377_v3 }
  0x14   : > { %380 = vst [vmem:[%s323_s28 + $0x20] sm:$0xff] %v379_v4 }
  0x15   : > { %382 = vst [vmem:[%s323_s28 + $0x28] sm:$0xff] %v381_v5 }
  0x16   : > { %384 = vst [vmem:[%s323_s28 + $0x30] sm:$0xff] %v383_v6 }
  0x17   : > { %386 = vst [vmem:[%s323_s28 + $0x38] sm:$0xff] %v385_v7 }
  0x18 PF: > { %p6957_p6 = scmp.ge.s32.totalorder %s8636_s17, 1  ;;  %p391_p7 = scmp.lt.s32.totalorder %s8636_s17, 3 }
  0x1a   : > { %p392_p8 = pnand %p6957_p6, %p391_p7 }
  0x1c   : > { %395 = sbr.rel (%p392_p8) target bundleno = 2674 (0xa72), region = 94 }
  0x21   : > { %s398_s29 = sand.u32 1, %s8620_s13   ;;  %p6959_p9 = scmp.ne.s32.totalorder %s8628_s15, 0 }
  0x22   : > { %s6958_s30 = sshll.u32 %s398_s29, 6 }
  0x23   : > { %s8740_s11 = scalar_lea.vmem [#allocation4], %s6958_s30  ;;  %442 = sbr.rel (%p6959_p9) target bundleno = 43 (0x2b), region = 102 }
  0x28   : > { %v8638_v8 = vmov 0.0  }
  0x29   : > { %443 = vst [vmem:[#allocation2] sm:$0xff] %v8638_v8 }
  0x2a   : > { %444 = vst [vmem:[#allocation3] sm:$0xff] %v8638_v8 }
  0x2b PF: > { %v465_v9 = vld [vmem:[%s17616_s1 + $0x60] sm:$0xff]  ;;  %v466_v10 = vld [vmem:[%s17616_s1 + $0x68] sm:$0xff]  ;;  %v467_v11 = vld [vmem:[%s17616_s1 + $0x70] sm:$0xff]  ;;  %vm17709_vm0 = vcmask 261120   ;;  %p7184_p10 = scmp.ne.s32.totalorder %s8628_s15, 1 }
  0x2c   : > { %506 = vmatpush.msra.mxu0 %v465_v9  ;;  %547 = vmatpush.msra.mxu1 %v466_v10  ;;  %v468_v12 = vld [vmem:[%s17616_s1 + $0x78] sm:$0xff]  ;;  %v461_v13 = vld [vmem:[%s17616_s1 + $0x40] sm:$0xff]  ;;  %v462_v14 = vld [vmem:[%s17616_s1 + $0x48] sm:$0xff] }
  0x2d   : > { %588 = vmatpush.msra.mxu2 %v467_v11  ;;  %629 = vmatpush.msra.mxu3 %v468_v12  ;;  %v463_v15 = vld [vmem:[%s17616_s1 + $0x50] sm:$0xff]  ;;  %v464_v16 = vld [vmem:[%s17616_s1 + $0x58] sm:$0xff]  ;;  %v457_v17 = vld [vmem:[%s17616_s1 + $0x20] sm:$0xff] }
  0x2e   : > { %507 = vmatpush.msra.mxu0 %v461_v13  ;;  %548 = vmatpush.msra.mxu1 %v462_v14  ;;  %v458_v18 = vld [vmem:[%s17616_s1 + $0x28] sm:$0xff]  ;;  %v459_v19 = vld [vmem:[%s17616_s1 + $0x30] sm:$0xff]  ;;  %v460_v20 = vld [vmem:[%s17616_s1 + $0x38] sm:$0xff] }
  0x2f   : > { %589 = vmatpush.msra.mxu2 %v463_v15  ;;  %630 = vmatpush.msra.mxu3 %v464_v16  ;;  %v453_v21 = vld [vmem:[%s17616_s1] sm:$0xff]  ;;  %v454_v22 = vld [vmem:[%s17616_s1 + $0x8] sm:$0xff]  ;;  %v455_v23 = vld [vmem:[%s17616_s1 + $0x10] sm:$0xff] }
  0x30   : > { %508 = vmatpush.msra.mxu0 %v457_v17  ;;  %549 = vmatpush.msra.mxu1 %v458_v18  ;;  %v456_v24 = vld [vmem:[%s17616_s1 + $0x18] sm:$0xff]  ;;  %v8792_v25 = vld [vmem:[%s8740_s11] sm:$0xff]  ;;  %v8797_v26 = vld [vmem:[%s17617_s2 + $0x1e0] sm:$0xff] }
  0x31   : > { %590 = vmatpush.msra.mxu2 %v459_v19  ;;  %631 = vmatpush.msra.mxu3 %v460_v20  ;;  %17777 = vst [vmem:[#allocation5_spill] sm:$0xff] %v8792_v25  ;;  %v8802_v27 = vld [vmem:[%s17617_s2 + $0x1e8] sm:$0xff]  ;;  %v8811_v28 = vld [vmem:[%s17617_s2 + $0x1f8] sm:$0xff]  ;;  %v8816_v29 = vld [vmem:[%s17617_s2 + $0x1f0] sm:$0xff] }
  0x32   : > { %509 = vmatpush.msra.mxu0 %v453_v21  ;;  %550 = vmatpush.msra.mxu1 %v454_v22  ;;  %v8825_v30 = vld [vmem:[%s17617_s2 + $0x1c0] sm:$0xff]  ;;  %v8830_v31 = vld [vmem:[%s17617_s2 + $0x1c8] sm:$0xff]  ;;  %v8837_v32 = vld [vmem:[%s17617_s2 + $0x1d8] sm:$0xff] }
  0x33   : > { %591 = vmatpush.msra.mxu2 %v455_v23  ;;  %632 = vmatpush.msra.mxu3 %v456_v24  ;;  %v8842_v33 = vld [vmem:[%s17617_s2 + $0x1d0] sm:$0xff]  ;;  %v8848_v34 = vld [vmem:[%s17617_s2 + $0x1a0] sm:$0xff]  ;;  %v8853_v35 = vld [vmem:[%s17617_s2 + $0x1a8] sm:$0xff] }
  0x34   : > { %6960 = vmatmul.msk.f32.vlgmr.msra.gmra.mxu0 %vm17709_vm0, %v8792_v25  ;;  %6968 = vmatmul.msk.f32.vlgmr.msra.gmra.mxu1 %vm17709_vm0, %v8792_v25  ;;  %v8861_v36 = vld [vmem:[%s17617_s2 + $0x1b8] sm:$0xff]  ;;  %v8866_v37 = vld [vmem:[%s17617_s2 + $0x1b0] sm:$0xff]  ;;  %v8878_v39 = vld [vmem:[%s17617_s2 + $0x180] sm:$0xff] }
  0x35   : > { %6976 = vmatmul.msk.f32.vlgmr.msra.gmra.mxu2 %vm17709_vm0, %v8792_v25  ;;  %6984 = vmatmul.msk.f32.vlgmr.msra.gmra.mxu3 %vm17709_vm0, %v8792_v25  ;;  %v8869_v38 = vld [vmem:[%s8740_s11 + $0x8] sm:$0xff]  ;;  %v8883_v40 = vld [vmem:[%s17617_s2 + $0x188] sm:$0xff]  ;;  %v8899_v42 = vld [vmem:[%s17617_s2 + $0x190] sm:$0xff] }
  0x36   : > { %766 = vmatpush.msrb.mxu0 %v8797_v26  ;;  %786 = vmatpush.msrb.mxu1 %v8802_v27  ;;  %17778 = vst [vmem:[#allocation6_spill] sm:$0xff] %v8869_v38  ;;  %v8894_v41 = vld [vmem:[%s17617_s2 + $0x198] sm:$0xff]  ;;  %v8908_v43 = vld [vmem:[%s17617_s2 + $0x160] sm:$0xff]  ;;  %v8913_v44 = vld [vmem:[%s17617_s2 + $0x168] sm:$0xff] }
  0x37   : > { %826 = vmatpush.msrb.mxu3 %v8811_v28  ;;  %806 = vmatpush.msrb.mxu2 %v8816_v29  ;;  %v8920_v45 = vld [vmem:[%s17617_s2 + $0x178] sm:$0xff]  ;;  %v8925_v46 = vld [vmem:[%s17617_s2 + $0x170] sm:$0xff]  ;;  %v8931_v47 = vld [vmem:[%s17617_s2 + $0x140] sm:$0xff] }
  0x38   : > { %767 = vmatpush.msrb.mxu0 %v8825_v30  ;;  %787 = vmatpush.msrb.mxu1 %v8830_v31  ;;  %v8936_v48 = vld [vmem:[%s17617_s2 + $0x148] sm:$0xff]  ;;  %v8944_v49 = vld [vmem:[%s17617_s2 + $0x158] sm:$0xff]  ;;  %v8949_v50 = vld [vmem:[%s17617_s2 + $0x150] sm:$0xff] }
  0x39   : > { %827 = vmatpush.msrb.mxu3 %v8837_v32  ;;  %807 = vmatpush.msrb.mxu2 %v8842_v33  ;;  %v8952_v51 = vld [vmem:[%s8740_s11 + $0x10] sm:$0xff]  ;;  %v8966_v53 = vld [vmem:[%s17617_s2 + $0x128] sm:$0xff]  ;;  %v8977_v54 = vld [vmem:[%s17617_s2 + $0x138] sm:$0xff] }
  0x3a   : > { %768 = vmatpush.msrb.mxu0 %v8848_v34  ;;  %788 = vmatpush.msrb.mxu1 %v8853_v35  ;;  %17779 = vst [vmem:[#allocation7_spill] sm:$0xff] %v8952_v51  ;;  %v8961_v52 = vld [vmem:[%s17617_s2 + $0x120] sm:$0xff]  ;;  %v8982_v55 = vld [vmem:[%s17617_s2 + $0x130] sm:$0xff]  ;;  %v8996_v57 = vld [vmem:[%s17617_s2 + $0x108] sm:$0xff] }
  0x3b   : > { %828 = vmatpush.msrb.mxu3 %v8861_v36  ;;  %808 = vmatpush.msrb.mxu2 %v8866_v37  ;;  %v8991_v56 = vld [vmem:[%s17617_s2 + $0x100] sm:$0xff]  ;;  %v9003_v58 = vld [vmem:[%s17617_s2 + $0x118] sm:$0xff]  ;;  %v9008_v59 = vld [vmem:[%s17617_s2 + $0x110] sm:$0xff] }
  0x3c   : > { %6961 = vmatmul.msk.f32.gmra.mxu0 %vm17709_vm0, %v8869_v38  ;;  %6969 = vmatmul.msk.f32.gmra.mxu1 %vm17709_vm0, %v8869_v38  ;;  %v9014_v60 = vld [vmem:[%s17617_s2 + $0xe0] sm:$0xff]  ;;  %v9019_v61 = vld [vmem:[%s17617_s2 + $0xe8] sm:$0xff]  ;;  %v9027_v62 = vld [vmem:[%s17617_s2 + $0xf8] sm:$0xff] }
  0x3d   : > { %6977 = vmatmul.msk.f32.gmra.mxu2 %vm17709_vm0, %v8869_v38  ;;  %6985 = vmatmul.msk.f32.gmra.mxu3 %vm17709_vm0, %v8869_v38  ;;  %v9032_v63 = vld [vmem:[%s17617_s2 + $0xf0] sm:$0xff]  ;;  %v9035_v0 = vld [vmem:[%s8740_s11 + $0x18] sm:$0xff]  ;;  %v9044_v1 = vld [vmem:[%s17617_s2 + $0xc0] sm:$0xff] }
  0x3e   : > { %769 = vmatpush.msrb.mxu0 %v8878_v39  ;;  %789 = vmatpush.msrb.mxu1 %v8883_v40  ;;  %17780 = vst [vmem:[#allocation8_spill] sm:$0xff] %v9035_v0  ;;  %v9049_v2 = vld [vmem:[%s17617_s2 + $0xc8] sm:$0xff]  ;;  %v9060_v3 = vld [vmem:[%s17617_s2 + $0xd8] sm:$0xff]  ;;  %v9065_v4 = vld [vmem:[%s17617_s2 + $0xd0] sm:$0xff] }
  0x3f   : > { %829 = vmatpush.msrb.mxu3 %v8894_v41  ;;  %809 = vmatpush.msrb.mxu2 %v8899_v42  ;;  %v9074_v5 = vld [vmem:[%s17617_s2 + $0xa0] sm:$0xff]  ;;  %v9079_v6 = vld [vmem:[%s17617_s2 + $0xa8] sm:$0xff]  ;;  %v9086_v7 = vld [vmem:[%s17617_s2 + $0xb8] sm:$0xff] }
  0x40   : > { %770 = vmatpush.msrb.mxu0 %v8908_v43  ;;  %790 = vmatpush.msrb.mxu1 %v8913_v44  ;;  %v9091_v8 = vld [vmem:[%s17617_s2 + $0xb0] sm:$0xff]  ;;  %v9097_v9 = vld [vmem:[%s17617_s2 + $0x80] sm:$0xff]  ;;  %v9102_v10 = vld [vmem:[%s17617_s2 + $0x88] sm:$0xff] }
  0x41   : > { %830 = vmatpush.msrb.mxu3 %v8920_v45  ;;  %810 = vmatpush.msrb.mxu2 %v8925_v46  ;;  %v9110_v11 = vld [vmem:[%s17617_s2 + $0x98] sm:$0xff]  ;;  %v9115_v12 = vld [vmem:[%s17617_s2 + $0x90] sm:$0xff]  ;;  %v9127_v14 = vld [vmem:[%s17617_s2 + $0x60] sm:$0xff] }
  0x42   : > { %771 = vmatpush.msrb.mxu0 %v8931_v47  ;;  %791 = vmatpush.msrb.mxu1 %v8936_v48  ;;  %v9118_v13 = vld [vmem:[%s8740_s11 + $0x20] sm:$0xff]  ;;  %v9132_v15 = vld [vmem:[%s17617_s2 + $0x68] sm:$0xff]  ;;  %v9143_v16 = vld [vmem:[%s17617_s2 + $0x78] sm:$0xff] }
  0x43   : > { %831 = vmatpush.msrb.mxu3 %v8944_v49  ;;  %811 = vmatpush.msrb.mxu2 %v8949_v50  ;;  %17781 = vst [vmem:[#allocation9_spill] sm:$0xff] %v9118_v13  ;;  %v9148_v17 = vld [vmem:[%s17617_s2 + $0x70] sm:$0xff]  ;;  %v9157_v18 = vld [vmem:[%s17617_s2 + $0x40] sm:$0xff]  ;;  %v9162_v19 = vld [vmem:[%s17617_s2 + $0x48] sm:$0xff] }
  0x44   : > { %6962 = vmatmul.msk.f32.gmra.mxu0 %vm17709_vm0, %v8952_v51  ;;  %6970 = vmatmul.msk.f32.gmra.mxu1 %vm17709_vm0, %v8952_v51  ;;  %v9169_v20 = vld [vmem:[%s17617_s2 + $0x58] sm:$0xff]  ;;  %v9174_v21 = vld [vmem:[%s17617_s2 + $0x50] sm:$0xff]  ;;  %v9180_v22 = vld [vmem:[%s17617_s2 + $0x20] sm:$0xff] }
  0x45   : > { %6978 = vmatmul.msk.f32.gmra.mxu2 %vm17709_vm0, %v8952_v51  ;;  %6986 = vmatmul.msk.f32.gmra.mxu3 %vm17709_vm0, %v8952_v51  ;;  %v9185_v23 = vld [vmem:[%s17617_s2 + $0x28] sm:$0xff]  ;;  %v9193_v24 = vld [vmem:[%s17617_s2 + $0x30] sm:$0xff]  ;;  %v9210_v51 = vld [vmem:[%s17617_s2] sm:$0xff] }
  0x46   : > { %772 = vmatpush.msrb.mxu0 %v8961_v52  ;;  %792 = vmatpush.msrb.mxu1 %v8966_v53  ;;  %17782 = vst [vmem:[#allocation10_spill] sm:$0xff] %v9185_v23  ;;  %v9215_v38 = vld [vmem:[%s17617_s2 + $0x8] sm:$0xff]  ;;  %v9226_v25 = vld [vmem:[%s17617_s2 + $0x10] sm:$0xff] }
  0x47   : > { %832 = vmatpush.msrb.mxu3 %v8977_v54  ;;  %812 = vmatpush.msrb.mxu2 %v8982_v55 }
  0x48   : > { %773 = vmatpush.msrb.mxu0 %v8991_v56  ;;  %793 = vmatpush.msrb.mxu1 %v8996_v57 }
  0x49   : > { %833 = vmatpush.msrb.mxu3 %v9003_v58  ;;  %813 = vmatpush.msrb.mxu2 %v9008_v59 }
  0x4a   : > { %774 = vmatpush.msrb.mxu0 %v9014_v60  ;;  %794 = vmatpush.msrb.mxu1 %v9019_v61 }
  0x4b   : > { %834 = vmatpush.msrb.mxu3 %v9027_v62  ;;  %814 = vmatpush.msrb.mxu2 %v9032_v63 }
  0x4c   : > { %6963 = vmatmul.msk.f32.gmra.mxu0 %vm17709_vm0, %v9035_v0  ;;  %6971 = vmatmul.msk.f32.gmra.mxu1 %vm17709_vm0, %v9035_v0 }
  0x4d   : > { %6979 = vmatmul.msk.f32.gmra.mxu2 %vm17709_vm0, %v9035_v0  ;;  %6987 = vmatmul.msk.f32.gmra.mxu3 %vm17709_vm0, %v9035_v0  ;;  %v9201_v0 = vld [vmem:[%s8740_s11 + $0x28] sm:$0xff] }
  0x4e   : > { %775 = vmatpush.msrb.mxu0 %v9044_v1  ;;  %795 = vmatpush.msrb.mxu1 %v9049_v2  ;;  %17784 = vst [vmem:[#allocation12_spill] sm:$0xff] %v9201_v0 }
  0x4f   : > { %835 = vmatpush.msrb.mxu3 %v9060_v3  ;;  %815 = vmatpush.msrb.mxu2 %v9065_v4 }
  0x50   : > { %776 = vmatpush.msrb.mxu0 %v9074_v5  ;;  %796 = vmatpush.msrb.mxu1 %v9079_v6 }
  0x51   : > { %836 = vmatpush.msrb.mxu3 %v9086_v7  ;;  %816 = vmatpush.msrb.mxu2 %v9091_v8 }
  0x52   : > { %777 = vmatpush.msrb.mxu0 %v9097_v9  ;;  %797 = vmatpush.msrb.mxu1 %v9102_v10 }
  0x53   : > { %837 = vmatpush.msrb.mxu3 %v9110_v11  ;;  %817 = vmatpush.msrb.mxu2 %v9115_v12 }
  0x54   : > { %6964 = vmatmul.msk.f32.gmra.mxu0 %vm17709_vm0, %v9118_v13  ;;  %6972 = vmatmul.msk.f32.gmra.mxu1 %vm17709_vm0, %v9118_v13 }
  0x55   : > { %6980 = vmatmul.msk.f32.gmra.mxu2 %vm17709_vm0, %v9118_v13  ;;  %6988 = vmatmul.msk.f32.gmra.mxu3 %vm17709_vm0, %v9118_v13  ;;  %v9198_v13 = vld [vmem:[%s17617_s2 + $0x38] sm:$0xff] }
  0x56   : > { %778 = vmatpush.msrb.mxu0 %v9127_v14  ;;  %798 = vmatpush.msrb.mxu1 %v9132_v15  ;;  %17783 = vst [vmem:[#allocation11_spill] sm:$0xff] %v9198_v13 }
  0x57   : > { %838 = vmatpush.msrb.mxu3 %v9143_v16  ;;  %818 = vmatpush.msrb.mxu2 %v9148_v17 }
  0x58   : > { %779 = vmatpush.msrb.mxu0 %v9157_v18  ;;  %799 = vmatpush.msrb.mxu1 %v9162_v19 }
  0x59   : > { %839 = vmatpush.msrb.mxu3 %v9169_v20  ;;  %819 = vmatpush.msrb.mxu2 %v9174_v21 }
  0x5a   : > { %780 = vmatpush.msrb.mxu0 %v9180_v22  ;;  %800 = vmatpush.msrb.mxu1 %v9185_v23  ;;  %v9231_v23 = vld [vmem:[%s17617_s2 + $0x18] sm:$0xff] }
  0x5b   : > { %820 = vmatpush.msrb.mxu2 %v9193_v24  ;;  %840 = vmatpush.msrb.mxu3 %v9198_v13  ;;  %v9244_v13 = vld [vmem:[%s8740_s11 + $0x30] sm:$0xff] }
  0x5c   : > { %6965 = vmatmul.msk.f32.gmra.mxu0 %vm17709_vm0, %v9201_v0  ;;  %6973 = vmatmul.msk.f32.gmra.mxu1 %vm17709_vm0, %v9201_v0  ;;  %17785 = vst [vmem:[#allocation13_spill] sm:$0xff] %v9244_v13 }
  0x5d   : > { %6981 = vmatmul.msk.f32.gmra.mxu2 %vm17709_vm0, %v9201_v0  ;;  %6989 = vmatmul.msk.f32.gmra.mxu3 %vm17709_vm0, %v9201_v0  ;;  %v9267_v0 = vld [vmem:[%s8740_s11 + $0x38] sm:$0xff] }
  0x5e   : > { %781 = vmatpush.msrb.mxu0 %v9210_v51  ;;  %801 = vmatpush.msrb.mxu1 %v9215_v38  ;;  %17786 = vst [vmem:[#allocation14_spill] sm:$0xff] %v9267_v0 }
  0x5f   : > { %821 = vmatpush.msrb.mxu2 %v9226_v25  ;;  %841 = vmatpush.msrb.mxu3 %v9231_v23 }
  0x60   : > { %1492 = vmatpush.msra.mxu0 %v8797_v26  ;;  %1512 = vmatpush.msra.mxu1 %v8802_v27 }
  0x61   : > { %1532 = vmatpush.msra.mxu2 %v8816_v29  ;;  %1552 = vmatpush.msra.mxu3 %v8811_v28 }
  0x62   : > { %1493 = vmatpush.msra.mxu0 %v8825_v30  ;;  %1513 = vmatpush.msra.mxu1 %v8830_v31 }
  0x63   : > { %1533 = vmatpush.msra.mxu2 %v8842_v33  ;;  %1553 = vmatpush.msra.mxu3 %v8837_v32 }
  0x64   : > { %6966 = vmatmul.msk.f32.gmra.mxu0 %vm17709_vm0, %v9244_v13  ;;  %6974 = vmatmul.msk.f32.gmra.mxu1 %vm17709_vm0, %v9244_v13 }
  0x65   : > { %6982 = vmatmul.msk.f32.gmra.mxu2 %vm17709_vm0, %v9244_v13  ;;  %6990 = vmatmul.msk.f32.gmra.mxu3 %vm17709_vm0, %v9244_v13  ;;  %v764_v13 = vld [vmem:[#allocation2] sm:$0xff] }
  0x66   : > { %1494 = vmatpush.msra.mxu0 %v8848_v34  ;;  %1514 = vmatpush.msra.mxu1 %v8853_v35 }
  0x67   : > { %1534 = vmatpush.msra.mxu2 %v8866_v37  ;;  %1554 = vmatpush.msra.mxu3 %v8861_v36 }
  0x68   : > { %1495 = vmatpush.msra.mxu0 %v8878_v39  ;;  %1515 = vmatpush.msra.mxu1 %v8883_v40 }
  0x69   : > { %1535 = vmatpush.msra.mxu2 %v8899_v42  ;;  %1555 = vmatpush.msra.mxu3 %v8894_v41 }
  0x6a   : > { %1496 = vmatpush.msra.mxu0 %v8908_v43  ;;  %1516 = vmatpush.msra.mxu1 %v8913_v44 }
  0x6b   : > { %1536 = vmatpush.msra.mxu2 %v8925_v46  ;;  %1556 = vmatpush.msra.mxu3 %v8920_v45 }
  0x6c   : > { %6967 = vmatmul.msk.f32.gmra.mxu0 %vm17709_vm0, %v9267_v0  ;;  %6975 = vmatmul.msk.f32.gmra.mxu1 %vm17709_vm0, %v9267_v0 }
  0x6d   : > { %6983 = vmatmul.msk.f32.gmra.mxu2 %vm17709_vm0, %v9267_v0  ;;  %6991 = vmatmul.msk.f32.gmra.mxu3 %vm17709_vm0, %v9267_v0  ;;  %v17788_v0 = vld [vmem:[#allocation11_spill] sm:$0xff] }
  0x6e   : > { %1497 = vmatpush.msra.mxu0 %v8931_v47  ;;  %1517 = vmatpush.msra.mxu1 %v8936_v48 }
  0x6f   : > { %1537 = vmatpush.msra.mxu2 %v8949_v50  ;;  %1557 = vmatpush.msra.mxu3 %v8944_v49 }
  0x70   : > { %1498 = vmatpush.msra.mxu0 %v8961_v52  ;;  %1518 = vmatpush.msra.mxu1 %v8966_v53 }
  0x71   : > { %1538 = vmatpush.msra.mxu2 %v8982_v55  ;;  %1558 = vmatpush.msra.mxu3 %v8977_v54 }
  0x72   : > { %1499 = vmatpush.msra.mxu0 %v8991_v56  ;;  %1519 = vmatpush.msra.mxu1 %v8996_v57 }
  0x73   : > { %1539 = vmatpush.msra.mxu2 %v9008_v59  ;;  %1559 = vmatpush.msra.mxu3 %v9003_v58 }
  0x74   : > { %782 = vmatmul.f32.vlgmr.msrb.gmra.mxu0 %v764_v13  ;;  %802 = vmatmul.f32.vlgmr.msrb.gmra.mxu1 %v764_v13 }
  0x75   : > { %822 = vmatmul.f32.vlgmr.msrb.gmra.mxu2 %v764_v13  ;;  %842 = vmatmul.f32.vlgmr.msrb.gmra.mxu3 %v764_v13  ;;  %v17787_v13 = vld [vmem:[#allocation10_spill] sm:$0xff] }
  0x76   : > { %1500 = vmatpush.msra.mxu0 %v9014_v60  ;;  %1520 = vmatpush.msra.mxu1 %v9019_v61 }
  0x77   : > { %1540 = vmatpush.msra.mxu2 %v9032_v63  ;;  %1560 = vmatpush.msra.mxu3 %v9027_v62 }
  0x78   : > { %1501 = vmatpush.msra.mxu0 %v9044_v1  ;;  %1521 = vmatpush.msra.mxu1 %v9049_v2 }
  0x79   : > { %1541 = vmatpush.msra.mxu2 %v9065_v4  ;;  %1561 = vmatpush.msra.mxu3 %v9060_v3 }
  0x7a   : > { %1502 = vmatpush.msra.mxu0 %v9074_v5  ;;  %1522 = vmatpush.msra.mxu1 %v9079_v6 }
  0x7b   : > { %1542 = vmatpush.msra.mxu2 %v9091_v8  ;;  %1562 = vmatpush.msra.mxu3 %v9086_v7 }
  0x7c   : > { %1503 = vmatpush.msra.mxu0 %v9097_v9  ;;  %1523 = vmatpush.msra.mxu1 %v9102_v10 }
  0x7d   : > { %1543 = vmatpush.msra.mxu2 %v9115_v12  ;;  %1563 = vmatpush.msra.mxu3 %v9110_v11 }
  0x7e   : > { %1504 = vmatpush.msra.mxu0 %v9127_v14  ;;  %1524 = vmatpush.msra.mxu1 %v9132_v15 }
  0x7f   : > { %1544 = vmatpush.msra.mxu2 %v9148_v17  ;;  %1564 = vmatpush.msra.mxu3 %v9143_v16 }
  0x80   : > { %1505 = vmatpush.msra.mxu0 %v9157_v18  ;;  %1525 = vmatpush.msra.mxu1 %v9162_v19 }
  0x81   : > { %1545 = vmatpush.msra.mxu2 %v9174_v21  ;;  %1565 = vmatpush.msra.mxu3 %v9169_v20 }
  0x82   : > { %1506 = vmatpush.msra.mxu0 %v9180_v22  ;;  %1526 = vmatpush.msra.mxu1 %v17787_v13 }
  0x83   : > { %1546 = vmatpush.msra.mxu2 %v9193_v24  ;;  %1566 = vmatpush.msra.mxu3 %v17788_v0 }
  0x84   : > { %1507 = vmatpush.msra.mxu0 %v9210_v51  ;;  %1527 = vmatpush.msra.mxu1 %v9215_v38 }
  0x85   : > { %1547 = vmatpush.msra.mxu2 %v9226_v25  ;;  %1567 = vmatpush.msra.mxu3 %v9231_v23 }
  0x86   : > { %2219 = vmatpush.msrb.mxu0 %v8797_v26  ;;  %2239 = vmatpush.msrb.mxu1 %v8802_v27 }
  0x87   : > { %2259 = vmatpush.msrb.mxu2 %v8816_v29  ;;  %2279 = vmatpush.msrb.mxu3 %v8811_v28 }
  0x88   : > { %2220 = vmatpush.msrb.mxu0 %v8825_v30  ;;  %2240 = vmatpush.msrb.mxu1 %v8830_v31 }
  0x89   : > { %2260 = vmatpush.msrb.mxu2 %v8842_v33  ;;  %2280 = vmatpush.msrb.mxu3 %v8837_v32 }
  0x8a   : > { %2221 = vmatpush.msrb.mxu0 %v8848_v34  ;;  %2241 = vmatpush.msrb.mxu1 %v8853_v35 }
  0x8b   : > { %2261 = vmatpush.msrb.mxu2 %v8866_v37  ;;  %2281 = vmatpush.msrb.mxu3 %v8861_v36 }
  0x8c   : > { %2222 = vmatpush.msrb.mxu0 %v8878_v39  ;;  %2242 = vmatpush.msrb.mxu1 %v8883_v40 }
  0x8d   : > { %2262 = vmatpush.msrb.mxu2 %v8899_v42  ;;  %2282 = vmatpush.msrb.mxu3 %v8894_v41 }
  0x8e   : > { %2223 = vmatpush.msrb.mxu0 %v8908_v43  ;;  %2243 = vmatpush.msrb.mxu1 %v8913_v44 }
  0x8f   : > { %2263 = vmatpush.msrb.mxu2 %v8925_v46  ;;  %2283 = vmatpush.msrb.mxu3 %v8920_v45 }
  0x90   : > { %2224 = vmatpush.msrb.mxu0 %v8931_v47  ;;  %2244 = vmatpush.msrb.mxu1 %v8936_v48  ;;  %v658_v48 = vld [vmem:[%s17618_s3] sm:$0xf] }
  0x91   : > { %2264 = vmatpush.msrb.mxu2 %v8949_v50  ;;  %2284 = vmatpush.msrb.mxu3 %v8944_v49  ;;  %v660_v50 = vperm.slane %v658_v48, 0 }
  0x92   : > { %2225 = vmatpush.msrb.mxu0 %v8961_v52  ;;  %2245 = vmatpush.msrb.mxu1 %v8966_v53 }
  0x93   : > { %2265 = vmatpush.msrb.mxu2 %v8982_v55  ;;  %2285 = vmatpush.msrb.mxu3 %v8977_v54  ;;  %v9432_v55 = vperm.slane %v658_v48, 1 }
  0x94   : > { %2226 = vmatpush.msrb.mxu0 %v8991_v56  ;;  %2246 = vmatpush.msrb.mxu1 %v8996_v57 }
  0x95   : > { %2266 = vmatpush.msrb.mxu2 %v9008_v59  ;;  %2286 = vmatpush.msrb.mxu3 %v9003_v58 }
  0x96   : > { %2227 = vmatpush.msrb.mxu0 %v9014_v60  ;;  %2247 = vmatpush.msrb.mxu1 %v9019_v61 }
  0x97   : > { %2267 = vmatpush.msrb.mxu2 %v9032_v63  ;;  %2287 = vmatpush.msrb.mxu3 %v9027_v62 }
  0x98   : > { %2228 = vmatpush.msrb.mxu0 %v9044_v1  ;;  %2248 = vmatpush.msrb.mxu1 %v9049_v2 }
  0x99   : > { %2268 = vmatpush.msrb.mxu2 %v9065_v4  ;;  %2288 = vmatpush.msrb.mxu3 %v9060_v3 }
  0x9a   : > { %2229 = vmatpush.msrb.mxu0 %v9074_v5  ;;  %2249 = vmatpush.msrb.mxu1 %v9079_v6 }
  0x9b   : > { %2269 = vmatpush.msrb.mxu2 %v9091_v8  ;;  %2289 = vmatpush.msrb.mxu3 %v9086_v7 }
  0x9c   : > { %2230 = vmatpush.msrb.mxu0 %v9097_v9  ;;  %2250 = vmatpush.msrb.mxu1 %v9102_v10 }
  0x9d   : > { %2270 = vmatpush.msrb.mxu2 %v9115_v12  ;;  %2290 = vmatpush.msrb.mxu3 %v9110_v11 }
  0x9e   : > { %2231 = vmatpush.msrb.mxu0 %v9127_v14  ;;  %2251 = vmatpush.msrb.mxu1 %v9132_v15 }
  0x9f   : > { %2271 = vmatpush.msrb.mxu2 %v9148_v17  ;;  %2291 = vmatpush.msrb.mxu3 %v9143_v16  ;;  %v9456_v17 = vperm.slane %v658_v48, 2 }
  0xa0   : > { %2232 = vmatpush.msrb.mxu0 %v9157_v18  ;;  %2252 = vmatpush.msrb.mxu1 %v9162_v19 }
  0xa1   : > { %2272 = vmatpush.msrb.mxu2 %v9174_v21  ;;  %2292 = vmatpush.msrb.mxu3 %v9169_v20 }
  0xa2   : > { %2233 = vmatpush.msrb.mxu0 %v9180_v22  ;;  %2253 = vmatpush.msrb.mxu1 %v17787_v13  ;;  %v9464_v22 = vperm.slane %v658_v48, 3 }
  0xa3   : > { %2273 = vmatpush.msrb.mxu2 %v9193_v24  ;;  %2293 = vmatpush.msrb.mxu3 %v17788_v0 }
  0xa4   : > { %2234 = vmatpush.msrb.mxu0 %v9210_v51  ;;  %2254 = vmatpush.msrb.mxu1 %v9215_v38 }
  0xa5   : > { %2274 = vmatpush.msrb.mxu2 %v9226_v25  ;;  %2294 = vmatpush.msrb.mxu3 %v9231_v23 }
  0xb1   : > { %v511_v26 = vpop.f32.mrf.mxu0  ;;  %v552_v27 = vpop.f32.mrf.mxu1 }
  0xb2   : > { %v9430_v54 = vadd.f32 %v660_v50, %v511_v26  ;;  %v9462_v21 = vadd.f32 %v9432_v55, %v552_v27 }
  0xb4   : > { %17789 = vst [vmem:[#allocation10_spill] sm:$0xff] %v9430_v54 }
  0xb5   : > { %17796 = vst [vmem:[#allocation20_spill] sm:$0xff] %v9462_v21 }
  0xb8   : > { %v9393_v30 = vpop.f32.mrf.mxu2  ;;  %v9397_v33 = vpop.f32.mrf.mxu3 }
  0xb9   : > { %v514_v28 = vpop.f32.mrf.mxu0  ;;  %v9391_v29 = vpop.f32.mrf.mxu1  ;;  %v9476_v27 = vadd.f32 %v9464_v22, %v9397_v33 }
  0xba   : > { %v9434_v56 = vadd.f32 %v660_v50, %v514_v28  ;;  %v9470_v28 = vadd.f32 %v9456_v17, %v9393_v30 }
  0xbb   : > { %17799 = vst [vmem:[#allocation23_spill] sm:$0xff] %v9476_v27 }
  0xbc   : > { %17790 = vst [vmem:[#allocation11_spill] sm:$0xff] %v9434_v56 }
  0xbd   : > { %17797 = vst [vmem:[#allocation21_spill] sm:$0xff] %v9470_v28 }
  0xc0   : > { %v9399_v34 = vpop.f32.mrf.mxu2  ;;  %v9403_v25 = vpop.f32.mrf.mxu3 }
  0xc1   : > { %v517_v31 = vpop.f32.mrf.mxu0  ;;  %v9395_v32 = vpop.f32.mrf.mxu1  ;;  %v9488_v30 = vadd.f32 %v9464_v22, %v9403_v25 }
  0xc2   : > { %v9436_v57 = vadd.f32 %v660_v50, %v517_v31  ;;  %v9492_v48 = vadd.f32 %v9432_v55, %v9395_v32 }
  0xc3   : > { %17802 = vst [vmem:[#allocation26_spill] sm:$0xff] %v9488_v30 }
  0xc4   : > { %17791 = vst [vmem:[#allocation15_spill] sm:$0xff] %v9436_v57 }
  0xc5   : > { %17803 = vst [vmem:[#allocation27_spill] sm:$0xff] %v9492_v48 }
  0xc8   : > { %v9405_v37 = vpop.f32.mrf.mxu2  ;;  %v9409_v40 = vpop.f32.mrf.mxu3 }
  0xc9   : > { %v520_v35 = vpop.f32.mrf.mxu0  ;;  %v9401_v36 = vpop.f32.mrf.mxu1  ;;  %v9496_v33 = vadd.f32 %v9456_v17, %v9405_v37  ;;  %v9504_v25 = vadd.f32 %v9464_v22, %v9409_v40 }
  0xca   : > { %v9438_v58 = vadd.f32 %v660_v50, %v520_v35  ;;  %v9508_v32 = vadd.f32 %v9432_v55, %v9401_v36 }
  0xcb   : > { %17804 = vst [vmem:[#allocation28_spill] sm:$0xff] %v9496_v33 }
  0xcc   : > { %17792 = vst [vmem:[#allocation16_spill] sm:$0xff] %v9438_v58 }
  0xcd   : > { %17805 = vst [vmem:[#allocation29_spill] sm:$0xff] %v9504_v25 }
  0xce   : > { %17806 = vst [vmem:[#allocation30_spill] sm:$0xff] %v9508_v32 }
  0xd0   : > { %v9411_v41 = vpop.f32.mrf.mxu2  ;;  %v9415_v45 = vpop.f32.mrf.mxu3 }
  0xd1   : > { %v523_v38 = vpop.f32.mrf.mxu0  ;;  %v9407_v39 = vpop.f32.mrf.mxu1 }
  0xd2   : > { %v9440_v59 = vadd.f32 %v660_v50, %v523_v38  ;;  %v9480_v38 = vadd.f32 %v9432_v55, %v9391_v29 }
  0xd4   : > { %17793 = vst [vmem:[#allocation17_spill] sm:$0xff] %v9440_v59 }
  0xd5   : > { %17800 = vst [vmem:[#allocation24_spill] sm:$0xff] %v9480_v38 }
  0xd8   : > { %v9417_v46 = vpop.f32.mrf.mxu2  ;;  %v9424_v51 = vpop.f32.mrf.mxu3 }
  0xd9   : > { %v526_v42 = vpop.f32.mrf.mxu0  ;;  %v9413_v43 = vpop.f32.mrf.mxu1 }
  0xda   : > { %v9442_v1 = vadd.f32 %v660_v50, %v526_v42  ;;  %v9484_v42 = vadd.f32 %v9456_v17, %v9399_v34 }
  0xdc   : > { %17794 = vst [vmem:[#allocation18_spill] sm:$0xff] %v9442_v1 }
  0xdd   : > { %17801 = vst [vmem:[#allocation25_spill] sm:$0xff] %v9484_v42 }
  0xe0   : > { %v9426_v52 = vpop.f32.mrf.mxu2  ;;  %v9451_v11 = vpop.f32.mrf.mxu3 }
  0xe1   : > { %v529_v44 = vpop.f32.mrf.mxu0  ;;  %v9419_v47 = vpop.f32.mrf.mxu1 }
  0xe2   : > { %v9449_v9 = vadd.f32 %v660_v50, %v529_v44 }
  0xe4   : > { %17795 = vst [vmem:[#allocation19_spill] sm:$0xff] %v9449_v9 }
  0xe8   : > { %v9453_v12 = vpop.f32.mrf.mxu2 }
  0xe9   : > { %v532_v49 = vpop.f32.mrf.mxu0  ;;  %v9428_v53 = vpop.f32.mrf.mxu1 }
  0xea   : > { %v9472_v31 = vadd.f32 %v660_v50, %v532_v49 }
  0xec   : > { %17798 = vst [vmem:[#allocation22_spill] sm:$0xff] %v9472_v31 }
  0xf1   : > { %v783_v60 = vpop.f32.mrf.mxu0  ;;  %v9459_v20 = vpop.f32.mrf.mxu1 }
  0xf2   : > { %v850_v61 = vrot.slane %v783_v60, 1  ;;  %v854_v62 = vrot.slane %v783_v60, 2  ;;  %v858_v63 = vrot.slane %v783_v60, 3  ;;  %v862_v0 = vrot.slane %v783_v60, 4 }
  0xf3   : > { %v866_v2 = vrot.slane %v783_v60, 5  ;;  %v870_v3 = vrot.slane %v783_v60, 6  ;;  %v910_v4 = vadd.f32 %v783_v60, %v9430_v54  ;;  %v874_v24 = vrot.slane %v783_v60, 7 }
  0xf4   : > { %v914_v5 = vadd.f32 %v850_v61, %v9434_v56  ;;  %v918_v6 = vadd.f32 %v854_v62, %v9436_v57  ;;  %v922_v7 = vadd.f32 %v858_v63, %v9438_v58  ;;  %v926_v8 = vadd.f32 %v862_v0, %v9440_v59  ;;  %v652_v0 = vpop.f32.mrf.mxu3 }
  0xf5   : > { %v6992_v10 = vmul.f32 -1.442695, %v910_v4  ;;  %v930_v14 = vadd.f32 %v866_v2, %v9442_v1  ;;  %v934_v18 = vadd.f32 %v870_v3, %v9449_v9  ;;  %v911_v26 = vadd.f32 %v9459_v20, %v9462_v21  ;;  %v614_v2 = vpop.f32.mrf.mxu2 }
  0xf6   : > { %v6993_v15 = vmul.f32 -1.442695, %v914_v5  ;;  %v6994_v16 = vmul.f32 -1.442695, %v918_v6  ;;  %v6995_v19 = vmul.f32 -1.442695, %v922_v7  ;;  %v938_v29 = vadd.f32 %v874_v24, %v9472_v31 }
  0xf7   : > { %7234 = vpow2.f32 %v6992_v10  ;;  %v6996_v23 = vmul.f32 -1.442695, %v926_v8  ;;  %v6997_v13 = vmul.f32 -1.442695, %v930_v14  ;;  %v6998_v35 = vmul.f32 -1.442695, %v934_v18 }
  0xf8   : > { %7236 = vpow2.f32 %v6993_v15  ;;  %v851_v50 = vrot.slane %v9459_v20, 1  ;;  %v7000_v60 = vmul.f32 -1.442695, %v911_v26  ;;  %v9514_v62 = vadd.f32 %v9456_v17, %v9411_v41 }
  0xf9   : > { %7238 = vpow2.f32 %v6994_v16  ;;  %v9518_v63 = vadd.f32 %v9464_v22, %v9415_v45  ;;  %v855_v40 = vrot.slane %v9459_v20, 2  ;;  %v9524_v3 = vadd.f32 %v9432_v55, %v9407_v39 }
  0xfa   : > { %7240 = vpow2.f32 %v6995_v19  ;;  %17807 = vst [vmem:[#allocation31_spill] sm:$0xff] %v9514_v62  ;;  %v9528_v4 = vadd.f32 %v9456_v17, %v9417_v46  ;;  %v9532_v41 = vadd.f32 %v9464_v22, %v9424_v51  ;;  %v9536_v45 = vadd.f32 %v9432_v55, %v9413_v43 }
  0xfb   : > { %7242 = vpow2.f32 %v6996_v23  ;;  %17808 = vst [vmem:[#allocation32_spill] sm:$0xff] %v9518_v63  ;;  %v6999_v6 = vmul.f32 -1.442695, %v938_v29  ;;  %v859_v7 = vrot.slane %v9459_v20, 3  ;;  %v915_v8 = vadd.f32 %v851_v50, %v9480_v38 }
  0xfc   : > { %7244 = vpow2.f32 %v6997_v13  ;;  %17809 = vst [vmem:[#allocation33_spill] sm:$0xff] %v9524_v3  ;;  %v863_v46 = vrot.slane %v9459_v20, 4  ;;  %v867_v51 = vrot.slane %v9459_v20, 5  ;;  %v9547_v43 = vadd.f32 %v9456_v17, %v9426_v52 }
  0xfd   : > { %v7235_v44 = vpop.eup %7234  ;;  %7246 = vpow2.f32 %v6998_v35  ;;  %17810 = vst [vmem:[#allocation34_spill] sm:$0xff] %v9528_v4  ;;  %v9551_v14 = vadd.f32 %v9464_v22, %v9451_v11  ;;  %v919_v16 = vadd.f32 %v855_v40, %v9492_v48  ;;  %v9558_v19 = vadd.f32 %v9432_v55, %v9419_v47 }
  0xfe   : > { %v7237_v49 = vpop.eup %7236  ;;  %v9499_v34 = vadd.f32 1.0, %v7235_v44  ;;  %17811 = vst [vmem:[#allocation35_spill] sm:$0xff] %v9532_v41  ;;  %v9562_v23 = vadd.f32 %v9456_v17, %v9453_v12  ;;  %v871_v52 = vrot.slane %v9459_v20, 6  ;;  %v875_v11 = vrot.slane %v9459_v20, 7 }
  0xff   : > { %v9510_v37 = vadd.f32 1.0, %v7237_v49  ;;  %v7239_v61 = vpop.eup %7238  ;;  %17812 = vst [vmem:[#allocation36_spill] sm:$0xff] %v9536_v45  ;;  %v923_v26 = vadd.f32 %v859_v7, %v9508_v32  ;;  %v7001_v35 = vmul.f32 -1.442695, %v915_v8  ;;  %v927_v47 = vadd.f32 %v863_v46, %v9524_v3  ;;  %v823_v7 = vpop.f32.mrf.mxu2 }
 0x100   : > { %7248 = vrcp.f32 %v9499_v34  ;;  %v7241_v36 = vpop.eup %7240  ;;  %v9540_v39 = vadd.f32 1.0, %v7239_v61  ;;  %17813 = vst [vmem:[#allocation37_spill] sm:$0xff] %v9547_v43  ;;  %v931_v12 = vadd.f32 %v867_v51, %v9536_v45  ;;  %v9578_v49 = vadd.f32 %v9432_v55, %v9428_v53  ;;  %v655_v55 = vpop.f32.mrf.mxu3 }
 0x101   : > { %v7243_v5 = vpop.eup %7242  ;;  %7250 = vpow2.f32 %v7000_v60  ;;  %17814 = vst [vmem:[#allocation38_spill] sm:$0xff] %v9551_v14  ;;  %v9553_v15 = vadd.f32 1.0, %v7241_v36  ;;  %v7002_v20 = vmul.f32 -1.442695, %v919_v16  ;;  %v9586_v61 = vadd.f32 %v9464_v22, %v652_v0 }
 0x102   : > { %7252 = vrcp.f32 %v9510_v37  ;;  %v7245_v10 = vpop.eup %7244  ;;  %17815 = vst [vmem:[#allocation39_spill] sm:$0xff] %v9558_v19  ;;  %v9564_v24 = vadd.f32 1.0, %v7243_v5  ;;  %v935_v36 = vadd.f32 %v871_v52, %v9558_v19  ;;  %v9593_v53 = vadd.f32 %v9456_v17, %v614_v2 }
 0x103   : > { %v7247_v18 = vpop.eup %7246  ;;  %17816 = vst [vmem:[#allocation40_spill] sm:$0xff] %v9562_v23  ;;  %7254 = vpow2.f32 %v6999_v6  ;;  %v9571_v44 = vadd.f32 1.0, %v7245_v10  ;;  %v939_v5 = vadd.f32 %v875_v11, %v9578_v49  ;;  %v7003_v6 = vmul.f32 -1.442695, %v923_v26 }
 0x104   : > { %7256 = vrcp.f32 %v9540_v39  ;;  %17817 = vst [vmem:[#allocation41_spill] sm:$0xff] %v9578_v49  ;;  %v9588_v40 = vadd.f32 1.0, %v7247_v18  ;;  %v9597_v8 = vadd.f32 %v9464_v22, %v655_v55  ;;  %v7004_v0 = vmul.f32 -1.442695, %v927_v47 }
 0x105   : > { %7258 = vrcp.f32 %v9553_v15  ;;  %17818 = vst [vmem:[#allocation42_spill] sm:$0xff] %v9586_v61  ;;  %v7005_v46 = vmul.f32 -1.442695, %v931_v12  ;;  %v7006_v18 = vmul.f32 -1.442695, %v935_v36  ;;  %v852_v52 = vrot.slane %v823_v7, 1 }
 0x106   : > { %v9567_v13 = vpop.eup %7248  ;;  %7260 = vrcp.f32 %v9564_v24  ;;  %17819 = vst [vmem:[#allocation43_spill] sm:$0xff] %v9593_v53  ;;  %v856_v22 = vrot.slane %v823_v7, 2  ;;  %v7007_v26 = vmul.f32 -1.442695, %v939_v5  ;;  %v864_v47 = vrot.slane %v823_v7, 4 }
 0x107   : > { %v7251_v29 = vpop.eup %7250  ;;  %v975_v50 = vmul.f32 %v9567_v13, %v9499_v34  ;;  %7262 = vpow2.f32 %v7001_v35  ;;  %17820 = vst [vmem:[#allocation44_spill] sm:$0xff] %v9597_v8  ;;  %v860_v35 = vrot.slane %v823_v7, 3  ;;  %v9613_v36 = vadd.f32 %v823_v7, %v9470_v28 }
 0x108   : > { %v9583_v60 = vpop.eup %7252  ;;  %7264 = vrcp.f32 %v9571_v44  ;;  %v9602_v17 = vadd.f32 1.0, %v7251_v29  ;;  %v876_v29 = vrot.slane %v823_v7, 7  ;;  %vm980_vm1 = vweird.f32 %v9567_v13 }
 0x109   : > { %v7255_v51 = vpop.eup %7254  ;;  %v976_v10 = vsub.f32 1.0, %v975_v50  ;;  %v990_v16 = vmul.f32 %v9583_v60, %v9510_v37  ;;  %7266 = vpow2.f32 %v7002_v20  ;;  %v868_v50 = vrot.slane %v823_v7, 5 }
 0x10a   : > { %v9604_v2 = vpop.eup %7256  ;;  %7268 = vrcp.f32 %v9588_v40  ;;  %v872_v20 = vrot.slane %v823_v7, 6  ;;  %v9618_v5 = vadd.f32 1.0, %v7255_v51  ;;  %v9629_v7 = vadd.f32 %v860_v35, %v9514_v62 }
 0x10b   : > { %v9607_v11 = vpop.eup %7258  ;;  %7270 = vpow2.f32 %v7003_v6  ;;  %v991_v49 = vsub.f32 1.0, %v990_v16  ;;  %v977_v19 = vmul.f32 %v9567_v13, %v976_v10  ;;  %v9621_v6 = vadd.f32 %v852_v52, %v9484_v42 }
 0x10c   : > { %v9609_v12 = vpop.eup %7260  ;;  %7272 = vpow2.f32 %v7004_v0  ;;  %v9624_v0 = vadd.f32 %v856_v22, %v9496_v33  ;;  %v1005_v16 = vmul.f32 %v9604_v2, %v9540_v39  ;;  %v9632_v10 = vadd.f32 %v864_v47, %v9528_v4 }
 0x10d   : > { %v7263_v55 = vpop.eup %7262  ;;  %7274 = vrcp.f32 %v9602_v17  ;;  %v1137_v52 = vand.u32 2147483648, %v9602_v17  ;;  %v9640_v22 = vadd.f32 %v868_v50, %v9547_v43  ;;  %v978_v42 = vadd.f32 %v9567_v13, %v977_v19 }
 0x10e   : > { %v9616_v45 = vpop.eup %7264  ;;  %7276 = vpow2.f32 %v7005_v46  ;;  %v9636_v46 = vadd.f32 1.0, %v7263_v55  ;;  %v992_v35 = vmul.f32 %v9583_v60, %v991_v49  ;;  %v9650_v55 = vadd.f32 %v872_v20, %v9562_v23 }
 0x10f   : > { %v7267_v3 = vpop.eup %7266  ;;  %7278 = vpow2.f32 %v7006_v18  ;;  %v983_v18 = vand.u32 2147483647, %v9499_v34  ;;  %v9653_v50 = vadd.f32 %v876_v29, %v9593_v53  ;;  %v1006_v19 = vsub.f32 1.0, %v1005_v16 }
 0x110   : > { %v9634_v51 = vpop.eup %7268  ;;  %7280 = vpow2.f32 %v7007_v26  ;;  %v9647_v26 = vadd.f32 1.0, %v7267_v3  ;;  %v9659_v4 = vmul.f32 %v9607_v11, %v9553_v15  ;;  %vm979_vm2 = vweird.f32 %v9499_v34 }
 0x111   : > { %v7271_v33 = vpop.eup %7270  ;;  %7282 = vrcp.f32 %v9618_v5  ;;  %v985_v49 = vand.u32 2147483648, %v9499_v34  ;;  %v9665_v3 = vmul.f32 %v9609_v12, %v9564_v24  ;;  %v9669_v29 = vor.u32 1.1754944e-38, %v1137_v52  ;;  %vm9674_vm3 = vmor %vm979_vm2, %vm980_vm1 }
 0x112   : > { %v7273_v47 = vpop.eup %7272  ;;  %v9667_v20 = vadd.f32 1.0, %v7271_v33  ;;  %7284 = vrcp.f32 %v9636_v46  ;;  %v982_v34 = vsel %vm9674_vm3, %v9567_v13, %v978_v42  ;;  %vm9681_vm4 = vcmp.eq.f32.partialorder %v983_v18, 8.507059e+37 }
 0x113   : > { %v9655_v43 = vpop.eup %7274  ;;  %v993_v33 = vadd.f32 %v9583_v60, %v992_v35  ;;  %vm995_vm5 = vweird.f32 %v9583_v60  ;;  %v9687_v28 = vadd.f32 1.0, %v7273_v47  ;;  %v1152_v48 = vand.u32 2147483648, %v9636_v46 }
 0x114   : > { %v7277_v62 = vpop.eup %7276  ;;  %v1127_v32 = vmul.f32 %v9655_v43, %v9602_v17  ;;  %7286 = vrcp.f32 %v9647_v26  ;;  %v986_v42 = vor.u32 1.1754944e-38, %v985_v49  ;;  %v998_v13 = vand.u32 2147483647, %v9510_v37 }
 0x115   : > { %v7279_v53 = vpop.eup %7278  ;;  %v9693_v16 = vadd.f32 1.0, %v7277_v62  ;;  %v1007_v18 = vmul.f32 %v9604_v2, %v1006_v19  ;;  %7288 = vrcp.f32 %v9667_v20  ;;  %vm994_vm6 = vweird.f32 %v9510_v37  ;;  %v9718_v19 = vpop.f32.mrf.mxu3 }
 0x116   : > { %v7281_v52 = vpop.eup %7280  ;;  %v9699_v38 = vadd.f32 1.0, %v7279_v53  ;;  %v1000_v47 = vand.u32 2147483648, %v9510_v37  ;;  %v9710_v49 = vsel %vm9681_vm4, %v986_v42, %v982_v34  ;;  %vm9714_vm7 = vmor %vm994_vm6, %vm995_vm5  ;;  %v1128_v37 = vsub.f32 1.0, %v1127_v32 }
 0x117   : > { %v9697_v35 = vpop.eup %7282  ;;  %v9706_v31 = vadd.f32 1.0, %v7281_v52  ;;  %v9722_v21 = vor.u32 1.1754944e-38, %v1152_v48  ;;  %7290 = vrcp.f32 %v9687_v28  ;;  %v997_v23 = vsel %vm9714_vm7, %v9583_v60, %v993_v33 }
 0x118   : > { %v9720_v9 = vpop.eup %7284  ;;  %7292 = vrcp.f32 %v9693_v16  ;;  %vm999_vm8 = vcmp.eq.f32.partialorder %v998_v13, 8.507059e+37  ;;  %v9730_v34 = vadd.f32 %v9604_v2, %v1007_v18  ;;  %vm1010_vm9 = vweird.f32 %v9604_v2 }
 0x119   : > { %17825 = vst [vmem:[#allocation45_spill] sm:$0xff] %v9706_v31  ;;  %vm1131_vm10 = vweird.f32 %v9602_v17  ;;  %7294 = vrcp.f32 %v9699_v38  ;;  %v1001_v48 = vor.u32 1.1754944e-38, %v1000_v47  ;;  %vm1009_vm11 = vweird.f32 %v9540_v39 }
 0x11a   : > { %v9733_v52 = vpop.eup %7286  ;;  %v853_v32 = vrot.slane %v9718_v19, 1  ;;  %vm1132_vm12 = vweird.f32 %v9655_v43  ;;  %v1142_v60 = vmul.f32 %v9720_v9, %v9636_v46  ;;  %7296 = vrcp.f32 %v9706_v31  ;;  %vm9749_vm13 = vmor %vm1009_vm11, %vm1010_vm9 }
 0x11b   : > { %v857_v33 = vrot.slane %v9718_v19, 2  ;;  %v9744_v42 = vpop.eup %7288  ;;  %v1129_v13 = vmul.f32 %v9655_v43, %v1128_v37  ;;  %v9747_v18 = vsel %vm999_vm8, %v1001_v48, %v997_v23  ;;  %v1013_v53 = vand.u32 2147483647, %v9540_v39  ;;  %vm9800_vm15 = vmor %vm1131_vm10, %vm1132_vm12 }
 0x11c   : > { %v861_v62 = vrot.slane %v9718_v19, 3  ;;  %v1157_v1 = vmul.f32 %v9733_v52, %v9647_v26  ;;  %v1012_v59 = vsel %vm9749_vm13, %v9604_v2, %v9730_v34  ;;  %v865_v37 = vrot.slane %v9718_v19, 4 }
 0x11d   : > { %v913_v23 = vadd.f32 %v9718_v19, %v9476_v27  ;;  %v9764_v48 = vpop.eup %7290  ;;  %v1015_v58 = vand.u32 2147483648, %v9540_v39  ;;  %7298 = vtanh.f32 %v9613_v36  ;;  %v869_v57 = vrot.slane %v9718_v19, 5 }
 0x11e   : > { %v917_v54 = vadd.f32 %v853_v32, %v9488_v30  ;;  %v9770_v56 = vpop.eup %7292  ;;  %v1143_v31 = vsub.f32 1.0, %v1142_v60  ;;  %v9774_v2 = vmul.f32 %v9744_v42, %v9667_v20  ;;  %7300 = vtanh.f32 %v9621_v6 }
 0x11f   : > { %v921_v34 = vadd.f32 %v857_v33, %v9504_v25  ;;  %v9778_v47 = vpop.eup %7294  ;;  %vm9780_vm14 = vcmp.eq.f32.partialorder %v1013_v53, 8.507059e+37  ;;  %v1130_v36 = vadd.f32 %v9655_v43, %v1129_v13  ;;  %7302 = vtanh.f32 %v9624_v0 }
 0x120   : > { %v873_v32 = vrot.slane %v9718_v19, 6  ;;  %v925_v60 = vadd.f32 %v861_v62, %v9518_v63  ;;  %v9788_v30 = vpop.eup %7296  ;;  %v1135_v6 = vand.u32 2147483647, %v9602_v17  ;;  %7304 = vtanh.f32 %v9629_v7 }
 0x121   : > { %v929_v33 = vadd.f32 %v865_v37, %v9532_v41  ;;  %v7008_v53 = vmul.f32 -1.442695, %v913_v23  ;;  %7306 = vtanh.f32 %v9632_v10  ;;  %v877_v25 = vrot.slane %v9718_v19, 7 }
 0x122   : > { %v933_v13 = vadd.f32 %v869_v57, %v9551_v14  ;;  %v7009_v0 = vmul.f32 -1.442695, %v917_v54  ;;  %v1158_v63 = vsub.f32 1.0, %v1157_v1  ;;  %v9806_v7 = vmul.f32 %v9764_v48, %v9687_v28 }
 0x123   : > { %7308 = vtanh.f32 %v9640_v22  ;;  %v7010_v10 = vmul.f32 -1.442695, %v921_v34  ;;  %v7299_v19 = vpop.eup %7298  ;;  %v1134_v54 = vsel %vm9800_vm15, %v9655_v43, %v1130_v36  ;;  %v937_v57 = vadd.f32 %v873_v32, %v9586_v61  ;;  %v9823_v36 = vld [vmem:[#allocation3] sm:$0xff] }
 0x124   : > { %7310 = vtanh.f32 %v9650_v55  ;;  %v7011_v17 = vmul.f32 -1.442695, %v925_v60  ;;  %v7301_v37 = vpop.eup %7300  ;;  %v9815_v1 = vmul.f32 %v9720_v9, %v1143_v31  ;;  %v1016_v23 = vor.u32 1.1754944e-38, %v1015_v58 }
 0x125   : > { %7312 = vpow2.f32 %v7008_v53  ;;  %v7012_v14 = vmul.f32 -1.442695, %v929_v33  ;;  %v9817_v41 = vpop.eup %7302  ;;  %vm1136_vm1 = vcmp.eq.f32.partialorder %v1135_v6, 8.507059e+37  ;;  %v941_v22 = vadd.f32 %v877_v25, %v9597_v8 }
 0x126   : > { %7314 = vpow2.f32 %v7009_v0  ;;  %v7013_v34 = vmul.f32 -1.442695, %v933_v13  ;;  %v9820_v43 = vpop.eup %7304  ;;  %v1173_v55 = vsub.f32 1.0, %v9774_v2  ;;  %v1139_v32 = vsel %vm1136_vm1, %v9669_v29, %v1134_v54 }
 0x127   : > { %7316 = vpow2.f32 %v7010_v10  ;;  %v1050_v58 = vmul.f32 %v9616_v45, %v9571_v44  ;;  %v9828_v31 = vpop.eup %7306  ;;  %v9831_v60 = vmul.f32 %v9733_v52, %v1158_v63  ;;  %v7014_v25 = vmul.f32 -1.442695, %v937_v57 }
 0x128   : > { %7318 = vpow2.f32 %v7011_v17  ;;  %v17834_v6 = vsub.f32 1.0, %v9659_v4  ;;  %v9841_v29 = vsel %vm9780_vm14, %v1016_v23, %v1012_v59  ;;  %v17835_v0 = vsub.f32 1.0, %v9665_v3 }
 0x129   : > { %v9836_v53 = vpop.eup %7308  ;;  %7320 = vpow2.f32 %v7012_v14  ;;  %v1422_v10 = vmul.f32 %v1139_v32, %v9823_v36  ;;  %v1430_v4 = vmul.f32 %v7299_v19, %v9710_v49  ;;  %v7015_v54 = vmul.f32 -1.442695, %v941_v22 }
 0x12a   : > { %v1022_v33 = vmul.f32 %v9607_v11, %v17834_v6  ;;  %v1037_v63 = vmul.f32 %v9609_v12, %v17835_v0  ;;  %v9846_v62 = vpop.eup %7310  ;;  %7322 = vpow2.f32 %v7013_v34  ;;  %v9852_v39 = vmul.f32 %v7301_v37, %v9747_v18 }
 0x12b   : > { %v7313_v57 = vpop.eup %7312  ;;  %7324 = vtanh.f32 %v9653_v50  ;;  %v1028_v59 = vand.u32 2147483647, %v9553_v15  ;;  %v1051_v14 = vsub.f32 1.0, %v1050_v58  ;;  %vm1025_vm2 = vweird.f32 %v9607_v11 }
 0x12c   : > { %v7315_v3 = vpop.eup %7314  ;;  %7326 = vpow2.f32 %v7014_v25  ;;  %v1023_v17 = vadd.f32 %v9607_v11, %v1022_v33  ;;  %v1030_v23 = vand.u32 2147483648, %v9553_v15  ;;  %v1038_v19 = vadd.f32 %v9609_v12, %v1037_v63 }
 0x12d   : > { %v7317_v49 = vpop.eup %7316  ;;  %vm1040_vm3 = vweird.f32 %v9609_v12  ;;  %v1043_v50 = vand.u32 2147483647, %v9564_v24  ;;  %v1065_v18 = vmul.f32 %v9634_v51, %v9588_v40  ;;  %v9863_v22 = vadd.f32 %v1430_v4, %v1422_v10 }
 0x12e   : > { %v7319_v37 = vpop.eup %7318  ;;  %7328 = vpow2.f32 %v7015_v54  ;;  %v9865_v34 = vadd.f32 1.0, %v7313_v57  ;;  %vm1024_vm4 = vweird.f32 %v9553_v15  ;;  %v9868_v58 = vadd.f32 1.0, %v7315_v3 }
 0x12f   : > { %17836 = vst [vmem:[#allocation46_spill] sm:$0xff] %v9863_v22  ;;  %v7321_v32 = vpop.eup %7320  ;;  %vm9870_vm5 = vmor %vm1024_vm4, %vm1025_vm2  ;;  %vm9874_vm6 = vcmp.eq.f32.partialorder %v1028_v59, 8.507059e+37  ;;  %vm1039_vm7 = vweird.f32 %v9564_v24  ;;  %v1052_v33 = vmul.f32 %v9616_v45, %v1051_v14  ;;  %v9880_v63 = vadd.f32 1.0, %v7317_v49 }
 0x130   : > { %v7323_v0 = vpop.eup %7322  ;;  %v1027_v15 = vsel %vm9870_vm5, %v9607_v11, %v1023_v17  ;;  %vm9887_vm8 = vmor %vm1039_vm7, %vm1040_vm3  ;;  %v1045_v4 = vand.u32 2147483648, %v9564_v24  ;;  %v1066_v54 = vsub.f32 1.0, %v1065_v18  ;;  %vm1147_vm9 = vweird.f32 %v9720_v9 }
 0x131   : > { %v9892_v57 = vpop.eup %7324  ;;  %v9895_v59 = vadd.f32 1.0, %v7319_v37  ;;  %v1031_v14 = vor.u32 1.1754944e-38, %v1030_v23  ;;  %v1042_v11 = vsel %vm9887_vm8, %v9609_v12, %v1038_v19  ;;  %vm9900_vm10 = vcmp.eq.f32.partialorder %v1043_v50, 8.507059e+37 }
 0x132   : > { %v7327_v17 = vpop.eup %7326  ;;  %v9904_v49 = vadd.f32 1.0, %v7321_v32  ;;  %7330 = vrcp.f32 %v9865_v34  ;;  %vm1055_vm11 = vweird.f32 %v9616_v45  ;;  %v1080_v24 = vmul.f32 %v9697_v35, %v9618_v5 }
 0x133   : > { %vm1146_vm12 = vweird.f32 %v9636_v46  ;;  %v9911_v23 = vadd.f32 1.0, %v7323_v0  ;;  %7332 = vrcp.f32 %v9868_v58  ;;  %v1053_v12 = vadd.f32 %v9616_v45, %v1052_v33 }
 0x134   : > { %v1060_v19 = vand.u32 2147483648, %v9571_v44  ;;  %v7329_v50 = vpop.eup %7328  ;;  %7334 = vrcp.f32 %v9880_v63  ;;  %v1046_v18 = vor.u32 1.1754944e-38, %v1045_v4  ;;  %vm1054_vm13 = vweird.f32 %v9571_v44  ;;  %vm9986_vm7 = vmor %vm1146_vm12, %vm1147_vm9 }
 0x135   : > { %v1067_v37 = vmul.f32 %v9634_v51, %v1066_v54  ;;  %v9919_v32 = vadd.f32 1.0, %v7327_v17  ;;  %7336 = vrcp.f32 %v9895_v59  ;;  %v1058_v25 = vand.u32 2147483647, %v9571_v44  ;;  %vm9938_vm14 = vmor %vm1054_vm13, %vm1055_vm11  ;;  %v17860_v54 = vld [vmem:[#allocation45_spill] sm:$0xff] }
 0x136   : > { %v1081_v0 = vsub.f32 1.0, %v1080_v24  ;;  %v9925_v33 = vmul.f32 %v9817_v41, %v9841_v29  ;;  %7338 = vrcp.f32 %v9904_v49  ;;  %v9930_v10 = vsel %vm9874_vm6, %v1031_v14, %v1027_v15 }
 0x137   : > { %v9934_v4 = vsel %vm9900_vm10, %v1046_v18, %v1042_v11  ;;  %vm1161_vm15 = vweird.f32 %v9647_v26  ;;  %v9943_v41 = vadd.f32 1.0, %v7329_v50  ;;  %7340 = vrcp.f32 %v9911_v23 }
 0x138   : > { %v1057_v44 = vsel %vm9938_vm14, %v9616_v45, %v1053_v12  ;;  %v1061_v29 = vor.u32 1.1754944e-38, %v1060_v19  ;;  %v9949_v6 = vpop.eup %7330  ;;  %v1068_v15 = vadd.f32 %v9634_v51, %v1067_v37  ;;  %vm1070_vm1 = vweird.f32 %v9634_v51 }
 0x139   : > { %v1073_v14 = vand.u32 2147483647, %v9588_v40  ;;  %v1075_v11 = vand.u32 2147483648, %v9588_v40  ;;  %v9955_v3 = vpop.eup %7332  ;;  %7342 = vrcp.f32 %v9919_v32  ;;  %vm1059_vm2 = vcmp.eq.f32.partialorder %v1058_v25, 8.507059e+37 }
 0x13a   : > { %v1082_v17 = vmul.f32 %v9697_v35, %v1081_v0  ;;  %v1145_v45 = vadd.f32 %v9720_v9, %v9815_v1  ;;  %v9961_v24 = vpop.eup %7334  ;;  %v9963_v12 = vsel %vm1059_vm2, %v1061_v29, %v1057_v44  ;;  %vm1069_vm3 = vweird.f32 %v9588_v40 }
 0x13b   : > { %v1088_v19 = vand.u32 2147483647, %v9618_v5  ;;  %v1090_v50 = vand.u32 2147483648, %v9618_v5  ;;  %v9968_v18 = vpop.eup %7336  ;;  %7344 = vrcp.f32 %v9943_v41  ;;  %vm9973_vm4 = vmor %vm1069_vm3, %vm1070_vm1  ;;  %vm1084_vm5 = vweird.f32 %v9618_v5 }
 0x13c   : > { %vm1085_vm6 = vweird.f32 %v9697_v35  ;;  %v1150_v40 = vand.u32 2147483647, %v9636_v46  ;;  %v9980_v1 = vpop.eup %7338  ;;  %v1072_v0 = vsel %vm9973_vm4, %v9634_v51, %v1068_v15  ;;  %vm9993_vm8 = vcmp.eq.f32.partialorder %v1073_v14, 8.507059e+37 }
 0x13d   : > { %v1076_v44 = vor.u32 1.1754944e-38, %v1075_v11  ;;  %v1174_v29 = vmul.f32 %v9744_v42, %v1173_v55  ;;  %v10000_v13 = vpop.eup %7340  ;;  %v1083_v46 = vadd.f32 %v9697_v35, %v1082_v17  ;;  %v1149_v8 = vsel %vm9986_vm7, %v9720_v9, %v1145_v45  ;;  %vm10022_vm11 = vmor %vm1084_vm5, %vm1085_vm6 }
 0x13e   : > { %v1160_v51 = vadd.f32 %v9733_v52, %v9831_v60  ;;  %vm1162_vm9 = vweird.f32 %v9733_v52  ;;  %vm10009_vm10 = vcmp.eq.f32.partialorder %v1088_v19, 8.507059e+37  ;;  %v1091_v2 = vor.u32 1.1754944e-38, %v1090_v50 }
 0x13f   : > { %v1165_v55 = vand.u32 2147483647, %v9647_v26  ;;  %v1202_v14 = vmul.f32 %v9770_v56, %v9693_v16  ;;  %v10016_v11 = vpop.eup %7342  ;;  %vm1151_vm12 = vcmp.eq.f32.partialorder %v1150_v40, 8.507059e+37  ;;  %v1167_v60 = vand.u32 2147483648, %v9647_v26  ;;  %vm10041_vm13 = vmor %vm1161_vm15, %vm1162_vm9 }
 0x140   : > { %v17857_v17 = vsub.f32 1.0, %v9806_v7  ;;  %v1217_v19 = vmul.f32 %v9778_v47, %v9699_v38  ;;  %v10034_v50 = vsel %vm9993_vm8, %v1076_v44, %v1072_v0  ;;  %v10037_v5 = vsel %vm1151_vm12, %v9722_v21, %v1149_v8 }
 0x141   : > { %v1175_v7 = vadd.f32 %v9744_v42, %v1174_v29  ;;  %vm1177_vm14 = vweird.f32 %v9744_v42  ;;  %v10047_v40 = vpop.eup %7344  ;;  %v1087_v25 = vsel %vm10022_vm11, %v9697_v35, %v1083_v46  ;;  %v1164_v21 = vsel %vm10041_vm13, %v9733_v52, %v1160_v51 }
 0x142   : > { %v1189_v45 = vmul.f32 %v9764_v48, %v17857_v17  ;;  %vm1176_vm1 = vweird.f32 %v9667_v20  ;;  %v1182_v8 = vand.u32 2147483648, %v9667_v20  ;;  %vm1166_vm15 = vcmp.eq.f32.partialorder %v1165_v55, 8.507059e+37 }
 0x143   : > { %v1180_v26 = vand.u32 2147483647, %v9667_v20  ;;  %v1203_v0 = vsub.f32 1.0, %v1202_v14  ;;  %v1232_v44 = vmul.f32 %v9788_v30, %v17860_v54  ;;  %v1168_v29 = vor.u32 1.1754944e-38, %v1167_v60  ;;  %vm10060_vm2 = vmor %vm1176_vm1, %vm1177_vm14 }
 0x144   : > { %v1190_v35 = vadd.f32 %v9764_v48, %v1189_v45  ;;  %vm1192_vm3 = vweird.f32 %v9764_v48  ;;  %v1218_v52 = vsub.f32 1.0, %v1217_v19  ;;  %v10068_v46 = vsel %vm10009_vm10, %v1091_v2, %v1087_v25 }
 0x145   : > { %v1179_v20 = vsel %vm10060_vm2, %v9744_v42, %v1175_v7  ;;  %vm1191_vm4 = vweird.f32 %v9687_v28  ;;  %v1195_v51 = vand.u32 2147483647, %v9687_v28  ;;  %v10075_v55 = vsel %vm1166_vm15, %v1168_v29, %v1164_v21 }
 0x146   : > { %v1183_v14 = vor.u32 1.1754944e-38, %v1182_v8  ;;  %v1197_v9 = vand.u32 2147483648, %v9687_v28  ;;  %v1210_v60 = vand.u32 2147483647, %v9693_v16  ;;  %vm1181_vm5 = vcmp.eq.f32.partialorder %v1180_v26, 8.507059e+37  ;;  %vm10079_vm6 = vmor %vm1191_vm4, %vm1192_vm3 }
 0x147   : > { %v1204_v2 = vmul.f32 %v9770_v56, %v1203_v0  ;;  %v1233_v45 = vsub.f32 1.0, %v1232_v44  ;;  %v1287_v42 = vmul.f32 %v9949_v6, %v9865_v34  ;;  %v1194_v37 = vsel %vm10079_vm6, %v9764_v48, %v1190_v35 }
 0x148   : > { %v10086_v19 = vsel %vm1181_vm5, %v1183_v14, %v1179_v20  ;;  %vm1206_vm7 = vweird.f32 %v9693_v16  ;;  %v1219_v28 = vmul.f32 %v9778_v47, %v1218_v52  ;;  %vm10093_vm8 = vcmp.eq.f32.partialorder %v1195_v51, 8.507059e+37 }
 0x149   : > { %v1212_v25 = vand.u32 2147483648, %v9693_v16  ;;  %v1225_v21 = vand.u32 2147483647, %v9699_v38  ;;  %v1302_v8 = vmul.f32 %v9955_v3, %v9868_v58  ;;  %v1198_v26 = vor.u32 1.1754944e-38, %v1197_v9 }
 0x14a   : > { %vm1207_vm9 = vweird.f32 %v9770_v56  ;;  %vm10102_vm10 = vcmp.eq.f32.partialorder %v1210_v60, 8.507059e+37  ;;  %vm1221_vm11 = vweird.f32 %v9699_v38  ;;  %v1205_v0 = vadd.f32 %v9770_v56, %v1204_v2 }
 0x14b   : > { %vm1222_vm12 = vweird.f32 %v9778_v47  ;;  %v1234_v44 = vmul.f32 %v9788_v30, %v1233_v45  ;;  %v1288_v29 = vsub.f32 1.0, %v1287_v42  ;;  %v1220_v17 = vadd.f32 %v9778_v47, %v1219_v28  ;;  %vm10127_vm14 = vmor %vm1206_vm7, %vm1207_vm9 }
 0x14c   : > { %v1227_v35 = vand.u32 2147483648, %v9699_v38  ;;  %v1303_v52 = vsub.f32 1.0, %v1302_v8  ;;  %v1317_v20 = vmul.f32 %v9961_v24, %v9880_v63  ;;  %v10116_v51 = vsel %vm10093_vm8, %v1198_v26, %v1194_v37  ;;  %vm10141_vm2 = vmor %vm1221_vm11, %vm1222_vm12 }
 0x14d   : > { %v1213_v14 = vor.u32 1.1754944e-38, %v1212_v25  ;;  %vm10118_vm13 = vcmp.eq.f32.partialorder %v1225_v21, 8.507059e+37  ;;  %v1240_v60 = vand.u32 2147483647, %v17860_v54  ;;  %vm1236_vm1 = vweird.f32 %v17860_v54 }
 0x14e   : > { %vm1237_vm15 = vweird.f32 %v9788_v30  ;;  %v1242_v2 = vand.u32 2147483648, %v17860_v54  ;;  %v1318_v45 = vsub.f32 1.0, %v1317_v20  ;;  %v1209_v42 = vsel %vm10127_vm14, %v9770_v56, %v1205_v0 }
 0x14f   : > { %v1235_v37 = vadd.f32 %v9788_v30, %v1234_v44  ;;  %v1289_v28 = vmul.f32 %v9949_v6, %v1288_v29  ;;  %v1332_v7 = vmul.f32 %v9968_v18, %v9895_v59  ;;  %v1224_v25 = vsel %vm10141_vm2, %v9778_v47, %v1220_v17  ;;  %vm10168_vm5 = vmor %vm1236_vm1, %vm1237_vm15 }
 0x150   : > { %v1228_v56 = vor.u32 1.1754944e-38, %v1227_v35  ;;  %v1295_v21 = vand.u32 2147483647, %v9865_v34  ;;  %v1304_v38 = vmul.f32 %v9955_v3, %v1303_v52  ;;  %vm10154_vm3 = vcmp.eq.f32.partialorder %v1240_v60, 8.507059e+37 }
 0x151   : > { %vm1291_vm4 = vweird.f32 %v9865_v34  ;;  %v1297_v26 = vand.u32 2147483648, %v9865_v34  ;;  %v1333_v0 = vsub.f32 1.0, %v1332_v7  ;;  %v10162_v44 = vsel %vm10102_vm10, %v1213_v14, %v1209_v42 }
 0x152   : > { %v1243_v29 = vor.u32 1.1754944e-38, %v1242_v2  ;;  %vm1292_vm6 = vweird.f32 %v9949_v6  ;;  %v1319_v17 = vmul.f32 %v9961_v24, %v1318_v45  ;;  %v10176_v35 = vsel %vm10118_vm13, %v1228_v56, %v1224_v25 }
 0x153   : > { %v1239_v48 = vsel %vm10168_vm5, %v9788_v30, %v1235_v37  ;;  %v1290_v52 = vadd.f32 %v9949_v6, %v1289_v28  ;;  %v1310_v54 = vand.u32 2147483647, %v9868_v58  ;;  %vm10183_vm7 = vcmp.eq.f32.partialorder %v1295_v21, 8.507059e+37  ;;  %vm10202_vm10 = vmor %vm1291_vm4, %vm1292_vm6 }
 0x154   : > { %v1305_v14 = vadd.f32 %v9955_v3, %v1304_v38  ;;  %vm1307_vm8 = vweird.f32 %v9955_v3  ;;  %v1312_v9 = vand.u32 2147483648, %v9868_v58  ;;  %v1298_v60 = vor.u32 1.1754944e-38, %v1297_v26 }
 0x155   : > { %vm1306_vm9 = vweird.f32 %v9868_v58  ;;  %v1334_v15 = vmul.f32 %v9968_v18, %v1333_v0  ;;  %v1347_v30 = vmul.f32 %v9980_v1, %v9904_v49  ;;  %v10196_v2 = vsel %vm10154_vm3, %v1243_v29, %v1239_v48 }
 0x156   : > { %v1320_v42 = vadd.f32 %v9961_v24, %v1319_v17  ;;  %vm1321_vm11 = vweird.f32 %v9880_v63  ;;  %vm1322_vm12 = vweird.f32 %v9961_v24  ;;  %v1294_v58 = vsel %vm10202_vm10, %v9949_v6, %v1290_v52  ;;  %vm10212_vm13 = vmor %vm1306_vm9, %vm1307_vm8 }
 0x157   : > { %vm10216_vm14 = vcmp.eq.f32.partialorder %v1310_v54, 8.507059e+37  ;;  %v1325_v37 = vand.u32 2147483647, %v9880_v63  ;;  %v1327_v28 = vand.u32 2147483648, %v9880_v63  ;;  %v1309_v7 = vsel %vm10212_vm13, %v9955_v3, %v1305_v14  ;;  %vm10227_vm1 = vmor %vm1321_vm11, %vm1322_vm12 }
 0x158   : > { %v1313_v25 = vor.u32 1.1754944e-38, %v1312_v9  ;;  %v1340_v56 = vand.u32 2147483647, %v9895_v59  ;;  %v1342_v6 = vand.u32 2147483648, %v9895_v59  ;;  %v1335_v38 = vadd.f32 %v9968_v18, %v1334_v15 }
 0x159   : > { %vm1337_vm15 = vweird.f32 %v9968_v18  ;;  %v1348_v8 = vsub.f32 1.0, %v1347_v30  ;;  %v1362_v63 = vmul.f32 %v10000_v13, %v9911_v23  ;;  %v10237_v3 = vsel %vm10183_vm7, %v1298_v60, %v1294_v58 }
 0x15a   : > { %v1324_v26 = vsel %vm10227_vm1, %v9961_v24, %v1320_v42  ;;  %vm1336_vm2 = vweird.f32 %v9895_v59  ;;  %v1357_v0 = vand.u32 2147483648, %v9904_v49  ;;  %v10246_v47 = vsel %vm10216_vm14, %v1313_v25, %v1309_v7 }
 0x15b   : > { %vm1326_vm3 = vcmp.eq.f32.partialorder %v1325_v37, 8.507059e+37  ;;  %v1328_v29 = vor.u32 1.1754944e-38, %v1327_v28  ;;  %v1377_v17 = vmul.f32 %v10016_v11, %v9919_v32  ;;  %vm10250_vm4 = vmor %vm1336_vm2, %vm1337_vm15  ;;  %vm10254_vm5 = vcmp.eq.f32.partialorder %v1340_v56, 8.507059e+37 }
 0x15c   : > { %v1343_v59 = vor.u32 1.1754944e-38, %v1342_v6  ;;  %vm1352_vm6 = vweird.f32 %v9980_v1  ;;  %v1355_v24 = vand.u32 2147483647, %v9904_v49  ;;  %v1339_v20 = vsel %vm10250_vm4, %v9968_v18, %v1335_v38 }
 0x15d   : > { %v10260_v54 = vsel %vm1326_vm3, %v1328_v29, %v1324_v26  ;;  %v1349_v14 = vmul.f32 %v9980_v1, %v1348_v8  ;;  %v1363_v9 = vsub.f32 1.0, %v1362_v63  ;;  %vm1351_vm7 = vweird.f32 %v9904_v49 }
 0x15e   : > { %v10267_v60 = vor.u32 1.1754944e-38, %v1357_v0  ;;  %v1392_v15 = vmul.f32 %v10047_v40, %v9943_v41  ;;  %v1407_v30 = vrot.slane %v9823_v36, 1  ;;  %v1408_v45 = vrot.slane %v9823_v36, 2  ;;  %vm10327_vm12 = vmor %vm1351_vm7, %vm1352_vm6 }
 0x15f   : > { %vm1367_vm8 = vweird.f32 %v10000_v13  ;;  %v1370_v42 = vand.u32 2147483647, %v9911_v23  ;;  %v1372_v18 = vand.u32 2147483648, %v9911_v23  ;;  %v1378_v58 = vsub.f32 1.0, %v1377_v17 }
 0x160   : > { %v1409_v16 = vrot.slane %v9823_v36, 3  ;;  %v10279_v34 = vsel %vm10254_vm5, %v1343_v59, %v1339_v20  ;;  %v1410_v37 = vrot.slane %v9823_v36, 4  ;;  %v1411_v28 = vrot.slane %v9823_v36, 5 }
 0x161   : > { %v1412_v7 = vrot.slane %v9823_v36, 6  ;;  %v1350_v25 = vadd.f32 %v9980_v1, %v1349_v14  ;;  %v1364_v56 = vmul.f32 %v10000_v13, %v1363_v9  ;;  %vm1366_vm9 = vweird.f32 %v9911_v23  ;;  %v8270_v23 = vld [vmem:[%s17617_s2 + $0x180] sm:$0xff] }
 0x162   : > { %v1413_v6 = vrot.slane %v9823_v36, 7  ;;  %v1423_v21 = vmul.f32 %v1407_v30, %v10037_v5  ;;  %v1393_v38 = vsub.f32 1.0, %v1392_v15  ;;  %v1424_v8 = vmul.f32 %v1408_v45, %v10075_v55  ;;  %vm10352_vm14 = vmor %vm1366_vm9, %vm1367_vm8  ;;  %v8278_v45 = vld [vmem:[%s17617_s2 + $0x140] sm:$0xff] }
 0x163   : > { %v1425_v63 = vmul.f32 %v1409_v16, %v10086_v19  ;;  %v1426_v26 = vmul.f32 %v1410_v37, %v10116_v51  ;;  %v1379_v0 = vmul.f32 %v10016_v11, %v1378_v58  ;;  %v1427_v29 = vmul.f32 %v1411_v28, %v10162_v44 }
 0x164   : > { %v1428_v17 = vmul.f32 %v1412_v7, %v10176_v35  ;;  %v1433_v48 = vmul.f32 %v9820_v43, %v9930_v10  ;;  %vm10297_vm10 = vcmp.eq.f32.partialorder %v1355_v24, 8.507059e+37  ;;  %v1429_v5 = vmul.f32 %v1413_v6, %v10196_v2  ;;  %v8269_v24 = vld [vmem:[%s17617_s2 + $0x1b8] sm:$0xff] }
 0x165   : > { %v1434_v55 = vmul.f32 %v9828_v31, %v9934_v4  ;;  %v1435_v19 = vmul.f32 %v9836_v53, %v9963_v12  ;;  %v1436_v51 = vmul.f32 %v9846_v62, %v10034_v50  ;;  %v1437_v44 = vmul.f32 %v9892_v57, %v10068_v46  ;;  %v8259_v53 = vld [vmem:[%s17617_s2 + $0x1e8] sm:$0xff] }
 0x166   : > { %v10311_v43 = vadd.f32 %v9852_v39, %v1423_v21  ;;  %v10314_v10 = vadd.f32 %v9925_v33, %v1424_v8  ;;  %v10316_v35 = vadd.f32 %v1433_v48, %v1425_v63  ;;  %vm1381_vm11 = vweird.f32 %v9919_v32 }
 0x167   : > { %v1394_v31 = vmul.f32 %v10047_v40, %v1393_v38  ;;  %v10320_v4 = vadd.f32 %v1434_v55, %v1426_v26  ;;  %7346 = vtanh.f32 %v9863_v22  ;;  %v1365_v62 = vadd.f32 %v10000_v13, %v1364_v56 }
 0x168   : > { %17895 = vst [vmem:[#allocation45_spill] sm:$0xff] %v10314_v10  ;;  %vm1382_vm13 = vweird.f32 %v10016_v11  ;;  %v10333_v39 = vadd.f32 %v1435_v19, %v1427_v29  ;;  %7348 = vtanh.f32 %v10311_v43  ;;  %v1354_v57 = vsel %vm10327_vm12, %v9980_v1, %v1350_v25  ;;  %v8265_v1 = vld [vmem:[%s17617_s2 + $0x1d8] sm:$0xff] }
 0x169   : > { %17896 = vst [vmem:[#allocation47_spill] sm:$0xff] %v10316_v35  ;;  %v1380_v33 = vadd.f32 %v10016_v11, %v1379_v0  ;;  %v10340_v12 = vadd.f32 %v1436_v51, %v1428_v17  ;;  %7350 = vtanh.f32 %v10314_v10  ;;  %v1385_v49 = vand.u32 2147483647, %v9919_v32  ;;  %vm10371_vm2 = vmor %vm1381_vm11, %vm1382_vm13 }
 0x16a   : > { %17897 = vst [vmem:[#allocation48_spill] sm:$0xff] %v10320_v4  ;;  %v1387_v50 = vand.u32 2147483648, %v9919_v32  ;;  %v10345_v46 = vadd.f32 %v1437_v44, %v1429_v5  ;;  %7352 = vtanh.f32 %v10316_v35  ;;  %v1395_v2 = vadd.f32 %v10047_v40, %v1394_v31  ;;  %v8258_v31 = vld [vmem:[%s17617_s2 + $0x1e0] sm:$0xff] }
 0x16b   : > { %17900 = vst [vmem:[#allocation49_spill] sm:$0xff] %v10333_v39  ;;  %vm1397_vm1 = vweird.f32 %v10047_v40  ;;  %v1400_v52 = vand.u32 2147483647, %v9943_v41  ;;  %7354 = vtanh.f32 %v10320_v4  ;;  %v1369_v59 = vsel %vm10352_vm14, %v10000_v13, %v1365_v62  ;;  %v8260_v62 = vld [vmem:[%s17617_s2 + $0x1f0] sm:$0xff] }
 0x16c   : > { %17901 = vst [vmem:[#allocation50_spill] sm:$0xff] %v10340_v12  ;;  %vm10363_vm15 = vcmp.eq.f32.partialorder %v1370_v42, 8.507059e+37  ;;  %v1402_v20 = vand.u32 2147483648, %v9943_v41  ;;  %7356 = vtanh.f32 %v10333_v39  ;;  %v1373_v9 = vor.u32 1.1754944e-38, %v1372_v18  ;;  %v17944_v39 = vld [vmem:[#allocation29_spill] sm:$0xff] }
 0x16d   : > { %17902 = vst [vmem:[#allocation51_spill] sm:$0xff] %v10345_v46  ;;  %v7347_v14 = vpop.eup %7346  ;;  %v1384_v13 = vsel %vm10371_vm2, %v10016_v11, %v1380_v33  ;;  %vm1396_vm3 = vweird.f32 %v9943_v41  ;;  %7358 = vtanh.f32 %v10340_v12  ;;  %v1359_v32 = vsel %vm10297_vm10, %v10267_v60, %v1354_v57  ;;  %v8261_v57 = vld [vmem:[%s17617_s2 + $0x1f8] sm:$0xff]  ;;  %v8262_v33 = vld [vmem:[%s17617_s2 + $0x1c0] sm:$0xff] }
 0x16e   : > { %v7349_v15 = vpop.eup %7348  ;;  %vm1386_vm4 = vcmp.eq.f32.partialorder %v1385_v49, 8.507059e+37  ;;  %v1388_v30 = vor.u32 1.1754944e-38, %v1387_v50  ;;  %vm10387_vm5 = vmor %vm1396_vm3, %vm1397_vm1  ;;  %7360 = vtanh.f32 %v10345_v46  ;;  %v1374_v41 = vsel %vm10363_vm15, %v1373_v9, %v1369_v59  ;;  %v8263_v49 = vld [vmem:[%s17617_s2 + $0x1c8] sm:$0xff]  ;;  %v8264_v50 = vld [vmem:[%s17617_s2 + $0x1d0] sm:$0xff] }
 0x16f   : > { %v7351_v11 = vpop.eup %7350  ;;  %v1399_v42 = vsel %vm10387_vm5, %v10047_v40, %v1395_v2  ;;  %vm1401_vm6 = vcmp.eq.f32.partialorder %v1400_v52, 8.507059e+37  ;;  %v1455_v60 = vmul.f32 %v7349_v15, %v10246_v47  ;;  %v1403_v16 = vor.u32 1.1754944e-38, %v1402_v20  ;;  %v8266_v2 = vld [vmem:[%s17617_s2 + $0x1a0] sm:$0xff]  ;;  %v8267_v52 = vld [vmem:[%s17617_s2 + $0x1a8] sm:$0xff]  ;;  %v8268_v59 = vld [vmem:[%s17617_s2 + $0x1b0] sm:$0xff] }
 0x170   : > { %v7353_v18 = vpop.eup %7352  ;;  %v1389_v58 = vsel %vm1386_vm4, %v1388_v30, %v1384_v13  ;;  %v1456_v37 = vmul.f32 %v7351_v11, %v10260_v54  ;;  %vm17776_vm7 = vcmask 1041409   ;;  %v1454_v7 = vmul.f32 %v7347_v14, %v10237_v3  ;;  %v8271_v20 = vld [vmem:[%s17617_s2 + $0x188] sm:$0xff]  ;;  %v8272_v14 = vld [vmem:[%s17617_s2 + $0x190] sm:$0xff]  ;;  %v8273_v9 = vld [vmem:[%s17617_s2 + $0x198] sm:$0xff] }
 0x171   : > { %v7355_v28 = vpop.eup %7354  ;;  %v1457_v25 = vmul.f32 %v7353_v18, %v10279_v34  ;;  %v1470_v56 = vrot.slane %v1455_v60, 7  ;;  %vm17775_vm8 = vcmask 1042434   ;;  %v1404_v21 = vsel %vm1401_vm6, %v1403_v16, %v1399_v42  ;;  %v8274_v13 = vld [vmem:[%s17617_s2 + $0x160] sm:$0xff]  ;;  %v8275_v15 = vld [vmem:[%s17617_s2 + $0x168] sm:$0xff]  ;;  %v8277_v30 = vld [vmem:[%s17617_s2 + $0x178] sm:$0xff] }
 0x172   : > { %v7357_v6 = vpop.eup %7356  ;;  %v1458_v38 = vmul.f32 %v7355_v28, %v1359_v32  ;;  %v1473_v40 = vrot.slane %v1456_v37, 6  ;;  %vm17774_vm9 = vcmask 1043459   ;;  %vm17773_vm10 = vcmask 1044484   ;;  %v8276_v32 = vld [vmem:[%s17617_s2 + $0x170] sm:$0xff]  ;;  %v8279_v11 = vld [vmem:[%s17617_s2 + $0x148] sm:$0xff]  ;;  %v8281_v42 = vld [vmem:[%s17617_s2 + $0x158] sm:$0xff] }
 0x173   : > { %v7359_v8 = vpop.eup %7358  ;;  %v1459_v47 = vmul.f32 %v7357_v6, %v1374_v41  ;;  %v1472_v63 = vsel %vm17776_vm7, %v1470_v56, %v1454_v7  ;;  %v1476_v26 = vrot.slane %v1457_v25, 5  ;;  %vm17772_vm11 = vcmask 1045509   ;;  %v8280_v41 = vld [vmem:[%s17617_s2 + $0x150] sm:$0xff]  ;;  %v8282_v60 = vld [vmem:[%s17617_s2 + $0x120] sm:$0xff]  ;;  %v8283_v18 = vld [vmem:[%s17617_s2 + $0x128] sm:$0xff] }
 0x174   : > { %v7361_v54 = vpop.eup %7360  ;;  %v1460_v0 = vmul.f32 %v7359_v8, %v1389_v58  ;;  %v1475_v29 = vsel %vm17775_vm8, %v1473_v40, %v1472_v63  ;;  %v1479_v3 = vrot.slane %v1458_v38, 4  ;;  %vm17722_vm12 = vcmask 1046534   ;;  %v8284_v58 = vld [vmem:[%s17617_s2 + $0x130] sm:$0xff]  ;;  %v8285_v16 = vld [vmem:[%s17617_s2 + $0x138] sm:$0xff]  ;;  %v8286_v37 = vld [vmem:[%s17617_s2 + $0x100] sm:$0xff] }
 0x175   : > { %v1461_v34 = vmul.f32 %v7361_v54, %v1404_v21  ;;  %v1478_v17 = vsel %vm17774_vm9, %v1476_v26, %v1475_v29  ;;  %v1482_v48 = vrot.slane %v1459_v47, 3  ;;  %vm17721_vm13 = vcmask 1047559   ;;  %v8287_v28 = vld [vmem:[%s17617_s2 + $0x108] sm:$0xff]  ;;  %v8288_v7 = vld [vmem:[%s17617_s2 + $0x110] sm:$0xff]  ;;  %v8289_v25 = vld [vmem:[%s17617_s2 + $0x118] sm:$0xff] }
 0x176   : > { %v1481_v36 = vsel %vm17773_vm10, %v1479_v3, %v1478_v17  ;;  %v1485_v5 = vrot.slane %v1460_v0, 2  ;;  %v8290_v56 = vld [vmem:[%s17617_s2 + $0xe0] sm:$0xff]  ;;  %v8291_v6 = vld [vmem:[%s17617_s2 + $0xe8] sm:$0xff]  ;;  %v8292_v21 = vld [vmem:[%s17617_s2 + $0xf0] sm:$0xff] }
 0x177   : > { %v1484_v55 = vsel %vm17772_vm11, %v1482_v48, %v1481_v36  ;;  %v1488_v19 = vrot.slane %v1461_v34, 1  ;;  %v8293_v38 = vld [vmem:[%s17617_s2 + $0xf8] sm:$0xff]  ;;  %v8294_v40 = vld [vmem:[%s17617_s2 + $0xc0] sm:$0xff]  ;;  %v8295_v8 = vld [vmem:[%s17617_s2 + $0xc8] sm:$0xff] }
 0x178   : > { %v1487_v51 = vsel %vm17722_vm12, %v1485_v5, %v1484_v55  ;;  %v8296_v47 = vld [vmem:[%s17617_s2 + $0xd0] sm:$0xff]  ;;  %v8297_v63 = vld [vmem:[%s17617_s2 + $0xd8] sm:$0xff]  ;;  %v8298_v26 = vld [vmem:[%s17617_s2 + $0xa0] sm:$0xff] }
 0x179   : > { %v1490_v44 = vsel %vm17721_vm13, %v1488_v19, %v1487_v51  ;;  %v8299_v54 = vld [vmem:[%s17617_s2 + $0xa8] sm:$0xff]  ;;  %v8300_v0 = vld [vmem:[%s17617_s2 + $0xb0] sm:$0xff]  ;;  %v8301_v29 = vld [vmem:[%s17617_s2 + $0xb8] sm:$0xff] }
 0x17a   : > { %1508 = vmatmul.f32.vlgmr.msra.gmra.mxu0 %v1490_v44  ;;  %1528 = vmatmul.f32.vlgmr.msra.gmra.mxu1 %v1490_v44  ;;  %v8302_v3 = vld [vmem:[%s17617_s2 + $0x80] sm:$0xff]  ;;  %v8303_v34 = vld [vmem:[%s17617_s2 + $0x88] sm:$0xff]  ;;  %v8304_v17 = vld [vmem:[%s17617_s2 + $0x90] sm:$0xff] }
 0x17b   : > { %1548 = vmatmul.f32.vlgmr.msra.gmra.mxu2 %v1490_v44  ;;  %1568 = vmatmul.f32.vlgmr.msra.gmra.mxu3 %v1490_v44  ;;  %v8305_v48 = vld [vmem:[%s17617_s2 + $0x98] sm:$0xff]  ;;  %v8306_v36 = vld [vmem:[%s17617_s2 + $0x60] sm:$0xff]  ;;  %v8307_v5 = vld [vmem:[%s17617_s2 + $0x68] sm:$0xff] }
 0x17c   : > { %2946 = vmatpush.msra.mxu0 %v8258_v31  ;;  %2966 = vmatpush.msra.mxu1 %v8259_v53  ;;  %v8308_v55 = vld [vmem:[%s17617_s2 + $0x70] sm:$0xff]  ;;  %v8309_v19 = vld [vmem:[%s17617_s2 + $0x78] sm:$0xff]  ;;  %v8310_v51 = vld [vmem:[%s17617_s2 + $0x40] sm:$0xff] }
 0x17d   : > { %2986 = vmatpush.msra.mxu2 %v8260_v62  ;;  %3006 = vmatpush.msra.mxu3 %v8261_v57  ;;  %v8311_v44 = vld [vmem:[%s17617_s2 + $0x48] sm:$0xff]  ;;  %v8312_v31 = vld [vmem:[%s17617_s2 + $0x50] sm:$0xff]  ;;  %v8313_v53 = vld [vmem:[%s17617_s2 + $0x58] sm:$0xff] }
 0x17e   : > { %2947 = vmatpush.msra.mxu0 %v8262_v33  ;;  %2967 = vmatpush.msra.mxu1 %v8263_v49  ;;  %v8314_v62 = vld [vmem:[%s17617_s2 + $0x20] sm:$0xff]  ;;  %v8315_v57 = vld [vmem:[%s17617_s2 + $0x28] sm:$0xff]  ;;  %v8316_v33 = vld [vmem:[%s17617_s2 + $0x30] sm:$0xff] }
 0x17f   : > { %2987 = vmatpush.msra.mxu2 %v8264_v50  ;;  %3007 = vmatpush.msra.mxu3 %v8265_v1  ;;  %v8317_v49 = vld [vmem:[%s17617_s2 + $0x38] sm:$0xff]  ;;  %v8318_v50 = vld [vmem:[%s17617_s2] sm:$0xff]  ;;  %v8319_v1 = vld [vmem:[%s17617_s2 + $0x8] sm:$0xff] }
 0x180   : > { %2948 = vmatpush.msra.mxu0 %v8266_v2  ;;  %2968 = vmatpush.msra.mxu1 %v8267_v52  ;;  %v8320_v2 = vld [vmem:[%s17617_s2 + $0x10] sm:$0xff]  ;;  %v8321_v52 = vld [vmem:[%s17617_s2 + $0x18] sm:$0xff] }
 0x181   : > { %2988 = vmatpush.msra.mxu2 %v8268_v59  ;;  %3008 = vmatpush.msra.mxu3 %v8269_v24 }
 0x182   : > { %2949 = vmatpush.msra.mxu0 %v8270_v23  ;;  %2969 = vmatpush.msra.mxu1 %v8271_v20 }
 0x183   : > { %2989 = vmatpush.msra.mxu2 %v8272_v14  ;;  %3009 = vmatpush.msra.mxu3 %v8273_v9 }
 0x184   : > { %2950 = vmatpush.msra.mxu0 %v8274_v13  ;;  %2970 = vmatpush.msra.mxu1 %v8275_v15  ;;  %v17911_v13 = vld [vmem:[#allocation11_spill] sm:$0xff] }
 0x185   : > { %2990 = vmatpush.msra.mxu2 %v8276_v32  ;;  %3010 = vmatpush.msra.mxu3 %v8277_v30  ;;  %v17912_v30 = vld [vmem:[#allocation10_spill] sm:$0xff] }
 0x186   : > { %2951 = vmatpush.msra.mxu0 %v8278_v45  ;;  %2971 = vmatpush.msra.mxu1 %v8279_v11  ;;  %v17913_v11 = vld [vmem:[#allocation15_spill] sm:$0xff] }
 0x187   : > { %2991 = vmatpush.msra.mxu2 %v8280_v41  ;;  %3011 = vmatpush.msra.mxu3 %v8281_v42  ;;  %v17914_v42 = vld [vmem:[#allocation16_spill] sm:$0xff] }
 0x188   : > { %2952 = vmatpush.msra.mxu0 %v8282_v60  ;;  %2972 = vmatpush.msra.mxu1 %v8283_v18 }
 0x189   : > { %2992 = vmatpush.msra.mxu2 %v8284_v58  ;;  %3012 = vmatpush.msra.mxu3 %v8285_v16  ;;  %v17915_v58 = vld [vmem:[#allocation17_spill] sm:$0xff] }
 0x18a   : > { %2953 = vmatpush.msra.mxu0 %v8286_v37  ;;  %2973 = vmatpush.msra.mxu1 %v8287_v28  ;;  %v17916_v28 = vld [vmem:[#allocation18_spill] sm:$0xff] }
 0x18b   : > { %2993 = vmatpush.msra.mxu2 %v8288_v7  ;;  %3013 = vmatpush.msra.mxu3 %v8289_v25  ;;  %v17917_v25 = vld [vmem:[#allocation19_spill] sm:$0xff] }
 0x18c   : > { %2954 = vmatpush.msra.mxu0 %v8290_v56  ;;  %2974 = vmatpush.msra.mxu1 %v8291_v6 }
 0x18d   : > { %2994 = vmatpush.msra.mxu2 %v8292_v21  ;;  %3014 = vmatpush.msra.mxu3 %v8293_v38 }
 0x18e   : > { %2955 = vmatpush.msra.mxu0 %v8294_v40  ;;  %2975 = vmatpush.msra.mxu1 %v8295_v8 }
 0x18f   : > { %2995 = vmatpush.msra.mxu2 %v8296_v47  ;;  %3015 = vmatpush.msra.mxu3 %v8297_v63 }
 0x190   : > { %2956 = vmatpush.msra.mxu0 %v8298_v26  ;;  %2976 = vmatpush.msra.mxu1 %v8299_v54  ;;  %v17918_v54 = vld [vmem:[#allocation22_spill] sm:$0xff] }
 0x191   : > { %2996 = vmatpush.msra.mxu2 %v8300_v0  ;;  %3016 = vmatpush.msra.mxu3 %v8301_v29 }
 0x192   : > { %2957 = vmatpush.msra.mxu0 %v8302_v3  ;;  %2977 = vmatpush.msra.mxu1 %v8303_v34 }
 0x193   : > { %2997 = vmatpush.msra.mxu2 %v8304_v17  ;;  %3017 = vmatpush.msra.mxu3 %v8305_v48  ;;  %v17919_v17 = vld [vmem:[#allocation20_spill] sm:$0xff] }
 0x194   : > { %2958 = vmatpush.msra.mxu0 %v8306_v36  ;;  %2978 = vmatpush.msra.mxu1 %v8307_v5  ;;  %v17920_v36 = vld [vmem:[#allocation24_spill] sm:$0xff] }
 0x195   : > { %2998 = vmatpush.msra.mxu2 %v8308_v55  ;;  %3018 = vmatpush.msra.mxu3 %v8309_v19 }
 0x196   : > { %2959 = vmatpush.msra.mxu0 %v8310_v51  ;;  %2979 = vmatpush.msra.mxu1 %v8311_v44 }
 0x197   : > { %2999 = vmatpush.msra.mxu2 %v8312_v31  ;;  %3019 = vmatpush.msra.mxu3 %v8313_v53 }
 0x198   : > { %2960 = vmatpush.msra.mxu0 %v8314_v62  ;;  %2980 = vmatpush.msra.mxu1 %v8315_v57 }
 0x199   : > { %3000 = vmatpush.msra.mxu2 %v8316_v33  ;;  %3020 = vmatpush.msra.mxu3 %v8317_v49 }
 0x19a   : > { %2961 = vmatpush.msra.mxu0 %v8318_v50  ;;  %2981 = vmatpush.msra.mxu1 %v8319_v1 }
 0x19b   : > { %3001 = vmatpush.msra.mxu2 %v8320_v2  ;;  %3021 = vmatpush.msra.mxu3 %v8321_v52 }
 0x1f7   : > { %v1509_v59 = vpop.f32.mrf.mxu0  ;;  %v1529_v21 = vpop.f32.mrf.mxu1 }
 0x1f8   : > { %v1576_v24 = vrot.slane %v1509_v59, 7  ;;  %v1580_v23 = vrot.slane %v1509_v59, 1  ;;  %v1584_v20 = vrot.slane %v1509_v59, 2  ;;  %v1588_v14 = vrot.slane %v1509_v59, 3 }
 0x1f9   : > { %v1592_v9 = vrot.slane %v1509_v59, 4  ;;  %v1640_v15 = vadd.f32 %v1509_v59, %v17911_v13  ;;  %v1596_v32 = vrot.slane %v1509_v59, 5  ;;  %v1600_v38 = vrot.slane %v1509_v59, 6 }
 0x1fa   : > { %v1636_v45 = vadd.f32 %v1576_v24, %v17912_v30  ;;  %v1644_v41 = vadd.f32 %v1580_v23, %v17913_v11  ;;  %v1648_v60 = vadd.f32 %v1584_v20, %v17914_v42  ;;  %v1652_v16 = vadd.f32 %v1588_v14, %v17915_v58  ;;  %v17921_v20 = vld [vmem:[#allocation27_spill] sm:$0xff] }
 0x1fb   : > { %v7017_v18 = vmul.f32 -1.442695, %v1640_v15  ;;  %v1656_v7 = vadd.f32 %v1592_v9, %v17916_v28  ;;  %v1660_v56 = vadd.f32 %v1596_v32, %v17917_v25  ;;  %v1577_v63 = vrot.slane %v1529_v21, 7  ;;  %v17922_v32 = vld [vmem:[#allocation30_spill] sm:$0xff] }
 0x1fc   : > { %v7016_v37 = vmul.f32 -1.442695, %v1636_v45  ;;  %v7018_v6 = vmul.f32 -1.442695, %v1644_v41  ;;  %v7019_v40 = vmul.f32 -1.442695, %v1648_v60  ;;  %v1664_v0 = vadd.f32 %v1600_v38, %v17918_v54 }
 0x1fd   : > { %v7020_v8 = vmul.f32 -1.442695, %v1652_v16  ;;  %v7021_v47 = vmul.f32 -1.442695, %v1656_v7  ;;  %v7022_v26 = vmul.f32 -1.442695, %v1660_v56  ;;  %v1637_v48 = vadd.f32 %v1577_v63, %v17919_v17 }
 0x1fe   : > { %7362 = vpow2.f32 %v7016_v37  ;;  %v1641_v5 = vadd.f32 %v1529_v21, %v17920_v36  ;;  %v7023_v55 = vmul.f32 -1.442695, %v1664_v0  ;;  %v1581_v44 = vrot.slane %v1529_v21, 1  ;;  %v17923_v16 = vld [vmem:[#allocation33_spill] sm:$0xff]  ;;  %v17925_v38 = vld [vmem:[#allocation39_spill] sm:$0xff]  ;;  %v17929_v60 = vld [vmem:[#allocation28_spill] sm:$0xff] }
 0x1ff   : > { %7364 = vpow2.f32 %v7017_v18  ;;  %v1585_v53 = vrot.slane %v1529_v21, 2  ;;  %v7024_v62 = vmul.f32 -1.442695, %v1637_v48  ;;  %v1589_v33 = vrot.slane %v1529_v21, 3  ;;  %v10643_v48 = vpop.f32.mrf.mxu2 }
 0x200   : > { %7366 = vpow2.f32 %v7018_v6  ;;  %v7025_v49 = vmul.f32 -1.442695, %v1641_v5  ;;  %v1593_v2 = vrot.slane %v1529_v21, 4  ;;  %v1597_v52 = vrot.slane %v1529_v21, 5  ;;  %v17924_v6 = vld [vmem:[#allocation36_spill] sm:$0xff] }
 0x201   : > { %7368 = vpow2.f32 %v7019_v40  ;;  %v1601_v23 = vrot.slane %v1529_v21, 6  ;;  %v1645_v14 = vadd.f32 %v1581_v44, %v17921_v20  ;;  %v1649_v45 = vadd.f32 %v1585_v53, %v17922_v32  ;;  %v17933_v20 = vld [vmem:[#allocation40_spill] sm:$0xff] }
 0x202   : > { %7370 = vpow2.f32 %v7020_v8  ;;  %v1653_v37 = vadd.f32 %v1589_v33, %v17923_v16  ;;  %v1657_v21 = vadd.f32 %v1593_v2, %v17924_v6  ;;  %v1661_v40 = vadd.f32 %v1597_v52, %v17925_v38  ;;  %v17926_v8 = vld [vmem:[#allocation41_spill] sm:$0xff]  ;;  %v17930_v38 = vld [vmem:[#allocation31_spill] sm:$0xff] }
 0x203   : > { %7372 = vpow2.f32 %v7021_v47  ;;  %v1665_v47 = vadd.f32 %v1601_v23, %v17926_v8  ;;  %v7026_v63 = vmul.f32 -1.442695, %v1645_v14  ;;  %v1578_v2 = vrot.slane %v10643_v48, 7 }
 0x204   : > { %v7363_v29 = vpop.eup %7362  ;;  %7374 = vpow2.f32 %v7022_v26  ;;  %v7028_v44 = vmul.f32 -1.442695, %v1653_v37 }
 0x205   : > { %v7365_v3 = vpop.eup %7364  ;;  %v10608_v34 = vadd.f32 1.0, %v7363_v29 }
 0x206   : > { %v7367_v19 = vpop.eup %7366  ;;  %v10612_v51 = vadd.f32 1.0, %v7365_v3  ;;  %v7027_v3 = vmul.f32 -1.442695, %v1649_v45 }
 0x207   : > { %7376 = vrcp.f32 %v10608_v34  ;;  %v7369_v31 = vpop.eup %7368  ;;  %v10615_v1 = vadd.f32 1.0, %v7367_v19  ;;  %vm1705_vm1 = vweird.f32 %v10608_v34 }
 0x208   : > { %v7371_v57 = vpop.eup %7370  ;;  %7378 = vpow2.f32 %v7023_v55  ;;  %v10617_v24 = vadd.f32 1.0, %v7369_v31  ;;  %v17928_v55 = vld [vmem:[#allocation25_spill] sm:$0xff]  ;;  %vm1720_vm4 = vweird.f32 %v10612_v51 }
 0x209   : > { %v7373_v50 = vpop.eup %7372  ;;  %7380 = vrcp.f32 %v10612_v51  ;;  %v10622_v15 = vadd.f32 1.0, %v7371_v57  ;;  %v7029_v57 = vmul.f32 -1.442695, %v1657_v21  ;;  %v1582_v21 = vrot.slane %v10643_v48, 1 }
 0x20a   : > { %v7375_v59 = vpop.eup %7374  ;;  %7382 = vpow2.f32 %v7024_v62  ;;  %v10628_v18 = vadd.f32 1.0, %v7373_v50  ;;  %v7031_v50 = vmul.f32 -1.442695, %v1665_v47  ;;  %v17927_v62 = vld [vmem:[#allocation21_spill] sm:$0xff]  ;;  %v10684_v0 = vadd.f32 %v10643_v48, %v17928_v55 }
 0x20b   : > { %7384 = vpow2.f32 %v7025_v49  ;;  %v10632_v56 = vadd.f32 1.0, %v7375_v59  ;;  %v7030_v49 = vmul.f32 -1.442695, %v1661_v40  ;;  %v1586_v40 = vrot.slane %v10643_v48, 2 }
 0x20c   : > { %7386 = vrcp.f32 %v10615_v1  ;;  %v10678_v53 = vadd.f32 %v1578_v2, %v17927_v62  ;;  %v10689_v8 = vadd.f32 %v1582_v21, %v17929_v60  ;;  %v1711_v60 = vand.u32 2147483648, %v10608_v34 }
 0x20d   : > { %v10625_v41 = vpop.eup %7376  ;;  %7388 = vrcp.f32 %v10617_v24  ;;  %v10692_v2 = vadd.f32 %v1586_v40, %v17930_v38  ;;  %v17932_v40 = vld [vmem:[#allocation37_spill] sm:$0xff] }
 0x20e   : > { %v7379_v26 = vpop.eup %7378  ;;  %v1701_v29 = vmul.f32 %v10625_v41, %v10608_v34  ;;  %7390 = vrcp.f32 %v10622_v15  ;;  %vm1706_vm14 = vweird.f32 %v10625_v41 }
 0x20f   : > { %v10645_v5 = vpop.eup %7380  ;;  %7392 = vrcp.f32 %v10628_v18  ;;  %vm10739_vm15 = vmor %vm1705_vm1, %vm1706_vm14  ;;  %vm1735_vm1 = vweird.f32 %v10615_v1 }
 0x210   : > { %v7383_v31 = vpop.eup %7382  ;;  %7394 = vrcp.f32 %v10632_v56  ;;  %v1702_v59 = vsub.f32 1.0, %v1701_v29  ;;  %v1716_v23 = vmul.f32 %v10645_v5, %v10612_v51  ;;  %v1590_v29 = vrot.slane %v10643_v48, 3 }
 0x211   : > { %v7385_v33 = vpop.eup %7384  ;;  %7396 = vpow2.f32 %v7026_v63  ;;  %v10662_v37 = vadd.f32 1.0, %v7383_v31  ;;  %v10668_v63 = vadd.f32 1.0, %v7379_v26  ;;  %v1602_v31 = vrot.slane %v10643_v48, 6 }
 0x212   : > { %v10654_v52 = vpop.eup %7386  ;;  %7398 = vpow2.f32 %v7027_v3  ;;  %v10658_v14 = vadd.f32 1.0, %v7385_v33  ;;  %v1594_v3 = vrot.slane %v10643_v48, 4  ;;  %v1717_v26 = vsub.f32 1.0, %v1716_v23 }
 0x213   : > { %v10660_v45 = vpop.eup %7388  ;;  %7400 = vpow2.f32 %v7028_v44  ;;  %v1598_v44 = vrot.slane %v10643_v48, 5  ;;  %v1703_v7 = vmul.f32 %v10625_v41, %v1702_v59  ;;  %v17931_v59 = vld [vmem:[#allocation34_spill] sm:$0xff]  ;;  %vm1721_vm2 = vweird.f32 %v10645_v5 }
 0x214   : > { %v10666_v47 = vpop.eup %7390  ;;  %7402 = vrcp.f32 %v10658_v14  ;;  %v10698_v48 = vmul.f32 %v10660_v45, %v10617_v24  ;;  %v10710_v38 = vadd.f32 %v1594_v3, %v17932_v40  ;;  %v17934_v3 = vld [vmem:[#allocation43_spill] sm:$0xff]  ;;  %v1878_v58 = vand.u32 2147483648, %v10658_v14  ;;  %vm10779_vm6 = vmor %vm1720_vm4, %vm1721_vm2 }
 0x215   : > { %v10673_v33 = vpop.eup %7392  ;;  %7404 = vpow2.f32 %v7029_v57  ;;  %v1863_v57 = vand.u32 2147483648, %v10662_v37  ;;  %v10706_v21 = vmul.f32 %v10666_v47, %v10622_v15  ;;  %v1704_v16 = vadd.f32 %v10625_v41, %v1703_v7 }
 0x216   : > { %v10680_v19 = vpop.eup %7394  ;;  %7406 = vpow2.f32 %v7030_v49  ;;  %v1731_v49 = vmul.f32 %v10654_v52, %v10615_v1  ;;  %v10723_v36 = vadd.f32 %v1598_v44, %v17933_v20  ;;  %v10726_v40 = vadd.f32 %v1602_v31, %v17934_v3  ;;  %v17943_v44 = vld [vmem:[#allocation26_spill] sm:$0xff] }
 0x217   : > { %v7397_v9 = vpop.eup %7396  ;;  %7408 = vpow2.f32 %v7031_v50  ;;  %v10702_v50 = vadd.f32 %v1590_v29, %v17931_v59  ;;  %v1718_v29 = vmul.f32 %v10645_v5, %v1717_v26  ;;  %v10720_v32 = vor.u32 1.1754944e-38, %v1863_v57 }
 0x218   : > { %v7399_v62 = vpop.eup %7398  ;;  %7410 = vrcp.f32 %v10668_v63  ;;  %v10715_v6 = vadd.f32 1.0, %v7397_v9  ;;  %v1732_v9 = vsub.f32 1.0, %v1731_v49  ;;  %v1709_v31 = vand.u32 2147483647, %v10608_v34 }
 0x219   : > { %v7401_v23 = vpop.eup %7400  ;;  %7412 = vrcp.f32 %v10662_v37  ;;  %v10730_v7 = vadd.f32 1.0, %v7399_v62  ;;  %v1712_v49 = vor.u32 1.1754944e-38, %v1711_v60  ;;  %v1719_v57 = vadd.f32 %v10645_v5, %v1718_v29  ;;  %v10760_v60 = vpop.f32.mrf.mxu3 }
 0x21a   : > { %v10713_v55 = vpop.eup %7402  ;;  %v10735_v28 = vadd.f32 1.0, %v7401_v23  ;;  %7414 = vrcp.f32 %v10715_v6  ;;  %v1708_v23 = vsel %vm10739_vm15, %v10625_v41, %v1704_v16  ;;  %v1724_v34 = vand.u32 2147483647, %v10612_v51 }
 0x21b   : > { %v7405_v59 = vpop.eup %7404  ;;  %v1868_v26 = vmul.f32 %v10713_v55, %v10658_v14  ;;  %7416 = vrcp.f32 %v10730_v7  ;;  %v1726_v41 = vand.u32 2147483648, %v10612_v51  ;;  %vm1710_vm3 = vcmp.eq.f32.partialorder %v1709_v31, 8.507059e+37 }
 0x21c   : > { %v7407_v17 = vpop.eup %7406  ;;  %v10746_v62 = vadd.f32 1.0, %v7405_v59  ;;  %7418 = vrcp.f32 %v10735_v28  ;;  %vm1872_vm5 = vweird.f32 %v10658_v14  ;;  %v1579_v51 = vrot.slane %v10760_v60, 7 }
 0x21d   : > { %v7409_v25 = vpop.eup %7408  ;;  %v10755_v20 = vadd.f32 1.0, %v7407_v17  ;;  %v1869_v42 = vsub.f32 1.0, %v1868_v26  ;;  %v1733_v17 = vmul.f32 %v10654_v52, %v1732_v9  ;;  %v1879_v26 = vor.u32 1.1754944e-38, %v1878_v58 }
 0x21e   : > { %v10744_v54 = vpop.eup %7410  ;;  %v10762_v59 = vadd.f32 1.0, %v7409_v25  ;;  %7420 = vrcp.f32 %v10746_v62  ;;  %v10775_v25 = vsel %vm1710_vm3, %v1712_v49, %v1708_v23  ;;  %v1723_v9 = vsel %vm10779_vm6, %v10645_v5, %v1719_v57 }
 0x21f   : > { %v10753_v3 = vpop.eup %7412  ;;  %7422 = vrcp.f32 %v10755_v20  ;;  %vm10788_vm14 = vcmp.eq.f32.partialorder %v1724_v34, 8.507059e+37  ;;  %v1870_v49 = vmul.f32 %v10713_v55, %v1869_v42  ;;  %v1727_v23 = vor.u32 1.1754944e-38, %v1726_v41 }
 0x220   : > { %v10771_v16 = vmul.f32 %v10753_v3, %v10662_v37  ;;  %v10792_v31 = vpop.eup %7414  ;;  %7424 = vrcp.f32 %v10762_v59  ;;  %v10798_v58 = vadd.f32 %v10654_v52, %v1733_v17  ;;  %vm1736_vm15 = vweird.f32 %v10654_v52 }
 0x221   : > { %v1739_v5 = vand.u32 2147483647, %v10615_v1  ;;  %v1583_v57 = vrot.slane %v10760_v60, 1  ;;  %v10803_v34 = vpop.eup %7416  ;;  %vm1873_vm2 = vweird.f32 %v10713_v55  ;;  %v1587_v42 = vrot.slane %v10760_v60, 2  ;;  %vm10821_vm3 = vmor %vm1735_vm1, %vm1736_vm15 }
 0x222   : > { %v1854_v29 = vsub.f32 1.0, %v10771_v16  ;;  %v1639_v41 = vadd.f32 %v1579_v51, %v9476_v27  ;;  %v10809_v11 = vpop.eup %7418  ;;  %v1883_v17 = vmul.f32 %v10792_v31, %v10715_v6  ;;  %v1728_v13 = vsel %vm10788_vm14, %v1727_v23, %v1723_v9  ;;  %vm10848_vm4 = vmor %vm1872_vm5, %vm1873_vm2 }
 0x223   : > { %7426 = vtanh.f32 %v10678_v53  ;;  %v1591_v30 = vrot.slane %v10760_v60, 3  ;;  %v1871_v51 = vadd.f32 %v10713_v55, %v1870_v49  ;;  %v1595_v27 = vrot.slane %v10760_v60, 4 }
 0x224   : > { %v10817_v46 = vpop.eup %7420  ;;  %7428 = vtanh.f32 %v10684_v0  ;;  %v1643_v9 = vadd.f32 %v10760_v60, %v17943_v44  ;;  %v1738_v23 = vsel %vm10821_vm3, %v10654_v52, %v10798_v58  ;;  %v1876_v12 = vand.u32 2147483647, %v10658_v14  ;;  %v17945_v44 = vld [vmem:[#allocation32_spill] sm:$0xff] }
 0x225   : > { %v10830_v53 = vpop.eup %7422  ;;  %7430 = vtanh.f32 %v10689_v8  ;;  %v1647_v49 = vadd.f32 %v1583_v57, %v17944_v39  ;;  %v1599_v0 = vrot.slane %v10760_v60, 5  ;;  %v1651_v35 = vadd.f32 %v1587_v42, %v17945_v44  ;;  %v17952_v52 = vld [vmem:[#allocation44_spill] sm:$0xff] }
 0x226   : > { %v10839_v4 = vpop.eup %7424  ;;  %7432 = vtanh.f32 %v10692_v2  ;;  %v7032_v10 = vmul.f32 -1.442695, %v1639_v41  ;;  %vm10852_vm6 = vcmp.eq.f32.partialorder %v1739_v5, 8.507059e+37  ;;  %v1741_v58 = vand.u32 2147483648, %v10615_v1  ;;  %v17950_v2 = vld [vmem:[#allocation35_spill] sm:$0xff]  ;;  %v17951_v41 = vld [vmem:[#allocation38_spill] sm:$0xff] }
 0x227   : > { %7434 = vtanh.f32 %v10702_v50  ;;  %v1655_v57 = vadd.f32 %v1591_v30, %v17950_v2  ;;  %v1875_v42 = vsel %vm10848_vm4, %v10713_v55, %v1871_v51  ;;  %v1603_v14 = vrot.slane %v10760_v60, 6 }
 0x228   : > { %v1659_v16 = vadd.f32 %v1595_v27, %v17951_v41  ;;  %v7033_v44 = vmul.f32 -1.442695, %v1643_v9  ;;  %v1884_v5 = vsub.f32 1.0, %v1883_v17  ;;  %v10866_v22 = vmul.f32 %v10803_v34, %v10730_v7 }
 0x229   : > { %v7427_v39 = vpop.eup %7426  ;;  %7436 = vtanh.f32 %v10710_v38  ;;  %v7034_v1 = vmul.f32 -1.442695, %v1647_v49  ;;  %vm1877_vm5 = vcmp.eq.f32.partialorder %v1876_v12, 8.507059e+37  ;;  %v1663_v30 = vadd.f32 %v1599_v0, %v9586_v61 }
 0x22a   : > { %v7429_v50 = vpop.eup %7428  ;;  %7438 = vpow2.f32 %v7032_v10  ;;  %v7035_v55 = vmul.f32 -1.442695, %v1651_v35  ;;  %v10871_v60 = vmul.f32 %v10753_v3, %v1854_v29  ;;  %v1880_v27 = vsel %vm1877_vm5, %v1879_v26, %v1875_v42 }
 0x22b   : > { %v7431_v51 = vpop.eup %7430  ;;  %7440 = vtanh.f32 %v10723_v36  ;;  %v7036_v17 = vmul.f32 -1.442695, %v1655_v57  ;;  %v1667_v41 = vadd.f32 %v1603_v14, %v17952_v52  ;;  %v7037_v38 = vmul.f32 -1.442695, %v1659_v16 }
 0x22c   : > { %v10874_v9 = vpop.eup %7432  ;;  %7442 = vpow2.f32 %v7033_v44  ;;  %v1776_v12 = vmul.f32 %v10673_v33, %v10628_v18  ;;  %v10883_v10 = vmul.f32 %v10809_v11, %v10735_v28  ;;  %v1742_v35 = vor.u32 1.1754944e-38, %v1741_v58 }
 0x22d   : > { %v10879_v49 = vpop.eup %7434  ;;  %7444 = vpow2.f32 %v7034_v1  ;;  %v17953_v36 = vsub.f32 1.0, %v10698_v48  ;;  %v10889_v29 = vmul.f32 %v10792_v31, %v1884_v5  ;;  %v1899_v44 = vsub.f32 1.0, %v10866_v22 }
 0x22e   : > { %7446 = vpow2.f32 %v7035_v55  ;;  %v7038_v0 = vmul.f32 -1.442695, %v1663_v30  ;;  %v1743_v42 = vsel %vm10852_vm6, %v1742_v35, %v1738_v23  ;;  %v17954_v14 = vrot.slane %v10311_v43, 7 }
 0x22f   : > { %v1748_v26 = vmul.f32 %v10660_v45, %v17953_v36  ;;  %v10892_v57 = vpop.eup %7436  ;;  %v2165_v16 = vmul.f32 %v7429_v50, %v1728_v13  ;;  %7448 = vpow2.f32 %v7036_v17  ;;  %v7039_v1 = vmul.f32 -1.442695, %v1667_v41 }
 0x230   : > { %v2157_v58 = vmul.f32 %v17954_v14, %v1880_v27  ;;  %v7439_v48 = vpop.eup %7438  ;;  %7450 = vpow2.f32 %v7037_v38  ;;  %v1754_v5 = vand.u32 2147483647, %v10617_v24  ;;  %v1777_v36 = vsub.f32 1.0, %v1776_v12 }
 0x231   : > { %v10899_v52 = vpop.eup %7440  ;;  %v1914_v30 = vsub.f32 1.0, %v10883_v10  ;;  %7452 = vtanh.f32 %v10726_v40  ;;  %v1749_v8 = vadd.f32 %v10660_v45, %v1748_v26  ;;  %vm1751_vm14 = vweird.f32 %v10660_v45 }
 0x232   : > { %v7443_v43 = vpop.eup %7442  ;;  %7454 = vpow2.f32 %v7038_v0  ;;  %v1756_v13 = vand.u32 2147483648, %v10617_v24  ;;  %v17955_v23 = vsub.f32 1.0, %v10706_v21  ;;  %v1791_v50 = vmul.f32 %v10680_v19, %v10632_v56 }
 0x233   : > { %v7445_v55 = vpop.eup %7444  ;;  %v10912_v27 = vmul.f32 %v7427_v39, %v10775_v25  ;;  %v10914_v40 = vmul.f32 %v7431_v51, %v1743_v42  ;;  %v10916_v17 = vadd.f32 1.0, %v7439_v48  ;;  %vm1750_vm1 = vweird.f32 %v10617_v24 }
 0x234   : > { %v1763_v41 = vmul.f32 %v10666_v47, %v17955_v23  ;;  %v7447_v38 = vpop.eup %7446  ;;  %v10919_v12 = vadd.f32 %v2165_v16, %v2157_v58  ;;  %7456 = vpow2.f32 %v7039_v1  ;;  %vm10921_vm15 = vmor %vm1750_vm1, %vm1751_vm14  ;;  %vm10925_vm2 = vcmp.eq.f32.partialorder %v1754_v5, 8.507059e+37 }
 0x235   : > { %v1778_v39 = vmul.f32 %v10673_v33, %v1777_v36  ;;  %v7449_v25 = vpop.eup %7448  ;;  %v10930_v51 = vadd.f32 1.0, %v7443_v43  ;;  %v1753_v24 = vsel %vm10921_vm15, %v10660_v45, %v1749_v8  ;;  %vm1765_vm3 = vweird.f32 %v10622_v15 }
 0x236   : > { %17956 = vst [vmem:[#allocation52_spill] sm:$0xff] %v10919_v12  ;;  %vm1766_vm4 = vweird.f32 %v10666_v47  ;;  %v7451_v26 = vpop.eup %7450  ;;  %v10937_v0 = vadd.f32 1.0, %v7445_v55  ;;  %v1757_v42 = vor.u32 1.1754944e-38, %v1756_v13  ;;  %v1764_v14 = vadd.f32 %v10666_v47, %v1763_v41 }
 0x237   : > { %v1792_v58 = vsub.f32 1.0, %v1791_v50  ;;  %v10940_v16 = vpop.eup %7452  ;;  %vm1858_vm6 = vweird.f32 %v10753_v3  ;;  %v10943_v48 = vadd.f32 1.0, %v7447_v38  ;;  %7458 = vrcp.f32 %v10916_v17  ;;  %vm10969_vm1 = vmor %vm1765_vm3, %vm1766_vm4 }
 0x238   : > { %v1769_v45 = vand.u32 2147483647, %v10622_v15  ;;  %v1771_v1 = vand.u32 2147483648, %v10622_v15  ;;  %v7455_v5 = vpop.eup %7454  ;;  %v10948_v36 = vadd.f32 1.0, %v7449_v25  ;;  %v1779_v8 = vadd.f32 %v10673_v33, %v1778_v39 }
 0x239   : > { %vm1781_vm5 = vweird.f32 %v10673_v33  ;;  %v1806_v43 = vmul.f32 %v10744_v54, %v10668_v63  ;;  %vm1857_vm14 = vweird.f32 %v10662_v37  ;;  %v10955_v13 = vadd.f32 1.0, %v7451_v26 }
 0x23a   : > { %7460 = vrcp.f32 %v10930_v51  ;;  %v1784_v23 = vand.u32 2147483647, %v10628_v18  ;;  %v1786_v41 = vand.u32 2147483648, %v10628_v18  ;;  %v7457_v50 = vpop.eup %7456  ;;  %v10963_v55 = vsel %vm10925_vm2, %v1757_v42, %v1753_v24  ;;  %vm11042_vm0 = vmor %vm1857_vm14, %vm1858_vm6 }
 0x23b   : > { %7462 = vrcp.f32 %v10937_v0  ;;  %vm1780_vm15 = vweird.f32 %v10628_v18  ;;  %v1793_v21 = vmul.f32 %v10680_v19, %v1792_v58  ;;  %v10975_v39 = vadd.f32 1.0, %v7455_v5 }
 0x23c   : > { %7464 = vrcp.f32 %v10943_v48  ;;  %v1768_v35 = vsel %vm10969_vm1, %v10666_v47, %v1764_v14  ;;  %vm10981_vm2 = vcmp.eq.f32.partialorder %v1769_v45, 8.507059e+37  ;;  %vm10987_vm3 = vmor %vm1780_vm15, %vm1781_vm5  ;;  %v1772_v18 = vor.u32 1.1754944e-38, %v1771_v1 }
 0x23d   : > { %7466 = vrcp.f32 %v10948_v36  ;;  %v1783_v24 = vsel %vm10987_vm3, %v10673_v33, %v1779_v8  ;;  %v1807_v26 = vsub.f32 1.0, %v1806_v43  ;;  %v10995_v42 = vpop.eup %7458  ;;  %vm1887_vm4 = vweird.f32 %v10715_v6 }
 0x23e   : > { %v10998_v47 = vadd.f32 1.0, %v7457_v50  ;;  %7468 = vrcp.f32 %v10955_v13  ;;  %vm1785_vm5 = vcmp.eq.f32.partialorder %v1784_v23, 8.507059e+37  ;;  %v1787_v14 = vor.u32 1.1754944e-38, %v1786_v41 }
 0x23f   : > { %v1794_v58 = vadd.f32 %v10680_v19, %v1793_v21  ;;  %vm1796_vm1 = vweird.f32 %v10680_v19  ;;  %v1799_v45 = vand.u32 2147483647, %v10632_v56  ;;  %v1801_v1 = vand.u32 2147483648, %v10632_v56 }
 0x240   : > { %v11005_v33 = vpop.eup %7460  ;;  %7470 = vrcp.f32 %v10975_v39  ;;  %v11010_v5 = vsel %vm10981_vm2, %v1772_v18, %v1768_v35  ;;  %v11012_v8 = vsel %vm1785_vm5, %v1787_v14, %v1783_v24  ;;  %v1856_v43 = vadd.f32 %v10753_v3, %v10871_v60 }
 0x241   : > { %v11016_v23 = vpop.eup %7462  ;;  %vm1795_vm15 = vweird.f32 %v10632_v56  ;;  %v1808_v41 = vmul.f32 %v10744_v54, %v1807_v26  ;;  %v1814_v50 = vand.u32 2147483647, %v10668_v63  ;;  %v1861_v38 = vand.u32 2147483647, %v10662_v37 }
 0x242   : > { %v11022_v21 = vpop.eup %7464  ;;  %7472 = vrcp.f32 %v10998_v47  ;;  %vm11027_vm2 = vmor %vm1795_vm15, %vm1796_vm1  ;;  %vm1810_vm3 = vweird.f32 %v10668_v63  ;;  %vm1811_vm5 = vweird.f32 %v10744_v54  ;;  %v1900_v56 = vmul.f32 %v10803_v34, %v1899_v44 }
 0x243   : > { %v11036_v60 = vpop.eup %7466  ;;  %v1798_v15 = vsel %vm11027_vm2, %v10680_v19, %v1794_v58  ;;  %vm11049_vm1 = vcmp.eq.f32.partialorder %v1799_v45, 8.507059e+37  ;;  %v1802_v22 = vor.u32 1.1754944e-38, %v1801_v1  ;;  %v1816_v44 = vand.u32 2147483648, %v10668_v63 }
 0x244   : > { %v11054_v24 = vpop.eup %7468  ;;  %v1860_v37 = vsel %vm11042_vm0, %v10753_v3, %v1856_v43  ;;  %v1886_v26 = vadd.f32 %v10792_v31, %v10889_v29  ;;  %vm1888_vm6 = vweird.f32 %v10792_v31  ;;  %v1891_v19 = vand.u32 2147483647, %v10715_v6 }
 0x245   : > { %v1809_v14 = vadd.f32 %v10744_v54, %v1808_v41  ;;  %vm11064_vm14 = vcmp.eq.f32.partialorder %v1814_v50, 8.507059e+37  ;;  %vm1862_vm15 = vcmp.eq.f32.partialorder %v1861_v38, 8.507059e+37  ;;  %v1928_v45 = vmul.f32 %v10817_v46, %v10746_v62  ;;  %vm11086_vm2 = vmor %vm1887_vm4, %vm1888_vm6 }
 0x246   : > { %v11070_v1 = vpop.eup %7470  ;;  %v1893_v3 = vand.u32 2147483648, %v10715_v6  ;;  %v1901_v29 = vadd.f32 %v10803_v34, %v1900_v56  ;;  %vm1903_vm0 = vweird.f32 %v10803_v34  ;;  %v1943_v43 = vmul.f32 %v10830_v53, %v10755_v20 }
 0x247   : > { %v11079_v41 = vsel %vm11049_vm1, %v1802_v22, %v1798_v15  ;;  %v1817_v50 = vor.u32 1.1754944e-38, %v1816_v44  ;;  %v11082_v38 = vsel %vm1862_vm15, %v10720_v32, %v1860_v37  ;;  %v1915_v56 = vmul.f32 %v10809_v11, %v1914_v30  ;;  %vm11099_vm1 = vmor %vm1810_vm3, %vm1811_vm5 }
 0x248   : > { %v11093_v25 = vpop.eup %7472  ;;  %v1890_v32 = vsel %vm11086_vm2, %v10792_v31, %v1886_v26  ;;  %vm11106_vm4 = vcmp.eq.f32.partialorder %v1891_v19, 8.507059e+37  ;;  %vm1902_vm6 = vweird.f32 %v10730_v7  ;;  %v1908_v10 = vand.u32 2147483648, %v10730_v7 }
 0x249   : > { %v1813_v63 = vsel %vm11099_vm1, %v10744_v54, %v1809_v14  ;;  %vm11115_vm3 = vmor %vm1902_vm6, %vm1903_vm0  ;;  %v1906_v18 = vand.u32 2147483647, %v10730_v7  ;;  %v1929_v22 = vsub.f32 1.0, %v1928_v45  ;;  %v1958_v31 = vmul.f32 %v10839_v4, %v10762_v59 }
 0x24a   : > { %v1894_v44 = vor.u32 1.1754944e-38, %v1893_v3  ;;  %v1905_v37 = vsel %vm11115_vm3, %v10803_v34, %v1901_v29  ;;  %vm1917_vm5 = vweird.f32 %v10735_v28  ;;  %v1944_v26 = vsub.f32 1.0, %v1943_v43 }
 0x24b   : > { %v1916_v54 = vadd.f32 %v10809_v11, %v1915_v56  ;;  %vm1918_vm15 = vweird.f32 %v10809_v11  ;;  %v1921_v19 = vand.u32 2147483647, %v10735_v28  ;;  %v2013_v7 = vmul.f32 %v10995_v42, %v10916_v17 }
 0x24c   : > { %v11133_v14 = vsel %vm11064_vm14, %v1817_v50, %v1813_v63  ;;  %v11137_v45 = vsel %vm11106_vm4, %v1894_v44, %v1890_v32  ;;  %v1909_v34 = vor.u32 1.1754944e-38, %v1908_v10  ;;  %v1923_v3 = vand.u32 2147483648, %v10735_v28  ;;  %vm11146_vm2 = vmor %vm1917_vm5, %vm1918_vm15 }
 0x24d   : > { %vm1907_vm0 = vcmp.eq.f32.partialorder %v1906_v18, 8.507059e+37  ;;  %v1930_v29 = vmul.f32 %v10817_v46, %v1929_v22  ;;  %v1936_v43 = vand.u32 2147483647, %v10746_v62  ;;  %v1959_v35 = vsub.f32 1.0, %v1958_v31 }
 0x24e   : > { %v11142_v56 = vsel %vm1907_vm0, %v1909_v34, %v1905_v37  ;;  %vm1932_vm14 = vweird.f32 %v10746_v62  ;;  %v1945_v50 = vmul.f32 %v10830_v53, %v1944_v26  ;;  %v2028_v15 = vmul.f32 %v11005_v33, %v10930_v51 }
 0x24f   : > { %v1920_v32 = vsel %vm11146_vm2, %v10809_v11, %v1916_v54  ;;  %vm1922_vm1 = vcmp.eq.f32.partialorder %v1921_v19, 8.507059e+37  ;;  %v1938_v6 = vand.u32 2147483648, %v10746_v62  ;;  %v2014_v10 = vsub.f32 1.0, %v2013_v7 }
 0x250   : > { %v1924_v28 = vor.u32 1.1754944e-38, %v1923_v3  ;;  %vm1933_vm4 = vweird.f32 %v10817_v46  ;;  %v1951_v63 = vand.u32 2147483647, %v10755_v20  ;;  %v2043_v30 = vmul.f32 %v11016_v23, %v10937_v0 }
 0x251   : > { %v1931_v18 = vadd.f32 %v10817_v46, %v1930_v29  ;;  %vm11163_vm6 = vcmp.eq.f32.partialorder %v1936_v43, 8.507059e+37  ;;  %vm1947_vm3 = vweird.f32 %v10755_v20  ;;  %v1960_v11 = vmul.f32 %v10839_v4, %v1959_v35  ;;  %vm11180_vm15 = vmor %vm1932_vm14, %vm1933_vm4 }
 0x252   : > { %v11169_v31 = vsel %vm1922_vm1, %v1924_v28, %v1920_v32  ;;  %v1946_v44 = vadd.f32 %v10830_v53, %v1945_v50  ;;  %vm1948_vm5 = vweird.f32 %v10830_v53  ;;  %v2029_v37 = vsub.f32 1.0, %v2028_v15 }
 0x253   : > { %v1939_v26 = vor.u32 1.1754944e-38, %v1938_v6  ;;  %v1953_v54 = vand.u32 2147483648, %v10755_v20  ;;  %v1966_v19 = vand.u32 2147483647, %v10762_v59  ;;  %v2015_v7 = vmul.f32 %v10995_v42, %v2014_v10  ;;  %vm11195_vm1 = vmor %vm1947_vm3, %vm1948_vm5 }
 0x254   : > { %vm11184_vm0 = vcmp.eq.f32.partialorder %v1951_v63, 8.507059e+37  ;;  %vm1962_vm2 = vweird.f32 %v10762_v59  ;;  %v1968_v29 = vand.u32 2147483648, %v10762_v59  ;;  %v2044_v43 = vsub.f32 1.0, %v2043_v30 }
 0x255   : > { %v1935_v35 = vsel %vm11180_vm15, %v10817_v46, %v1931_v18  ;;  %v1961_v58 = vadd.f32 %v10839_v4, %v1960_v11  ;;  %vm1963_vm14 = vweird.f32 %v10839_v4  ;;  %v2058_v50 = vmul.f32 %v11022_v21, %v10943_v48 }
 0x256   : > { %v1950_v15 = vsel %vm11195_vm1, %v10830_v53, %v1946_v44  ;;  %v2021_v32 = vand.u32 2147483647, %v10916_v17  ;;  %v2023_v46 = vand.u32 2147483648, %v10916_v17  ;;  %v2030_v20 = vmul.f32 %v11005_v33, %v2029_v37  ;;  %vm11221_vm5 = vmor %vm1962_vm2, %vm1963_vm14 }
 0x257   : > { %v1954_v6 = vor.u32 1.1754944e-38, %v1953_v54  ;;  %vm11209_vm4 = vcmp.eq.f32.partialorder %v1966_v19, 8.507059e+37  ;;  %v2016_v28 = vadd.f32 %v10995_v42, %v2015_v7  ;;  %vm2018_vm3 = vweird.f32 %v10995_v42 }
 0x258   : > { %v11217_v63 = vsel %vm11163_vm6, %v1939_v26, %v1935_v35  ;;  %v1969_v30 = vor.u32 1.1754944e-38, %v1968_v29  ;;  %vm2017_vm15 = vweird.f32 %v10916_v17  ;;  %v2045_v18 = vmul.f32 %v11016_v23, %v2044_v43 }
 0x259   : > { %v11229_v11 = vsel %vm11184_vm0, %v1954_v6, %v1950_v15  ;;  %v1965_v22 = vsel %vm11221_vm5, %v10839_v4, %v1961_v58  ;;  %v2036_v44 = vand.u32 2147483647, %v10930_v51  ;;  %v2059_v59 = vsub.f32 1.0, %v2058_v50  ;;  %vm11235_vm6 = vmor %vm2017_vm15, %vm2018_vm3 }
 0x25a   : > { %vm11239_vm2 = vcmp.eq.f32.partialorder %v2021_v32, 8.507059e+37  ;;  %v2024_v17 = vor.u32 1.1754944e-38, %v2023_v46  ;;  %v2031_v54 = vadd.f32 %v11005_v33, %v2030_v20  ;;  %vm2033_vm0 = vweird.f32 %v11005_v33 }
 0x25b   : > { %v2020_v4 = vsel %vm11235_vm6, %v10995_v42, %v2016_v28  ;;  %v2038_v19 = vand.u32 2147483648, %v10930_v51  ;;  %v2051_v7 = vand.u32 2147483647, %v10937_v0  ;;  %v2073_v34 = vmul.f32 %v11036_v60, %v10948_v36 }
 0x25c   : > { %v1970_v3 = vsel %vm11209_vm4, %v1969_v30, %v1965_v22  ;;  %vm2032_vm1 = vweird.f32 %v10930_v51  ;;  %v2046_v29 = vadd.f32 %v11016_v23, %v2045_v18  ;;  %vm2048_vm14 = vweird.f32 %v11016_v23  ;;  %v8323_v22 = vld [vmem:[%s17617_s2 + $0x1e8] sm:$0xff] }
 0x25d   : > { %vm11257_vm3 = vmor %vm2032_vm1, %vm2033_vm0  ;;  %vm11261_vm5 = vcmp.eq.f32.partialorder %v2036_v44, 8.507059e+37  ;;  %vm2047_vm15 = vweird.f32 %v10937_v0  ;;  %v2053_v35 = vand.u32 2147483648, %v10937_v0  ;;  %v2060_v62 = vmul.f32 %v11022_v21, %v2059_v59  ;;  %v18021_v0 = vld [vmem:[#allocation49_spill] sm:$0xff] }
 0x25e   : > { %v11270_v51 = vsel %vm11239_vm2, %v2024_v17, %v2020_v4  ;;  %v2035_v58 = vsel %vm11257_vm3, %v11005_v33, %v2031_v54  ;;  %v2066_v50 = vand.u32 2147483647, %v10943_v48  ;;  %v2068_v15 = vand.u32 2147483648, %v10943_v48  ;;  %vm11277_vm4 = vmor %vm2047_vm15, %vm2048_vm14  ;;  %v18011_v17 = vld [vmem:[#allocation46_spill] sm:$0xff] }
 0x25f   : > { %v2039_v32 = vor.u32 1.1754944e-38, %v2038_v19  ;;  %vm11281_vm6 = vcmp.eq.f32.partialorder %v2051_v7, 8.507059e+37  ;;  %vm2062_vm2 = vweird.f32 %v10943_v48  ;;  %v2074_v20 = vsub.f32 1.0, %v2073_v34  ;;  %v18013_v19 = vld [vmem:[#allocation45_spill] sm:$0xff]  ;;  %v18019_v48 = vld [vmem:[#allocation48_spill] sm:$0xff] }
 0x260   : > { %v2050_v33 = vsel %vm11277_vm4, %v11016_v23, %v2046_v29  ;;  %vm2063_vm0 = vweird.f32 %v11022_v21  ;;  %v2083_v6 = vand.u32 2147483648, %v10948_v36  ;;  %v2088_v10 = vmul.f32 %v11054_v24, %v10955_v13 }
 0x261   : > { %v11295_v28 = vsel %vm11261_vm5, %v2039_v32, %v2035_v58  ;;  %v2054_v53 = vor.u32 1.1754944e-38, %v2053_v35  ;;  %v2061_v30 = vadd.f32 %v11022_v21, %v2060_v62  ;;  %v2103_v18 = vmul.f32 %v11070_v1, %v10975_v39  ;;  %vm11323_vm3 = vmor %vm2062_vm2, %vm2063_vm0 }
 0x262   : > { %vm11300_vm1 = vcmp.eq.f32.partialorder %v2066_v50, 8.507059e+37  ;;  %v2069_v23 = vor.u32 1.1754944e-38, %v2068_v15  ;;  %vm2078_vm14 = vweird.f32 %v11036_v60  ;;  %v2081_v44 = vand.u32 2147483647, %v10948_v36 }
 0x263   : > { %v2118_v59 = vmul.f32 %v11093_v25, %v10998_v47  ;;  %v11310_v37 = vsel %vm11281_vm6, %v2054_v53, %v2050_v33  ;;  %v2075_v26 = vmul.f32 %v11036_v60, %v2074_v20  ;;  %v18012_v54 = vrot.slane %v18011_v17, 7 }
 0x264   : > { %v18014_v7 = vrot.slane %v18013_v19, 7  ;;  %vm2077_vm5 = vweird.f32 %v10948_v36  ;;  %v2084_v43 = vor.u32 1.1754944e-38, %v2083_v6  ;;  %v2089_v42 = vsub.f32 1.0, %v2088_v10  ;;  %v18023_v6 = vld [vmem:[#allocation50_spill] sm:$0xff] }
 0x265   : > { %v2156_v4 = vmul.f32 %v18012_v54, %v11082_v38  ;;  %vm2093_vm15 = vweird.f32 %v11054_v24  ;;  %v18017_v38 = vld [vmem:[#allocation47_spill] sm:$0xff]  ;;  %v2104_v58 = vsub.f32 1.0, %v2103_v18  ;;  %v18020_v50 = vrot.slane %v18019_v48, 7  ;;  %vm11395_vm0 = vmor %vm2077_vm5, %vm2078_vm14 }
 0x266   : > { %v2158_v34 = vmul.f32 %v18014_v7, %v11137_v45  ;;  %v18018_v35 = vrot.slane %v18017_v38, 7  ;;  %v2065_v45 = vsel %vm11323_vm3, %v11022_v21, %v2061_v30  ;;  %v2167_v32 = vmul.f32 %v10874_v9, %v10963_v55  ;;  %v8330_v7 = vld [vmem:[%s17617_s2 + $0x1a0] sm:$0xff] }
 0x267   : > { %v2160_v15 = vmul.f32 %v18020_v50, %v11169_v31  ;;  %vm2092_vm4 = vweird.f32 %v10955_v13  ;;  %v2119_v46 = vsub.f32 1.0, %v2118_v59  ;;  %v18022_v20 = vrot.slane %v18021_v0, 7 }
 0x268   : > { %v2159_v62 = vmul.f32 %v18018_v35, %v11142_v56  ;;  %v2168_v56 = vmul.f32 %v10879_v49, %v11010_v5  ;;  %v2169_v21 = vmul.f32 %v10892_v57, %v11012_v8  ;;  %v18024_v10 = vrot.slane %v18023_v6, 7  ;;  %v18029_v57 = vld [vmem:[#allocation51_spill] sm:$0xff]  ;;  %vm11415_vm3 = vmor %vm2092_vm4, %vm2093_vm15 }
 0x269   : > { %v2161_v33 = vmul.f32 %v18022_v20, %v11217_v63  ;;  %v2170_v9 = vmul.f32 %v10899_v52, %v11079_v41  ;;  %v11354_v55 = vadd.f32 %v10912_v27, %v2156_v4  ;;  %v11357_v53 = vadd.f32 %v10914_v40, %v2158_v34 }
 0x26a   : > { %v2162_v31 = vmul.f32 %v18024_v10, %v11229_v11  ;;  %vm11359_vm6 = vcmp.eq.f32.partialorder %v2081_v44, 8.507059e+37  ;;  %v2090_v49 = vmul.f32 %v11054_v24, %v2089_v42  ;;  %v18030_v5 = vrot.slane %v18029_v57, 7 }
 0x26b   : > { %18025 = vst [vmem:[#allocation46_spill] sm:$0xff] %v11354_v55  ;;  %v2171_v11 = vmul.f32 %v10940_v16, %v11133_v14  ;;  %v11368_v30 = vadd.f32 %v2167_v32, %v2159_v62  ;;  %v2096_v52 = vand.u32 2147483647, %v10955_v13  ;;  %v2098_v27 = vand.u32 2147483648, %v10955_v13 }
 0x26c   : > { %18026 = vst [vmem:[#allocation45_spill] sm:$0xff] %v11357_v53  ;;  %v2163_v8 = vmul.f32 %v18030_v5, %v1970_v3  ;;  %v11372_v40 = vadd.f32 %v2168_v56, %v2160_v15  ;;  %7474 = vtanh.f32 %v11354_v55  ;;  %v2076_v41 = vadd.f32 %v11036_v60, %v2075_v26 }
 0x26d   : > { %18031 = vst [vmem:[#allocation47_spill] sm:$0xff] %v11368_v30  ;;  %v2105_v18 = vmul.f32 %v11070_v1, %v2104_v58  ;;  %v11377_v44 = vadd.f32 %v2169_v21, %v2161_v33  ;;  %7476 = vtanh.f32 %v10919_v12  ;;  %v2070_v16 = vsel %vm11300_vm1, %v2069_v23, %v2065_v45  ;;  %v8324_v23 = vld [vmem:[%s17617_s2 + $0x1f0] sm:$0xff]  ;;  %v8339_v45 = vld [vmem:[%s17617_s2 + $0x168] sm:$0xff] }
 0x26e   : > { %18032 = vst [vmem:[#allocation48_spill] sm:$0xff] %v11372_v40  ;;  %v2120_v14 = vmul.f32 %v11093_v25, %v2119_v46  ;;  %v11383_v3 = vadd.f32 %v2170_v9, %v2162_v31  ;;  %7478 = vtanh.f32 %v11357_v53  ;;  %v2091_v59 = vadd.f32 %v11054_v24, %v2090_v49 }
 0x26f   : > { %18033 = vst [vmem:[#allocation49_spill] sm:$0xff] %v11377_v44  ;;  %vm2107_vm2 = vweird.f32 %v10975_v39  ;;  %v11388_v26 = vadd.f32 %v2171_v11, %v2163_v8  ;;  %7480 = vtanh.f32 %v11368_v30  ;;  %vm11399_vm1 = vcmp.eq.f32.partialorder %v2096_v52, 8.507059e+37 }
 0x270   : > { %18034 = vst [vmem:[#allocation50_spill] sm:$0xff] %v11383_v3  ;;  %v2099_v17 = vor.u32 1.1754944e-38, %v2098_v27  ;;  %v2111_v54 = vand.u32 2147483647, %v10975_v39  ;;  %7482 = vtanh.f32 %v11372_v40  ;;  %v2080_v4 = vsel %vm11395_vm0, %v11036_v60, %v2076_v41  ;;  %v18083_v40 = vld [vmem:[#allocation29_spill] sm:$0xff] }
 0x271   : > { %18035 = vst [vmem:[#allocation51_spill] sm:$0xff] %v11388_v26  ;;  %v2106_v19 = vadd.f32 %v11070_v1, %v2105_v18  ;;  %vm2108_vm14 = vweird.f32 %v11070_v1  ;;  %7484 = vtanh.f32 %v11377_v44  ;;  %v2113_v34 = vand.u32 2147483648, %v10975_v39  ;;  %v8344_v39 = vld [vmem:[%s17617_s2 + $0x150] sm:$0xff] }
 0x272   : > { %v7475_v36 = vpop.eup %7474  ;;  %v2121_v29 = vadd.f32 %v11093_v25, %v2120_v14  ;;  %vm2123_vm5 = vweird.f32 %v11093_v25  ;;  %7486 = vtanh.f32 %v11383_v3  ;;  %v2095_v42 = vsel %vm11415_vm3, %v11054_v24, %v2091_v59  ;;  %vm11435_vm15 = vmor %vm2107_vm2, %vm2108_vm14  ;;  %v8322_v59 = vld [vmem:[%s17617_s2 + $0x1e0] sm:$0xff]  ;;  %v8340_v24 = vld [vmem:[%s17617_s2 + $0x170] sm:$0xff] }
 0x273   : > { %v7477_v60 = vpop.eup %7476  ;;  %v2128_v38 = vand.u32 2147483648, %v10998_v47  ;;  %7488 = vtanh.f32 %v11388_v26  ;;  %v2188_v13 = vmul.f32 %v7475_v36, %v11270_v51  ;;  %v2085_v62 = vsel %vm11359_vm6, %v2084_v43, %v2080_v4  ;;  %v8327_v4 = vld [vmem:[%s17617_s2 + $0x1c8] sm:$0xff]  ;;  %v8329_v36 = vld [vmem:[%s17617_s2 + $0x1d8] sm:$0xff] }
 0x274   : > { %v7479_v35 = vpop.eup %7478  ;;  %vm11439_vm4 = vcmp.eq.f32.partialorder %v2111_v54, 8.507059e+37  ;;  %vm2122_vm0 = vweird.f32 %v10998_v47  ;;  %v2126_v51 = vand.u32 2147483647, %v10998_v47  ;;  %v2110_v43 = vsel %vm11435_vm15, %v11070_v1, %v2106_v19  ;;  %v8326_v54 = vld [vmem:[%s17617_s2 + $0x1c0] sm:$0xff]  ;;  %v8328_v19 = vld [vmem:[%s17617_s2 + $0x1d0] sm:$0xff] }
 0x275   : > { %v7481_v58 = vpop.eup %7480  ;;  %vm11450_vm6 = vmor %vm2122_vm0, %vm2123_vm5  ;;  %v2189_v48 = vmul.f32 %v7477_v60, %v11295_v28  ;;  %v2190_v50 = vmul.f32 %v7479_v35, %v11310_v37  ;;  %v2204_v15 = vrot.slane %v2188_v13, 1  ;;  %v2100_v47 = vsel %vm11399_vm1, %v2099_v17, %v2095_v42  ;;  %v8325_v17 = vld [vmem:[%s17617_s2 + $0x1f8] sm:$0xff]  ;;  %v8334_v42 = vld [vmem:[%s17617_s2 + $0x180] sm:$0xff] }
 0x276   : > { %v7483_v32 = vpop.eup %7482  ;;  %v2114_v46 = vor.u32 1.1754944e-38, %v2113_v34  ;;  %v2125_v1 = vsel %vm11450_vm6, %v11093_v25, %v2121_v29  ;;  %v2191_v0 = vmul.f32 %v7481_v58, %v2070_v16  ;;  %v2129_v33 = vor.u32 1.1754944e-38, %v2128_v38  ;;  %v8331_v34 = vld [vmem:[%s17617_s2 + $0x1a8] sm:$0xff]  ;;  %v8332_v29 = vld [vmem:[%s17617_s2 + $0x1b0] sm:$0xff]  ;;  %v8333_v60 = vld [vmem:[%s17617_s2 + $0x1b8] sm:$0xff] }
 0x277   : > { %v7485_v20 = vpop.eup %7484  ;;  %v2192_v56 = vmul.f32 %v7483_v32, %v2085_v62  ;;  %v2205_v21 = vsel %vm17776_vm7, %v2189_v48, %v2204_v15  ;;  %v2206_v6 = vrot.slane %v2190_v50, 7  ;;  %vm2127_vm2 = vcmp.eq.f32.partialorder %v2126_v51, 8.507059e+37  ;;  %v8335_v38 = vld [vmem:[%s17617_s2 + $0x188] sm:$0xff]  ;;  %v8336_v13 = vld [vmem:[%s17617_s2 + $0x190] sm:$0xff]  ;;  %v8337_v35 = vld [vmem:[%s17617_s2 + $0x198] sm:$0xff] }
 0x278   : > { %v7487_v28 = vpop.eup %7486  ;;  %v2115_v37 = vsel %vm11439_vm4, %v2114_v46, %v2110_v43  ;;  %v2193_v10 = vmul.f32 %v7485_v20, %v2100_v47  ;;  %v2208_v31 = vrot.slane %v2191_v0, 6  ;;  %v2130_v63 = vsel %vm2127_vm2, %v2129_v33, %v2125_v1  ;;  %v8338_v62 = vld [vmem:[%s17617_s2 + $0x160] sm:$0xff]  ;;  %v8341_v51 = vld [vmem:[%s17617_s2 + $0x178] sm:$0xff]  ;;  %v8343_v43 = vld [vmem:[%s17617_s2 + $0x148] sm:$0xff] }
 0x279   : > { %v7489_v9 = vpop.eup %7488  ;;  %v2194_v49 = vmul.f32 %v7487_v28, %v2115_v37  ;;  %v2207_v57 = vsel %vm17775_vm8, %v2206_v6, %v2205_v21  ;;  %v2210_v25 = vrot.slane %v2192_v56, 5  ;;  %v8342_v58 = vld [vmem:[%s17617_s2 + $0x140] sm:$0xff]  ;;  %v8345_v48 = vld [vmem:[%s17617_s2 + $0x158] sm:$0xff]  ;;  %v8347_v15 = vld [vmem:[%s17617_s2 + $0x128] sm:$0xff] }
 0x27a   : > { %v2195_v5 = vmul.f32 %v7489_v9, %v2130_v63  ;;  %v2209_v8 = vsel %vm17774_vm9, %v2208_v31, %v2207_v57  ;;  %v2212_v11 = vrot.slane %v2193_v10, 4  ;;  %v8346_v50 = vld [vmem:[%s17617_s2 + $0x120] sm:$0xff]  ;;  %v8348_v32 = vld [vmem:[%s17617_s2 + $0x130] sm:$0xff]  ;;  %v8349_v47 = vld [vmem:[%s17617_s2 + $0x138] sm:$0xff] }
 0x27b   : > { %v2211_v52 = vsel %vm17773_vm10, %v2210_v25, %v2209_v8  ;;  %v2214_v27 = vrot.slane %v2194_v49, 3  ;;  %v8350_v46 = vld [vmem:[%s17617_s2 + $0x100] sm:$0xff]  ;;  %v8351_v1 = vld [vmem:[%s17617_s2 + $0x108] sm:$0xff]  ;;  %v8352_v0 = vld [vmem:[%s17617_s2 + $0x110] sm:$0xff] }
 0x27c   : > { %v2213_v41 = vsel %vm17772_vm11, %v2212_v11, %v2211_v52  ;;  %v2216_v18 = vrot.slane %v2195_v5, 2  ;;  %v8353_v20 = vld [vmem:[%s17617_s2 + $0x118] sm:$0xff]  ;;  %v8354_v33 = vld [vmem:[%s17617_s2 + $0xe0] sm:$0xff]  ;;  %v8355_v56 = vld [vmem:[%s17617_s2 + $0xe8] sm:$0xff] }
 0x27d   : > { %v2215_v16 = vsel %vm17722_vm12, %v2214_v27, %v2213_v41  ;;  %v8356_v21 = vld [vmem:[%s17617_s2 + $0xf0] sm:$0xff]  ;;  %v8357_v6 = vld [vmem:[%s17617_s2 + $0xf8] sm:$0xff]  ;;  %v8358_v28 = vld [vmem:[%s17617_s2 + $0xc0] sm:$0xff] }
 0x27e   : > { %v2217_v14 = vsel %vm17721_vm13, %v2216_v18, %v2215_v16  ;;  %v8359_v37 = vld [vmem:[%s17617_s2 + $0xc8] sm:$0xff]  ;;  %v8360_v10 = vld [vmem:[%s17617_s2 + $0xd0] sm:$0xff]  ;;  %v8361_v31 = vld [vmem:[%s17617_s2 + $0xd8] sm:$0xff] }
 0x27f   : > { %2235 = vmatmul.f32.vlgmr.msrb.gmra.mxu0 %v2217_v14  ;;  %2255 = vmatmul.f32.vlgmr.msrb.gmra.mxu1 %v2217_v14  ;;  %v8362_v9 = vld [vmem:[%s17617_s2 + $0xa0] sm:$0xff]  ;;  %v8363_v63 = vld [vmem:[%s17617_s2 + $0xa8] sm:$0xff]  ;;  %v8364_v49 = vld [vmem:[%s17617_s2 + $0xb0] sm:$0xff] }
 0x280   : > { %2275 = vmatmul.f32.vlgmr.msrb.gmra.mxu2 %v2217_v14  ;;  %2295 = vmatmul.f32.vlgmr.msrb.gmra.mxu3 %v2217_v14  ;;  %v8365_v57 = vld [vmem:[%s17617_s2 + $0xb8] sm:$0xff]  ;;  %v8366_v25 = vld [vmem:[%s17617_s2 + $0x80] sm:$0xff]  ;;  %v8367_v5 = vld [vmem:[%s17617_s2 + $0x88] sm:$0xff] }
 0x281   : > { %3673 = vmatpush.msrb.mxu0 %v8322_v59  ;;  %3693 = vmatpush.msrb.mxu1 %v8323_v22  ;;  %v8368_v8 = vld [vmem:[%s17617_s2 + $0x90] sm:$0xff]  ;;  %v8369_v11 = vld [vmem:[%s17617_s2 + $0x98] sm:$0xff]  ;;  %v8370_v52 = vld [vmem:[%s17617_s2 + $0x60] sm:$0xff] }
 0x282   : > { %3713 = vmatpush.msrb.mxu2 %v8324_v23  ;;  %3733 = vmatpush.msrb.mxu3 %v8325_v17  ;;  %v8371_v27 = vld [vmem:[%s17617_s2 + $0x68] sm:$0xff]  ;;  %v8372_v41 = vld [vmem:[%s17617_s2 + $0x70] sm:$0xff]  ;;  %v8373_v18 = vld [vmem:[%s17617_s2 + $0x78] sm:$0xff] }
 0x283   : > { %3674 = vmatpush.msrb.mxu0 %v8326_v54  ;;  %3694 = vmatpush.msrb.mxu1 %v8327_v4  ;;  %v8374_v16 = vld [vmem:[%s17617_s2 + $0x40] sm:$0xff]  ;;  %v8375_v14 = vld [vmem:[%s17617_s2 + $0x48] sm:$0xff]  ;;  %v8376_v59 = vld [vmem:[%s17617_s2 + $0x50] sm:$0xff] }
 0x284   : > { %3714 = vmatpush.msrb.mxu2 %v8328_v19  ;;  %3734 = vmatpush.msrb.mxu3 %v8329_v36  ;;  %v8377_v22 = vld [vmem:[%s17617_s2 + $0x58] sm:$0xff]  ;;  %v8378_v23 = vld [vmem:[%s17617_s2 + $0x20] sm:$0xff]  ;;  %v8379_v17 = vld [vmem:[%s17617_s2 + $0x28] sm:$0xff] }
 0x285   : > { %3675 = vmatpush.msrb.mxu0 %v8330_v7  ;;  %3695 = vmatpush.msrb.mxu1 %v8331_v34  ;;  %v8380_v54 = vld [vmem:[%s17617_s2 + $0x30] sm:$0xff]  ;;  %v8381_v4 = vld [vmem:[%s17617_s2 + $0x38] sm:$0xff]  ;;  %v8382_v19 = vld [vmem:[%s17617_s2] sm:$0xff] }
 0x286   : > { %3715 = vmatpush.msrb.mxu2 %v8332_v29  ;;  %3735 = vmatpush.msrb.mxu3 %v8333_v60  ;;  %v8383_v36 = vld [vmem:[%s17617_s2 + $0x8] sm:$0xff]  ;;  %v8384_v7 = vld [vmem:[%s17617_s2 + $0x10] sm:$0xff]  ;;  %v8385_v34 = vld [vmem:[%s17617_s2 + $0x18] sm:$0xff] }
 0x287   : > { %3676 = vmatpush.msrb.mxu0 %v8334_v42  ;;  %3696 = vmatpush.msrb.mxu1 %v8335_v38 }
 0x288   : > { %3716 = vmatpush.msrb.mxu2 %v8336_v13  ;;  %3736 = vmatpush.msrb.mxu3 %v8337_v35 }
 0x289   : > { %3677 = vmatpush.msrb.mxu0 %v8338_v62  ;;  %3697 = vmatpush.msrb.mxu1 %v8339_v45  ;;  %v18048_v62 = vld [vmem:[#allocation10_spill] sm:$0xff] }
 0x28a   : > { %3717 = vmatpush.msrb.mxu2 %v8340_v24  ;;  %3737 = vmatpush.msrb.mxu3 %v8341_v51  ;;  %v18049_v24 = vld [vmem:[#allocation11_spill] sm:$0xff] }
 0x28b   : > { %3678 = vmatpush.msrb.mxu0 %v8342_v58  ;;  %3698 = vmatpush.msrb.mxu1 %v8343_v43  ;;  %v18050_v58 = vld [vmem:[#allocation15_spill] sm:$0xff] }
 0x28c   : > { %3718 = vmatpush.msrb.mxu2 %v8344_v39  ;;  %3738 = vmatpush.msrb.mxu3 %v8345_v48  ;;  %v18051_v48 = vld [vmem:[#allocation16_spill] sm:$0xff] }
 0x28d   : > { %3679 = vmatpush.msrb.mxu0 %v8346_v50  ;;  %3699 = vmatpush.msrb.mxu1 %v8347_v15  ;;  %v18052_v15 = vld [vmem:[#allocation17_spill] sm:$0xff] }
 0x28e   : > { %3719 = vmatpush.msrb.mxu2 %v8348_v32  ;;  %3739 = vmatpush.msrb.mxu3 %v8349_v47 }
 0x28f   : > { %3680 = vmatpush.msrb.mxu0 %v8350_v46  ;;  %3700 = vmatpush.msrb.mxu1 %v8351_v1  ;;  %v18053_v1 = vld [vmem:[#allocation18_spill] sm:$0xff] }
 0x290   : > { %3720 = vmatpush.msrb.mxu2 %v8352_v0  ;;  %3740 = vmatpush.msrb.mxu3 %v8353_v20 }
 0x291   : > { %3681 = vmatpush.msrb.mxu0 %v8354_v33  ;;  %3701 = vmatpush.msrb.mxu1 %v8355_v56  ;;  %v18054_v33 = vld [vmem:[#allocation19_spill] sm:$0xff] }
 0x292   : > { %3721 = vmatpush.msrb.mxu2 %v8356_v21  ;;  %3741 = vmatpush.msrb.mxu3 %v8357_v6 }
 0x293   : > { %3682 = vmatpush.msrb.mxu0 %v8358_v28  ;;  %3702 = vmatpush.msrb.mxu1 %v8359_v37 }
 0x294   : > { %3722 = vmatpush.msrb.mxu2 %v8360_v10  ;;  %3742 = vmatpush.msrb.mxu3 %v8361_v31 }
 0x295   : > { %3683 = vmatpush.msrb.mxu0 %v8362_v9  ;;  %3703 = vmatpush.msrb.mxu1 %v8363_v63 }
 0x296   : > { %3723 = vmatpush.msrb.mxu2 %v8364_v49  ;;  %3743 = vmatpush.msrb.mxu3 %v8365_v57  ;;  %v18055_v57 = vld [vmem:[#allocation22_spill] sm:$0xff] }
 0x297   : > { %3684 = vmatpush.msrb.mxu0 %v8366_v25  ;;  %3704 = vmatpush.msrb.mxu1 %v8367_v5 }
 0x298   : > { %3724 = vmatpush.msrb.mxu2 %v8368_v8  ;;  %3744 = vmatpush.msrb.mxu3 %v8369_v11  ;;  %v18056_v8 = vld [vmem:[#allocation20_spill] sm:$0xff] }
 0x299   : > { %3685 = vmatpush.msrb.mxu0 %v8370_v52  ;;  %3705 = vmatpush.msrb.mxu1 %v8371_v27 }
 0x29a   : > { %3725 = vmatpush.msrb.mxu2 %v8372_v41  ;;  %3745 = vmatpush.msrb.mxu3 %v8373_v18 }
 0x29b   : > { %3686 = vmatpush.msrb.mxu0 %v8374_v16  ;;  %3706 = vmatpush.msrb.mxu1 %v8375_v14 }
 0x29c   : > { %3726 = vmatpush.msrb.mxu2 %v8376_v59  ;;  %3746 = vmatpush.msrb.mxu3 %v8377_v22 }
 0x29d   : > { %3687 = vmatpush.msrb.mxu0 %v8378_v23  ;;  %3707 = vmatpush.msrb.mxu1 %v8379_v17 }
 0x29e   : > { %3727 = vmatpush.msrb.mxu2 %v8380_v54  ;;  %3747 = vmatpush.msrb.mxu3 %v8381_v4 }
 0x29f   : > { %3688 = vmatpush.msrb.mxu0 %v8382_v19  ;;  %3708 = vmatpush.msrb.mxu1 %v8383_v36 }
 0x2a0   : > { %3728 = vmatpush.msrb.mxu2 %v8384_v7  ;;  %3748 = vmatpush.msrb.mxu3 %v8385_v34  ;;  %v18057_v34 = vld [vmem:[#allocation24_spill] sm:$0xff] }
 0x2fc   : > { %v2236_v29 = vpop.f32.mrf.mxu0  ;;  %v2256_v6 = vpop.f32.mrf.mxu1 }
 0x2fd   : > { %v2303_v60 = vrot.slane %v2236_v29, 6  ;;  %v2307_v42 = vrot.slane %v2236_v29, 7  ;;  %v2311_v38 = vrot.slane %v2236_v29, 1  ;;  %v2315_v13 = vrot.slane %v2236_v29, 2 }
 0x2fe   : > { %v2319_v35 = vrot.slane %v2236_v29, 3  ;;  %v2371_v43 = vadd.f32 %v2236_v29, %v18050_v58  ;;  %v2323_v39 = vrot.slane %v2236_v29, 4  ;;  %v2327_v37 = vrot.slane %v2236_v29, 5 }
 0x2ff   : > { %v2363_v45 = vadd.f32 %v2303_v60, %v18048_v62  ;;  %v2367_v51 = vadd.f32 %v2307_v42, %v18049_v24  ;;  %v2375_v50 = vadd.f32 %v2311_v38, %v18051_v48  ;;  %v2379_v32 = vadd.f32 %v2315_v13, %v18052_v15  ;;  %v18066_v60 = vld [vmem:[#allocation28_spill] sm:$0xff] }
 0x300   : > { %v2383_v0 = vadd.f32 %v2319_v35, %v18053_v1  ;;  %v7042_v20 = vmul.f32 -1.442695, %v2371_v43  ;;  %v2387_v56 = vadd.f32 %v2323_v39, %v18054_v33  ;;  %v2304_v31 = vrot.slane %v2256_v6, 6 }
 0x301   : > { %v7040_v47 = vmul.f32 -1.442695, %v2363_v45  ;;  %v7041_v46 = vmul.f32 -1.442695, %v2367_v51  ;;  %v7043_v21 = vmul.f32 -1.442695, %v2375_v50  ;;  %v2391_v25 = vadd.f32 %v2327_v37, %v18055_v57 }
 0x302   : > { %v7044_v28 = vmul.f32 -1.442695, %v2379_v32  ;;  %v7045_v10 = vmul.f32 -1.442695, %v2383_v0  ;;  %v7046_v9 = vmul.f32 -1.442695, %v2387_v56  ;;  %v2364_v11 = vadd.f32 %v2304_v31, %v18056_v8 }
 0x303   : > { %7490 = vpow2.f32 %v7040_v47  ;;  %v2308_v52 = vrot.slane %v2256_v6, 7  ;;  %v7047_v14 = vmul.f32 -1.442695, %v2391_v25  ;;  %v2312_v23 = vrot.slane %v2256_v6, 1  ;;  %v18058_v51 = vld [vmem:[#allocation27_spill] sm:$0xff]  ;;  %v18059_v32 = vld [vmem:[#allocation30_spill] sm:$0xff] }
 0x304   : > { %7492 = vpow2.f32 %v7041_v46  ;;  %v2316_v17 = vrot.slane %v2256_v6, 2  ;;  %v7048_v54 = vmul.f32 -1.442695, %v2364_v11  ;;  %v2320_v36 = vrot.slane %v2256_v6, 3  ;;  %v18060_v46 = vld [vmem:[#allocation33_spill] sm:$0xff]  ;;  %v11707_v11 = vpop.f32.mrf.mxu2 }
 0x305   : > { %7494 = vpow2.f32 %v7042_v20  ;;  %v2324_v7 = vrot.slane %v2256_v6, 4  ;;  %v2368_v29 = vadd.f32 %v2308_v52, %v18057_v34  ;;  %v2328_v38 = vrot.slane %v2256_v6, 5  ;;  %v18061_v20 = vld [vmem:[#allocation36_spill] sm:$0xff] }
 0x306   : > { %7496 = vpow2.f32 %v7043_v21  ;;  %v2372_v43 = vadd.f32 %v2256_v6, %v18058_v51  ;;  %v2376_v47 = vadd.f32 %v2312_v23, %v18059_v32  ;;  %v2380_v0 = vadd.f32 %v2316_v17, %v18060_v46  ;;  %v18062_v21 = vld [vmem:[#allocation39_spill] sm:$0xff]  ;;  %v18063_v6 = vld [vmem:[#allocation41_spill] sm:$0xff] }
 0x307   : > { %7498 = vpow2.f32 %v7044_v28  ;;  %v2384_v56 = vadd.f32 %v2320_v36, %v18061_v20  ;;  %v2388_v28 = vadd.f32 %v2324_v7, %v18062_v21  ;;  %v7049_v37 = vmul.f32 -1.442695, %v2368_v29  ;;  %v18071_v51 = vld [vmem:[#allocation43_spill] sm:$0xff] }
 0x308   : > { %7500 = vpow2.f32 %v7045_v10  ;;  %v7050_v25 = vmul.f32 -1.442695, %v2372_v43  ;;  %v7052_v23 = vmul.f32 -1.442695, %v2380_v0  ;;  %v2305_v7 = vrot.slane %v11707_v11, 6  ;;  %v18065_v10 = vld [vmem:[#allocation25_spill] sm:$0xff] }
 0x309   : > { %v7491_v63 = vpop.eup %7490  ;;  %7502 = vpow2.f32 %v7046_v9  ;;  %v2392_v9 = vadd.f32 %v2328_v38, %v18063_v6  ;;  %v7053_v17 = vmul.f32 -1.442695, %v2384_v56  ;;  %v2309_v29 = vrot.slane %v11707_v11, 7 }
 0x30a   : > { %v7493_v49 = vpop.eup %7492  ;;  %v11670_v5 = vadd.f32 1.0, %v7491_v63  ;;  %v2317_v56 = vrot.slane %v11707_v11, 2  ;;  %v18064_v63 = vld [vmem:[#allocation21_spill] sm:$0xff]  ;;  %v11744_v16 = vadd.f32 %v11707_v11, %v18066_v60 }
 0x30b   : > { %v7495_v27 = vpop.eup %7494  ;;  %v11673_v41 = vadd.f32 1.0, %v7493_v49  ;;  %v7055_v36 = vmul.f32 -1.442695, %v2392_v9  ;;  %v11740_v35 = vadd.f32 %v2309_v29, %v18065_v10 }
 0x30c   : > { %7504 = vrcp.f32 %v11670_v5  ;;  %v7497_v18 = vpop.eup %7496  ;;  %v11678_v19 = vadd.f32 1.0, %v7495_v27  ;;  %vm2432_vm14 = vweird.f32 %v11670_v5 }
 0x30d   : > { %v7499_v59 = vpop.eup %7498  ;;  %v11682_v42 = vadd.f32 1.0, %v7497_v18  ;;  %7506 = vrcp.f32 %v11673_v41  ;;  %vm2447_vm4 = vweird.f32 %v11673_v41 }
 0x30e   : > { %v7501_v4 = vpop.eup %7500  ;;  %7508 = vpow2.f32 %v7047_v14  ;;  %v11686_v45 = vadd.f32 1.0, %v7499_v59  ;;  %v7051_v14 = vmul.f32 -1.442695, %v2376_v47  ;;  %v2313_v47 = vrot.slane %v11707_v11, 1 }
 0x30f   : > { %v7503_v13 = vpop.eup %7502  ;;  %v11691_v50 = vadd.f32 1.0, %v7501_v4  ;;  %7510 = vpow2.f32 %v7048_v54  ;;  %v7054_v54 = vmul.f32 -1.442695, %v2388_v28  ;;  %v2321_v28 = vrot.slane %v11707_v11, 3 }
 0x310   : > { %7512 = vrcp.f32 %v11678_v19  ;;  %v11699_v31 = vadd.f32 1.0, %v7503_v13  ;;  %vm2462_vm2 = vweird.f32 %v11678_v19 }
 0x311   : > { %7514 = vrcp.f32 %v11682_v42 }
 0x312   : > { %v11689_v39 = vpop.eup %7504  ;;  %7516 = vrcp.f32 %v11686_v45 }
 0x313   : > { %v2428_v49 = vmul.f32 %v11689_v39, %v11670_v5  ;;  %v11709_v52 = vpop.eup %7506  ;;  %7518 = vrcp.f32 %v11691_v50  ;;  %vm2433_vm1 = vweird.f32 %v11689_v39 }
 0x314   : > { %v7509_v59 = vpop.eup %7508  ;;  %7520 = vpow2.f32 %v7049_v37  ;;  %v2443_v43 = vmul.f32 %v11709_v52, %v11673_v41  ;;  %v2325_v37 = vrot.slane %v11707_v11, 4  ;;  %vm11801_vm3 = vmor %vm2432_vm14, %vm2433_vm1  ;;  %vm2448_vm15 = vweird.f32 %v11709_v52 }
 0x315   : > { %v7511_v4 = vpop.eup %7510  ;;  %7522 = vrcp.f32 %v11699_v31  ;;  %v2429_v13 = vsub.f32 1.0, %v2428_v49  ;;  %v11729_v18 = vadd.f32 1.0, %v7509_v59  ;;  %vm11844_vm0 = vmor %vm2447_vm4, %vm2448_vm15  ;;  %vm2477_vm4 = vweird.f32 %v11682_v42 }
 0x316   : > { %v11717_v38 = vpop.eup %7512  ;;  %7524 = vpow2.f32 %v7050_v25  ;;  %v11731_v49 = vadd.f32 1.0, %v7511_v4  ;;  %v2329_v25 = vrot.slane %v11707_v11, 5  ;;  %v2444_v22 = vsub.f32 1.0, %v2443_v43  ;;  %v18069_v11 = vld [vmem:[#allocation37_spill] sm:$0xff] }
 0x317   : > { %v11722_v0 = vpop.eup %7514  ;;  %7526 = vpow2.f32 %v7051_v14  ;;  %v11737_v14 = vadd.f32 %v2305_v7, %v18064_v63  ;;  %v2430_v6 = vmul.f32 %v11689_v39, %v2429_v13  ;;  %v18068_v7 = vld [vmem:[#allocation34_spill] sm:$0xff]  ;;  %v11760_v60 = vadd.f32 %v2321_v28, %v18069_v11 }
 0x318   : > { %v11727_v9 = vpop.eup %7516  ;;  %7528 = vpow2.f32 %v7052_v23  ;;  %v18067_v23 = vld [vmem:[#allocation31_spill] sm:$0xff]  ;;  %v11757_v29 = vadd.f32 %v2317_v56, %v18068_v7  ;;  %v2436_v56 = vand.u32 2147483647, %v11670_v5  ;;  %v2438_v28 = vand.u32 2147483648, %v11670_v5  ;;  %v18070_v7 = vld [vmem:[#allocation40_spill] sm:$0xff] }
 0x319   : > { %v11734_v27 = vpop.eup %7518  ;;  %7530 = vpow2.f32 %v7053_v17  ;;  %v11747_v4 = vadd.f32 %v2313_v47, %v18067_v23  ;;  %v11754_v17 = vmul.f32 %v11717_v38, %v11678_v19  ;;  %v11768_v13 = vmul.f32 %v11727_v9, %v11686_v45 }
 0x31a   : > { %v7521_v59 = vpop.eup %7520  ;;  %7532 = vpow2.f32 %v7054_v54  ;;  %v11764_v54 = vmul.f32 %v11722_v0, %v11682_v42  ;;  %v2590_v47 = vand.u32 2147483648, %v11731_v49  ;;  %v11778_v10 = vadd.f32 %v2325_v37, %v18070_v7  ;;  %v11818_v37 = vpop.f32.mrf.mxu3 }
 0x31b   : > { %v11750_v21 = vpop.eup %7522  ;;  %7534 = vpow2.f32 %v7055_v36  ;;  %v11772_v23 = vadd.f32 1.0, %v7521_v59  ;;  %v2431_v63 = vadd.f32 %v11689_v39, %v2430_v6  ;;  %v2445_v20 = vmul.f32 %v11709_v52, %v2444_v22 }
 0x31c   : > { %v7525_v43 = vpop.eup %7524  ;;  %7536 = vrcp.f32 %v11729_v18  ;;  %v2459_v59 = vsub.f32 1.0, %v11754_v17  ;;  %v11787_v34 = vadd.f32 %v2329_v25, %v18071_v51  ;;  %v11794_v57 = vor.u32 1.1754944e-38, %v2590_v47 }
 0x31d   : > { %v7527_v36 = vpop.eup %7526  ;;  %7538 = vrcp.f32 %v11731_v49  ;;  %v11784_v32 = vadd.f32 1.0, %v7525_v43  ;;  %v2605_v17 = vand.u32 2147483648, %v11772_v23  ;;  %vm11805_vm5 = vcmp.eq.f32.partialorder %v2436_v56, 8.507059e+37 }
 0x31e   : > { %v7529_v11 = vpop.eup %7528  ;;  %v11792_v6 = vadd.f32 1.0, %v7527_v36  ;;  %v2439_v43 = vor.u32 1.1754944e-38, %v2438_v28  ;;  %7540 = vrcp.f32 %v11772_v23  ;;  %v2446_v7 = vadd.f32 %v11709_v52, %v2445_v20 }
 0x31f   : > { %v7531_v46 = vpop.eup %7530  ;;  %v11796_v33 = vadd.f32 1.0, %v7529_v11  ;;  %v2435_v11 = vsel %vm11801_vm3, %v11689_v39, %v2431_v63  ;;  %7542 = vrcp.f32 %v11784_v32  ;;  %v2620_v28 = vand.u32 2147483648, %v11784_v32 }
 0x320   : > { %v7533_v8 = vpop.eup %7532  ;;  %v11811_v47 = vadd.f32 1.0, %v7531_v46  ;;  %7544 = vrcp.f32 %v11792_v6  ;;  %v2451_v39 = vand.u32 2147483647, %v11673_v41  ;;  %v2453_v20 = vand.u32 2147483648, %v11673_v41 }
 0x321   : > { %v7535_v22 = vpop.eup %7534  ;;  %v11822_v56 = vadd.f32 1.0, %v7533_v8  ;;  %v11832_v63 = vor.u32 1.1754944e-38, %v2605_v17  ;;  %7546 = vrcp.f32 %v11796_v33  ;;  %v2306_v8 = vrot.slane %v11818_v37, 6 }
 0x322   : > { %v11809_v36 = vpop.eup %7536  ;;  %v11827_v46 = vadd.f32 1.0, %v7535_v22  ;;  %7548 = vrcp.f32 %v11811_v47  ;;  %v11842_v22 = vsel %vm11805_vm5, %v2439_v43, %v2435_v11  ;;  %v2310_v17 = vrot.slane %v11818_v37, 7 }
 0x323   : > { %v11820_v51 = vpop.eup %7538  ;;  %v11849_v15 = vor.u32 1.1754944e-38, %v2620_v28  ;;  %7550 = vrcp.f32 %v11822_v56  ;;  %v2450_v41 = vsel %vm11844_vm0, %v11709_v52, %v2446_v7  ;;  %v2460_v48 = vmul.f32 %v11717_v38, %v2459_v59  ;;  %v18081_v52 = vld [vmem:[#allocation23_spill] sm:$0xff] }
 0x324   : > { %v2580_v25 = vmul.f32 %v11820_v51, %v11731_v49  ;;  %v11856_v58 = vpop.eup %7540  ;;  %7552 = vrcp.f32 %v11827_v46  ;;  %vm11859_vm6 = vcmp.eq.f32.partialorder %v2451_v39, 8.507059e+37  ;;  %v2454_v43 = vor.u32 1.1754944e-38, %v2453_v20  ;;  %v18082_v20 = vld [vmem:[#allocation26_spill] sm:$0xff] }
 0x325   : > { %18078 = vst [vmem:[#allocation53_spill] sm:$0xff] %v11849_v15  ;;  %v2314_v11 = vrot.slane %v11818_v37, 1  ;;  %v11864_v28 = vpop.eup %7542  ;;  %vm2463_vm1 = vweird.f32 %v11717_v38  ;;  %v2318_v1 = vrot.slane %v11818_v37, 2  ;;  %v2366_v7 = vadd.f32 %v2306_v8, %v18081_v52 }
 0x326   : > { %v11870_v59 = vpop.eup %7544  ;;  %v2581_v24 = vsub.f32 1.0, %v2580_v25  ;;  %7554 = vtanh.f32 %v11737_v14  ;;  %v2322_v39 = vrot.slane %v11818_v37, 3  ;;  %v2370_v62 = vadd.f32 %v2310_v17, %v18082_v20  ;;  %v18084_v17 = vld [vmem:[#allocation32_spill] sm:$0xff]  ;;  %vm11920_vm14 = vmor %vm2462_vm2, %vm2463_vm1 }
 0x327   : > { %v11875_v26 = vpop.eup %7546  ;;  %v2595_v3 = vmul.f32 %v11856_v58, %v11772_v23  ;;  %v2461_v44 = vadd.f32 %v11717_v38, %v2460_v48  ;;  %7556 = vtanh.f32 %v11740_v35  ;;  %v2374_v8 = vadd.f32 %v11818_v37, %v18083_v40 }
 0x328   : > { %v11883_v52 = vpop.eup %7548  ;;  %v2610_v14 = vmul.f32 %v11864_v28, %v11784_v32  ;;  %7558 = vtanh.f32 %v11744_v16  ;;  %v2326_v25 = vrot.slane %v11818_v37, 4  ;;  %v2378_v20 = vadd.f32 %v2314_v11, %v18084_v17  ;;  %v18085_v16 = vld [vmem:[#allocation38_spill] sm:$0xff] }
 0x329   : > { %v11890_v30 = vpop.eup %7550  ;;  %7560 = vtanh.f32 %v11747_v4  ;;  %v2330_v48 = vrot.slane %v11818_v37, 5  ;;  %v2382_v35 = vadd.f32 %v2318_v1, %v17950_v2  ;;  %v7056_v40 = vmul.f32 -1.442695, %v2366_v7 }
 0x32a   : > { %v11895_v53 = vpop.eup %7552  ;;  %v2455_v12 = vsel %vm11859_vm6, %v2454_v43, %v2450_v41  ;;  %7562 = vtanh.f32 %v11757_v29  ;;  %v2386_v55 = vadd.f32 %v2322_v39, %v18085_v16  ;;  %v7057_v15 = vmul.f32 -1.442695, %v2370_v62  ;;  %v18086_v62 = vld [vmem:[#allocation44_spill] sm:$0xff] }
 0x32b   : > { %v2466_v11 = vand.u32 2147483647, %v11678_v19  ;;  %v2468_v17 = vand.u32 2147483648, %v11678_v19  ;;  %7564 = vtanh.f32 %v11760_v60  ;;  %v7058_v4 = vmul.f32 -1.442695, %v2374_v8 }
 0x32c   : > { %v7555_v37 = vpop.eup %7554  ;;  %v2596_v1 = vsub.f32 1.0, %v2595_v3  ;;  %7566 = vtanh.f32 %v11778_v10  ;;  %v2390_v7 = vadd.f32 %v2326_v25, %v9586_v61  ;;  %v7059_v5 = vmul.f32 -1.442695, %v2378_v20 }
 0x32d   : > { %v7557_v41 = vpop.eup %7556  ;;  %v11908_v29 = vmul.f32 %v11870_v59, %v11792_v6  ;;  %v2394_v43 = vadd.f32 %v2330_v48, %v18086_v62  ;;  %7568 = vpow2.f32 %v7056_v40  ;;  %v7060_v39 = vmul.f32 -1.442695, %v2382_v35 }
 0x32e   : > { %v11911_v16 = vpop.eup %7558  ;;  %v11914_v60 = vmul.f32 %v11820_v51, %v2581_v24  ;;  %v2611_v3 = vsub.f32 1.0, %v2610_v14  ;;  %7570 = vpow2.f32 %v7057_v15  ;;  %v7061_v20 = vmul.f32 -1.442695, %v2386_v55 }
 0x32f   : > { %v11924_v8 = vpop.eup %7560  ;;  %v11928_v40 = vmul.f32 %v11875_v26, %v11796_v33  ;;  %v2465_v24 = vsel %vm11920_vm14, %v11717_v38, %v2461_v44  ;;  %vm11933_vm3 = vcmp.eq.f32.partialorder %v2466_v11, 8.507059e+37  ;;  %7572 = vpow2.f32 %v7058_v4 }
 0x330   : > { %v11937_v19 = vpop.eup %7562  ;;  %v2469_v25 = vor.u32 1.1754944e-38, %v2468_v17  ;;  %7574 = vpow2.f32 %v7059_v5  ;;  %v7062_v55 = vmul.f32 -1.442695, %v2390_v7  ;;  %v2503_v15 = vmul.f32 %v11734_v27, %v11691_v50 }
 0x331   : > { %v11941_v48 = vpop.eup %7564  ;;  %v11944_v35 = vmul.f32 %v11856_v58, %v2596_v1  ;;  %7576 = vpow2.f32 %v7060_v39  ;;  %v7063_v38 = vmul.f32 -1.442695, %v2394_v43  ;;  %v11950_v4 = vmul.f32 %v11864_v28, %v2611_v3 }
 0x332   : > { %v11947_v11 = vpop.eup %7566  ;;  %7578 = vpow2.f32 %v7061_v20  ;;  %v18091_v17 = vsub.f32 1.0, %v11764_v54  ;;  %v18092_v5 = vsub.f32 1.0, %v11768_v13  ;;  %v2470_v43 = vsel %vm11933_vm3, %v2469_v25, %v2465_v24 }
 0x333   : > { %v7569_v1 = vpop.eup %7568  ;;  %7580 = vtanh.f32 %v11787_v34  ;;  %v11963_v39 = vmul.f32 %v7555_v37, %v11842_v22  ;;  %v11965_v20 = vmul.f32 %v7557_v41, %v2455_v12  ;;  %v2504_v54 = vsub.f32 1.0, %v2503_v15 }
 0x334   : > { %v2475_v7 = vmul.f32 %v11722_v0, %v18091_v17  ;;  %v2490_v10 = vmul.f32 %v11727_v9, %v18092_v5  ;;  %v7571_v3 = vpop.eup %7570  ;;  %7582 = vpow2.f32 %v7062_v55  ;;  %v2518_v13 = vmul.f32 %v11750_v21, %v11699_v31 }
 0x335   : > { %v7573_v17 = vpop.eup %7572  ;;  %7584 = vpow2.f32 %v7063_v38  ;;  %vm2478_vm5 = vweird.f32 %v11722_v0  ;;  %v2481_v14 = vand.u32 2147483647, %v11682_v42  ;;  %v2483_v24 = vand.u32 2147483648, %v11682_v42 }
 0x336   : > { %v7575_v34 = vpop.eup %7574  ;;  %v11972_v25 = vadd.f32 1.0, %v7569_v1  ;;  %v2476_v22 = vadd.f32 %v11722_v0, %v2475_v7  ;;  %v2491_v12 = vadd.f32 %v11727_v9, %v2490_v10  ;;  %vm2493_vm15 = vweird.f32 %v11727_v9  ;;  %vm11986_vm0 = vmor %vm2477_vm4, %vm2478_vm5 }
 0x337   : > { %v7577_v37 = vpop.eup %7576  ;;  %v11977_v41 = vadd.f32 1.0, %v7571_v3  ;;  %v2496_v55 = vand.u32 2147483647, %v11686_v45  ;;  %v2498_v15 = vand.u32 2147483648, %v11686_v45  ;;  %v11982_v5 = vadd.f32 1.0, %v7573_v17 }
 0x338   : > { %v7579_v38 = vpop.eup %7578  ;;  %vm2492_vm6 = vweird.f32 %v11686_v45  ;;  %v2505_v10 = vmul.f32 %v11734_v27, %v2504_v54  ;;  %v2519_v1 = vsub.f32 1.0, %v2518_v13  ;;  %v11994_v42 = vadd.f32 1.0, %v7575_v34 }
 0x339   : > { %v11992_v3 = vpop.eup %7580  ;;  %vm11996_vm2 = vcmp.eq.f32.partialorder %v2481_v14, 8.507059e+37  ;;  %v2484_v17 = vor.u32 1.1754944e-38, %v2483_v24  ;;  %vm12002_vm1 = vmor %vm2492_vm6, %vm2493_vm15  ;;  %v2533_v45 = vmul.f32 %v11809_v36, %v11729_v18  ;;  %v12008_v13 = vadd.f32 1.0, %v7577_v37 }
 0x33a   : > { %18095 = vst [vmem:[#allocation54_spill] sm:$0xff] %v11992_v3  ;;  %v7583_v54 = vpop.eup %7582  ;;  %7586 = vrcp.f32 %v11972_v25  ;;  %v2480_v14 = vsel %vm11986_vm0, %v11722_v0, %v2476_v22  ;;  %v2495_v24 = vsel %vm12002_vm1, %v11727_v9, %v2491_v12  ;;  %vm2585_vm14 = vweird.f32 %v11820_v51 }
 0x33b   : > { %v7585_v34 = vpop.eup %7584  ;;  %v12018_v61 = vadd.f32 1.0, %v7579_v38  ;;  %7588 = vrcp.f32 %v11977_v41  ;;  %vm12021_vm3 = vcmp.eq.f32.partialorder %v2496_v55, 8.507059e+37  ;;  %v2499_v2 = vor.u32 1.1754944e-38, %v2498_v15 }
 0x33c   : > { %vm2600_vm5 = vweird.f32 %v11856_v58  ;;  %7590 = vrcp.f32 %v11982_v5  ;;  %v2506_v0 = vadd.f32 %v11734_v27, %v2505_v10  ;;  %vm2508_vm15 = vweird.f32 %v11734_v27 }
 0x33d   : > { %v2520_v9 = vmul.f32 %v11750_v21, %v2519_v1  ;;  %vm2584_vm4 = vweird.f32 %v11731_v49  ;;  %v12031_v44 = vadd.f32 1.0, %v7583_v54  ;;  %7592 = vrcp.f32 %v11994_v42 }
 0x33e   : > { %v2513_v22 = vand.u32 2147483648, %v11691_v50  ;;  %v2534_v12 = vsub.f32 1.0, %v2533_v45  ;;  %vm2599_vm0 = vweird.f32 %v11772_v23  ;;  %v12036_v55 = vadd.f32 1.0, %v7585_v34 }
 0x33f   : > { %7594 = vrcp.f32 %v12008_v13  ;;  %vm2507_vm6 = vweird.f32 %v11691_v50  ;;  %v2511_v15 = vand.u32 2147483647, %v11691_v50  ;;  %v12042_v38 = vmul.f32 %v11911_v16, %v2470_v43 }
 0x340   : > { %7596 = vrcp.f32 %v12018_v61  ;;  %v12047_v7 = vsel %vm11996_vm2, %v2484_v17, %v2480_v14  ;;  %v12051_v10 = vsel %vm12021_vm3, %v2499_v2, %v2495_v24  ;;  %vm12055_vm1 = vmor %vm2507_vm6, %vm2508_vm15  ;;  %v12059_v50 = vpop.eup %7586  ;;  %vm2614_vm13 = vweird.f32 %v11784_v32 }
 0x341   : > { %v2510_v16 = vsel %vm12055_vm1, %v11734_v27, %v2506_v0  ;;  %v2521_v62 = vadd.f32 %v11750_v21, %v2520_v9  ;;  %vm2523_vm2 = vweird.f32 %v11750_v21  ;;  %v2526_v2 = vand.u32 2147483647, %v11699_v31  ;;  %v12068_v43 = vpop.eup %7588 }
 0x342   : > { %7598 = vrcp.f32 %v12031_v44  ;;  %v2514_v17 = vor.u32 1.1754944e-38, %v2513_v22  ;;  %v2528_v45 = vand.u32 2147483648, %v11699_v31  ;;  %v2535_v54 = vmul.f32 %v11809_v36, %v2534_v12  ;;  %v12073_v14 = vpop.eup %7590 }
 0x343   : > { %7600 = vrcp.f32 %v12036_v55  ;;  %vm2512_vm3 = vcmp.eq.f32.partialorder %v2511_v15, 8.507059e+37  ;;  %vm2522_vm15 = vweird.f32 %v11699_v31  ;;  %v2541_v27 = vand.u32 2147483647, %v11729_v18  ;;  %v12078_v24 = vpop.eup %7592 }
 0x344   : > { %v12080_v34 = vsel %vm2512_vm3, %v2514_v17, %v2510_v16  ;;  %vm12082_vm6 = vmor %vm2522_vm15, %vm2523_vm2  ;;  %vm2537_vm1 = vweird.f32 %v11729_v18  ;;  %v2543_v0 = vand.u32 2147483648, %v11729_v18  ;;  %v2583_v9 = vadd.f32 %v11820_v51, %v11914_v60  ;;  %v8389_v18 = vld [vmem:[%s17617_s2 + $0x1f8] sm:$0xff] }
 0x345   : > { %v12090_v22 = vpop.eup %7594  ;;  %v2525_v31 = vsel %vm12082_vm6, %v11750_v21, %v2521_v62  ;;  %vm12095_vm12 = vcmp.eq.f32.partialorder %v2526_v2, 8.507059e+37  ;;  %v2588_v15 = vand.u32 2147483647, %v11731_v49  ;;  %v2598_v1 = vadd.f32 %v11856_v58, %v11944_v35  ;;  %vm12113_vm3 = vmor %vm2584_vm4, %vm2585_vm14 }
 0x346   : > { %v12102_v16 = vpop.eup %7596  ;;  %v2529_v17 = vor.u32 1.1754944e-38, %v2528_v45  ;;  %v2536_v60 = vadd.f32 %v11809_v36, %v2535_v54  ;;  %vm2538_vm2 = vweird.f32 %v11809_v36  ;;  %v18108_v3 = vsub.f32 1.0, %v11908_v29  ;;  %vm12131_vm14 = vmor %vm2599_vm0, %vm2600_vm5 }
 0x347   : > { %vm12117_vm15 = vcmp.eq.f32.partialorder %v2541_v27, 8.507059e+37  ;;  %v2603_v2 = vand.u32 2147483647, %v11772_v23  ;;  %v2613_v45 = vadd.f32 %v11864_v28, %v11950_v4  ;;  %vm2615_vm6 = vweird.f32 %v11864_v28  ;;  %vm12148_vm5 = vmor %vm2537_vm1, %vm2538_vm2 }
 0x348   : > { %v2627_v21 = vmul.f32 %v11870_v59, %v18108_v3  ;;  %v12125_v29 = vpop.eup %7598  ;;  %v12137_v3 = vsel %vm12095_vm12, %v2529_v17, %v2525_v31  ;;  %v2544_v54 = vor.u32 1.1754944e-38, %v2543_v0  ;;  %v2587_v4 = vsel %vm12113_vm3, %v11820_v51, %v2583_v9  ;;  %vm12163_vm12 = vmor %vm2614_vm13, %vm2615_vm6 }
 0x349   : > { %v2655_v27 = vmul.f32 %v11883_v52, %v11811_v47  ;;  %v12144_v37 = vpop.eup %7600  ;;  %vm2589_vm4 = vcmp.eq.f32.partialorder %v2588_v15, 8.507059e+37  ;;  %v2602_v0 = vsel %vm12131_vm14, %v11856_v58, %v2598_v1  ;;  %v2618_v31 = vand.u32 2147483647, %v11784_v32 }
 0x34a   : > { %v2670_v51 = vmul.f32 %v11890_v30, %v11822_v56  ;;  %v2540_v9 = vsel %vm12148_vm5, %v11809_v36, %v2536_v60  ;;  %v2628_v12 = vadd.f32 %v11870_v59, %v2627_v21  ;;  %vm2630_vm0 = vweird.f32 %v11870_v59 }
 0x34b   : > { %v2633_v58 = vand.u32 2147483647, %v11792_v6  ;;  %vm2604_vm1 = vcmp.eq.f32.partialorder %v2603_v2, 8.507059e+37  ;;  %v2617_v15 = vsel %vm12163_vm12, %v11864_v28, %v2613_v45  ;;  %v2635_v1 = vand.u32 2147483648, %v11792_v6  ;;  %v18122_v2 = vld [vmem:[#allocation53_spill] sm:$0xff] }
 0x34c   : > { %v18119_v36 = vsub.f32 1.0, %v11928_v40  ;;  %v12178_v17 = vsel %vm2589_vm4, %v11794_v57, %v2587_v4  ;;  %v12181_v60 = vsel %vm2604_vm1, %v11832_v63, %v2602_v0  ;;  %vm2629_vm13 = vweird.f32 %v11792_v6 }
 0x34d   : > { %v2656_v21 = vsub.f32 1.0, %v2655_v27  ;;  %v12186_v62 = vsel %vm12117_vm15, %v2544_v54, %v2540_v9  ;;  %vm2619_vm2 = vcmp.eq.f32.partialorder %v2618_v31, 8.507059e+37  ;;  %vm12188_vm3 = vmor %vm2629_vm13, %vm2630_vm0  ;;  %v2671_v40 = vsub.f32 1.0, %v2670_v51 }
 0x34e   : > { %v2642_v32 = vmul.f32 %v11875_v26, %v18119_v36  ;;  %v2685_v57 = vmul.f32 %v11895_v53, %v11827_v46  ;;  %v12195_v45 = vsel %vm2619_vm2, %v18122_v2, %v2617_v15  ;;  %v2632_v6 = vsel %vm12188_vm3, %v11870_v59, %v2628_v12 }
 0x34f   : > { %vm2634_vm6 = vcmp.eq.f32.partialorder %v2633_v58, 8.507059e+37  ;;  %v2648_v63 = vand.u32 2147483647, %v11796_v33  ;;  %v2636_v35 = vor.u32 1.1754944e-38, %v2635_v1  ;;  %vm2645_vm15 = vweird.f32 %v11875_v26 }
 0x350   : > { %v2643_v49 = vadd.f32 %v11875_v26, %v2642_v32  ;;  %v2740_v54 = vmul.f32 %v12059_v50, %v11972_v25  ;;  %vm2644_vm14 = vweird.f32 %v11796_v33  ;;  %v2650_v4 = vand.u32 2147483648, %v11796_v33 }
 0x351   : > { %v2657_v27 = vmul.f32 %v11883_v52, %v2656_v21  ;;  %v2663_v23 = vand.u32 2147483647, %v11811_v47  ;;  %v12209_v59 = vsel %vm2634_vm6, %v2636_v35, %v2632_v6  ;;  %v2672_v0 = vmul.f32 %v11890_v30, %v2671_v40  ;;  %vm12214_vm5 = vmor %vm2644_vm14, %vm2645_vm15 }
 0x352   : > { %v2686_v31 = vsub.f32 1.0, %v2685_v57  ;;  %v2755_v51 = vmul.f32 %v12068_v43, %v11977_v41  ;;  %vm12218_vm4 = vcmp.eq.f32.partialorder %v2648_v63, 8.507059e+37  ;;  %vm2659_vm12 = vweird.f32 %v11811_v47 }
 0x353   : > { %vm2660_vm0 = vweird.f32 %v11883_v52  ;;  %v2665_v33 = vand.u32 2147483648, %v11811_v47  ;;  %v2647_v12 = vsel %vm12214_vm5, %v11875_v26, %v2643_v49  ;;  %v2678_v58 = vand.u32 2147483647, %v11822_v56 }
 0x354   : > { %v2741_v15 = vsub.f32 1.0, %v2740_v54  ;;  %v2770_v1 = vmul.f32 %v12073_v14, %v11982_v5  ;;  %v2651_v36 = vor.u32 1.1754944e-38, %v2650_v4  ;;  %v2658_v32 = vadd.f32 %v11883_v52, %v2657_v27  ;;  %vm12250_vm3 = vmor %vm2659_vm12, %vm2660_vm0 }
 0x355   : > { %vm12232_vm1 = vcmp.eq.f32.partialorder %v2663_v23, 8.507059e+37  ;;  %vm2674_vm13 = vweird.f32 %v11822_v56  ;;  %v2673_v28 = vadd.f32 %v11890_v30, %v2672_v0  ;;  %vm2675_vm2 = vweird.f32 %v11890_v30 }
 0x356   : > { %v2687_v26 = vmul.f32 %v11895_v53, %v2686_v31  ;;  %v2756_v40 = vsub.f32 1.0, %v2755_v51  ;;  %v12242_v57 = vsel %vm12218_vm4, %v2651_v36, %v2647_v12  ;;  %v2666_v2 = vor.u32 1.1754944e-38, %v2665_v33  ;;  %vm12265_vm14 = vmor %vm2674_vm13, %vm2675_vm2 }
 0x357   : > { %v2680_v6 = vand.u32 2147483648, %v11822_v56  ;;  %v2693_v63 = vand.u32 2147483647, %v11827_v46  ;;  %vm12254_vm6 = vcmp.eq.f32.partialorder %v2678_v58, 8.507059e+37  ;;  %vm2689_vm15 = vweird.f32 %v11827_v46 }
 0x358   : > { %v2742_v54 = vmul.f32 %v12059_v50, %v2741_v15  ;;  %v2771_v4 = vsub.f32 1.0, %v2770_v1  ;;  %v2662_v27 = vsel %vm12250_vm3, %v11883_v52, %v2658_v32  ;;  %vm2690_vm5 = vweird.f32 %v11895_v53 }
 0x359   : > { %v2695_v23 = vand.u32 2147483648, %v11827_v46  ;;  %v2785_v0 = vmul.f32 %v12078_v24, %v11994_v42  ;;  %v2677_v31 = vsel %vm12265_vm14, %v11890_v30, %v2673_v28  ;;  %v2688_v51 = vadd.f32 %v11895_v53, %v2687_v26  ;;  %vm12300_vm13 = vmor %vm2689_vm15, %vm2690_vm5 }
 0x35a   : > { %v2748_v52 = vand.u32 2147483647, %v11972_v25  ;;  %v2757_v56 = vmul.f32 %v12068_v43, %v2756_v40  ;;  %v2681_v9 = vor.u32 1.1754944e-38, %v2680_v6  ;;  %vm12279_vm4 = vcmp.eq.f32.partialorder %v2693_v63, 8.507059e+37 }
 0x35b   : > { %vm2744_vm12 = vweird.f32 %v11972_v25  ;;  %v2750_v33 = vand.u32 2147483648, %v11972_v25  ;;  %v12287_v12 = vsel %vm12232_vm1, %v2666_v2, %v2662_v27  ;;  %v2743_v30 = vadd.f32 %v12059_v50, %v2742_v54 }
 0x35c   : > { %vm2745_vm0 = vweird.f32 %v12059_v50  ;;  %v2772_v58 = vmul.f32 %v12073_v14, %v2771_v4  ;;  %v12294_v15 = vsel %vm12254_vm6, %v2681_v9, %v2677_v31  ;;  %v2696_v36 = vor.u32 1.1754944e-38, %v2695_v23 }
 0x35d   : > { %vm2759_vm1 = vweird.f32 %v11977_v41  ;;  %v2786_v32 = vsub.f32 1.0, %v2785_v0  ;;  %v2692_v21 = vsel %vm12300_vm13, %v11895_v53, %v2688_v51  ;;  %vm12308_vm2 = vcmp.eq.f32.partialorder %v2748_v52, 8.507059e+37  ;;  %vm12316_vm6 = vmor %vm2744_vm12, %vm2745_vm0 }
 0x35e   : > { %v2758_v26 = vadd.f32 %v12068_v43, %v2757_v56  ;;  %vm2760_vm3 = vweird.f32 %v12068_v43  ;;  %v2751_v40 = vor.u32 1.1754944e-38, %v2750_v33  ;;  %v2763_v2 = vand.u32 2147483647, %v11977_v41 }
 0x35f   : > { %v2765_v6 = vand.u32 2147483648, %v11977_v41  ;;  %v2778_v53 = vand.u32 2147483647, %v11982_v5  ;;  %v2747_v63 = vsel %vm12316_vm6, %v12059_v50, %v2743_v30  ;;  %v2773_v35 = vadd.f32 %v12073_v14, %v2772_v58  ;;  %vm12334_vm14 = vmor %vm2759_vm1, %vm2760_vm3 }
 0x360   : > { %vm2775_vm15 = vweird.f32 %v12073_v14  ;;  %v2800_v25 = vmul.f32 %v12090_v22, %v12008_v13  ;;  %v2697_v49 = vsel %vm12279_vm4, %v2696_v36, %v2692_v21  ;;  %v2780_v4 = vand.u32 2147483648, %v11982_v5  ;;  %v18147_v36 = vld [vmem:[#allocation46_spill] sm:$0xff] }
 0x361   : > { %v2787_v50 = vmul.f32 %v12078_v24, %v2786_v32  ;;  %v2815_v27 = vmul.f32 %v12102_v16, %v12018_v61  ;;  %v2762_v47 = vsel %vm12334_vm14, %v12068_v43, %v2758_v26  ;;  %vm2774_vm5 = vweird.f32 %v11982_v5 }
 0x362   : > { %v2793_v23 = vand.u32 2147483647, %v11994_v42  ;;  %v2795_v41 = vand.u32 2147483648, %v11994_v42  ;;  %v12350_v0 = vsel %vm12308_vm2, %v2751_v40, %v2747_v63  ;;  %vm2764_vm4 = vcmp.eq.f32.partialorder %v2763_v2, 8.507059e+37  ;;  %vm2776_vm12 = vmor %vm2774_vm5, %vm2775_vm15  ;;  %v18151_v40 = vld [vmem:[#allocation52_spill] sm:$0xff] }
 0x363   : > { %v2766_v31 = vor.u32 1.1754944e-38, %v2765_v6  ;;  %vm2779_vm0 = vcmp.eq.f32.partialorder %v2778_v53, 8.507059e+37  ;;  %v2777_v51 = vsel %vm2776_vm12, %v12073_v14, %v2773_v35  ;;  %vm2789_vm13 = vweird.f32 %v11994_v42  ;;  %v18153_v53 = vld [vmem:[#allocation45_spill] sm:$0xff] }
 0x364   : > { %vm2790_vm1 = vweird.f32 %v12078_v24  ;;  %v2801_v43 = vsub.f32 1.0, %v2800_v25  ;;  %v2781_v52 = vor.u32 1.1754944e-38, %v2780_v4  ;;  %v2788_v56 = vadd.f32 %v12078_v24, %v2787_v50  ;;  %v18155_v25 = vld [vmem:[#allocation47_spill] sm:$0xff] }
 0x365   : > { %v12355_v5 = vsel %vm2764_vm4, %v2766_v31, %v2762_v47  ;;  %v2816_v9 = vsub.f32 1.0, %v2815_v27  ;;  %vm12358_vm3 = vcmp.eq.f32.partialorder %v2793_v23, 8.507059e+37  ;;  %v2796_v33 = vor.u32 1.1754944e-38, %v2795_v41  ;;  %vm12375_vm6 = vmor %vm2789_vm13, %vm2790_vm1  ;;  %v18159_v41 = vld [vmem:[#allocation49_spill] sm:$0xff] }
 0x366   : > { %vm2805_vm2 = vweird.f32 %v12090_v22  ;;  %v2830_v14 = vmul.f32 %v12125_v29, %v12031_v44  ;;  %v12365_v30 = vsel %vm2779_vm0, %v2781_v52, %v2777_v51  ;;  %v2808_v58 = vand.u32 2147483647, %v12008_v13  ;;  %v18162_v52 = vld [vmem:[#allocation50_spill] sm:$0xff] }
 0x367   : > { %v2845_v1 = vmul.f32 %v12144_v37, %v12036_v55  ;;  %v18148_v32 = vrot.slane %v18147_v36, 7  ;;  %v2802_v26 = vmul.f32 %v12090_v22, %v2801_v43  ;;  %vm2804_vm15 = vweird.f32 %v12008_v13 }
 0x368   : > { %v2810_v46 = vand.u32 2147483648, %v12008_v13  ;;  %v18152_v2 = vrot.slane %v18151_v40, 7  ;;  %v18154_v63 = vrot.slane %v18153_v53, 7  ;;  %v2792_v42 = vsel %vm12375_vm6, %v12078_v24, %v2788_v56  ;;  %vm12453_vm12 = vmor %vm2804_vm15, %vm2805_vm2  ;;  %v8393_v13 = vld [vmem:[%s17617_s2 + $0x1d8] sm:$0xff] }
 0x369   : > { %v2883_v21 = vmul.f32 %v18148_v32, %v12178_v17  ;;  %v2817_v35 = vmul.f32 %v12102_v16, %v2816_v9  ;;  %vm2820_vm14 = vweird.f32 %v12102_v16  ;;  %v18156_v54 = vrot.slane %v18155_v25, 7  ;;  %v8407_v25 = vld [vmem:[%s17617_s2 + $0x148] sm:$0xff] }
 0x36a   : > { %v2884_v6 = vmul.f32 %v18152_v2, %v12181_v60  ;;  %v2885_v17 = vmul.f32 %v18154_v63, %v12195_v45  ;;  %vm2819_vm5 = vweird.f32 %v12018_v61  ;;  %v2831_v50 = vsub.f32 1.0, %v2830_v14  ;;  %v18157_v60 = vld [vmem:[#allocation48_spill] sm:$0xff] }
 0x36b   : > { %v2886_v4 = vmul.f32 %v18156_v54, %v12209_v59  ;;  %v18158_v27 = vrot.slane %v18157_v60, 7  ;;  %v2894_v45 = vmul.f32 %v11924_v8, %v12047_v7  ;;  %v2895_v24 = vmul.f32 %v11937_v19, %v12051_v10  ;;  %v8412_v60 = vld [vmem:[%s17617_s2 + $0x130] sm:$0xff] }
 0x36c   : > { %v2846_v23 = vsub.f32 1.0, %v2845_v1  ;;  %v18160_v31 = vrot.slane %v18159_v41, 7  ;;  %v2896_v59 = vmul.f32 %v11941_v48, %v12080_v34  ;;  %v12410_v43 = vadd.f32 %v11963_v39, %v2883_v21  ;;  %v18168_v39 = vld [vmem:[#allocation51_spill] sm:$0xff] }
 0x36d   : > { %v2887_v47 = vmul.f32 %v18158_v27, %v12242_v57  ;;  %v18163_v57 = vrot.slane %v18162_v52, 7  ;;  %v2897_v8 = vmul.f32 %v11947_v11, %v12137_v3  ;;  %v12418_v19 = vadd.f32 %v11965_v20, %v2884_v6 }
 0x36e   : > { %v2888_v51 = vmul.f32 %v18160_v31, %v12287_v12  ;;  %18161 = vst [vmem:[#allocation53_spill] sm:$0xff] %v12410_v43  ;;  %v12421_v7 = vadd.f32 %v12042_v38, %v2885_v17  ;;  %vm12423_vm4 = vcmp.eq.f32.partialorder %v2808_v58, 8.507059e+37  ;;  %v2823_v48 = vand.u32 2147483647, %v12018_v61 }
 0x36f   : > { %v2889_v56 = vmul.f32 %v18163_v57, %v12294_v15  ;;  %18164 = vst [vmem:[#allocation46_spill] sm:$0xff] %v12418_v19  ;;  %v18169_v34 = vrot.slane %v18168_v39, 7  ;;  %v18170_v15 = vld [vmem:[#allocation54_spill] sm:$0xff]  ;;  %v12432_v14 = vadd.f32 %v2894_v45, %v2886_v4  ;;  %v2803_v11 = vadd.f32 %v12090_v22, %v2802_v26 }
 0x370   : > { %18165 = vst [vmem:[#allocation52_spill] sm:$0xff] %v12421_v7  ;;  %v2898_v9 = vmul.f32 %v18170_v15, %v12186_v62  ;;  %v2811_v20 = vor.u32 1.1754944e-38, %v2810_v46  ;;  %v12435_v3 = vadd.f32 %v2895_v24, %v2887_v47  ;;  %7602 = vtanh.f32 %v12410_v43 }
 0x371   : > { %v2890_v12 = vmul.f32 %v18169_v34, %v2697_v49  ;;  %18171 = vst [vmem:[#allocation45_spill] sm:$0xff] %v12432_v14  ;;  %v2797_v38 = vsel %vm12358_vm3, %v2796_v33, %v2792_v42  ;;  %v2832_v58 = vmul.f32 %v12125_v29, %v2831_v50  ;;  %v12441_v1 = vadd.f32 %v2896_v59, %v2888_v51  ;;  %vm12475_vm3 = vmor %vm2819_vm5, %vm2820_vm14  ;;  %v8390_v33 = vld [vmem:[%s17617_s2 + $0x1c0] sm:$0xff] }
 0x372   : > { %18172 = vst [vmem:[#allocation47_spill] sm:$0xff] %v12435_v3  ;;  %7604 = vtanh.f32 %v12418_v19  ;;  %v2818_v62 = vadd.f32 %v12102_v16, %v2817_v35  ;;  %v2847_v49 = vmul.f32 %v12144_v37, %v2846_v23  ;;  %v12446_v36 = vadd.f32 %v2897_v8, %v2889_v56  ;;  %v18226_v19 = vld [vmem:[#allocation35_spill] sm:$0xff] }
 0x373   : > { %18173 = vst [vmem:[#allocation48_spill] sm:$0xff] %v12441_v1  ;;  %7606 = vtanh.f32 %v12421_v7  ;;  %vm12457_vm0 = vcmp.eq.f32.partialorder %v2823_v48, 8.507059e+37  ;;  %v2825_v32 = vand.u32 2147483648, %v12018_v61  ;;  %v12462_v21 = vadd.f32 %v2898_v9, %v2890_v12 }
 0x374   : > { %18174 = vst [vmem:[#allocation49_spill] sm:$0xff] %v12446_v36  ;;  %7608 = vtanh.f32 %v12432_v14  ;;  %v2807_v28 = vsel %vm12453_vm12, %v12090_v22, %v2803_v11  ;;  %vm2834_vm13 = vweird.f32 %v12031_v44  ;;  %vm2835_vm1 = vweird.f32 %v12125_v29  ;;  %v18225_v14 = vld [vmem:[#allocation32_spill] sm:$0xff] }
 0x375   : > { %18179 = vst [vmem:[#allocation50_spill] sm:$0xff] %v12462_v21  ;;  %7610 = vtanh.f32 %v12435_v3  ;;  %v2833_v26 = vadd.f32 %v12125_v29, %v2832_v58  ;;  %v2838_v46 = vand.u32 2147483647, %v12031_v44  ;;  %v2840_v22 = vand.u32 2147483648, %v12031_v44  ;;  %vm12499_vm6 = vmor %vm2834_vm13, %vm2835_vm1  ;;  %v8386_v58 = vld [vmem:[%s17617_s2 + $0x1e0] sm:$0xff]  ;;  %v18221_v3 = vld [vmem:[#allocation29_spill] sm:$0xff] }
 0x376   : > { %7612 = vtanh.f32 %v12441_v1  ;;  %v7603_v40 = vpop.eup %7602  ;;  %v2822_v2 = vsel %vm12475_vm3, %v12102_v16, %v2818_v62  ;;  %v2848_v6 = vadd.f32 %v12144_v37, %v2847_v49  ;;  %vm2850_vm2 = vweird.f32 %v12144_v37  ;;  %v8387_v62 = vld [vmem:[%s17617_s2 + $0x1e8] sm:$0xff]  ;;  %v8388_v49 = vld [vmem:[%s17617_s2 + $0x1f0] sm:$0xff] }
 0x377   : > { %7614 = vtanh.f32 %v12446_v36  ;;  %v2853_v53 = vand.u32 2147483647, %v12036_v55  ;;  %v2855_v63 = vand.u32 2147483648, %v12036_v55  ;;  %v2915_v17 = vmul.f32 %v7603_v40, %v12350_v0  ;;  %v8397_v40 = vld [vmem:[%s17617_s2 + $0x1b8] sm:$0xff] }
 0x378   : > { %v7605_v61 = vpop.eup %7604  ;;  %7616 = vtanh.f32 %v12462_v21  ;;  %v2812_v35 = vsel %vm12423_vm4, %v2811_v20, %v2807_v28  ;;  %v2826_v16 = vor.u32 1.1754944e-38, %v2825_v32  ;;  %vm2849_vm15 = vweird.f32 %v12036_v55  ;;  %v8391_v32 = vld [vmem:[%s17617_s2 + $0x1c8] sm:$0xff]  ;;  %v8392_v28 = vld [vmem:[%s17617_s2 + $0x1d0] sm:$0xff] }
 0x379   : > { %v7607_v42 = vpop.eup %7606  ;;  %v2916_v54 = vmul.f32 %v7605_v61, %v12355_v5  ;;  %v2837_v0 = vsel %vm12499_vm6, %v12125_v29, %v2833_v26  ;;  %vm2839_vm14 = vcmp.eq.f32.partialorder %v2838_v46, 8.507059e+37  ;;  %v2841_v50 = vor.u32 1.1754944e-38, %v2840_v22  ;;  %vm12510_vm5 = vmor %vm2849_vm15, %vm2850_vm2  ;;  %v8394_v26 = vld [vmem:[%s17617_s2 + $0x1a0] sm:$0xff]  ;;  %v8395_v46 = vld [vmem:[%s17617_s2 + $0x1a8] sm:$0xff] }
 0x37a   : > { %v7609_v4 = vpop.eup %7608  ;;  %v2931_v44 = vrot.slane %v2915_v17, 2  ;;  %v2827_v55 = vsel %vm12457_vm0, %v2826_v16, %v2822_v2  ;;  %v2852_v5 = vsel %vm12510_vm5, %v12144_v37, %v2848_v6  ;;  %vm2854_vm4 = vcmp.eq.f32.partialorder %v2853_v53, 8.507059e+37  ;;  %v8396_v22 = vld [vmem:[%s17617_s2 + $0x1b0] sm:$0xff]  ;;  %v8398_v2 = vld [vmem:[%s17617_s2 + $0x180] sm:$0xff]  ;;  %v8399_v6 = vld [vmem:[%s17617_s2 + $0x188] sm:$0xff] }
 0x37b   : > { %v7611_v27 = vpop.eup %7610  ;;  %v2918_v47 = vmul.f32 %v7609_v4, %v2797_v38  ;;  %v2932_v45 = vrot.slane %v2916_v54, 1  ;;  %v2856_v24 = vor.u32 1.1754944e-38, %v2855_v63  ;;  %v2917_v23 = vmul.f32 %v7607_v42, %v12365_v30  ;;  %v8400_v61 = vld [vmem:[%s17617_s2 + $0x190] sm:$0xff]  ;;  %v8401_v53 = vld [vmem:[%s17617_s2 + $0x198] sm:$0xff]  ;;  %v8402_v63 = vld [vmem:[%s17617_s2 + $0x160] sm:$0xff] }
 0x37c   : > { %v7613_v29 = vpop.eup %7612  ;;  %v2919_v41 = vmul.f32 %v7611_v27, %v2812_v35  ;;  %v2842_v51 = vsel %vm2839_vm14, %v2841_v50, %v2837_v0  ;;  %vm18186_vm12 = vcmask 1046534   ;;  %vm18187_vm0 = vcmask 1047559   ;;  %v8403_v17 = vld [vmem:[%s17617_s2 + $0x168] sm:$0xff]  ;;  %v8404_v42 = vld [vmem:[%s17617_s2 + $0x170] sm:$0xff]  ;;  %v8405_v35 = vld [vmem:[%s17617_s2 + $0x178] sm:$0xff] }
 0x37d   : > { %v7615_v31 = vpop.eup %7614  ;;  %v2920_v59 = vmul.f32 %v7613_v29, %v2827_v55  ;;  %v2933_v52 = vsel %vm17776_vm7, %v2932_v45, %v2931_v44  ;;  %v2935_v57 = vrot.slane %v2918_v47, 7  ;;  %v2857_v8 = vsel %vm2854_vm4, %v2856_v24, %v2852_v5  ;;  %v8406_v16 = vld [vmem:[%s17617_s2 + $0x140] sm:$0xff]  ;;  %v8408_v54 = vld [vmem:[%s17617_s2 + $0x150] sm:$0xff]  ;;  %v8409_v4 = vld [vmem:[%s17617_s2 + $0x158] sm:$0xff] }
 0x37e   : > { %v7617_v56 = vpop.eup %7616  ;;  %v2921_v10 = vmul.f32 %v7615_v31, %v2842_v51  ;;  %v2934_v48 = vsel %vm17775_vm8, %v2917_v23, %v2933_v52  ;;  %v2937_v37 = vrot.slane %v2919_v41, 6  ;;  %v8410_v0 = vld [vmem:[%s17617_s2 + $0x120] sm:$0xff]  ;;  %v8411_v50 = vld [vmem:[%s17617_s2 + $0x128] sm:$0xff]  ;;  %v8413_v44 = vld [vmem:[%s17617_s2 + $0x138] sm:$0xff] }
 0x37f   : > { %v2922_v39 = vmul.f32 %v7617_v56, %v2857_v8  ;;  %v2936_v34 = vsel %vm17774_vm9, %v2935_v57, %v2934_v48  ;;  %v2939_v12 = vrot.slane %v2920_v59, 5  ;;  %v8414_v27 = vld [vmem:[%s17617_s2 + $0x100] sm:$0xff]  ;;  %v8415_v55 = vld [vmem:[%s17617_s2 + $0x108] sm:$0xff]  ;;  %v8416_v5 = vld [vmem:[%s17617_s2 + $0x110] sm:$0xff] }
 0x380   : > { %v2938_v15 = vsel %vm17773_vm10, %v2937_v37, %v2936_v34  ;;  %v2941_v30 = vrot.slane %v2921_v10, 4  ;;  %v8417_v47 = vld [vmem:[%s17617_s2 + $0x118] sm:$0xff]  ;;  %v8418_v45 = vld [vmem:[%s17617_s2 + $0xe0] sm:$0xff]  ;;  %v8419_v29 = vld [vmem:[%s17617_s2 + $0xe8] sm:$0xff] }
 0x381   : > { %v2940_v9 = vsel %vm17772_vm11, %v2939_v12, %v2938_v15  ;;  %v2943_v11 = vrot.slane %v2922_v39, 3  ;;  %v8420_v24 = vld [vmem:[%s17617_s2 + $0xf0] sm:$0xff]  ;;  %v8421_v23 = vld [vmem:[%s17617_s2 + $0xf8] sm:$0xff]  ;;  %v8422_v41 = vld [vmem:[%s17617_s2 + $0xc0] sm:$0xff] }
 0x382   : > { %v2942_v20 = vsel %vm18186_vm12, %v2941_v30, %v2940_v9  ;;  %v8423_v31 = vld [vmem:[%s17617_s2 + $0xc8] sm:$0xff]  ;;  %v8424_v51 = vld [vmem:[%s17617_s2 + $0xd0] sm:$0xff]  ;;  %v8425_v59 = vld [vmem:[%s17617_s2 + $0xd8] sm:$0xff] }
 0x383   : > { %v2944_v38 = vsel %vm18187_vm0, %v2943_v11, %v2942_v20  ;;  %v8426_v52 = vld [vmem:[%s17617_s2 + $0xa0] sm:$0xff]  ;;  %v8427_v57 = vld [vmem:[%s17617_s2 + $0xa8] sm:$0xff]  ;;  %v8428_v56 = vld [vmem:[%s17617_s2 + $0xb0] sm:$0xff] }
 0x384   : > { %2962 = vmatmul.f32.vlgmr.msra.gmra.mxu0 %v2944_v38  ;;  %2982 = vmatmul.f32.vlgmr.msra.gmra.mxu1 %v2944_v38  ;;  %v8429_v8 = vld [vmem:[%s17617_s2 + $0xb8] sm:$0xff]  ;;  %v8430_v10 = vld [vmem:[%s17617_s2 + $0x80] sm:$0xff]  ;;  %v8431_v48 = vld [vmem:[%s17617_s2 + $0x88] sm:$0xff] }
 0x385   : > { %3002 = vmatmul.f32.vlgmr.msra.gmra.mxu2 %v2944_v38  ;;  %3022 = vmatmul.f32.vlgmr.msra.gmra.mxu3 %v2944_v38  ;;  %v8432_v37 = vld [vmem:[%s17617_s2 + $0x90] sm:$0xff]  ;;  %v8433_v39 = vld [vmem:[%s17617_s2 + $0x98] sm:$0xff]  ;;  %v8434_v34 = vld [vmem:[%s17617_s2 + $0x60] sm:$0xff] }
 0x386   : > { %4400 = vmatpush.msra.mxu0 %v8386_v58  ;;  %4420 = vmatpush.msra.mxu1 %v8387_v62  ;;  %v8435_v12 = vld [vmem:[%s17617_s2 + $0x68] sm:$0xff]  ;;  %v8436_v15 = vld [vmem:[%s17617_s2 + $0x70] sm:$0xff]  ;;  %v8437_v30 = vld [vmem:[%s17617_s2 + $0x78] sm:$0xff] }
 0x387   : > { %4440 = vmatpush.msra.mxu2 %v8388_v49  ;;  %4460 = vmatpush.msra.mxu3 %v8389_v18  ;;  %v8438_v9 = vld [vmem:[%s17617_s2 + $0x40] sm:$0xff]  ;;  %v8439_v11 = vld [vmem:[%s17617_s2 + $0x48] sm:$0xff]  ;;  %v8440_v20 = vld [vmem:[%s17617_s2 + $0x50] sm:$0xff] }
 0x388   : > { %4401 = vmatpush.msra.mxu0 %v8390_v33  ;;  %4421 = vmatpush.msra.mxu1 %v8391_v32  ;;  %v8441_v38 = vld [vmem:[%s17617_s2 + $0x58] sm:$0xff]  ;;  %v8442_v58 = vld [vmem:[%s17617_s2 + $0x20] sm:$0xff]  ;;  %v8443_v62 = vld [vmem:[%s17617_s2 + $0x28] sm:$0xff] }
 0x389   : > { %4441 = vmatpush.msra.mxu2 %v8392_v28  ;;  %4461 = vmatpush.msra.mxu3 %v8393_v13  ;;  %v8444_v49 = vld [vmem:[%s17617_s2 + $0x30] sm:$0xff]  ;;  %v8445_v18 = vld [vmem:[%s17617_s2 + $0x38] sm:$0xff]  ;;  %v8446_v33 = vld [vmem:[%s17617_s2] sm:$0xff] }
 0x38a   : > { %4402 = vmatpush.msra.mxu0 %v8394_v26  ;;  %4422 = vmatpush.msra.mxu1 %v8395_v46  ;;  %v8447_v32 = vld [vmem:[%s17617_s2 + $0x8] sm:$0xff]  ;;  %v8448_v28 = vld [vmem:[%s17617_s2 + $0x10] sm:$0xff]  ;;  %v8449_v13 = vld [vmem:[%s17617_s2 + $0x18] sm:$0xff] }
 0x38b   : > { %4442 = vmatpush.msra.mxu2 %v8396_v22  ;;  %4462 = vmatpush.msra.mxu3 %v8397_v40 }
 0x38c   : > { %4403 = vmatpush.msra.mxu0 %v8398_v2  ;;  %4423 = vmatpush.msra.mxu1 %v8399_v6  ;;  %v18188_v6 = vld [vmem:[#allocation10_spill] sm:$0xff] }
 0x38d   : > { %4443 = vmatpush.msra.mxu2 %v8400_v61  ;;  %4463 = vmatpush.msra.mxu3 %v8401_v53  ;;  %v18189_v53 = vld [vmem:[#allocation11_spill] sm:$0xff] }
 0x38e   : > { %4404 = vmatpush.msra.mxu0 %v8402_v63  ;;  %4424 = vmatpush.msra.mxu1 %v8403_v17  ;;  %v18190_v17 = vld [vmem:[#allocation15_spill] sm:$0xff] }
 0x38f   : > { %4444 = vmatpush.msra.mxu2 %v8404_v42  ;;  %4464 = vmatpush.msra.mxu3 %v8405_v35 }
 0x390   : > { %4405 = vmatpush.msra.mxu0 %v8406_v16  ;;  %4425 = vmatpush.msra.mxu1 %v8407_v25 }
 0x391   : > { %4445 = vmatpush.msra.mxu2 %v8408_v54  ;;  %4465 = vmatpush.msra.mxu3 %v8409_v4 }
 0x392   : > { %4406 = vmatpush.msra.mxu0 %v8410_v0  ;;  %4426 = vmatpush.msra.mxu1 %v8411_v50  ;;  %v18191_v0 = vld [vmem:[#allocation16_spill] sm:$0xff] }
 0x393   : > { %4446 = vmatpush.msra.mxu2 %v8412_v60  ;;  %4466 = vmatpush.msra.mxu3 %v8413_v44  ;;  %v18192_v44 = vld [vmem:[#allocation17_spill] sm:$0xff] }
 0x394   : > { %4407 = vmatpush.msra.mxu0 %v8414_v27  ;;  %4427 = vmatpush.msra.mxu1 %v8415_v55 }
 0x395   : > { %4447 = vmatpush.msra.mxu2 %v8416_v5  ;;  %4467 = vmatpush.msra.mxu3 %v8417_v47  ;;  %v18193_v5 = vld [vmem:[#allocation18_spill] sm:$0xff] }
 0x396   : > { %4408 = vmatpush.msra.mxu0 %v8418_v45  ;;  %4428 = vmatpush.msra.mxu1 %v8419_v29  ;;  %v18194_v29 = vld [vmem:[#allocation19_spill] sm:$0xff] }
 0x397   : > { %4448 = vmatpush.msra.mxu2 %v8420_v24  ;;  %4468 = vmatpush.msra.mxu3 %v8421_v23 }
 0x398   : > { %4409 = vmatpush.msra.mxu0 %v8422_v41  ;;  %4429 = vmatpush.msra.mxu1 %v8423_v31  ;;  %v18195_v41 = vld [vmem:[#allocation22_spill] sm:$0xff] }
 0x399   : > { %4449 = vmatpush.msra.mxu2 %v8424_v51  ;;  %4469 = vmatpush.msra.mxu3 %v8425_v59 }
 0x39a   : > { %4410 = vmatpush.msra.mxu0 %v8426_v52  ;;  %4430 = vmatpush.msra.mxu1 %v8427_v57  ;;  %v18196_v52 = vld [vmem:[#allocation20_spill] sm:$0xff] }
 0x39b   : > { %4450 = vmatpush.msra.mxu2 %v8428_v56  ;;  %4470 = vmatpush.msra.mxu3 %v8429_v8 }
 0x39c   : > { %4411 = vmatpush.msra.mxu0 %v8430_v10  ;;  %4431 = vmatpush.msra.mxu1 %v8431_v48 }
 0x39d   : > { %4451 = vmatpush.msra.mxu2 %v8432_v37  ;;  %4471 = vmatpush.msra.mxu3 %v8433_v39 }
 0x39e   : > { %4412 = vmatpush.msra.mxu0 %v8434_v34  ;;  %4432 = vmatpush.msra.mxu1 %v8435_v12 }
 0x39f   : > { %4452 = vmatpush.msra.mxu2 %v8436_v15  ;;  %4472 = vmatpush.msra.mxu3 %v8437_v30 }
 0x3a0   : > { %4413 = vmatpush.msra.mxu0 %v8438_v9  ;;  %4433 = vmatpush.msra.mxu1 %v8439_v11  ;;  %v18197_v9 = vld [vmem:[#allocation24_spill] sm:$0xff] }
 0x3a1   : > { %4453 = vmatpush.msra.mxu2 %v8440_v20  ;;  %4473 = vmatpush.msra.mxu3 %v8441_v38  ;;  %v18198_v20 = vld [vmem:[#allocation27_spill] sm:$0xff] }
 0x3a2   : > { %4414 = vmatpush.msra.mxu0 %v8442_v58  ;;  %4434 = vmatpush.msra.mxu1 %v8443_v62 }
 0x3a3   : > { %4454 = vmatpush.msra.mxu2 %v8444_v49  ;;  %4474 = vmatpush.msra.mxu3 %v8445_v18 }
 0x3a4   : > { %4415 = vmatpush.msra.mxu0 %v8446_v33  ;;  %4435 = vmatpush.msra.mxu1 %v8447_v32 }
 0x3a5   : > { %4455 = vmatpush.msra.mxu2 %v8448_v28  ;;  %4475 = vmatpush.msra.mxu3 %v8449_v13 }
 0x401   : > { %v2963_v26 = vpop.f32.mrf.mxu0  ;;  %v12722_v4 = vpop.f32.mrf.mxu1 }
 0x402   : > { %v3030_v46 = vrot.slane %v2963_v26, 5  ;;  %v3034_v22 = vrot.slane %v2963_v26, 6  ;;  %v3038_v40 = vrot.slane %v2963_v26, 7  ;;  %v3042_v2 = vrot.slane %v2963_v26, 1 }
 0x403   : > { %v3046_v35 = vrot.slane %v2963_v26, 2  ;;  %v3050_v16 = vrot.slane %v2963_v26, 3  ;;  %v3102_v50 = vadd.f32 %v2963_v26, %v18191_v0  ;;  %v3054_v60 = vrot.slane %v2963_v26, 4 }
 0x404   : > { %v3090_v61 = vadd.f32 %v3030_v46, %v18188_v6  ;;  %v3094_v63 = vadd.f32 %v3034_v22, %v18189_v53  ;;  %v3098_v42 = vadd.f32 %v3038_v40, %v18190_v17  ;;  %v3106_v27 = vadd.f32 %v3042_v2, %v18192_v44  ;;  %v18199_v46 = vld [vmem:[#allocation30_spill] sm:$0xff] }
 0x405   : > { %v3110_v47 = vadd.f32 %v3046_v35, %v18193_v5  ;;  %v3031_v45 = vrot.slane %v12722_v4, 5  ;;  %v3114_v24 = vadd.f32 %v3050_v16, %v18194_v29  ;;  %v7067_v23 = vmul.f32 -1.442695, %v3102_v50  ;;  %v18200_v35 = vld [vmem:[#allocation33_spill] sm:$0xff]  ;;  %v18220_v44 = vld [vmem:[#allocation26_spill] sm:$0xff] }
 0x406   : > { %v7064_v25 = vmul.f32 -1.442695, %v3090_v61  ;;  %v7065_v54 = vmul.f32 -1.442695, %v3094_v63  ;;  %v7066_v55 = vmul.f32 -1.442695, %v3098_v42  ;;  %v3118_v31 = vadd.f32 %v3054_v60, %v18195_v41 }
 0x407   : > { %v7068_v51 = vmul.f32 -1.442695, %v3106_v27  ;;  %v7069_v59 = vmul.f32 -1.442695, %v3110_v47  ;;  %v3091_v57 = vadd.f32 %v3031_v45, %v18196_v52  ;;  %v7070_v8 = vmul.f32 -1.442695, %v3114_v24 }
 0x408   : > { %7618 = vpow2.f32 %v7064_v25  ;;  %v3035_v10 = vrot.slane %v12722_v4, 6  ;;  %v3039_v39 = vrot.slane %v12722_v4, 7  ;;  %v7071_v34 = vmul.f32 -1.442695, %v3118_v31  ;;  %v18201_v45 = vld [vmem:[#allocation36_spill] sm:$0xff]  ;;  %v18202_v31 = vld [vmem:[#allocation39_spill] sm:$0xff] }
 0x409   : > { %7620 = vpow2.f32 %v7065_v54  ;;  %v7072_v12 = vmul.f32 -1.442695, %v3091_v57  ;;  %v3043_v58 = vrot.slane %v12722_v4, 1  ;;  %v3047_v33 = vrot.slane %v12722_v4, 2  ;;  %v12767_v57 = vpop.f32.mrf.mxu2 }
 0x40a   : > { %7622 = vpow2.f32 %v7066_v55  ;;  %v3095_v11 = vadd.f32 %v3035_v10, %v18197_v9  ;;  %v3099_v38 = vadd.f32 %v3039_v39, %v18198_v20  ;;  %v3051_v26 = vrot.slane %v12722_v4, 3  ;;  %v18203_v10 = vld [vmem:[#allocation41_spill] sm:$0xff] }
 0x40b   : > { %7624 = vpow2.f32 %v7067_v23  ;;  %v3103_v22 = vadd.f32 %v12722_v4, %v18199_v46  ;;  %v3055_v42 = vrot.slane %v12722_v4, 4  ;;  %v3107_v16 = vadd.f32 %v3043_v58, %v18200_v35 }
 0x40c   : > { %7626 = vpow2.f32 %v7068_v51  ;;  %v7073_v32 = vmul.f32 -1.442695, %v3095_v11  ;;  %v7074_v40 = vmul.f32 -1.442695, %v3099_v38  ;;  %v3111_v24 = vadd.f32 %v3047_v33, %v18201_v45 }
 0x40d   : > { %7628 = vpow2.f32 %v7069_v59  ;;  %v3115_v51 = vadd.f32 %v3051_v26, %v18202_v31  ;;  %v7075_v59 = vmul.f32 -1.442695, %v3103_v22  ;;  %v7076_v39 = vmul.f32 -1.442695, %v3107_v16 }
 0x40e   : > { %v7619_v56 = vpop.eup %7618  ;;  %7630 = vpow2.f32 %v7070_v8  ;;  %v7077_v38 = vmul.f32 -1.442695, %v3111_v24  ;;  %v3032_v58 = vrot.slane %v12767_v57, 5  ;;  %v3044_v16 = vrot.slane %v12767_v57, 1 }
 0x40f   : > { %v7621_v48 = vpop.eup %7620  ;;  %v12732_v37 = vadd.f32 1.0, %v7619_v56  ;;  %v7078_v22 = vmul.f32 -1.442695, %v3115_v51 }
 0x410   : > { %v7623_v15 = vpop.eup %7622  ;;  %v12735_v30 = vadd.f32 1.0, %v7621_v48  ;;  %v3119_v48 = vadd.f32 %v3055_v42, %v18203_v10  ;;  %v3040_v42 = vrot.slane %v12767_v57, 7 }
 0x411   : > { %7632 = vrcp.f32 %v12732_v37  ;;  %v7625_v62 = vpop.eup %7624  ;;  %v12741_v49 = vadd.f32 1.0, %v7623_v15  ;;  %vm3159_vm1 = vweird.f32 %v12732_v37 }
 0x412   : > { %7634 = vpow2.f32 %v7071_v34  ;;  %v7627_v18 = vpop.eup %7626  ;;  %v12750_v63 = vadd.f32 1.0, %v7625_v62  ;;  %v18205_v34 = vld [vmem:[#allocation25_spill] sm:$0xff]  ;;  %vm3174_vm2 = vweird.f32 %v12735_v30  ;;  %v3180_v52 = vand.u32 2147483648, %v12735_v30 }
 0x413   : > { %7636 = vpow2.f32 %v7072_v12  ;;  %v7629_v28 = vpop.eup %7628  ;;  %v12758_v60 = vadd.f32 1.0, %v7627_v18  ;;  %vm3189_vm12 = vweird.f32 %v12741_v49 }
 0x414   : > { %7638 = vrcp.f32 %v12735_v30  ;;  %v7631_v2 = vpop.eup %7630  ;;  %v12762_v47 = vadd.f32 1.0, %v7629_v28 }
 0x415   : > { %7640 = vrcp.f32 %v12741_v49  ;;  %v12777_v15 = vadd.f32 1.0, %v7631_v2 }
 0x416   : > { %7642 = vpow2.f32 %v7073_v32  ;;  %v3036_v32 = vrot.slane %v12767_v57, 6 }
 0x417   : > { %v12754_v25 = vpop.eup %7632  ;;  %7644 = vpow2.f32 %v7074_v40  ;;  %v7079_v40 = vmul.f32 -1.442695, %v3119_v48 }
 0x418   : > { %v7635_v27 = vpop.eup %7634  ;;  %v3155_v8 = vmul.f32 %v12754_v25, %v12732_v37  ;;  %7646 = vrcp.f32 %v12750_v63  ;;  %v12809_v23 = vadd.f32 %v3036_v32, %v18205_v34  ;;  %v18207_v32 = vld [vmem:[#allocation31_spill] sm:$0xff]  ;;  %vm3160_vm13 = vweird.f32 %v12754_v25 }
 0x419   : > { %v7637_v4 = vpop.eup %7636  ;;  %7648 = vrcp.f32 %v12758_v60  ;;  %v12780_v11 = vadd.f32 1.0, %v7635_v27  ;;  %v3048_v27 = vrot.slane %v12767_v57, 2  ;;  %v12827_v34 = vadd.f32 %v12767_v57, %v18207_v32  ;;  %vm12870_vm3 = vmor %vm3159_vm1, %vm3160_vm13 }
 0x41a   : > { %v12769_v56 = vpop.eup %7638  ;;  %7650 = vrcp.f32 %v12762_v47  ;;  %v12788_v33 = vadd.f32 1.0, %v7637_v4  ;;  %v3156_v26 = vsub.f32 1.0, %v3155_v8  ;;  %v3052_v4 = vrot.slane %v12767_v57, 3  ;;  %v18204_v8 = vld [vmem:[#allocation21_spill] sm:$0xff] }
 0x41b   : > { %v12784_v62 = vpop.eup %7640  ;;  %v3170_v18 = vmul.f32 %v12769_v56, %v12735_v30  ;;  %7652 = vpow2.f32 %v7075_v59  ;;  %v3056_v59 = vrot.slane %v12767_v57, 4  ;;  %v12801_v51 = vadd.f32 %v3032_v58, %v18204_v8 }
 0x41c   : > { %v7643_v28 = vpop.eup %7642  ;;  %7654 = vpow2.f32 %v7076_v39  ;;  %v3185_v50 = vmul.f32 %v12784_v62, %v12741_v49  ;;  %v3157_v58 = vmul.f32 %v12754_v25, %v3156_v26  ;;  %v18209_v26 = vld [vmem:[#allocation37_spill] sm:$0xff]  ;;  %vm3175_vm6 = vweird.f32 %v12769_v56 }
 0x41d   : > { %v7645_v2 = vpop.eup %7644  ;;  %7656 = vrcp.f32 %v12777_v15  ;;  %v3171_v39 = vsub.f32 1.0, %v3170_v18  ;;  %v12805_v12 = vadd.f32 1.0, %v7643_v28  ;;  %v18206_v28 = vld [vmem:[#allocation28_spill] sm:$0xff]  ;;  %v12834_v31 = vadd.f32 %v3048_v27, %v18209_v26  ;;  %vm12899_vm14 = vmor %vm3174_vm2, %vm3175_vm6 }
 0x41e   : > { %v12795_v24 = vpop.eup %7646  ;;  %7658 = vrcp.f32 %v12780_v11  ;;  %v12815_v54 = vadd.f32 1.0, %v7645_v2  ;;  %v12823_v13 = vadd.f32 %v3040_v42, %v18206_v28  ;;  %v18208_v2 = vld [vmem:[#allocation34_spill] sm:$0xff]  ;;  %v3186_v32 = vsub.f32 1.0, %v3185_v50 }
 0x41f   : > { %v12803_v48 = vpop.eup %7648  ;;  %7660 = vrcp.f32 %v12788_v33  ;;  %v12820_v18 = vmul.f32 %v12795_v24, %v12750_v63  ;;  %v12831_v10 = vadd.f32 %v3044_v16, %v18208_v2  ;;  %v3172_v57 = vmul.f32 %v12769_v56, %v3171_v39 }
 0x420   : > { %v12811_v55 = vpop.eup %7650  ;;  %7662 = vpow2.f32 %v7077_v38  ;;  %v3317_v38 = vand.u32 2147483648, %v12788_v33  ;;  %v3158_v16 = vadd.f32 %v12754_v25, %v3157_v58  ;;  %v3165_v39 = vand.u32 2147483648, %v12732_v37 }
 0x421   : > { %v7653_v61 = vpop.eup %7652  ;;  %7664 = vpow2.f32 %v7078_v22  ;;  %v18210_v22 = vld [vmem:[#allocation40_spill] sm:$0xff]  ;;  %v3201_v26 = vsub.f32 1.0, %v12820_v18  ;;  %v3163_v58 = vand.u32 2147483647, %v12732_v37  ;;  %v3173_v18 = vadd.f32 %v12769_v56, %v3172_v57 }
 0x422   : > { %v7655_v8 = vpop.eup %7654  ;;  %7666 = vpow2.f32 %v7079_v40  ;;  %v12840_v42 = vadd.f32 %v3052_v4, %v18210_v22  ;;  %v12846_v28 = vadd.f32 1.0, %v7653_v61  ;;  %v18212_v4 = vld [vmem:[#allocation43_spill] sm:$0xff]  ;;  %v12861_v61 = vmul.f32 %v12803_v48, %v12758_v60 }
 0x423   : > { %v12836_v45 = vpop.eup %7656  ;;  %7668 = vrcp.f32 %v12805_v12  ;;  %v12853_v2 = vadd.f32 1.0, %v7655_v8  ;;  %v12856_v22 = vadd.f32 %v3056_v59, %v18212_v4  ;;  %v12863_v50 = vor.u32 1.1754944e-38, %v3317_v38 }
 0x424   : > { %v12844_v40 = vpop.eup %7658  ;;  %7670 = vrcp.f32 %v12815_v54  ;;  %v3332_v8 = vand.u32 2147483648, %v12805_v12  ;;  %v3162_v37 = vsel %vm12870_vm3, %v12754_v25, %v3158_v16  ;;  %v3187_v20 = vmul.f32 %v12784_v62, %v3186_v32  ;;  %v12904_v32 = vpop.f32.mrf.mxu3 }
 0x425   : > { %v12850_v27 = vpop.eup %7660  ;;  %18211 = vst [vmem:[#allocation51_spill] sm:$0xff] %v12853_v2  ;;  %7672 = vrcp.f32 %v12846_v28  ;;  %v3166_v57 = vor.u32 1.1754944e-38, %v3165_v39  ;;  %vm3164_vm15 = vcmp.eq.f32.partialorder %v3163_v58, 8.507059e+37  ;;  %vm3190_vm5 = vweird.f32 %v12784_v62 }
 0x426   : > { %v7663_v35 = vpop.eup %7662  ;;  %v3307_v4 = vmul.f32 %v12850_v27, %v12788_v33  ;;  %7674 = vrcp.f32 %v12853_v2  ;;  %v12908_v39 = vor.u32 1.1754944e-38, %v3332_v8  ;;  %v12918_v17 = vadd.f32 %v12784_v62, %v3187_v20  ;;  %vm12937_vm0 = vmor %vm3189_vm12, %vm3190_vm5 }
 0x427   : > { %v7665_v46 = vpop.eup %7664  ;;  %v12886_v41 = vadd.f32 1.0, %v7663_v35  ;;  %v3178_v35 = vand.u32 2147483647, %v12735_v30  ;;  %v12910_v59 = vsel %vm3164_vm15, %v3166_v57, %v3162_v37  ;;  %v3181_v8 = vor.u32 1.1754944e-38, %v3180_v52 }
 0x428   : > { %v7667_v38 = vpop.eup %7666  ;;  %v12893_v0 = vadd.f32 1.0, %v7665_v46  ;;  %v3177_v46 = vsel %vm12899_vm14, %v12769_v56, %v3173_v18  ;;  %v3308_v58 = vsub.f32 1.0, %v3307_v4  ;;  %v3037_v20 = vrot.slane %v12904_v32, 6 }
 0x429   : > { %v12884_v9 = vpop.eup %7668  ;;  %v12906_v16 = vadd.f32 1.0, %v7667_v38  ;;  %7676 = vrcp.f32 %v12886_v41  ;;  %v3033_v38 = vrot.slane %v12904_v32, 5  ;;  %vm3179_vm4 = vcmp.eq.f32.partialorder %v3178_v35, 8.507059e+37 }
 0x42a   : > { %v12890_v29 = vpop.eup %7670  ;;  %v3322_v5 = vmul.f32 %v12884_v9, %v12805_v12  ;;  %7678 = vrcp.f32 %v12893_v0  ;;  %v12935_v4 = vsel %vm3179_vm4, %v3181_v8, %v3177_v46  ;;  %v3193_v52 = vand.u32 2147483647, %v12741_v49 }
 0x42b   : > { %v12923_v30 = vmul.f32 %v12890_v29, %v12815_v54  ;;  %v12927_v37 = vpop.eup %7672  ;;  %7680 = vrcp.f32 %v12906_v16  ;;  %v3195_v57 = vand.u32 2147483648, %v12741_v49  ;;  %v12944_v25 = vmul.f32 %v12850_v27, %v3308_v58  ;;  %v18219_v49 = vld [vmem:[#allocation23_spill] sm:$0xff] }
 0x42c   : > { %v12932_v56 = vpop.eup %7674  ;;  %v3323_v35 = vsub.f32 1.0, %v3322_v5  ;;  %v3041_v46 = vrot.slane %v12904_v32, 7  ;;  %v12954_v53 = vmul.f32 %v12927_v37, %v12846_v28  ;;  %v3202_v6 = vmul.f32 %v12795_v24, %v3201_v26 }
 0x42d   : > { %v3338_v8 = vsub.f32 1.0, %v12923_v30  ;;  %v3093_v21 = vadd.f32 %v3033_v38, %v18219_v49  ;;  %v12960_v5 = vmul.f32 %v12932_v56, %v12853_v2  ;;  %7682 = vtanh.f32 %v12801_v51 }
 0x42e   : > { %v3045_v58 = vrot.slane %v12904_v32, 1  ;;  %v3097_v36 = vadd.f32 %v3037_v20, %v18220_v44  ;;  %v3196_v30 = vor.u32 1.1754944e-38, %v3195_v57  ;;  %vm3204_vm13 = vweird.f32 %v12750_v63 }
 0x42f   : > { %v12965_v1 = vpop.eup %7676  ;;  %7684 = vtanh.f32 %v12809_v23  ;;  %v3049_v26 = vrot.slane %v12904_v32, 2  ;;  %v12973_v49 = vmul.f32 %v12884_v9, %v3323_v35  ;;  %v3053_v51 = vrot.slane %v12904_v32, 3 }
 0x430   : > { %v12970_v38 = vpop.eup %7678  ;;  %7686 = vtanh.f32 %v12823_v13  ;;  %v3101_v20 = vadd.f32 %v3041_v46, %v18221_v3  ;;  %vm12980_vm1 = vcmp.eq.f32.partialorder %v3193_v52, 8.507059e+37  ;;  %v3057_v23 = vrot.slane %v12904_v32, 4 }
 0x431   : > { %v12978_v44 = vpop.eup %7680  ;;  %7688 = vtanh.f32 %v12827_v34  ;;  %v3105_v35 = vadd.f32 %v12904_v32, %v18225_v14  ;;  %v7080_v7 = vmul.f32 -1.442695, %v3093_v21  ;;  %v3353_v13 = vsub.f32 1.0, %v12954_v53  ;;  %v18227_v34 = vld [vmem:[#allocation38_spill] sm:$0xff] }
 0x432   : > { %18222 = vst [vmem:[#allocation54_spill] sm:$0xff] %v12978_v44  ;;  %7690 = vtanh.f32 %v12831_v10  ;;  %v3109_v46 = vadd.f32 %v3045_v58, %v18226_v19  ;;  %v7081_v3 = vmul.f32 -1.442695, %v3097_v36  ;;  %v3203_v52 = vadd.f32 %v12795_v24, %v3202_v6  ;;  %v18228_v32 = vld [vmem:[#allocation42_spill] sm:$0xff]  ;;  %v18229_v58 = vld [vmem:[#allocation44_spill] sm:$0xff] }
 0x433   : > { %vm3205_vm3 = vweird.f32 %v12795_v24  ;;  %7692 = vtanh.f32 %v12834_v31  ;;  %v3113_v43 = vadd.f32 %v3049_v26, %v18227_v34  ;;  %v7683_v2 = vpop.eup %7682  ;;  %v3117_v21 = vadd.f32 %v3053_v51, %v18228_v32 }
 0x434   : > { %7694 = vtanh.f32 %v12840_v42  ;;  %v7082_v14 = vmul.f32 -1.442695, %v3101_v20  ;;  %v3230_v53 = vmul.f32 %v12811_v55, %v12762_v47  ;;  %v3210_v36 = vand.u32 2147483648, %v12750_v63  ;;  %vm13008_vm2 = vmor %vm3204_vm13, %vm3205_vm3 }
 0x435   : > { %v7685_v10 = vpop.eup %7684  ;;  %v3121_v6 = vadd.f32 %v3057_v23, %v18229_v58  ;;  %7696 = vpow2.f32 %v7080_v7  ;;  %v7083_v19 = vmul.f32 -1.442695, %v3105_v35  ;;  %v13002_v31 = vmul.f32 %v12890_v29, %v3338_v8 }
 0x436   : > { %v7687_v44 = vpop.eup %7686  ;;  %v3208_v26 = vand.u32 2147483647, %v12750_v63  ;;  %7698 = vpow2.f32 %v7081_v3  ;;  %v7084_v51 = vmul.f32 -1.442695, %v3109_v46  ;;  %v3207_v7 = vsel %vm13008_vm2, %v12795_v24, %v3203_v52 }
 0x437   : > { %v7689_v20 = vpop.eup %7688  ;;  %7700 = vtanh.f32 %v12856_v22  ;;  %v7085_v8 = vmul.f32 -1.442695, %v3113_v43  ;;  %v18232_v23 = vsub.f32 1.0, %v12861_v61  ;;  %v7086_v32 = vmul.f32 -1.442695, %v3117_v21 }
 0x438   : > { %v13020_v58 = vpop.eup %7690  ;;  %7702 = vpow2.f32 %v7082_v14  ;;  %v3231_v34 = vsub.f32 1.0, %v3230_v53  ;;  %v3245_v3 = vmul.f32 %v12836_v45, %v12777_v15  ;;  %v3368_v46 = vsub.f32 1.0, %v12960_v5 }
 0x439   : > { %v3217_v35 = vmul.f32 %v12803_v48, %v18232_v23  ;;  %v13024_v63 = vpop.eup %7692  ;;  %v3211_v24 = vor.u32 1.1754944e-38, %v3210_v36  ;;  %7704 = vpow2.f32 %v7083_v19  ;;  %v7087_v22 = vmul.f32 -1.442695, %v3121_v6 }
 0x43a   : > { %v13027_v43 = vpop.eup %7694  ;;  %v13030_v61 = vmul.f32 %v12927_v37, %v3353_v13  ;;  %v18233_v14 = vsel %vm12937_vm0, %v12784_v62, %v12918_v17  ;;  %vm3209_vm6 = vcmp.eq.f32.partialorder %v3208_v26, 8.507059e+37  ;;  %7706 = vpow2.f32 %v7084_v51 }
 0x43b   : > { %v3197_v52 = vsel %vm12980_vm1, %v3196_v30, %v18233_v14  ;;  %v7697_v21 = vpop.eup %7696  ;;  %v3212_v53 = vsel %vm3209_vm6, %v3211_v24, %v3207_v7  ;;  %7708 = vpow2.f32 %v7085_v8  ;;  %v3218_v19 = vadd.f32 %v12803_v48, %v3217_v35 }
 0x43c   : > { %vm3220_vm15 = vweird.f32 %v12803_v48  ;;  %v7699_v36 = vpop.eup %7698  ;;  %7710 = vpow2.f32 %v7086_v32  ;;  %v3225_v13 = vand.u32 2147483648, %v12758_v60  ;;  %v3232_v18 = vmul.f32 %v12811_v55, %v3231_v34 }
 0x43d   : > { %v3246_v6 = vsub.f32 1.0, %v3245_v3  ;;  %v13043_v17 = vpop.eup %7700  ;;  %v13046_v62 = vmul.f32 %v7683_v2, %v12910_v59  ;;  %7712 = vpow2.f32 %v7087_v22  ;;  %vm3219_vm14 = vweird.f32 %v12758_v60 }
 0x43e   : > { %v3223_v30 = vand.u32 2147483647, %v12758_v60  ;;  %v7703_v57 = vpop.eup %7702  ;;  %v13051_v42 = vmul.f32 %v7685_v10, %v12935_v4  ;;  %v13053_v32 = vmul.f32 %v7687_v44, %v3197_v52  ;;  %v13055_v26 = vadd.f32 1.0, %v7697_v21  ;;  %vm13059_vm5 = vmor %vm3219_vm14, %vm3220_vm15 }
 0x43f   : > { %v3260_v2 = vmul.f32 %v12844_v40, %v12780_v11  ;;  %v7705_v59 = vpop.eup %7704  ;;  %v13065_v51 = vmul.f32 %v7689_v20, %v3212_v53  ;;  %v13067_v60 = vadd.f32 1.0, %v7699_v36  ;;  %v3222_v44 = vsel %vm13059_vm5, %v12803_v48, %v3218_v19 }
 0x440   : > { %v3238_v4 = vand.u32 2147483647, %v12762_v47  ;;  %v7707_v10 = vpop.eup %7706  ;;  %vm3312_vm4 = vweird.f32 %v12850_v27  ;;  %v3226_v7 = vor.u32 1.1754944e-38, %v3225_v13  ;;  %v3233_v8 = vadd.f32 %v12811_v55, %v3232_v18 }
 0x441   : > { %vm3235_vm12 = vweird.f32 %v12811_v55  ;;  %v3247_v23 = vmul.f32 %v12836_v45, %v3246_v6  ;;  %v7709_v20 = vpop.eup %7708  ;;  %vm3327_vm0 = vweird.f32 %v12884_v9  ;;  %v13078_v35 = vadd.f32 1.0, %v7703_v57 }
 0x442   : > { %vm3224_vm13 = vcmp.eq.f32.partialorder %v3223_v30, 8.507059e+37  ;;  %vm3234_vm1 = vweird.f32 %v12762_v47  ;;  %v3240_v48 = vand.u32 2147483648, %v12762_v47  ;;  %v7711_v3 = vpop.eup %7710  ;;  %vm3311_vm3 = vweird.f32 %v12788_v33 }
 0x443   : > { %v13083_v24 = vadd.f32 1.0, %v7705_v59  ;;  %7714 = vrcp.f32 %v13055_v26  ;;  %v13086_v22 = vsel %vm3224_vm13, %v3226_v7, %v3222_v44  ;;  %v3261_v14 = vsub.f32 1.0, %v3260_v2  ;;  %v7713_v52 = vpop.eup %7712  ;;  %vm13094_vm6 = vmor %vm3234_vm1, %vm3235_vm12 }
 0x444   : > { %vm3326_vm2 = vweird.f32 %v12805_v12  ;;  %v13089_v21 = vadd.f32 1.0, %v7707_v10  ;;  %7716 = vrcp.f32 %v13067_v60  ;;  %vm13098_vm15 = vcmp.eq.f32.partialorder %v3238_v4, 8.507059e+37 }
 0x445   : > { %v3253_v19 = vand.u32 2147483647, %v12777_v15  ;;  %v13103_v36 = vadd.f32 1.0, %v7709_v20  ;;  %v3237_v13 = vsel %vm13094_vm6, %v12811_v55, %v3233_v8  ;;  %v3248_v18 = vadd.f32 %v12836_v45, %v3247_v23 }
 0x446   : > { %vm3250_vm14 = vweird.f32 %v12836_v45  ;;  %v13110_v6 = vadd.f32 1.0, %v7711_v3  ;;  %7718 = vrcp.f32 %v13078_v35  ;;  %v3241_v30 = vor.u32 1.1754944e-38, %v3240_v48 }
 0x447   : > { %v3255_v57 = vand.u32 2147483648, %v12777_v15  ;;  %vm3341_vm5 = vweird.f32 %v12815_v54  ;;  %v13115_v34 = vadd.f32 1.0, %v7713_v52  ;;  %7720 = vrcp.f32 %v13083_v24 }
 0x448   : > { %vm3249_vm12 = vweird.f32 %v12777_v15  ;;  %v3262_v55 = vmul.f32 %v12844_v40, %v3261_v14  ;;  %7722 = vrcp.f32 %v13089_v21  ;;  %v13123_v2 = vsel %vm13098_vm15, %v3241_v30, %v3237_v13 }
 0x449   : > { %vm13125_vm13 = vmor %vm3249_vm12, %vm3250_vm14  ;;  %vm13129_vm1 = vcmp.eq.f32.partialorder %v3253_v19, 8.507059e+37  ;;  %v3268_v4 = vand.u32 2147483647, %v12780_v11  ;;  %v13134_v10 = vpop.eup %7714  ;;  %7724 = vrcp.f32 %v13103_v36  ;;  %v3270_v7 = vand.u32 2147483648, %v12780_v11 }
 0x44a   : > { %v3252_v15 = vsel %vm13125_vm13, %v12836_v45, %v3248_v18  ;;  %v3310_v8 = vadd.f32 %v12850_v27, %v12944_v25  ;;  %v13143_v23 = vpop.eup %7716  ;;  %7726 = vrcp.f32 %v13110_v6  ;;  %v3256_v20 = vor.u32 1.1754944e-38, %v3255_v57  ;;  %vm13159_vm14 = vmor %vm3311_vm3, %vm3312_vm4 }
 0x44b   : > { %v3315_v48 = vand.u32 2147483647, %v12788_v33  ;;  %v3325_v3 = vadd.f32 %v12884_v9, %v12973_v49  ;;  %7728 = vrcp.f32 %v13115_v34  ;;  %v3263_v14 = vadd.f32 %v12844_v40, %v3262_v55  ;;  %vm13180_vm4 = vmor %vm3326_vm2, %vm3327_vm0 }
 0x44c   : > { %vm3264_vm6 = vweird.f32 %v12780_v11  ;;  %vm3265_vm15 = vweird.f32 %v12844_v40  ;;  %v13153_v45 = vpop.eup %7718  ;;  %v13165_v49 = vsel %vm13129_vm1, %v3256_v20, %v3252_v15  ;;  %vm13167_vm12 = vcmp.eq.f32.partialorder %v3268_v4, 8.507059e+37 }
 0x44d   : > { %v3330_v47 = vand.u32 2147483647, %v12805_v12  ;;  %v3382_v53 = vmul.f32 %v12965_v1, %v12886_v41  ;;  %v13174_v19 = vpop.eup %7720  ;;  %v3271_v13 = vor.u32 1.1754944e-38, %v3270_v7  ;;  %v3314_v18 = vsel %vm13159_vm14, %v12850_v27, %v3310_v8  ;;  %vm13194_vm13 = vmor %vm3264_vm6, %vm3265_vm15 }
 0x44e   : > { %v3340_v30 = vadd.f32 %v12890_v29, %v13002_v31  ;;  %vm3342_vm3 = vweird.f32 %v12890_v29  ;;  %v13190_v57 = vpop.eup %7722  ;;  %vm3316_vm0 = vcmp.eq.f32.partialorder %v3315_v48, 8.507059e+37  ;;  %v3329_v55 = vsel %vm13180_vm4, %v12884_v9, %v3325_v3 }
 0x44f   : > { %v3345_v27 = vand.u32 2147483647, %v12815_v54  ;;  %v3347_v59 = vand.u32 2147483648, %v12815_v54  ;;  %v13203_v31 = vpop.eup %7724  ;;  %v3267_v44 = vsel %vm13194_vm13, %v12844_v40, %v3263_v14  ;;  %v3355_v11 = vadd.f32 %v12927_v37, %v13030_v61  ;;  %vm13222_vm6 = vmor %vm3341_vm5, %vm3342_vm3  ;;  %v18254_v54 = vld [vmem:[#allocation54_spill] sm:$0xff]  ;;  %v18257_v14 = vld [vmem:[#allocation51_spill] sm:$0xff] }
 0x450   : > { %vm3357_vm2 = vweird.f32 %v12927_v37  ;;  %v3397_v4 = vmul.f32 %v12970_v38, %v12893_v0  ;;  %v13213_v15 = vpop.eup %7726  ;;  %v13216_v9 = vsel %vm3316_vm0, %v12863_v50, %v3314_v18  ;;  %vm3331_vm1 = vcmp.eq.f32.partialorder %v3330_v47, 8.507059e+37 }
 0x451   : > { %v3369_v61 = vmul.f32 %v12932_v56, %v3368_v46  ;;  %v3383_v7 = vsub.f32 1.0, %v3382_v53  ;;  %v13229_v8 = vpop.eup %7728  ;;  %v13232_v20 = vsel %vm3331_vm1, %v12908_v39, %v3329_v55  ;;  %v3344_v50 = vsel %vm13222_vm6, %v12890_v29, %v3340_v30 }
 0x452   : > { %vm3356_vm15 = vweird.f32 %v12846_v28  ;;  %v3412_v48 = vmul.f32 %v18254_v54, %v12906_v16  ;;  %v13242_v5 = vsel %vm13167_vm12, %v3271_v13, %v3267_v44  ;;  %v3360_v39 = vand.u32 2147483647, %v12846_v28 }
 0x453   : > { %vm13244_vm5 = vmor %vm3356_vm15, %vm3357_vm2  ;;  %v3362_v3 = vand.u32 2147483648, %v12846_v28  ;;  %v3375_v25 = vand.u32 2147483647, %v18257_v14  ;;  %vm3346_vm14 = vcmp.eq.f32.partialorder %v3345_v27, 8.507059e+37  ;;  %v3348_v29 = vor.u32 1.1754944e-38, %v3347_v59 }
 0x454   : > { %v3359_v47 = vsel %vm13244_vm5, %v12927_v37, %v3355_v11  ;;  %v3398_v53 = vsub.f32 1.0, %v3397_v4  ;;  %v3370_v52 = vadd.f32 %v12932_v56, %v3369_v61  ;;  %vm3372_vm12 = vweird.f32 %v12932_v56 }
 0x455   : > { %v3384_v33 = vmul.f32 %v12965_v1, %v3383_v7  ;;  %v3467_v13 = vmul.f32 %v13134_v10, %v13055_v26  ;;  %v13259_v18 = vsel %vm3346_vm14, %v3348_v29, %v3344_v50  ;;  %vm3371_vm4 = vweird.f32 %v18257_v14 }
 0x456   : > { %v3377_v28 = vand.u32 2147483648, %v18257_v14  ;;  %v3413_v30 = vsub.f32 1.0, %v3412_v48  ;;  %vm3361_vm3 = vcmp.eq.f32.partialorder %v3360_v39, 8.507059e+37  ;;  %v3363_v12 = vor.u32 1.1754944e-38, %v3362_v3  ;;  %vm13268_vm0 = vmor %vm3371_vm4, %vm3372_vm12 }
 0x457   : > { %vm13263_vm13 = vcmp.eq.f32.partialorder %v3375_v25, 8.507059e+37  ;;  %v3390_v55 = vand.u32 2147483647, %v12886_v41  ;;  %vm3386_vm2 = vweird.f32 %v12886_v41  ;;  %vm3387_vm1 = vweird.f32 %v12965_v1 }
 0x458   : > { %v3399_v59 = vmul.f32 %v12970_v38, %v3398_v53  ;;  %v3482_v44 = vmul.f32 %v13143_v23, %v13067_v60  ;;  %v3374_v11 = vsel %vm13268_vm0, %v12932_v56, %v3370_v52  ;;  %v3385_v4 = vadd.f32 %v12965_v1, %v3384_v33  ;;  %vm13302_vm5 = vmor %vm3386_vm2, %vm3387_vm1 }
 0x459   : > { %v3392_v40 = vand.u32 2147483648, %v12886_v41  ;;  %v3468_v61 = vsub.f32 1.0, %v3467_v13  ;;  %v13282_v7 = vsel %vm3361_vm3, %v3363_v12, %v3359_v47  ;;  %v3378_v50 = vor.u32 1.1754944e-38, %v3377_v28 }
 0x45a   : > { %v3414_v48 = vmul.f32 %v18254_v54, %v3413_v30  ;;  %v3497_v46 = vmul.f32 %v13153_v45, %v13078_v35  ;;  %vm13287_vm6 = vcmp.eq.f32.partialorder %v3390_v55, 8.507059e+37  ;;  %vm3401_vm15 = vweird.f32 %v12893_v0 }
 0x45b   : > { %v3405_v56 = vand.u32 2147483647, %v12893_v0  ;;  %v3407_v3 = vand.u32 2147483648, %v12893_v0  ;;  %v13296_v14 = vsel %vm13263_vm13, %v3378_v50, %v3374_v11  ;;  %v3400_v29 = vadd.f32 %v12970_v38, %v3399_v59 }
 0x45c   : > { %vm3402_vm14 = vweird.f32 %v12970_v38  ;;  %v3483_v47 = vsub.f32 1.0, %v3482_v44  ;;  %v3389_v53 = vsel %vm13302_vm5, %v12965_v1, %v3385_v4  ;;  %v3393_v52 = vor.u32 1.1754944e-38, %v3392_v40 }
 0x45d   : > { %vm3417_vm12 = vweird.f32 %v18254_v54  ;;  %v3469_v33 = vmul.f32 %v13134_v10, %v3468_v61  ;;  %v3415_v41 = vadd.f32 %v18254_v54, %v3414_v48  ;;  %v3420_v13 = vand.u32 2147483647, %v12906_v16  ;;  %vm13318_vm4 = vmor %vm3401_vm15, %vm3402_vm14 }
 0x45e   : > { %v3422_v28 = vand.u32 2147483648, %v12906_v16  ;;  %v3498_v30 = vsub.f32 1.0, %v3497_v46  ;;  %vm13322_vm3 = vcmp.eq.f32.partialorder %v3405_v56, 8.507059e+37  ;;  %v3408_v37 = vor.u32 1.1754944e-38, %v3407_v3 }
 0x45f   : > { %vm3416_vm13 = vweird.f32 %v12906_v16  ;;  %v3475_v55 = vand.u32 2147483647, %v13055_v26  ;;  %v13330_v27 = vsel %vm13287_vm6, %v3393_v52, %v3389_v53  ;;  %v3404_v0 = vsel %vm13318_vm4, %v12970_v38, %v3400_v29 }
 0x460   : > { %vm3471_vm0 = vweird.f32 %v13055_v26  ;;  %v3484_v59 = vmul.f32 %v13143_v23, %v3483_v47  ;;  %vm13339_vm2 = vmor %vm3416_vm13, %vm3417_vm12  ;;  %v3470_v16 = vadd.f32 %v13134_v10, %v3469_v33  ;;  %vm3472_vm1 = vweird.f32 %v13134_v10 }
 0x461   : > { %v3477_v11 = vand.u32 2147483648, %v13055_v26  ;;  %v3512_v4 = vmul.f32 %v13174_v19, %v13083_v24  ;;  %v3419_v38 = vsel %vm13339_vm2, %v18254_v54, %v3415_v41  ;;  %vm3421_vm6 = vcmp.eq.f32.partialorder %v3420_v13, 8.507059e+37  ;;  %vm13364_vm5 = vmor %vm3471_vm0, %vm3472_vm1 }
 0x462   : > { %v3423_v40 = vor.u32 1.1754944e-38, %v3422_v28  ;;  %v3499_v61 = vmul.f32 %v13153_v45, %v3498_v30  ;;  %v13354_v50 = vsel %vm13322_vm3, %v3408_v37, %v3404_v0  ;;  %vm13356_vm15 = vcmp.eq.f32.partialorder %v3475_v55, 8.507059e+37  ;;  %v18296_v37 = vld [vmem:[#allocation48_spill] sm:$0xff] }
 0x463   : > { %v3490_v46 = vand.u32 2147483647, %v13067_v60  ;;  %v3492_v39 = vand.u32 2147483648, %v13067_v60  ;;  %v3485_v56 = vadd.f32 %v13143_v23, %v3484_v59  ;;  %vm3486_vm14 = vweird.f32 %v13067_v60 }
 0x464   : > { %vm3487_vm12 = vweird.f32 %v13143_v23  ;;  %v3505_v3 = vand.u32 2147483647, %v13078_v35  ;;  %v3424_v25 = vsel %vm3421_vm6, %v3423_v40, %v3419_v38  ;;  %v3474_v29 = vsel %vm13364_vm5, %v13134_v10, %v3470_v16 }
 0x465   : > { %v3478_v47 = vor.u32 1.1754944e-38, %v3477_v11  ;;  %v3513_v53 = vsub.f32 1.0, %v3512_v4  ;;  %v3500_v26 = vadd.f32 %v13153_v45, %v3499_v61  ;;  %vm3502_vm4 = vweird.f32 %v13153_v45  ;;  %vm13380_vm3 = vmor %vm3486_vm14, %vm3487_vm12  ;;  %v18284_v61 = vld [vmem:[#allocation53_spill] sm:$0xff] }
 0x466   : > { %v3507_v52 = vand.u32 2147483648, %v13078_v35  ;;  %v3527_v60 = vmul.f32 %v13190_v57, %v13089_v21  ;;  %vm13384_vm13 = vcmp.eq.f32.partialorder %v3490_v46, 8.507059e+37  ;;  %v3493_v10 = vor.u32 1.1754944e-38, %v3492_v39  ;;  %v18286_v46 = vld [vmem:[#allocation46_spill] sm:$0xff] }
 0x467   : > { %vm3501_vm0 = vweird.f32 %v13078_v35  ;;  %v3542_v13 = vmul.f32 %v13203_v31, %v13103_v36  ;;  %v13393_v28 = vsel %vm13356_vm15, %v3478_v47, %v3474_v29  ;;  %v3489_v30 = vsel %vm13380_vm3, %v13143_v23, %v3485_v56 }
 0x468   : > { %vm13398_vm2 = vcmp.eq.f32.partialorder %v3505_v3, 8.507059e+37  ;;  %v3522_v1 = vand.u32 2147483648, %v13083_v24  ;;  %vm13403_vm1 = vmor %vm3501_vm0, %vm3502_vm4  ;;  %v3514_v35 = vmul.f32 %v13174_v19, %v3513_v53  ;;  %vm3516_vm6 = vweird.f32 %v13083_v24 }
 0x469   : > { %vm3517_vm15 = vweird.f32 %v13174_v19  ;;  %v3520_v55 = vand.u32 2147483647, %v13083_v24  ;;  %v3504_v23 = vsel %vm13403_vm1, %v13153_v45, %v3500_v26  ;;  %v3508_v0 = vor.u32 1.1754944e-38, %v3507_v52 }
 0x46a   : > { %v3528_v59 = vsub.f32 1.0, %v3527_v60  ;;  %v3537_v44 = vand.u32 2147483648, %v13089_v21  ;;  %v13417_v16 = vsel %vm13384_vm13, %v3493_v10, %v3489_v30  ;;  %vm3532_vm5 = vweird.f32 %v13190_v57  ;;  %v18292_v60 = vld [vmem:[#allocation45_spill] sm:$0xff]  ;;  %v18294_v30 = vld [vmem:[#allocation47_spill] sm:$0xff]  ;;  %vm13479_vm13 = vmor %vm3516_vm6, %vm3517_vm15 }
 0x46b   : > { %v3543_v11 = vsub.f32 1.0, %v3542_v13  ;;  %v3557_v4 = vmul.f32 %v13213_v15, %v13110_v6  ;;  %v3523_v38 = vor.u32 1.1754944e-38, %v3522_v1  ;;  %v3535_v40 = vand.u32 2147483647, %v13089_v21 }
 0x46c   : > { %v18285_v45 = vrot.slane %v18284_v61, 7  ;;  %v18287_v39 = vrot.slane %v18286_v46, 7  ;;  %v13431_v56 = vsel %vm13398_vm2, %v3508_v0, %v3504_v23  ;;  %v3515_v3 = vadd.f32 %v13174_v19, %v3514_v35 }
 0x46d   : > { %vm13434_vm14 = vcmp.eq.f32.partialorder %v3520_v55, 8.507059e+37  ;;  %vm3531_vm12 = vweird.f32 %v13089_v21  ;;  %v3572_v47 = vmul.f32 %v13229_v8, %v13115_v34  ;;  %v3538_v52 = vor.u32 1.1754944e-38, %v3537_v44  ;;  %v18300_v44 = vld [vmem:[#allocation49_spill] sm:$0xff]  ;;  %v8457_v21 = vld [vmem:[%s17617_s2 + $0x1d8] sm:$0xff] }
 0x46e   : > { %v3610_v48 = vmul.f32 %v18285_v45, %v13216_v9  ;;  %v3611_v54 = vmul.f32 %v18287_v39, %v13232_v20  ;;  %v18290_v9 = vld [vmem:[#allocation52_spill] sm:$0xff]  ;;  %v3529_v20 = vmul.f32 %v13190_v57, %v3528_v59  ;;  %vm3547_vm4 = vweird.f32 %v13203_v31  ;;  %vm13518_vm2 = vmor %vm3531_vm12, %vm3532_vm5  ;;  %v8454_v45 = vld [vmem:[%s17617_s2 + $0x1c0] sm:$0xff] }
 0x46f   : > { %v18291_v53 = vrot.slane %v18290_v9, 7  ;;  %v18293_v33 = vrot.slane %v18292_v60, 7  ;;  %v3544_v10 = vmul.f32 %v13203_v31, %v3543_v11  ;;  %vm3546_vm3 = vweird.f32 %v13103_v36 }
 0x470   : > { %v3558_v13 = vsub.f32 1.0, %v3557_v4  ;;  %v18295_v12 = vrot.slane %v18294_v30, 7  ;;  %v18297_v35 = vrot.slane %v18296_v37, 7  ;;  %v3623_v23 = vmul.f32 %v13024_v63, %v13123_v2  ;;  %v18307_v2 = vld [vmem:[#allocation50_spill] sm:$0xff]  ;;  %vm13539_vm5 = vmor %vm3546_vm3, %vm3547_vm4 }
 0x471   : > { %v3612_v26 = vmul.f32 %v18291_v53, %v13259_v18  ;;  %v3613_v41 = vmul.f32 %v18293_v33, %v13282_v7  ;;  %v3622_v18 = vmul.f32 %v13020_v58, %v13086_v22  ;;  %v13462_v7 = vadd.f32 %v13046_v62, %v3610_v48  ;;  %v8455_v48 = vld [vmem:[%s17617_s2 + $0x1c8] sm:$0xff] }
 0x472   : > { %v3614_v1 = vmul.f32 %v18295_v12, %v13296_v14  ;;  %v3615_v55 = vmul.f32 %v18297_v35, %v13330_v27  ;;  %v13465_v0 = vadd.f32 %v13051_v42, %v3611_v54  ;;  %v3573_v59 = vsub.f32 1.0, %v3572_v47  ;;  %v8471_v33 = vld [vmem:[%s17617_s2 + $0x148] sm:$0xff] }
 0x473   : > { %18298 = vst [vmem:[#allocation54_spill] sm:$0xff] %v13462_v7  ;;  %v18301_v14 = vrot.slane %v18300_v44, 7  ;;  %v3624_v58 = vmul.f32 %v13027_v43, %v13165_v49  ;;  %v13473_v22 = vadd.f32 %v13053_v32, %v3612_v26  ;;  %vm13483_vm0 = vcmp.eq.f32.partialorder %v3535_v40, 8.507059e+37 }
 0x474   : > { %18299 = vst [vmem:[#allocation51_spill] sm:$0xff] %v13465_v0  ;;  %v3550_v42 = vand.u32 2147483647, %v13103_v36  ;;  %v18308_v27 = vrot.slane %v18307_v2, 7  ;;  %v3625_v32 = vmul.f32 %v13043_v17, %v13242_v5  ;;  %v13493_v49 = vadd.f32 %v13065_v51, %v3613_v41 }
 0x475   : > { %v3616_v11 = vmul.f32 %v18301_v14, %v13354_v50  ;;  %18302 = vst [vmem:[#allocation53_spill] sm:$0xff] %v13473_v22  ;;  %v3519_v24 = vsel %vm13479_vm13, %v13174_v19, %v3515_v3  ;;  %v3530_v50 = vadd.f32 %v13190_v57, %v3529_v20  ;;  %v13499_v4 = vadd.f32 %v3622_v18, %v3614_v1 }
 0x476   : > { %v3617_v43 = vmul.f32 %v18308_v27, %v3424_v25  ;;  %18309 = vst [vmem:[#allocation46_spill] sm:$0xff] %v13493_v49  ;;  %7730 = vtanh.f32 %v13462_v7  ;;  %v3552_v40 = vand.u32 2147483648, %v13103_v36  ;;  %v3559_v25 = vmul.f32 %v13213_v15, %v3558_v13 }
 0x477   : > { %18310 = vst [vmem:[#allocation52_spill] sm:$0xff] %v13499_v4  ;;  %v13504_v61 = vadd.f32 %v3623_v23, %v3615_v55  ;;  %7732 = vtanh.f32 %v13465_v0  ;;  %v3545_v17 = vadd.f32 %v13203_v31, %v3544_v10  ;;  %v3574_v51 = vmul.f32 %v13229_v8, %v3573_v59 }
 0x478   : > { %v13509_v5 = vadd.f32 %v3624_v58, %v3616_v11  ;;  %7734 = vtanh.f32 %v13473_v22  ;;  %v3524_v19 = vsel %vm13434_vm14, %v3523_v38, %v3519_v24  ;;  %vm13522_vm1 = vcmp.eq.f32.partialorder %v3550_v42, 8.507059e+37 }
 0x479   : > { %18311 = vst [vmem:[#allocation45_spill] sm:$0xff] %v13504_v61  ;;  %v13526_v46 = vadd.f32 %v3625_v32, %v3617_v43  ;;  %7736 = vtanh.f32 %v13493_v49  ;;  %v3534_v38 = vsel %vm13518_vm2, %v13190_v57, %v3530_v50  ;;  %vm3561_vm6 = vweird.f32 %v13110_v6 }
 0x47a   : > { %18312 = vst [vmem:[#allocation47_spill] sm:$0xff] %v13509_v5  ;;  %vm3562_vm15 = vweird.f32 %v13213_v15  ;;  %7738 = vtanh.f32 %v13499_v4  ;;  %v3560_v39 = vadd.f32 %v13213_v15, %v3559_v25  ;;  %v3565_v54 = vand.u32 2147483647, %v13110_v6  ;;  %v8450_v25 = vld [vmem:[%s17617_s2 + $0x1e0] sm:$0xff] }
 0x47b   : > { %18317 = vst [vmem:[#allocation48_spill] sm:$0xff] %v13526_v46  ;;  %v3567_v57 = vand.u32 2147483648, %v13110_v6  ;;  %7740 = vtanh.f32 %v13504_v61  ;;  %v3549_v29 = vsel %vm13539_vm5, %v13203_v31, %v3545_v17  ;;  %v3575_v47 = vadd.f32 %v13229_v8, %v3574_v51  ;;  %vm13563_vm12 = vmor %vm3561_vm6, %vm3562_vm15  ;;  %v8451_v17 = vld [vmem:[%s17617_s2 + $0x1e8] sm:$0xff]  ;;  %v8452_v51 = vld [vmem:[%s17617_s2 + $0x1f0] sm:$0xff] }
 0x47c   : > { %v7731_v3 = vpop.eup %7730  ;;  %vm3577_vm14 = vweird.f32 %v13229_v8  ;;  %7742 = vtanh.f32 %v13509_v5  ;;  %v3580_v9 = vand.u32 2147483647, %v13115_v34  ;;  %v3582_v53 = vand.u32 2147483648, %v13115_v34 }
 0x47d   : > { %v7733_v36 = vpop.eup %7732  ;;  %7744 = vtanh.f32 %v13526_v46  ;;  %v3642_v26 = vmul.f32 %v7731_v3, %v13393_v28  ;;  %v3539_v60 = vsel %vm13483_vm0, %v3538_v52, %v3534_v38  ;;  %v3553_v31 = vor.u32 1.1754944e-38, %v3552_v40  ;;  %v8456_v38 = vld [vmem:[%s17617_s2 + $0x1d0] sm:$0xff]  ;;  %v8461_v3 = vld [vmem:[%s17617_s2 + $0x1b8] sm:$0xff]  ;;  %v8475_v52 = vld [vmem:[%s17617_s2 + $0x128] sm:$0xff] }
 0x47e   : > { %v7735_v20 = vpop.eup %7734  ;;  %vm3576_vm4 = vweird.f32 %v13115_v34  ;;  %v3643_v41 = vmul.f32 %v7733_v36, %v13417_v16  ;;  %v3564_v28 = vsel %vm13563_vm12, %v13213_v15, %v3560_v39  ;;  %vm3566_vm3 = vcmp.eq.f32.partialorder %v3565_v54, 8.507059e+37  ;;  %v8458_v39 = vld [vmem:[%s17617_s2 + $0x1a0] sm:$0xff]  ;;  %v8459_v54 = vld [vmem:[%s17617_s2 + $0x1a8] sm:$0xff]  ;;  %v8464_v36 = vld [vmem:[%s17617_s2 + $0x190] sm:$0xff] }
 0x47f   : > { %v7737_v10 = vpop.eup %7736  ;;  %vm13574_vm13 = vmor %vm3576_vm4, %vm3577_vm14  ;;  %v3644_v6 = vmul.f32 %v7735_v20, %v13431_v56  ;;  %v3658_v13 = vrot.slane %v3642_v26, 3  ;;  %v3554_v34 = vsel %vm13522_vm1, %v3553_v31, %v3549_v29  ;;  %v3568_v16 = vor.u32 1.1754944e-38, %v3567_v57  ;;  %v8460_v57 = vld [vmem:[%s17617_s2 + $0x1b0] sm:$0xff]  ;;  %v8462_v29 = vld [vmem:[%s17617_s2 + $0x180] sm:$0xff] }
 0x480   : > { %v7739_v30 = vpop.eup %7738  ;;  %v3579_v12 = vsel %vm13574_vm13, %v13229_v8, %v3575_v47  ;;  %v3659_v15 = vrot.slane %v3643_v41, 2  ;;  %vm3581_vm0 = vcmp.eq.f32.partialorder %v3580_v9, 8.507059e+37  ;;  %v3583_v18 = vor.u32 1.1754944e-38, %v3582_v53  ;;  %v8463_v47 = vld [vmem:[%s17617_s2 + $0x188] sm:$0xff]  ;;  %v8465_v9 = vld [vmem:[%s17617_s2 + $0x198] sm:$0xff]  ;;  %v8466_v53 = vld [vmem:[%s17617_s2 + $0x160] sm:$0xff] }
 0x481   : > { %v7741_v1 = vpop.eup %7740  ;;  %v3646_v37 = vmul.f32 %v7739_v30, %v3539_v60  ;;  %v3661_v35 = vrot.slane %v3644_v6, 1  ;;  %v3569_v23 = vsel %vm3566_vm3, %v3568_v16, %v3564_v28  ;;  %v3645_v59 = vmul.f32 %v7737_v10, %v3524_v19  ;;  %v8453_v19 = vld [vmem:[%s17617_s2 + $0x1f8] sm:$0xff]  ;;  %v8467_v26 = vld [vmem:[%s17617_s2 + $0x168] sm:$0xff]  ;;  %v8468_v20 = vld [vmem:[%s17617_s2 + $0x170] sm:$0xff] }
 0x482   : > { %v7743_v55 = vpop.eup %7742  ;;  %v3647_v56 = vmul.f32 %v7741_v1, %v3554_v34  ;;  %v3660_v44 = vsel %vm17776_vm7, %v3659_v15, %v3658_v13  ;;  %v3584_v11 = vsel %vm3581_vm0, %v3583_v18, %v3579_v12  ;;  %vm18324_vm2 = vcmask 1046534   ;;  %v8469_v60 = vld [vmem:[%s17617_s2 + $0x178] sm:$0xff]  ;;  %v8470_v31 = vld [vmem:[%s17617_s2 + $0x140] sm:$0xff]  ;;  %v8472_v41 = vld [vmem:[%s17617_s2 + $0x150] sm:$0xff] }
 0x483   : > { %v7745_v14 = vpop.eup %7744  ;;  %v3648_v58 = vmul.f32 %v7743_v55, %v3569_v23  ;;  %v3662_v63 = vsel %vm17775_vm8, %v3661_v35, %v3660_v44  ;;  %v3664_v62 = vrot.slane %v3646_v37, 7  ;;  %vm18325_vm1 = vcmask 1047559   ;;  %v8473_v10 = vld [vmem:[%s17617_s2 + $0x158] sm:$0xff]  ;;  %v8474_v28 = vld [vmem:[%s17617_s2 + $0x120] sm:$0xff]  ;;  %v8476_v6 = vld [vmem:[%s17617_s2 + $0x130] sm:$0xff] }
 0x484   : > { %v3649_v42 = vmul.f32 %v7745_v14, %v3584_v11  ;;  %v3663_v8 = vsel %vm17774_vm9, %v3645_v59, %v3662_v63  ;;  %v3666_v2 = vrot.slane %v3647_v56, 6  ;;  %v8477_v13 = vld [vmem:[%s17617_s2 + $0x138] sm:$0xff]  ;;  %v8478_v30 = vld [vmem:[%s17617_s2 + $0x100] sm:$0xff]  ;;  %v8479_v34 = vld [vmem:[%s17617_s2 + $0x108] sm:$0xff] }
 0x485   : > { %v3665_v27 = vsel %vm17773_vm10, %v3664_v62, %v3663_v8  ;;  %v3668_v43 = vrot.slane %v3648_v58, 5  ;;  %v8480_v16 = vld [vmem:[%s17617_s2 + $0x110] sm:$0xff]  ;;  %v8481_v12 = vld [vmem:[%s17617_s2 + $0x118] sm:$0xff]  ;;  %v8482_v15 = vld [vmem:[%s17617_s2 + $0xe0] sm:$0xff] }
 0x486   : > { %v3667_v32 = vsel %vm17772_vm11, %v3666_v2, %v3665_v27  ;;  %v3670_v24 = vrot.slane %v3649_v42, 4  ;;  %v8483_v1 = vld [vmem:[%s17617_s2 + $0xe8] sm:$0xff]  ;;  %v8484_v18 = vld [vmem:[%s17617_s2 + $0xf0] sm:$0xff]  ;;  %v8485_v37 = vld [vmem:[%s17617_s2 + $0xf8] sm:$0xff] }
 0x487   : > { %v3669_v50 = vsel %vm18324_vm2, %v3668_v43, %v3667_v32  ;;  %v8486_v35 = vld [vmem:[%s17617_s2 + $0xc0] sm:$0xff]  ;;  %v8487_v55 = vld [vmem:[%s17617_s2 + $0xc8] sm:$0xff]  ;;  %v8488_v23 = vld [vmem:[%s17617_s2 + $0xd0] sm:$0xff] }
 0x488   : > { %v3671_v40 = vsel %vm18325_vm1, %v3670_v24, %v3669_v50  ;;  %v8489_v59 = vld [vmem:[%s17617_s2 + $0xd8] sm:$0xff]  ;;  %v8490_v56 = vld [vmem:[%s17617_s2 + $0xa0] sm:$0xff]  ;;  %v8491_v44 = vld [vmem:[%s17617_s2 + $0xa8] sm:$0xff] }
 0x489   : > { %3689 = vmatmul.f32.vlgmr.msrb.gmra.mxu0 %v3671_v40  ;;  %3709 = vmatmul.f32.vlgmr.msrb.gmra.mxu1 %v3671_v40  ;;  %v8492_v14 = vld [vmem:[%s17617_s2 + $0xb0] sm:$0xff]  ;;  %v8493_v11 = vld [vmem:[%s17617_s2 + $0xb8] sm:$0xff]  ;;  %v8494_v58 = vld [vmem:[%s17617_s2 + $0x80] sm:$0xff] }
 0x48a   : > { %3729 = vmatmul.f32.vlgmr.msrb.gmra.mxu2 %v3671_v40  ;;  %3749 = vmatmul.f32.vlgmr.msrb.gmra.mxu3 %v3671_v40  ;;  %v8495_v63 = vld [vmem:[%s17617_s2 + $0x88] sm:$0xff]  ;;  %v8496_v62 = vld [vmem:[%s17617_s2 + $0x90] sm:$0xff]  ;;  %v8497_v42 = vld [vmem:[%s17617_s2 + $0x98] sm:$0xff] }
 0x48b   : > { %5127 = vmatpush.msrb.mxu0 %v8450_v25  ;;  %5147 = vmatpush.msrb.mxu1 %v8451_v17  ;;  %v8498_v8 = vld [vmem:[%s17617_s2 + $0x60] sm:$0xff]  ;;  %v8499_v2 = vld [vmem:[%s17617_s2 + $0x68] sm:$0xff]  ;;  %v8500_v27 = vld [vmem:[%s17617_s2 + $0x70] sm:$0xff] }
 0x48c   : > { %5167 = vmatpush.msrb.mxu2 %v8452_v51  ;;  %5187 = vmatpush.msrb.mxu3 %v8453_v19  ;;  %v8501_v43 = vld [vmem:[%s17617_s2 + $0x78] sm:$0xff]  ;;  %v8502_v32 = vld [vmem:[%s17617_s2 + $0x40] sm:$0xff]  ;;  %v8503_v24 = vld [vmem:[%s17617_s2 + $0x48] sm:$0xff] }
 0x48d   : > { %5128 = vmatpush.msrb.mxu0 %v8454_v45  ;;  %5148 = vmatpush.msrb.mxu1 %v8455_v48  ;;  %v8504_v50 = vld [vmem:[%s17617_s2 + $0x50] sm:$0xff]  ;;  %v8505_v40 = vld [vmem:[%s17617_s2 + $0x58] sm:$0xff]  ;;  %v8506_v25 = vld [vmem:[%s17617_s2 + $0x20] sm:$0xff] }
 0x48e   : > { %5168 = vmatpush.msrb.mxu2 %v8456_v38  ;;  %5188 = vmatpush.msrb.mxu3 %v8457_v21  ;;  %v8507_v17 = vld [vmem:[%s17617_s2 + $0x28] sm:$0xff]  ;;  %v8508_v51 = vld [vmem:[%s17617_s2 + $0x30] sm:$0xff]  ;;  %v8509_v19 = vld [vmem:[%s17617_s2 + $0x38] sm:$0xff] }
 0x48f   : > { %5129 = vmatpush.msrb.mxu0 %v8458_v39  ;;  %5149 = vmatpush.msrb.mxu1 %v8459_v54  ;;  %v8510_v45 = vld [vmem:[%s17617_s2] sm:$0xff]  ;;  %v8511_v48 = vld [vmem:[%s17617_s2 + $0x8] sm:$0xff]  ;;  %v8512_v38 = vld [vmem:[%s17617_s2 + $0x10] sm:$0xff] }
 0x490   : > { %5169 = vmatpush.msrb.mxu2 %v8460_v57  ;;  %5189 = vmatpush.msrb.mxu3 %v8461_v3  ;;  %v8513_v21 = vld [vmem:[%s17617_s2 + $0x18] sm:$0xff] }
 0x491   : > { %5130 = vmatpush.msrb.mxu0 %v8462_v29  ;;  %5150 = vmatpush.msrb.mxu1 %v8463_v47  ;;  %v18326_v47 = vld [vmem:[#allocation10_spill] sm:$0xff] }
 0x492   : > { %5170 = vmatpush.msrb.mxu2 %v8464_v36  ;;  %5190 = vmatpush.msrb.mxu3 %v8465_v9  ;;  %v18327_v9 = vld [vmem:[#allocation11_spill] sm:$0xff] }
 0x493   : > { %5131 = vmatpush.msrb.mxu0 %v8466_v53  ;;  %5151 = vmatpush.msrb.mxu1 %v8467_v26 }
 0x494   : > { %5171 = vmatpush.msrb.mxu2 %v8468_v20  ;;  %5191 = vmatpush.msrb.mxu3 %v8469_v60  ;;  %v18328_v20 = vld [vmem:[#allocation17_spill] sm:$0xff] }
 0x495   : > { %5132 = vmatpush.msrb.mxu0 %v8470_v31  ;;  %5152 = vmatpush.msrb.mxu1 %v8471_v33  ;;  %v18329_v33 = vld [vmem:[#allocation15_spill] sm:$0xff] }
 0x496   : > { %5172 = vmatpush.msrb.mxu2 %v8472_v41  ;;  %5192 = vmatpush.msrb.mxu3 %v8473_v10 }
 0x497   : > { %5133 = vmatpush.msrb.mxu0 %v8474_v28  ;;  %5153 = vmatpush.msrb.mxu1 %v8475_v52  ;;  %v18330_v52 = vld [vmem:[#allocation16_spill] sm:$0xff] }
 0x498   : > { %5173 = vmatpush.msrb.mxu2 %v8476_v6  ;;  %5193 = vmatpush.msrb.mxu3 %v8477_v13  ;;  %v18331_v13 = vld [vmem:[#allocation18_spill] sm:$0xff] }
 0x499   : > { %5134 = vmatpush.msrb.mxu0 %v8478_v30  ;;  %5154 = vmatpush.msrb.mxu1 %v8479_v34 }
 0x49a   : > { %5174 = vmatpush.msrb.mxu2 %v8480_v16  ;;  %5194 = vmatpush.msrb.mxu3 %v8481_v12  ;;  %v18332_v12 = vld [vmem:[#allocation19_spill] sm:$0xff] }
 0x49b   : > { %5135 = vmatpush.msrb.mxu0 %v8482_v15  ;;  %5155 = vmatpush.msrb.mxu1 %v8483_v1 }
 0x49c   : > { %5175 = vmatpush.msrb.mxu2 %v8484_v18  ;;  %5195 = vmatpush.msrb.mxu3 %v8485_v37 }
 0x49d   : > { %5136 = vmatpush.msrb.mxu0 %v8486_v35  ;;  %5156 = vmatpush.msrb.mxu1 %v8487_v55 }
 0x49e   : > { %5176 = vmatpush.msrb.mxu2 %v8488_v23  ;;  %5196 = vmatpush.msrb.mxu3 %v8489_v59 }
 0x49f   : > { %5137 = vmatpush.msrb.mxu0 %v8490_v56  ;;  %5157 = vmatpush.msrb.mxu1 %v8491_v44 }
 0x4a0   : > { %5177 = vmatpush.msrb.mxu2 %v8492_v14  ;;  %5197 = vmatpush.msrb.mxu3 %v8493_v11  ;;  %v18333_v14 = vld [vmem:[#allocation20_spill] sm:$0xff] }
 0x4a1   : > { %5138 = vmatpush.msrb.mxu0 %v8494_v58  ;;  %5158 = vmatpush.msrb.mxu1 %v8495_v63  ;;  %v18334_v58 = vld [vmem:[#allocation22_spill] sm:$0xff] }
 0x4a2   : > { %5178 = vmatpush.msrb.mxu2 %v8496_v62  ;;  %5198 = vmatpush.msrb.mxu3 %v8497_v42 }
 0x4a3   : > { %5139 = vmatpush.msrb.mxu0 %v8498_v8  ;;  %5159 = vmatpush.msrb.mxu1 %v8499_v2 }
 0x4a4   : > { %5179 = vmatpush.msrb.mxu2 %v8500_v27  ;;  %5199 = vmatpush.msrb.mxu3 %v8501_v43 }
 0x4a5   : > { %5140 = vmatpush.msrb.mxu0 %v8502_v32  ;;  %5160 = vmatpush.msrb.mxu1 %v8503_v24 }
 0x4a6   : > { %5180 = vmatpush.msrb.mxu2 %v8504_v50  ;;  %5200 = vmatpush.msrb.mxu3 %v8505_v40  ;;  %v18345_v50 = vld [vmem:[#allocation31_spill] sm:$0xff] }
 0x4a7   : > { %5141 = vmatpush.msrb.mxu0 %v8506_v25  ;;  %5161 = vmatpush.msrb.mxu1 %v8507_v17  ;;  %v18335_v17 = vld [vmem:[#allocation24_spill] sm:$0xff] }
 0x4a8   : > { %5181 = vmatpush.msrb.mxu2 %v8508_v51  ;;  %5201 = vmatpush.msrb.mxu3 %v8509_v19 }
 0x4a9   : > { %5142 = vmatpush.msrb.mxu0 %v8510_v45  ;;  %5162 = vmatpush.msrb.mxu1 %v8511_v48  ;;  %v18336_v48 = vld [vmem:[#allocation27_spill] sm:$0xff] }
 0x4aa   : > { %5182 = vmatpush.msrb.mxu2 %v8512_v38  ;;  %5202 = vmatpush.msrb.mxu3 %v8513_v21 }
 0x506   : > { %v3690_v39 = vpop.f32.mrf.mxu0  ;;  %v13789_v16 = vpop.f32.mrf.mxu1 }
 0x507   : > { %v3757_v54 = vrot.slane %v3690_v39, 4  ;;  %v3761_v57 = vrot.slane %v3690_v39, 5  ;;  %v3765_v3 = vrot.slane %v3690_v39, 6  ;;  %v3769_v29 = vrot.slane %v3690_v39, 7 }
 0x508   : > { %v3773_v26 = vrot.slane %v3690_v39, 1  ;;  %v3833_v60 = vadd.f32 %v3690_v39, %v18328_v20  ;;  %v3777_v31 = vrot.slane %v3690_v39, 2  ;;  %v3758_v37 = vrot.slane %v13789_v16, 4 }
 0x509   : > { %v3817_v36 = vadd.f32 %v3757_v54, %v18326_v47  ;;  %v3821_v53 = vadd.f32 %v3761_v57, %v18327_v9  ;;  %v3825_v41 = vadd.f32 %v3765_v3, %v18329_v33  ;;  %v3829_v6 = vadd.f32 %v3769_v29, %v18330_v52  ;;  %v18358_v33 = vld [vmem:[#allocation23_spill] sm:$0xff] }
 0x50a   : > { %v3837_v30 = vadd.f32 %v3773_v26, %v18331_v13  ;;  %v7092_v34 = vmul.f32 -1.442695, %v3833_v60  ;;  %v3841_v15 = vadd.f32 %v3777_v31, %v18332_v12  ;;  %v3781_v35 = vrot.slane %v3690_v39, 3  ;;  %v18337_v31 = vld [vmem:[#allocation30_spill] sm:$0xff] }
 0x50b   : > { %v7088_v10 = vmul.f32 -1.442695, %v3817_v36  ;;  %v7089_v28 = vmul.f32 -1.442695, %v3821_v53  ;;  %v7090_v1 = vmul.f32 -1.442695, %v3825_v41  ;;  %v3818_v11 = vadd.f32 %v3758_v37, %v18333_v14 }
 0x50c   : > { %v7091_v18 = vmul.f32 -1.442695, %v3829_v6  ;;  %v7093_v55 = vmul.f32 -1.442695, %v3837_v30  ;;  %v7094_v59 = vmul.f32 -1.442695, %v3841_v15  ;;  %v3845_v63 = vadd.f32 %v3781_v35, %v18334_v58 }
 0x50d   : > { %7746 = vpow2.f32 %v7088_v10  ;;  %v3762_v62 = vrot.slane %v13789_v16, 5  ;;  %v3766_v8 = vrot.slane %v13789_v16, 6  ;;  %v7096_v32 = vmul.f32 -1.442695, %v3818_v11  ;;  %v18338_v10 = vld [vmem:[#allocation33_spill] sm:$0xff]  ;;  %v18340_v35 = vld [vmem:[#allocation39_spill] sm:$0xff] }
 0x50e   : > { %7748 = vpow2.f32 %v7089_v28  ;;  %v7095_v40 = vmul.f32 -1.442695, %v3845_v63  ;;  %v3770_v25 = vrot.slane %v13789_v16, 7  ;;  %v3774_v45 = vrot.slane %v13789_v16, 1  ;;  %v18341_v11 = vld [vmem:[#allocation41_spill] sm:$0xff] }
 0x50f   : > { %7750 = vpow2.f32 %v7092_v34  ;;  %v3822_v51 = vadd.f32 %v3762_v62, %v18335_v17  ;;  %v3826_v38 = vadd.f32 %v3766_v8, %v18336_v48  ;;  %v3778_v3 = vrot.slane %v13789_v16, 2  ;;  %v18339_v34 = vld [vmem:[#allocation36_spill] sm:$0xff] }
 0x510   : > { %7752 = vpow2.f32 %v7090_v1  ;;  %v3782_v26 = vrot.slane %v13789_v16, 3  ;;  %v3830_v41 = vadd.f32 %v3770_v25, %v18337_v31  ;;  %v3834_v28 = vadd.f32 %v13789_v16, %v18338_v10 }
 0x511   : > { %7754 = vpow2.f32 %v7091_v18  ;;  %v7097_v6 = vmul.f32 -1.442695, %v3822_v51  ;;  %v3838_v15 = vadd.f32 %v3774_v45, %v18339_v34  ;;  %v7098_v1 = vmul.f32 -1.442695, %v3826_v38 }
 0x512   : > { %7756 = vpow2.f32 %v7093_v55  ;;  %v3842_v55 = vadd.f32 %v3778_v3, %v18340_v35  ;;  %v3846_v63 = vadd.f32 %v3782_v26, %v18341_v11  ;;  %v7099_v8 = vmul.f32 -1.442695, %v3830_v41  ;;  %v18349_v35 = vld [vmem:[#allocation43_spill] sm:$0xff] }
 0x513   : > { %v7747_v23 = vpop.eup %7746  ;;  %7758 = vpow2.f32 %v7094_v59 }
 0x514   : > { %v7749_v56 = vpop.eup %7748  ;;  %v13793_v44 = vadd.f32 1.0, %v7747_v23  ;;  %v13833_v23 = vpop.f32.mrf.mxu2  ;;  %v7102_v45 = vmul.f32 -1.442695, %v3842_v55 }
 0x515   : > { %v13798_v42 = vadd.f32 1.0, %v7749_v56  ;;  %v7751_v2 = vpop.eup %7750  ;;  %v3767_v38 = vrot.slane %v13833_v23, 6  ;;  %v3771_v26 = vrot.slane %v13833_v23, 7  ;;  %v3783_v55 = vrot.slane %v13833_v23, 3 }
 0x516   : > { %7760 = vrcp.f32 %v13793_v44  ;;  %v7753_v27 = vpop.eup %7752  ;;  %v13806_v19 = vadd.f32 1.0, %v7751_v2  ;;  %v7100_v2 = vmul.f32 -1.442695, %v3834_v28  ;;  %vm3886_vm15 = vweird.f32 %v13793_v44 }
 0x517   : > { %v7755_v24 = vpop.eup %7754  ;;  %7762 = vrcp.f32 %v13798_v42  ;;  %v13813_v57 = vadd.f32 1.0, %v7753_v27  ;;  %v13912_v10 = vadd.f32 %v3783_v55, %v18349_v35  ;;  %v3905_v35 = vand.u32 2147483647, %v13798_v42 }
 0x518   : > { %v7757_v21 = vpop.eup %7756  ;;  %v13817_v53 = vadd.f32 1.0, %v7755_v24  ;;  %7764 = vpow2.f32 %v7096_v32  ;;  %v7101_v32 = vmul.f32 -1.442695, %v3838_v15  ;;  %v3759_v24 = vrot.slane %v13833_v23, 4 }
 0x519   : > { %v7759_v29 = vpop.eup %7758  ;;  %7766 = vpow2.f32 %v7095_v40  ;;  %v13829_v37 = vadd.f32 1.0, %v7757_v21  ;;  %v3763_v40 = vrot.slane %v13833_v23, 5  ;;  %v3779_v15 = vrot.slane %v13833_v23, 2 }
 0x51a   : > { %7768 = vrcp.f32 %v13806_v19  ;;  %v13837_v16 = vadd.f32 1.0, %v7759_v29  ;;  %v7103_v29 = vmul.f32 -1.442695, %v3846_v63  ;;  %v18343_v63 = vld [vmem:[#allocation25_spill] sm:$0xff]  ;;  %vm3901_vm4 = vweird.f32 %v13798_v42 }
 0x51b   : > { %7770 = vrcp.f32 %v13813_v57  ;;  %v13867_v18 = vadd.f32 %v3763_v40, %v18343_v63  ;;  %vm13976_vm13 = vcmp.eq.f32.partialorder %v3905_v35, 8.507059e+37  ;;  %v3920_v35 = vand.u32 2147483647, %v13813_v57 }
 0x51c   : > { %v13820_v60 = vpop.eup %7760  ;;  %7772 = vrcp.f32 %v13817_v53  ;;  %vm3916_vm2 = vweird.f32 %v13813_v57  ;;  %v3922_v46 = vand.u32 2147483648, %v13813_v57 }
 0x51d   : > { %v13835_v59 = vpop.eup %7762  ;;  %v3882_v56 = vmul.f32 %v13820_v60, %v13793_v44  ;;  %7774 = vpow2.f32 %v7097_v6  ;;  %v3775_v6 = vrot.slane %v13833_v23, 1  ;;  %vm3887_vm6 = vweird.f32 %v13820_v60 }
 0x51e   : > { %v7765_v27 = vpop.eup %7764  ;;  %7776 = vpow2.f32 %v7098_v1  ;;  %v3897_v51 = vmul.f32 %v13835_v59, %v13798_v42  ;;  %vm13933_vm5 = vmor %vm3886_vm15, %vm3887_vm6  ;;  %vm3902_vm14 = vweird.f32 %v13835_v59  ;;  %vm14024_vm6 = vcmp.eq.f32.partialorder %v3920_v35, 8.507059e+37 }
 0x51f   : > { %v7767_v25 = vpop.eup %7766  ;;  %7778 = vrcp.f32 %v13829_v37  ;;  %v3883_v3 = vsub.f32 1.0, %v3882_v56  ;;  %v13856_v28 = vadd.f32 1.0, %v7765_v27  ;;  %v18342_v56 = vld [vmem:[#allocation21_spill] sm:$0xff]  ;;  %v18344_v27 = vld [vmem:[#allocation28_spill] sm:$0xff]  ;;  %vm13966_vm3 = vmor %vm3901_vm4, %vm3902_vm14  ;;  %v3923_v49 = vor.u32 1.1754944e-38, %v3922_v46 }
 0x520   : > { %v13850_v21 = vpop.eup %7768  ;;  %7780 = vrcp.f32 %v13837_v16  ;;  %v13864_v62 = vadd.f32 %v3759_v24, %v18342_v56  ;;  %v13869_v36 = vadd.f32 1.0, %v7767_v25  ;;  %v13872_v54 = vadd.f32 %v3767_v38, %v18344_v27  ;;  %v18347_v38 = vld [vmem:[#allocation37_spill] sm:$0xff] }
 0x521   : > { %v13854_v41 = vpop.eup %7770  ;;  %7782 = vpow2.f32 %v7099_v8  ;;  %v3898_v8 = vsub.f32 1.0, %v3897_v51  ;;  %v13879_v24 = vadd.f32 %v3771_v26, %v18345_v50  ;;  %v3884_v40 = vmul.f32 %v13820_v60, %v3883_v3 }
 0x522   : > { %v13860_v1 = vpop.eup %7772  ;;  %7784 = vpow2.f32 %v7100_v2  ;;  %v13876_v2 = vmul.f32 %v13850_v21, %v13806_v19  ;;  %v3912_v25 = vmul.f32 %v13854_v41, %v13813_v57  ;;  %v13892_v27 = vadd.f32 %v3775_v6, %v18347_v38 }
 0x523   : > { %v7775_v30 = vpop.eup %7774  ;;  %7786 = vpow2.f32 %v7101_v32  ;;  %v18346_v32 = vld [vmem:[#allocation34_spill] sm:$0xff]  ;;  %v13898_v26 = vmul.f32 %v13860_v1, %v13817_v53  ;;  %v4044_v50 = vand.u32 2147483648, %v13856_v28  ;;  %v3899_v6 = vmul.f32 %v13835_v59, %v3898_v8 }
 0x524   : > { %v7777_v39 = vpop.eup %7776  ;;  %7788 = vpow2.f32 %v7102_v45  ;;  %v13889_v51 = vadd.f32 %v13833_v23, %v18346_v32  ;;  %v13900_v3 = vadd.f32 1.0, %v7775_v30  ;;  %v18348_v23 = vld [vmem:[#allocation40_spill] sm:$0xff]  ;;  %v3885_v30 = vadd.f32 %v13820_v60, %v3884_v40 }
 0x525   : > { %v13882_v43 = vpop.eup %7778  ;;  %7790 = vrcp.f32 %v13856_v28  ;;  %v13904_v56 = vadd.f32 1.0, %v7777_v39  ;;  %v13907_v32 = vadd.f32 %v3779_v15, %v18348_v23  ;;  %v3913_v31 = vsub.f32 1.0, %v3912_v25 }
 0x526   : > { %v13894_v45 = vpop.eup %7780  ;;  %7792 = vpow2.f32 %v7103_v29  ;;  %v3890_v39 = vand.u32 2147483647, %v13793_v44  ;;  %v3892_v15 = vand.u32 2147483648, %v13793_v44  ;;  %v13922_v11 = vor.u32 1.1754944e-38, %v4044_v50 }
 0x527   : > { %v7783_v63 = vpop.eup %7782  ;;  %7794 = vrcp.f32 %v13869_v36  ;;  %v4059_v25 = vand.u32 2147483648, %v13900_v3  ;;  %v3914_v14 = vmul.f32 %v13854_v41, %v3913_v31  ;;  %vm3917_vm0 = vweird.f32 %v13854_v41 }
 0x528   : > { %v7785_v38 = vpop.eup %7784  ;;  %v13920_v34 = vadd.f32 1.0, %v7783_v63  ;;  %7796 = vrcp.f32 %v13900_v3  ;;  %v3900_v63 = vadd.f32 %v13835_v59, %v3899_v6  ;;  %vm3891_vm12 = vcmp.eq.f32.partialorder %v3890_v39, 8.507059e+37  ;;  %v13950_v6 = vpop.f32.mrf.mxu3  ;;  %vm14004_vm1 = vmor %vm3916_vm2, %vm3917_vm0 }
 0x529   : > { %v7787_v29 = vpop.eup %7786  ;;  %v13927_v40 = vadd.f32 1.0, %v7785_v38  ;;  %7798 = vrcp.f32 %v13904_v56  ;;  %v3889_v38 = vsel %vm13933_vm5, %v13820_v60, %v3885_v30  ;;  %v3893_v58 = vor.u32 1.1754944e-38, %v3892_v15 }
 0x52a   : > { %v7789_v23 = vpop.eup %7788  ;;  %v13938_v8 = vadd.f32 1.0, %v7787_v29  ;;  %7800 = vrcp.f32 %v13920_v34  ;;  %v3907_v60 = vand.u32 2147483648, %v13798_v42  ;;  %v13959_v44 = vor.u32 1.1754944e-38, %v4059_v25 }
 0x52b   : > { %v13925_v55 = vpop.eup %7790  ;;  %v13947_v17 = vadd.f32 1.0, %v7789_v23  ;;  %7802 = vrcp.f32 %v13927_v40  ;;  %v13962_v23 = vsel %vm3891_vm12, %v3893_v58, %v3889_v38  ;;  %v3904_v42 = vsel %vm13966_vm3, %v13835_v59, %v3900_v63 }
 0x52c   : > { %v7793_v50 = vpop.eup %7792  ;;  %v4034_v29 = vmul.f32 %v13925_v55, %v13856_v28  ;;  %7804 = vrcp.f32 %v13938_v8  ;;  %v3760_v58 = vrot.slane %v13950_v6, 4  ;;  %v3764_v38 = vrot.slane %v13950_v6, 5 }
 0x52d   : > { %v13945_v48 = vpop.eup %7794  ;;  %v13957_v30 = vadd.f32 1.0, %v7793_v50  ;;  %7806 = vrcp.f32 %v13947_v17  ;;  %v13985_v50 = vadd.f32 %v13854_v41, %v3914_v14  ;;  %v3908_v31 = vor.u32 1.1754944e-38, %v3907_v60  ;;  %v18363_v60 = vld [vmem:[#allocation32_spill] sm:$0xff] }
 0x52e   : > { %v13970_v39 = vpop.eup %7796  ;;  %v4035_v12 = vsub.f32 1.0, %v4034_v29  ;;  %v3768_v59 = vrot.slane %v13950_v6, 6  ;;  %v3772_v14 = vrot.slane %v13950_v6, 7  ;;  %v3820_v13 = vadd.f32 %v3760_v58, %v18358_v33 }
 0x52f   : > { %v13981_v25 = vpop.eup %7798  ;;  %v4049_v63 = vmul.f32 %v13970_v39, %v13900_v3  ;;  %7808 = vrcp.f32 %v13957_v30  ;;  %v14002_v29 = vsel %vm13976_vm13, %v3908_v31, %v3904_v42  ;;  %v3919_v47 = vsel %vm14004_vm1, %v13854_v41, %v13985_v50  ;;  %v18359_v42 = vld [vmem:[#allocation26_spill] sm:$0xff]  ;;  %v18362_v41 = vld [vmem:[#allocation29_spill] sm:$0xff] }
 0x530   : > { %v13996_v20 = vpop.eup %7800  ;;  %v4064_v52 = vmul.f32 %v13981_v25, %v13904_v56  ;;  %7810 = vtanh.f32 %v13864_v62  ;;  %v3824_v15 = vadd.f32 %v3764_v38, %v18359_v42  ;;  %v14022_v5 = vmul.f32 %v13925_v55, %v4035_v12 }
 0x531   : > { %v14010_v9 = vpop.eup %7802  ;;  %7812 = vtanh.f32 %v13867_v18  ;;  %v3776_v58 = vrot.slane %v13950_v6, 1  ;;  %v3828_v50 = vadd.f32 %v3768_v59, %v18362_v41  ;;  %v4050_v18 = vsub.f32 1.0, %v4049_v63  ;;  %v18364_v63 = vld [vmem:[#allocation35_spill] sm:$0xff] }
 0x532   : > { %v14019_v31 = vpop.eup %7804  ;;  %7814 = vtanh.f32 %v13872_v54  ;;  %v3780_v38 = vrot.slane %v13950_v6, 2  ;;  %v3832_v12 = vadd.f32 %v3772_v14, %v18363_v60  ;;  %v14038_v35 = vmul.f32 %v13996_v20, %v13920_v34 }
 0x533   : > { %v14031_v57 = vpop.eup %7806  ;;  %7816 = vtanh.f32 %v13879_v24  ;;  %v3784_v54 = vrot.slane %v13950_v6, 3  ;;  %v7104_v42 = vmul.f32 -1.442695, %v3820_v13  ;;  %v4065_v59 = vsub.f32 1.0, %v4064_v52  ;;  %v18366_v52 = vld [vmem:[#allocation42_spill] sm:$0xff] }
 0x534   : > { %7818 = vtanh.f32 %v13889_v51  ;;  %v3836_v24 = vadd.f32 %v13950_v6, %v18364_v63  ;;  %v7105_v41 = vmul.f32 -1.442695, %v3824_v15  ;;  %v14049_v14 = vmul.f32 %v14010_v9, %v13927_v40  ;;  %v18365_v51 = vld [vmem:[#allocation38_spill] sm:$0xff]  ;;  %v18367_v15 = vld [vmem:[#allocation44_spill] sm:$0xff] }
 0x535   : > { %v14042_v33 = vpop.eup %7808  ;;  %7820 = vtanh.f32 %v13892_v27  ;;  %v3840_v60 = vadd.f32 %v3776_v58, %v18365_v51  ;;  %v7106_v4 = vmul.f32 -1.442695, %v3828_v50  ;;  %v3844_v27 = vadd.f32 %v3780_v38, %v18366_v52 }
 0x536   : > { %v7811_v61 = vpop.eup %7810  ;;  %7822 = vtanh.f32 %v13907_v32  ;;  %v7107_v22 = vmul.f32 -1.442695, %v3832_v12  ;;  %v14056_v6 = vmul.f32 %v13970_v39, %v4050_v18  ;;  %v3848_v63 = vadd.f32 %v3784_v54, %v18367_v15 }
 0x537   : > { %v7813_v13 = vpop.eup %7812  ;;  %7824 = vtanh.f32 %v13912_v10  ;;  %v18368_v7 = vsub.f32 1.0, %v13898_v26  ;;  %v7108_v10 = vmul.f32 -1.442695, %v3836_v24  ;;  %v3957_v50 = vmul.f32 %v13882_v43, %v13829_v37 }
 0x538   : > { %v7815_v0 = vpop.eup %7814  ;;  %7826 = vpow2.f32 %v7104_v42  ;;  %v14070_v18 = vmul.f32 %v13981_v25, %v4065_v59  ;;  %v7109_v26 = vmul.f32 -1.442695, %v3840_v60  ;;  %v18369_v54 = vsub.f32 1.0, %v13876_v2 }
 0x539   : > { %v3929_v32 = vmul.f32 %v13860_v1, %v18368_v7  ;;  %v14062_v58 = vpop.eup %7816  ;;  %7828 = vpow2.f32 %v7105_v41  ;;  %v3924_v7 = vsel %vm14024_vm6, %v3923_v49, %v3919_v47  ;;  %v7110_v41 = vmul.f32 -1.442695, %v3844_v27 }
 0x53a   : > { %v14067_v38 = vpop.eup %7818  ;;  %7830 = vpow2.f32 %v7106_v4  ;;  %v3944_v24 = vmul.f32 %v13850_v21, %v18369_v54  ;;  %v14083_v59 = vmul.f32 %v7811_v61, %v13962_v23  ;;  %v7111_v15 = vmul.f32 -1.442695, %v3848_v63 }
 0x53b   : > { %v14073_v12 = vpop.eup %7820  ;;  %7832 = vpow2.f32 %v7107_v22  ;;  %v3930_v4 = vadd.f32 %v13860_v1, %v3929_v32  ;;  %vm3932_vm15 = vweird.f32 %v13860_v1  ;;  %v14090_v49 = vmul.f32 %v7813_v13, %v14002_v29 }
 0x53c   : > { %v14080_v46 = vpop.eup %7822  ;;  %7834 = vpow2.f32 %v7108_v10  ;;  %v3958_v22 = vsub.f32 1.0, %v3957_v50  ;;  %v3972_v47 = vmul.f32 %v13894_v45, %v13837_v16  ;;  %vm3931_vm5 = vweird.f32 %v13817_v53 }
 0x53d   : > { %v14087_v60 = vpop.eup %7824  ;;  %7836 = vpow2.f32 %v7109_v26  ;;  %v3935_v61 = vand.u32 2147483647, %v13817_v53  ;;  %v3937_v23 = vand.u32 2147483648, %v13817_v53  ;;  %v14097_v63 = vmul.f32 %v7815_v0, %v3924_v7  ;;  %vm14099_vm14 = vmor %vm3931_vm5, %vm3932_vm15 }
 0x53e   : > { %v7827_v2 = vpop.eup %7826  ;;  %7838 = vpow2.f32 %v7110_v41  ;;  %v3945_v13 = vadd.f32 %v13850_v21, %v3944_v24  ;;  %vm3947_vm12 = vweird.f32 %v13850_v21  ;;  %v3934_v32 = vsel %vm14099_vm14, %v13860_v1, %v3930_v4 }
 0x53f   : > { %v7829_v62 = vpop.eup %7828  ;;  %7840 = vpow2.f32 %v7111_v15  ;;  %vm3946_vm4 = vweird.f32 %v13806_v19  ;;  %v3952_v0 = vand.u32 2147483648, %v13806_v19  ;;  %v14110_v10 = vadd.f32 1.0, %v7827_v2 }
 0x540   : > { %v7831_v27 = vpop.eup %7830  ;;  %v3959_v50 = vmul.f32 %v13882_v43, %v3958_v22  ;;  %v3973_v26 = vsub.f32 1.0, %v3972_v47  ;;  %v3987_v7 = vmul.f32 %v13945_v48, %v13869_v36  ;;  %vm4039_vm3 = vweird.f32 %v13925_v55  ;;  %vm14124_vm0 = vmor %vm3946_vm4, %vm3947_vm12 }
 0x541   : > { %v7833_v53 = vpop.eup %7832  ;;  %v14116_v15 = vadd.f32 1.0, %v7829_v62  ;;  %vm14118_vm13 = vcmp.eq.f32.partialorder %v3935_v61, 8.507059e+37  ;;  %v3938_v1 = vor.u32 1.1754944e-38, %v3937_v23  ;;  %v3950_v24 = vand.u32 2147483647, %v13806_v19 }
 0x542   : > { %v7835_v4 = vpop.eup %7834  ;;  %vm4054_vm2 = vweird.f32 %v13970_v39  ;;  %v14130_v22 = vadd.f32 1.0, %v7831_v27  ;;  %v3949_v47 = vsel %vm14124_vm0, %v13850_v21, %v3945_v13  ;;  %vm3961_vm1 = vweird.f32 %v13829_v37 }
 0x543   : > { %v3965_v2 = vand.u32 2147483647, %v13829_v37  ;;  %v7837_v61 = vpop.eup %7836  ;;  %vm4038_vm6 = vweird.f32 %v13856_v28  ;;  %v14138_v23 = vadd.f32 1.0, %v7833_v53  ;;  %v3953_v62 = vor.u32 1.1754944e-38, %v3952_v0 }
 0x544   : > { %vm3962_vm15 = vweird.f32 %v13882_v43  ;;  %v3967_v19 = vand.u32 2147483648, %v13829_v37  ;;  %v7839_v29 = vpop.eup %7838  ;;  %vm4053_vm5 = vweird.f32 %v13900_v3  ;;  %7842 = vrcp.f32 %v14110_v10 }
 0x545   : > { %v3960_v21 = vadd.f32 %v13882_v43, %v3959_v50  ;;  %v3974_v13 = vmul.f32 %v13894_v45, %v3973_v26  ;;  %v3988_v27 = vsub.f32 1.0, %v3987_v7  ;;  %v7841_v54 = vpop.eup %7840  ;;  %v14146_v42 = vadd.f32 1.0, %v7835_v4  ;;  %vm14169_vm4 = vmor %vm3961_vm1, %vm3962_vm15 }
 0x546   : > { %7844 = vrcp.f32 %v14116_v15  ;;  %v14151_v0 = vsel %vm14118_vm13, %v3938_v1, %v3934_v32  ;;  %vm3951_vm14 = vcmp.eq.f32.partialorder %v3950_v24, 8.507059e+37  ;;  %v14153_v53 = vadd.f32 1.0, %v7837_v61 }
 0x547   : > { %7846 = vrcp.f32 %v14130_v22  ;;  %v14156_v52 = vsel %vm3951_vm14, %v3953_v62, %v3949_v47  ;;  %vm14158_vm12 = vcmp.eq.f32.partialorder %v3965_v2, 8.507059e+37  ;;  %v14162_v26 = vadd.f32 1.0, %v7839_v29 }
 0x548   : > { %7848 = vrcp.f32 %v14138_v23  ;;  %v3968_v7 = vor.u32 1.1754944e-38, %v3967_v19  ;;  %vm3976_vm13 = vweird.f32 %v13837_v16  ;;  %v3964_v41 = vsel %vm14169_vm4, %v13882_v43, %v3960_v21 }
 0x549   : > { %v3975_v1 = vadd.f32 %v13894_v45, %v3974_v13  ;;  %vm3977_vm0 = vweird.f32 %v13894_v45  ;;  %v3989_v24 = vmul.f32 %v13945_v48, %v3988_v27  ;;  %vm4068_vm14 = vweird.f32 %v13904_v56 }
 0x54a   : > { %v14181_v37 = vadd.f32 1.0, %v7841_v54  ;;  %7850 = vrcp.f32 %v14146_v42  ;;  %v3980_v4 = vand.u32 2147483647, %v13837_v16  ;;  %v3982_v47 = vand.u32 2147483648, %v13837_v16  ;;  %v14186_v2 = vpop.eup %7842  ;;  %vm14205_vm1 = vmor %vm3976_vm13, %vm3977_vm0 }
 0x54b   : > { %7852 = vrcp.f32 %v14153_v53  ;;  %v3995_v43 = vand.u32 2147483647, %v13869_v36  ;;  %v4037_v61 = vadd.f32 %v13925_v55, %v14022_v5  ;;  %v4052_v62 = vadd.f32 %v13970_v39, %v14056_v6 }
 0x54c   : > { %v14194_v19 = vpop.eup %7844  ;;  %7854 = vrcp.f32 %v14162_v26  ;;  %v14199_v29 = vsel %vm14158_vm12, %v3968_v7, %v3964_v41  ;;  %vm3992_vm15 = vweird.f32 %v13945_v48  ;;  %v3997_v5 = vand.u32 2147483648, %v13869_v36  ;;  %vm14217_vm12 = vmor %vm4038_vm6, %vm4039_vm3 }
 0x54d   : > { %v14211_v6 = vpop.eup %7846  ;;  %v3979_v16 = vsel %vm14205_vm1, %v13894_v45, %v3975_v1  ;;  %v3990_v27 = vadd.f32 %v13945_v48, %v3989_v24  ;;  %v4042_v54 = vand.u32 2147483647, %v13856_v28  ;;  %v4057_v50 = vand.u32 2147483647, %v13900_v3  ;;  %vm14233_vm3 = vmor %vm4053_vm5, %vm4054_vm2 }
 0x54e   : > { %v14227_v32 = vpop.eup %7848  ;;  %7856 = vrcp.f32 %v14181_v37  ;;  %vm3981_vm6 = vcmp.eq.f32.partialorder %v3980_v4, 8.507059e+37  ;;  %v3983_v45 = vor.u32 1.1754944e-38, %v3982_v47  ;;  %vm3991_vm4 = vweird.f32 %v13869_v36 }
 0x54f   : > { %vm14239_vm13 = vcmp.eq.f32.partialorder %v3995_v43, 8.507059e+37  ;;  %v4041_v41 = vsel %vm14217_vm12, %v13925_v55, %v4037_v61  ;;  %v4056_v3 = vsel %vm14233_vm3, %v13970_v39, %v4052_v62  ;;  %v18388_v1 = vsub.f32 1.0, %v14038_v35  ;;  %vm14258_vm2 = vmor %vm3991_vm4, %vm3992_vm15 }
 0x550   : > { %v14252_v4 = vpop.eup %7850  ;;  %v14254_v47 = vsel %vm3981_vm6, %v3983_v45, %v3979_v16  ;;  %v3998_v43 = vor.u32 1.1754944e-38, %v3997_v5  ;;  %v4067_v55 = vadd.f32 %v13981_v25, %v14070_v18  ;;  %vm4069_vm5 = vweird.f32 %v13981_v25 }
 0x551   : > { %v4081_v24 = vmul.f32 %v13996_v20, %v18388_v1  ;;  %v14265_v39 = vpop.eup %7852  ;;  %v3994_v35 = vsel %vm14258_vm2, %v13945_v48, %v3990_v27  ;;  %vm4043_vm0 = vcmp.eq.f32.partialorder %v4042_v54, 8.507059e+37  ;;  %vm4058_vm1 = vcmp.eq.f32.partialorder %v4057_v50, 8.507059e+37  ;;  %vm14284_vm15 = vmor %vm4068_vm14, %vm4069_vm5 }
 0x552   : > { %v4109_v61 = vmul.f32 %v14019_v31, %v13938_v8  ;;  %v14272_v62 = vpop.eup %7854  ;;  %v14275_v21 = vsel %vm4043_vm0, %v13922_v11, %v4041_v41  ;;  %v14278_v18 = vsel %vm4058_vm1, %v13959_v44, %v4056_v3  ;;  %v4072_v5 = vand.u32 2147483647, %v13904_v56 }
 0x553   : > { %v4074_v13 = vand.u32 2147483648, %v13904_v56  ;;  %v4082_v16 = vadd.f32 %v13996_v20, %v4081_v24  ;;  %vm4084_vm12 = vweird.f32 %v13996_v20  ;;  %v18393_v11 = vsub.f32 1.0, %v14049_v14 }
 0x554   : > { %v4124_v44 = vmul.f32 %v14031_v57, %v13947_v17  ;;  %v14295_v54 = vpop.eup %7856  ;;  %v14299_v56 = vsel %vm14239_vm13, %v3998_v43, %v3994_v35  ;;  %v4071_v50 = vsel %vm14284_vm15, %v13981_v25, %v4067_v55  ;;  %vm4083_vm14 = vweird.f32 %v13920_v34 }
 0x555   : > { %v4096_v27 = vmul.f32 %v14010_v9, %v18393_v11  ;;  %v4089_v7 = vand.u32 2147483648, %v13920_v34  ;;  %v4087_v14 = vand.u32 2147483647, %v13920_v34  ;;  %v4102_v45 = vand.u32 2147483647, %v13927_v40  ;;  %vm14310_vm6 = vmor %vm4083_vm14, %vm4084_vm12 }
 0x556   : > { %v4110_v41 = vsub.f32 1.0, %v4109_v61  ;;  %v4139_v3 = vmul.f32 %v14042_v33, %v13957_v30  ;;  %vm4073_vm3 = vcmp.eq.f32.partialorder %v4072_v5, 8.507059e+37  ;;  %v4075_v28 = vor.u32 1.1754944e-38, %v4074_v13 }
 0x557   : > { %vm4098_vm4 = vweird.f32 %v13927_v40  ;;  %vm4099_vm13 = vweird.f32 %v14010_v9  ;;  %v4086_v34 = vsel %vm14310_vm6, %v13996_v20, %v4082_v16  ;;  %v4097_v25 = vadd.f32 %v14010_v9, %v4096_v27 }
 0x558   : > { %v4125_v24 = vsub.f32 1.0, %v4124_v44  ;;  %v4194_v36 = vmul.f32 %v14186_v2, %v14110_v10  ;;  %v14322_v43 = vsel %vm4073_vm3, %v4075_v28, %v4071_v50  ;;  %v4090_v55 = vor.u32 1.1754944e-38, %v4089_v7  ;;  %vm14335_vm0 = vmor %vm4098_vm4, %vm4099_vm13 }
 0x559   : > { %v4104_v35 = vand.u32 2147483648, %v13927_v40  ;;  %v4117_v61 = vand.u32 2147483647, %v13938_v8  ;;  %vm4088_vm2 = vcmp.eq.f32.partialorder %v4087_v14, 8.507059e+37  ;;  %vm14326_vm5 = vcmp.eq.f32.partialorder %v4102_v45, 8.507059e+37 }
 0x55a   : > { %v4111_v20 = vmul.f32 %v14019_v31, %v4110_v41  ;;  %v4140_v13 = vsub.f32 1.0, %v4139_v3  ;;  %v14331_v48 = vsel %vm4088_vm2, %v4090_v55, %v4086_v34  ;;  %vm4113_vm1 = vweird.f32 %v13938_v8 }
 0x55b   : > { %vm4114_vm15 = vweird.f32 %v14019_v31  ;;  %v4209_v11 = vmul.f32 %v14194_v19, %v14116_v15  ;;  %v4101_v27 = vsel %vm14335_vm0, %v14010_v9, %v4097_v25  ;;  %v4119_v44 = vand.u32 2147483648, %v13938_v8 }
 0x55c   : > { %v4126_v50 = vmul.f32 %v14031_v57, %v4125_v24  ;;  %v4195_v40 = vsub.f32 1.0, %v4194_v36  ;;  %v4105_v7 = vor.u32 1.1754944e-38, %v4104_v35  ;;  %vm14348_vm12 = vcmp.eq.f32.partialorder %v4117_v61, 8.507059e+37  ;;  %vm14372_vm4 = vmor %vm4113_vm1, %vm4114_vm15 }
 0x55d   : > { %v4132_v45 = vand.u32 2147483647, %v13947_v17  ;;  %v4224_v41 = vmul.f32 %v14211_v6, %v14130_v22  ;;  %v4112_v3 = vadd.f32 %v14019_v31, %v4111_v20  ;;  %vm4128_vm14 = vweird.f32 %v13947_v17 }
 0x55e   : > { %v4134_v9 = vand.u32 2147483648, %v13947_v17  ;;  %v4141_v28 = vmul.f32 %v14042_v33, %v4140_v13  ;;  %v14361_v1 = vsel %vm14326_vm5, %v4105_v7, %v4101_v27  ;;  %vm4129_vm3 = vweird.f32 %v14031_v57 }
 0x55f   : > { %v4147_v34 = vand.u32 2147483647, %v13957_v30  ;;  %v4210_v25 = vsub.f32 1.0, %v4209_v11  ;;  %v4120_v24 = vor.u32 1.1754944e-38, %v4119_v44  ;;  %v4127_v36 = vadd.f32 %v14031_v57, %v4126_v50  ;;  %vm14392_vm5 = vmor %vm4128_vm14, %vm4129_vm3 }
 0x560   : > { %vm4143_vm6 = vweird.f32 %v13957_v30  ;;  %v4196_v55 = vmul.f32 %v14186_v2, %v4195_v40  ;;  %vm14376_vm13 = vcmp.eq.f32.partialorder %v4132_v45, 8.507059e+37  ;;  %v4149_v5 = vand.u32 2147483648, %v13957_v30 }
 0x561   : > { %v4225_v20 = vsub.f32 1.0, %v4224_v41  ;;  %v4239_v13 = vmul.f32 %v14227_v32, %v14138_v23  ;;  %v4116_v16 = vsel %vm14372_vm4, %v14019_v31, %v4112_v3  ;;  %v4135_v11 = vor.u32 1.1754944e-38, %v4134_v9 }
 0x562   : > { %v4142_v8 = vadd.f32 %v14042_v33, %v4141_v28  ;;  %vm4144_vm2 = vweird.f32 %v14042_v33  ;;  %vm14396_vm0 = vcmp.eq.f32.partialorder %v4147_v34, 8.507059e+37  ;;  %vm4198_vm1 = vweird.f32 %v14110_v10 }
 0x563   : > { %v4202_v31 = vand.u32 2147483647, %v14110_v10  ;;  %v4211_v50 = vmul.f32 %v14194_v19, %v4210_v25  ;;  %v4131_v40 = vsel %vm14392_vm5, %v14031_v57, %v4127_v36  ;;  %v4197_v17 = vadd.f32 %v14186_v2, %v4196_v55  ;;  %vm14415_vm14 = vmor %vm4143_vm6, %vm4144_vm2 }
 0x564   : > { %vm4199_vm15 = vweird.f32 %v14186_v2  ;;  %v4204_v7 = vand.u32 2147483648, %v14110_v10  ;;  %v14411_v45 = vsel %vm14348_vm12, %v4120_v24, %v4116_v16  ;;  %v4150_v3 = vor.u32 1.1754944e-38, %v4149_v5 }
 0x565   : > { %v4226_v9 = vmul.f32 %v14211_v6, %v4225_v20  ;;  %v4240_v57 = vsub.f32 1.0, %v4239_v13  ;;  %v4146_v28 = vsel %vm14415_vm14, %v14042_v33, %v4142_v8  ;;  %vm4213_vm3 = vweird.f32 %v14116_v15  ;;  %vm14430_vm12 = vmor %vm4198_vm1, %vm4199_vm15 }
 0x566   : > { %v4217_v14 = vand.u32 2147483647, %v14116_v15  ;;  %v4219_v34 = vand.u32 2147483648, %v14116_v15  ;;  %v4136_v30 = vsel %vm14376_vm13, %v4135_v11, %v4131_v40  ;;  %vm14434_vm6 = vcmp.eq.f32.partialorder %v4202_v31, 8.507059e+37  ;;  %v18436_v31 = vld [vmem:[#allocation52_spill] sm:$0xff] }
 0x567   : > { %v4212_v33 = vadd.f32 %v14194_v19, %v4211_v50  ;;  %vm4214_vm4 = vweird.f32 %v14194_v19  ;;  %v4201_v36 = vsel %vm14430_vm12, %v14186_v2, %v4197_v17  ;;  %v4205_v55 = vor.u32 1.1754944e-38, %v4204_v7 }
 0x568   : > { %v4232_v35 = vand.u32 2147483647, %v14130_v22  ;;  %v4254_v10 = vmul.f32 %v14252_v4, %v14146_v42  ;;  %v4151_v61 = vsel %vm14396_vm0, %v4150_v3, %v4146_v28  ;;  %v4227_v5 = vadd.f32 %v14211_v6, %v4226_v9  ;;  %vm14453_vm2 = vmor %vm4213_vm3, %vm4214_vm4 }
 0x569   : > { %vm4229_vm13 = vweird.f32 %v14211_v6  ;;  %v4241_v20 = vmul.f32 %v14227_v32, %v4240_v57  ;;  %vm14457_vm5 = vcmp.eq.f32.partialorder %v4217_v14, 8.507059e+37  ;;  %v4220_v16 = vor.u32 1.1754944e-38, %v4219_v34  ;;  %v18426_v34 = vld [vmem:[#allocation54_spill] sm:$0xff] }
 0x56a   : > { %vm4228_vm1 = vweird.f32 %v14130_v22  ;;  %v4234_v11 = vand.u32 2147483648, %v14130_v22  ;;  %v14465_v8 = vsel %vm14434_vm6, %v4205_v55, %v4201_v36  ;;  %v4216_v15 = vsel %vm14453_vm2, %v14194_v19, %v4212_v33 }
 0x56b   : > { %v4247_v27 = vand.u32 2147483647, %v14138_v23  ;;  %v4249_v44 = vand.u32 2147483648, %v14138_v23  ;;  %vm14472_vm0 = vmor %vm4228_vm1, %vm4229_vm13  ;;  %vm14476_vm15 = vcmp.eq.f32.partialorder %v4232_v35, 8.507059e+37  ;;  %vm4243_vm14 = vweird.f32 %v14138_v23  ;;  %v18430_v35 = vld [vmem:[#allocation51_spill] sm:$0xff] }
 0x56c   : > { %vm4244_vm3 = vweird.f32 %v14227_v32  ;;  %v4255_v22 = vsub.f32 1.0, %v4254_v10  ;;  %v4231_v19 = vsel %vm14472_vm0, %v14211_v6, %v4227_v5  ;;  %v4242_v40 = vadd.f32 %v14227_v32, %v4241_v20  ;;  %v18432_v5 = vld [vmem:[#allocation53_spill] sm:$0xff] }
 0x56d   : > { %v4264_v17 = vand.u32 2147483648, %v14146_v42  ;;  %v4269_v7 = vmul.f32 %v14265_v39, %v14153_v53  ;;  %v14491_v41 = vsel %vm14457_vm5, %v4220_v16, %v4216_v15  ;;  %v4235_v3 = vor.u32 1.1754944e-38, %v4234_v11  ;;  %vm14514_vm4 = vmor %vm4243_vm14, %vm4244_vm3  ;;  %v18434_v11 = vld [vmem:[#allocation46_spill] sm:$0xff] }
 0x56e   : > { %vm4259_vm12 = vweird.f32 %v14252_v4  ;;  %v4284_v9 = vmul.f32 %v14272_v62, %v14162_v26  ;;  %vm14496_vm6 = vcmp.eq.f32.partialorder %v4247_v27, 8.507059e+37  ;;  %v4250_v6 = vor.u32 1.1754944e-38, %v4249_v44 }
 0x56f   : > { %v4262_v28 = vand.u32 2147483647, %v14146_v42  ;;  %v4299_v14 = vmul.f32 %v14295_v54, %v14181_v37  ;;  %v18427_v25 = vrot.slane %v18426_v34, 7  ;;  %v14508_v33 = vsel %vm14476_vm15, %v4235_v3, %v4231_v19  ;;  %v18438_v19 = vld [vmem:[#allocation45_spill] sm:$0xff] }
 0x570   : > { %v4256_v55 = vmul.f32 %v14252_v4, %v4255_v22  ;;  %vm4258_vm13 = vweird.f32 %v14146_v42  ;;  %v18431_v10 = vrot.slane %v18430_v35, 7  ;;  %v18433_v20 = vrot.slane %v18432_v5, 7 }
 0x571   : > { %v4337_v24 = vmul.f32 %v18427_v25, %v14275_v21  ;;  %v4246_v23 = vsel %vm14514_vm4, %v14227_v32, %v4242_v40  ;;  %v4265_v2 = vor.u32 1.1754944e-38, %v4264_v17  ;;  %v4270_v16 = vsub.f32 1.0, %v4269_v7  ;;  %vm14590_vm0 = vmor %vm4258_vm13, %vm4259_vm12  ;;  %v8516_v25 = vld [vmem:[%s17617_s2 + $0x1f0] sm:$0xff] }
 0x572   : > { %v4338_v21 = vmul.f32 %v18431_v10, %v14278_v18  ;;  %v4339_v13 = vmul.f32 %v18433_v20, %v14322_v43  ;;  %v18435_v15 = vrot.slane %v18434_v11, 7  ;;  %vm4274_vm2 = vweird.f32 %v14265_v39  ;;  %v8527_v20 = vld [vmem:[%s17617_s2 + $0x188] sm:$0xff] }
 0x573   : > { %v4285_v44 = vsub.f32 1.0, %v4284_v9  ;;  %v18437_v18 = vrot.slane %v18436_v31, 7  ;;  %v4348_v43 = vmul.f32 %v14062_v58, %v14151_v0  ;;  %v4349_v22 = vmul.f32 %v14067_v38, %v14156_v52 }
 0x574   : > { %v4340_v27 = vmul.f32 %v18435_v15, %v14331_v48  ;;  %v4300_v32 = vsub.f32 1.0, %v4299_v14  ;;  %v18439_v40 = vrot.slane %v18438_v19, 7  ;;  %v4350_v48 = vmul.f32 %v14073_v12, %v14199_v29 }
 0x575   : > { %v4341_v50 = vmul.f32 %v18437_v18, %v14361_v1  ;;  %v14546_v7 = vadd.f32 %v14083_v59, %v4337_v24  ;;  %vm4273_vm5 = vweird.f32 %v14153_v53  ;;  %v18441_v1 = vld [vmem:[#allocation47_spill] sm:$0xff]  ;;  %v4351_v58 = vmul.f32 %v14080_v46, %v14254_v47  ;;  %v18447_v59 = vld [vmem:[#allocation48_spill] sm:$0xff]  ;;  %v8517_v24 = vld [vmem:[%s17617_s2 + $0x1f8] sm:$0xff] }
 0x576   : > { %v4342_v17 = vmul.f32 %v18439_v40, %v14411_v45  ;;  %v18442_v3 = vrot.slane %v18441_v1, 7  ;;  %v14554_v52 = vadd.f32 %v14090_v49, %v4338_v21  ;;  %v14557_v38 = vadd.f32 %v14097_v63, %v4339_v13 }
 0x577   : > { %18440 = vst [vmem:[#allocation49_spill] sm:$0xff] %v14546_v7  ;;  %vm14559_vm1 = vcmp.eq.f32.partialorder %v4262_v28, 8.507059e+37  ;;  %v4277_v12 = vand.u32 2147483647, %v14153_v53  ;;  %v18448_v29 = vrot.slane %v18447_v59, 7  ;;  %v14568_v14 = vadd.f32 %v4348_v43, %v4340_v27  ;;  %v8534_v27 = vld [vmem:[%s17617_s2 + $0x140] sm:$0xff] }
 0x578   : > { %v4343_v9 = vmul.f32 %v18442_v3, %v4136_v30  ;;  %18443 = vst [vmem:[#allocation50_spill] sm:$0xff] %v14554_v52  ;;  %v4352_v30 = vmul.f32 %v14087_v60, %v14299_v56  ;;  %v4257_v46 = vadd.f32 %v14252_v4, %v4256_v55  ;;  %v4271_v49 = vmul.f32 %v14265_v39, %v4270_v16 }
 0x579   : > { %18444 = vst [vmem:[#allocation54_spill] sm:$0xff] %v14557_v38  ;;  %v4344_v45 = vmul.f32 %v18448_v29, %v4151_v61  ;;  %v14572_v63 = vadd.f32 %v4349_v22, %v4341_v50  ;;  %7858 = vtanh.f32 %v14546_v7  ;;  %v4279_v47 = vand.u32 2147483648, %v14153_v53 }
 0x57a   : > { %18449 = vst [vmem:[#allocation51_spill] sm:$0xff] %v14568_v14  ;;  %v4286_v28 = vmul.f32 %v14272_v62, %v4285_v44  ;;  %v14577_v34 = vadd.f32 %v4350_v48, %v4342_v17  ;;  %7860 = vtanh.f32 %v14554_v52  ;;  %v4251_v60 = vsel %vm14496_vm6, %v4250_v6, %v4246_v23  ;;  %vm14619_vm6 = vmor %vm4273_vm5, %vm4274_vm2 }
 0x57b   : > { %18450 = vst [vmem:[#allocation53_spill] sm:$0xff] %v14572_v63  ;;  %v4301_v56 = vmul.f32 %v14295_v54, %v4300_v32  ;;  %v14583_v61 = vadd.f32 %v4351_v58, %v4343_v9  ;;  %7862 = vtanh.f32 %v14557_v38  ;;  %vm14594_vm15 = vcmp.eq.f32.partialorder %v4277_v12, 8.507059e+37 }
 0x57c   : > { %18451 = vst [vmem:[#allocation46_spill] sm:$0xff] %v14577_v34  ;;  %vm4288_vm14 = vweird.f32 %v14162_v26  ;;  %v14599_v57 = vadd.f32 %v4352_v30, %v4344_v45  ;;  %7864 = vtanh.f32 %v14568_v14  ;;  %v4261_v6 = vsel %vm14590_vm0, %v14252_v4, %v4257_v46 }
 0x57d   : > { %18452 = vst [vmem:[#allocation52_spill] sm:$0xff] %v14583_v61  ;;  %v4272_v42 = vadd.f32 %v14265_v39, %v4271_v49  ;;  %vm4289_vm3 = vweird.f32 %v14272_v62  ;;  %7866 = vtanh.f32 %v14572_v63  ;;  %v4280_v36 = vor.u32 1.1754944e-38, %v4279_v47 }
 0x57e   : > { %18457 = vst [vmem:[#allocation45_spill] sm:$0xff] %v14599_v57  ;;  %v4287_v55 = vadd.f32 %v14272_v62, %v4286_v28  ;;  %v4292_v35 = vand.u32 2147483647, %v14162_v26  ;;  %7868 = vtanh.f32 %v14577_v34  ;;  %v4294_v21 = vand.u32 2147483648, %v14162_v26  ;;  %vm14636_vm4 = vmor %vm4288_vm14, %vm4289_vm3 }
 0x57f   : > { %v7859_v10 = vpop.eup %7858  ;;  %v4302_v5 = vadd.f32 %v14295_v54, %v4301_v56  ;;  %vm4304_vm12 = vweird.f32 %v14295_v54  ;;  %7870 = vtanh.f32 %v14583_v61  ;;  %v4307_v13 = vand.u32 2147483647, %v14181_v37  ;;  %v8515_v56 = vld [vmem:[%s17617_s2 + $0x1e8] sm:$0xff] }
 0x580   : > { %v7861_v4 = vpop.eup %7860  ;;  %v4309_v23 = vand.u32 2147483648, %v14181_v37  ;;  %7872 = vtanh.f32 %v14599_v57  ;;  %v4369_v16 = vmul.f32 %v7859_v10, %v14465_v8  ;;  %v4266_v15 = vsel %vm14559_vm1, %v4265_v2, %v4261_v6  ;;  %v8518_v6 = vld [vmem:[%s17617_s2 + $0x1c0] sm:$0xff]  ;;  %v8523_v10 = vld [vmem:[%s17617_s2 + $0x1a8] sm:$0xff] }
 0x581   : > { %v7863_v11 = vpop.eup %7862  ;;  %v4276_v53 = vsel %vm14619_vm6, %v14265_v39, %v4272_v42  ;;  %vm4303_vm13 = vweird.f32 %v14181_v37  ;;  %v4370_v8 = vmul.f32 %v7861_v4, %v14491_v41  ;;  %v4291_v2 = vsel %vm14636_vm4, %v14272_v62, %v4287_v55  ;;  %v8519_v42 = vld [vmem:[%s17617_s2 + $0x1c8] sm:$0xff]  ;;  %v8521_v55 = vld [vmem:[%s17617_s2 + $0x1d8] sm:$0xff]  ;;  %v8526_v4 = vld [vmem:[%s17617_s2 + $0x180] sm:$0xff] }
 0x582   : > { %v7865_v44 = vpop.eup %7864  ;;  %vm4293_vm2 = vcmp.eq.f32.partialorder %v4292_v35, 8.507059e+37  ;;  %vm14647_vm5 = vmor %vm4303_vm13, %vm4304_vm12  ;;  %v4371_v26 = vmul.f32 %v7863_v11, %v14508_v33  ;;  %v4385_v31 = vrot.slane %v4369_v16, 4  ;;  %v4295_v50 = vor.u32 1.1754944e-38, %v4294_v21  ;;  %v8522_v35 = vld [vmem:[%s17617_s2 + $0x1a0] sm:$0xff]  ;;  %v8524_v21 = vld [vmem:[%s17617_s2 + $0x1b0] sm:$0xff] }
 0x583   : > { %v7867_v18 = vpop.eup %7866  ;;  %v4306_v37 = vsel %vm14647_vm5, %v14295_v54, %v4302_v5  ;;  %v4372_v41 = vmul.f32 %v7865_v44, %v4251_v60  ;;  %v4386_v43 = vrot.slane %v4370_v8, 3  ;;  %v4281_v62 = vsel %vm14594_vm15, %v4280_v36, %v4276_v53  ;;  %v8514_v60 = vld [vmem:[%s17617_s2 + $0x1e0] sm:$0xff]  ;;  %v8520_v36 = vld [vmem:[%s17617_s2 + $0x1d0] sm:$0xff]  ;;  %v8525_v5 = vld [vmem:[%s17617_s2 + $0x1b8] sm:$0xff] }
 0x584   : > { %v7869_v22 = vpop.eup %7868  ;;  %vm4308_vm1 = vcmp.eq.f32.partialorder %v4307_v13, 8.507059e+37  ;;  %v4310_v32 = vor.u32 1.1754944e-38, %v4309_v23  ;;  %v4388_v19 = vrot.slane %v4371_v26, 2  ;;  %v4296_v17 = vsel %vm4293_vm2, %v4295_v50, %v4291_v2  ;;  %v8528_v13 = vld [vmem:[%s17617_s2 + $0x190] sm:$0xff]  ;;  %v8529_v23 = vld [vmem:[%s17617_s2 + $0x198] sm:$0xff]  ;;  %v8530_v16 = vld [vmem:[%s17617_s2 + $0x160] sm:$0xff] }
 0x585   : > { %v7871_v40 = vpop.eup %7870  ;;  %v4374_v48 = vmul.f32 %v7869_v22, %v4281_v62  ;;  %v4387_v33 = vsel %vm17776_vm7, %v4386_v43, %v4385_v31  ;;  %v4390_v1 = vrot.slane %v4372_v41, 1  ;;  %v4373_v58 = vmul.f32 %v7867_v18, %v4266_v15  ;;  %v8531_v11 = vld [vmem:[%s17617_s2 + $0x168] sm:$0xff]  ;;  %v8532_v15 = vld [vmem:[%s17617_s2 + $0x170] sm:$0xff]  ;;  %v8533_v53 = vld [vmem:[%s17617_s2 + $0x178] sm:$0xff] }
 0x586   : > { %v7873_v3 = vpop.eup %7872  ;;  %v4311_v9 = vsel %vm4308_vm1, %v4310_v32, %v4306_v37  ;;  %v4375_v0 = vmul.f32 %v7871_v40, %v4296_v17  ;;  %v4389_v54 = vsel %vm17775_vm8, %v4388_v19, %v4387_v33  ;;  %vm18464_vm0 = vcmask 1046534   ;;  %v8535_v8 = vld [vmem:[%s17617_s2 + $0x148] sm:$0xff]  ;;  %v8536_v44 = vld [vmem:[%s17617_s2 + $0x150] sm:$0xff]  ;;  %v8537_v2 = vld [vmem:[%s17617_s2 + $0x158] sm:$0xff] }
 0x587   : > { %v4376_v12 = vmul.f32 %v7873_v3, %v4311_v9  ;;  %v4391_v59 = vsel %vm17774_vm9, %v4390_v1, %v4389_v54  ;;  %v4393_v29 = vrot.slane %v4374_v48, 7  ;;  %vm18465_vm15 = vcmask 1047559   ;;  %v8538_v39 = vld [vmem:[%s17617_s2 + $0x120] sm:$0xff]  ;;  %v8539_v26 = vld [vmem:[%s17617_s2 + $0x128] sm:$0xff]  ;;  %v8540_v31 = vld [vmem:[%s17617_s2 + $0x130] sm:$0xff] }
 0x588   : > { %v4392_v45 = vsel %vm17773_vm10, %v4373_v58, %v4391_v59  ;;  %v4395_v30 = vrot.slane %v4375_v0, 6  ;;  %v8541_v18 = vld [vmem:[%s17617_s2 + $0x138] sm:$0xff]  ;;  %v8542_v50 = vld [vmem:[%s17617_s2 + $0x100] sm:$0xff]  ;;  %v8543_v37 = vld [vmem:[%s17617_s2 + $0x108] sm:$0xff] }
 0x589   : > { %v4394_v46 = vsel %vm17772_vm11, %v4393_v29, %v4392_v45  ;;  %v4397_v49 = vrot.slane %v4376_v12, 5  ;;  %v8544_v41 = vld [vmem:[%s17617_s2 + $0x110] sm:$0xff]  ;;  %v8545_v43 = vld [vmem:[%s17617_s2 + $0x118] sm:$0xff]  ;;  %v8546_v22 = vld [vmem:[%s17617_s2 + $0xe0] sm:$0xff] }
 0x58a   : > { %v4396_v47 = vsel %vm18464_vm0, %v4395_v30, %v4394_v46  ;;  %v8547_v62 = vld [vmem:[%s17617_s2 + $0xe8] sm:$0xff]  ;;  %v8548_v32 = vld [vmem:[%s17617_s2 + $0xf0] sm:$0xff]  ;;  %v8549_v19 = vld [vmem:[%s17617_s2 + $0xf8] sm:$0xff] }
 0x58b   : > { %v4398_v28 = vsel %vm18465_vm15, %v4397_v49, %v4396_v47  ;;  %v8550_v40 = vld [vmem:[%s17617_s2 + $0xc0] sm:$0xff]  ;;  %v8551_v17 = vld [vmem:[%s17617_s2 + $0xc8] sm:$0xff]  ;;  %v8552_v48 = vld [vmem:[%s17617_s2 + $0xd0] sm:$0xff] }
 0x58c   : > { %4416 = vmatmul.f32.vlgmr.msra.gmra.mxu0 %v4398_v28  ;;  %4436 = vmatmul.f32.vlgmr.msra.gmra.mxu1 %v4398_v28  ;;  %v8553_v33 = vld [vmem:[%s17617_s2 + $0xd8] sm:$0xff]  ;;  %v8554_v1 = vld [vmem:[%s17617_s2 + $0xa0] sm:$0xff]  ;;  %v8555_v3 = vld [vmem:[%s17617_s2 + $0xa8] sm:$0xff] }
 0x58d   : > { %4456 = vmatmul.f32.vlgmr.msra.gmra.mxu2 %v4398_v28  ;;  %4476 = vmatmul.f32.vlgmr.msra.gmra.mxu3 %v4398_v28  ;;  %v8556_v9 = vld [vmem:[%s17617_s2 + $0xb0] sm:$0xff]  ;;  %v8557_v58 = vld [vmem:[%s17617_s2 + $0xb8] sm:$0xff]  ;;  %v8558_v0 = vld [vmem:[%s17617_s2 + $0x80] sm:$0xff] }
 0x58e   : > { %5854 = vmatpush.msra.mxu0 %v8514_v60  ;;  %5874 = vmatpush.msra.mxu1 %v8515_v56  ;;  %v8559_v54 = vld [vmem:[%s17617_s2 + $0x88] sm:$0xff]  ;;  %v8560_v12 = vld [vmem:[%s17617_s2 + $0x90] sm:$0xff]  ;;  %v8561_v59 = vld [vmem:[%s17617_s2 + $0x98] sm:$0xff] }
 0x58f   : > { %5894 = vmatpush.msra.mxu2 %v8516_v25  ;;  %5914 = vmatpush.msra.mxu3 %v8517_v24  ;;  %v8562_v29 = vld [vmem:[%s17617_s2 + $0x60] sm:$0xff]  ;;  %v8563_v45 = vld [vmem:[%s17617_s2 + $0x68] sm:$0xff]  ;;  %v8564_v30 = vld [vmem:[%s17617_s2 + $0x70] sm:$0xff] }
 0x590   : > { %5855 = vmatpush.msra.mxu0 %v8518_v6  ;;  %5875 = vmatpush.msra.mxu1 %v8519_v42  ;;  %v8565_v46 = vld [vmem:[%s17617_s2 + $0x78] sm:$0xff]  ;;  %v8566_v49 = vld [vmem:[%s17617_s2 + $0x40] sm:$0xff]  ;;  %v8567_v47 = vld [vmem:[%s17617_s2 + $0x48] sm:$0xff] }
 0x591   : > { %5895 = vmatpush.msra.mxu2 %v8520_v36  ;;  %5915 = vmatpush.msra.mxu3 %v8521_v55  ;;  %v8568_v28 = vld [vmem:[%s17617_s2 + $0x50] sm:$0xff]  ;;  %v8569_v60 = vld [vmem:[%s17617_s2 + $0x58] sm:$0xff]  ;;  %v8570_v56 = vld [vmem:[%s17617_s2 + $0x20] sm:$0xff] }
 0x592   : > { %5856 = vmatpush.msra.mxu0 %v8522_v35  ;;  %5876 = vmatpush.msra.mxu1 %v8523_v10  ;;  %v8571_v25 = vld [vmem:[%s17617_s2 + $0x28] sm:$0xff]  ;;  %v8572_v24 = vld [vmem:[%s17617_s2 + $0x30] sm:$0xff]  ;;  %v8573_v6 = vld [vmem:[%s17617_s2 + $0x38] sm:$0xff] }
 0x593   : > { %5896 = vmatpush.msra.mxu2 %v8524_v21  ;;  %5916 = vmatpush.msra.mxu3 %v8525_v5  ;;  %v8574_v42 = vld [vmem:[%s17617_s2] sm:$0xff]  ;;  %v8575_v36 = vld [vmem:[%s17617_s2 + $0x8] sm:$0xff]  ;;  %v8576_v55 = vld [vmem:[%s17617_s2 + $0x10] sm:$0xff] }
 0x594   : > { %5857 = vmatpush.msra.mxu0 %v8526_v4  ;;  %5877 = vmatpush.msra.mxu1 %v8527_v20  ;;  %v8577_v35 = vld [vmem:[%s17617_s2 + $0x18] sm:$0xff] }
 0x595   : > { %5897 = vmatpush.msra.mxu2 %v8528_v13  ;;  %5917 = vmatpush.msra.mxu3 %v8529_v23  ;;  %v18466_v13 = vld [vmem:[#allocation10_spill] sm:$0xff] }
 0x596   : > { %5858 = vmatpush.msra.mxu0 %v8530_v16  ;;  %5878 = vmatpush.msra.mxu1 %v8531_v11  ;;  %v18467_v16 = vld [vmem:[#allocation11_spill] sm:$0xff] }
 0x597   : > { %5898 = vmatpush.msra.mxu2 %v8532_v15  ;;  %5918 = vmatpush.msra.mxu3 %v8533_v53  ;;  %v18468_v53 = vld [vmem:[#allocation18_spill] sm:$0xff] }
 0x598   : > { %5859 = vmatpush.msra.mxu0 %v8534_v27  ;;  %5879 = vmatpush.msra.mxu1 %v8535_v8  ;;  %v18469_v8 = vld [vmem:[#allocation15_spill] sm:$0xff] }
 0x599   : > { %5899 = vmatpush.msra.mxu2 %v8536_v44  ;;  %5919 = vmatpush.msra.mxu3 %v8537_v2 }
 0x59a   : > { %5860 = vmatpush.msra.mxu0 %v8538_v39  ;;  %5880 = vmatpush.msra.mxu1 %v8539_v26 }
 0x59b   : > { %5900 = vmatpush.msra.mxu2 %v8540_v31  ;;  %5920 = vmatpush.msra.mxu3 %v8541_v18  ;;  %v18470_v31 = vld [vmem:[#allocation16_spill] sm:$0xff] }
 0x59c   : > { %5861 = vmatpush.msra.mxu0 %v8542_v50  ;;  %5881 = vmatpush.msra.mxu1 %v8543_v37  ;;  %v18471_v50 = vld [vmem:[#allocation17_spill] sm:$0xff] }
 0x59d   : > { %5901 = vmatpush.msra.mxu2 %v8544_v41  ;;  %5921 = vmatpush.msra.mxu3 %v8545_v43 }
 0x59e   : > { %5862 = vmatpush.msra.mxu0 %v8546_v22  ;;  %5882 = vmatpush.msra.mxu1 %v8547_v62  ;;  %v18472_v62 = vld [vmem:[#allocation19_spill] sm:$0xff] }
 0x59f   : > { %5902 = vmatpush.msra.mxu2 %v8548_v32  ;;  %5922 = vmatpush.msra.mxu3 %v8549_v19 }
 0x5a0   : > { %5863 = vmatpush.msra.mxu0 %v8550_v40  ;;  %5883 = vmatpush.msra.mxu1 %v8551_v17 }
 0x5a1   : > { %5903 = vmatpush.msra.mxu2 %v8552_v48  ;;  %5923 = vmatpush.msra.mxu3 %v8553_v33 }
 0x5a2   : > { %5864 = vmatpush.msra.mxu0 %v8554_v1  ;;  %5884 = vmatpush.msra.mxu1 %v8555_v3 }
 0x5a3   : > { %5904 = vmatpush.msra.mxu2 %v8556_v9  ;;  %5924 = vmatpush.msra.mxu3 %v8557_v58 }
 0x5a4   : > { %5865 = vmatpush.msra.mxu0 %v8558_v0  ;;  %5885 = vmatpush.msra.mxu1 %v8559_v54  ;;  %v18473_v0 = vld [vmem:[#allocation20_spill] sm:$0xff] }
 0x5a5   : > { %5905 = vmatpush.msra.mxu2 %v8560_v12  ;;  %5925 = vmatpush.msra.mxu3 %v8561_v59  ;;  %v18474_v12 = vld [vmem:[#allocation22_spill] sm:$0xff] }
 0x5a6   : > { %5866 = vmatpush.msra.mxu0 %v8562_v29  ;;  %5886 = vmatpush.msra.mxu1 %v8563_v45 }
 0x5a7   : > { %5906 = vmatpush.msra.mxu2 %v8564_v30  ;;  %5926 = vmatpush.msra.mxu3 %v8565_v46 }
 0x5a8   : > { %5867 = vmatpush.msra.mxu0 %v8566_v49  ;;  %5887 = vmatpush.msra.mxu1 %v8567_v47  ;;  %v18475_v47 = vld [vmem:[#allocation24_spill] sm:$0xff] }
 0x5a9   : > { %5907 = vmatpush.msra.mxu2 %v8568_v28  ;;  %5927 = vmatpush.msra.mxu3 %v8569_v60 }
 0x5aa   : > { %5868 = vmatpush.msra.mxu0 %v8570_v56  ;;  %5888 = vmatpush.msra.mxu1 %v8571_v25 }
 0x5ab   : > { %5908 = vmatpush.msra.mxu2 %v8572_v24  ;;  %5928 = vmatpush.msra.mxu3 %v8573_v6 }
 0x5ac   : > { %5869 = vmatpush.msra.mxu0 %v8574_v42  ;;  %5889 = vmatpush.msra.mxu1 %v8575_v36  ;;  %v18485_v36 = vld [vmem:[#allocation31_spill] sm:$0xff] }
 0x5ad   : > { %5909 = vmatpush.msra.mxu2 %v8576_v55  ;;  %5929 = vmatpush.msra.mxu3 %v8577_v35 }
 0x609   : > { %v4417_v10 = vpop.f32.mrf.mxu0  ;;  %v14862_v43 = vpop.f32.mrf.mxu1 }
 0x60a   : > { %v4484_v21 = vrot.slane %v4417_v10, 3  ;;  %v4488_v5 = vrot.slane %v4417_v10, 4  ;;  %v4492_v4 = vrot.slane %v4417_v10, 5  ;;  %v4496_v20 = vrot.slane %v4417_v10, 6 }
 0x60b   : > { %v4500_v15 = vrot.slane %v4417_v10, 7  ;;  %v4564_v27 = vadd.f32 %v4417_v10, %v18468_v53  ;;  %v4504_v26 = vrot.slane %v4417_v10, 1  ;;  %v4485_v40 = vrot.slane %v14862_v43, 3 }
 0x60c   : > { %v4544_v23 = vadd.f32 %v4484_v21, %v18466_v13  ;;  %v4548_v11 = vadd.f32 %v4488_v5, %v18467_v16  ;;  %v4552_v44 = vadd.f32 %v4492_v4, %v18469_v8  ;;  %v4556_v18 = vadd.f32 %v4496_v20, %v18470_v31  ;;  %v18483_v20 = vld [vmem:[#allocation25_spill] sm:$0xff] }
 0x60d   : > { %v4560_v37 = vadd.f32 %v4500_v15, %v18471_v50  ;;  %v7117_v41 = vmul.f32 -1.442695, %v4564_v27  ;;  %v4568_v32 = vadd.f32 %v4504_v26, %v18472_v62  ;;  %v4508_v17 = vrot.slane %v4417_v10, 2  ;;  %v18476_v10 = vld [vmem:[#allocation27_spill] sm:$0xff]  ;;  %v18477_v27 = vld [vmem:[#allocation36_spill] sm:$0xff] }
 0x60e   : > { %v7112_v2 = vmul.f32 -1.442695, %v4544_v23  ;;  %v7113_v39 = vmul.f32 -1.442695, %v4548_v11  ;;  %v7114_v22 = vmul.f32 -1.442695, %v4552_v44  ;;  %v4545_v54 = vadd.f32 %v4485_v40, %v18473_v0 }
 0x60f   : > { %v7115_v19 = vmul.f32 -1.442695, %v4556_v18  ;;  %v7116_v48 = vmul.f32 -1.442695, %v4560_v37  ;;  %v7118_v1 = vmul.f32 -1.442695, %v4568_v32  ;;  %v4572_v59 = vadd.f32 %v4508_v17, %v18474_v12 }
 0x610   : > { %7874 = vpow2.f32 %v7112_v2  ;;  %v4489_v58 = vrot.slane %v14862_v43, 4  ;;  %v4493_v29 = vrot.slane %v14862_v43, 5  ;;  %v7120_v60 = vmul.f32 -1.442695, %v4545_v54  ;;  %v18478_v18 = vld [vmem:[#allocation30_spill] sm:$0xff]  ;;  %v18481_v54 = vld [vmem:[#allocation41_spill] sm:$0xff] }
 0x611   : > { %7876 = vpow2.f32 %v7113_v39  ;;  %v7119_v25 = vmul.f32 -1.442695, %v4572_v59  ;;  %v4497_v24 = vrot.slane %v14862_v43, 6  ;;  %v4501_v6 = vrot.slane %v14862_v43, 7 }
 0x612   : > { %7878 = vpow2.f32 %v7117_v41  ;;  %v4549_v28 = vadd.f32 %v4489_v58, %v18475_v47  ;;  %v4505_v35 = vrot.slane %v14862_v43, 1  ;;  %v4553_v21 = vadd.f32 %v4493_v29, %v18476_v10  ;;  %v18479_v41 = vld [vmem:[#allocation33_spill] sm:$0xff] }
 0x613   : > { %7880 = vpow2.f32 %v7114_v22  ;;  %v4509_v15 = vrot.slane %v14862_v43, 2  ;;  %v4565_v44 = vadd.f32 %v14862_v43, %v18477_v27  ;;  %v4557_v37 = vadd.f32 %v4497_v24, %v18478_v18 }
 0x614   : > { %7882 = vpow2.f32 %v7115_v19  ;;  %v7121_v2 = vmul.f32 -1.442695, %v4549_v28  ;;  %v4561_v22 = vadd.f32 %v4501_v6, %v18479_v41  ;;  %v18480_v19 = vld [vmem:[#allocation39_spill] sm:$0xff]  ;;  %v7122_v17 = vmul.f32 -1.442695, %v4553_v21 }
 0x615   : > { %7884 = vpow2.f32 %v7116_v48  ;;  %v4569_v40 = vadd.f32 %v4505_v35, %v18480_v19  ;;  %v4573_v59 = vadd.f32 %v4509_v15, %v18481_v54  ;;  %v7125_v28 = vmul.f32 -1.442695, %v4565_v44  ;;  %v18482_v48 = vld [vmem:[#allocation21_spill] sm:$0xff]  ;;  %v18489_v19 = vld [vmem:[#allocation43_spill] sm:$0xff] }
 0x616   : > { %v7875_v33 = vpop.eup %7874 }
 0x617   : > { %v14866_v3 = vadd.f32 1.0, %v7875_v33  ;;  %v7877_v9 = vpop.eup %7876 }
 0x618   : > { %v7879_v45 = vpop.eup %7878  ;;  %v14873_v30 = vadd.f32 1.0, %v7877_v9 }
 0x619   : > { %7886 = vrcp.f32 %v14866_v3  ;;  %v7881_v46 = vpop.eup %7880  ;;  %v14881_v55 = vadd.f32 1.0, %v7879_v45  ;;  %v7123_v45 = vmul.f32 -1.442695, %v4557_v37  ;;  %vm4613_vm3 = vweird.f32 %v14866_v3 }
 0x61a   : > { %7888 = vpow2.f32 %v7118_v1  ;;  %v7883_v42 = vpop.eup %7882  ;;  %v14887_v23 = vadd.f32 1.0, %v7881_v46  ;;  %v14908_v1 = vpop.f32.mrf.mxu2  ;;  %v7124_v46 = vmul.f32 -1.442695, %v4561_v22  ;;  %vm4628_vm13 = vweird.f32 %v14873_v30 }
 0x61b   : > { %v7885_v5 = vpop.eup %7884  ;;  %7890 = vrcp.f32 %v14873_v30  ;;  %v14895_v26 = vadd.f32 1.0, %v7883_v42  ;;  %v4486_v24 = vrot.slane %v14908_v1, 3  ;;  %v4490_v6 = vrot.slane %v14908_v1, 4 }
 0x61c   : > { %7892 = vpow2.f32 %v7120_v60  ;;  %v14903_v43 = vadd.f32 1.0, %v7885_v5  ;;  %v4494_v21 = vrot.slane %v14908_v1, 5  ;;  %v4498_v5 = vrot.slane %v14908_v1, 6 }
 0x61d   : > { %7894 = vpow2.f32 %v7119_v25  ;;  %v7126_v25 = vmul.f32 -1.442695, %v4569_v40  ;;  %v4506_v40 = vrot.slane %v14908_v1, 1  ;;  %v14937_v32 = vadd.f32 %v4486_v24, %v18482_v48  ;;  %v18487_v48 = vld [vmem:[#allocation37_spill] sm:$0xff] }
 0x61e   : > { %7896 = vrcp.f32 %v14881_v55  ;;  %v14948_v56 = vadd.f32 %v4498_v5, %v18485_v36  ;;  %v18488_v36 = vld [vmem:[#allocation40_spill] sm:$0xff]  ;;  %vm4643_vm5 = vweird.f32 %v14887_v23  ;;  %v4647_v31 = vand.u32 2147483647, %v14887_v23 }
 0x61f   : > { %v14890_v11 = vpop.eup %7886  ;;  %7898 = vrcp.f32 %v14887_v23 }
 0x620   : > { %v7889_v39 = vpop.eup %7888  ;;  %v4609_v33 = vmul.f32 %v14890_v11, %v14866_v3  ;;  %7900 = vpow2.f32 %v7121_v2  ;;  %v7127_v2 = vmul.f32 -1.442695, %v4573_v59  ;;  %v14940_v59 = vadd.f32 %v4490_v6, %v18483_v20 }
 0x621   : > { %v14911_v58 = vadd.f32 1.0, %v7889_v39  ;;  %v14914_v29 = vpop.eup %7890  ;;  %7902 = vrcp.f32 %v14895_v26  ;;  %v4502_v39 = vrot.slane %v14908_v1, 7  ;;  %v14956_v6 = vadd.f32 %v14908_v1, %v18487_v48 }
 0x622   : > { %v7893_v60 = vpop.eup %7892  ;;  %7904 = vpow2.f32 %v7122_v17  ;;  %v4610_v35 = vsub.f32 1.0, %v4609_v33  ;;  %v4624_v44 = vmul.f32 %v14914_v29, %v14873_v30  ;;  %v4510_v17 = vrot.slane %v14908_v1, 2 }
 0x623   : > { %v7895_v42 = vpop.eup %7894  ;;  %7906 = vrcp.f32 %v14903_v43  ;;  %v14930_v22 = vadd.f32 1.0, %v7893_v60  ;;  %vm4614_vm14 = vweird.f32 %v14890_v11  ;;  %vm4629_vm4 = vweird.f32 %v14914_v29 }
 0x624   : > { %v14922_v15 = vpop.eup %7896  ;;  %7908 = vrcp.f32 %v14911_v58  ;;  %v14934_v9 = vadd.f32 1.0, %v7895_v42  ;;  %v4611_v49 = vmul.f32 %v14890_v11, %v4610_v35  ;;  %v4625_v54 = vsub.f32 1.0, %v4624_v44  ;;  %vm15003_vm12 = vmor %vm4613_vm3, %vm4614_vm14 }
 0x625   : > { %v14928_v37 = vpop.eup %7898  ;;  %7910 = vpow2.f32 %v7123_v45  ;;  %v18484_v45 = vld [vmem:[#allocation28_spill] sm:$0xff]  ;;  %v4771_v1 = vand.u32 2147483648, %v14930_v22  ;;  %v4617_v44 = vand.u32 2147483647, %v14866_v3  ;;  %v14986_v27 = vadd.f32 %v4510_v17, %v18489_v19  ;;  %vm15050_vm2 = vmor %vm4628_vm13, %vm4629_vm4 }
 0x626   : > { %v7901_v33 = vpop.eup %7900  ;;  %7912 = vpow2.f32 %v7124_v46  ;;  %v14945_v60 = vadd.f32 %v4494_v21, %v18484_v45  ;;  %v18486_v46 = vld [vmem:[#allocation34_spill] sm:$0xff]  ;;  %v14964_v21 = vmul.f32 %v14922_v15, %v14881_v55  ;;  %v14983_v45 = vadd.f32 %v4506_v40, %v18488_v36 }
 0x627   : > { %v14942_v4 = vpop.eup %7902  ;;  %7914 = vpow2.f32 %v7125_v28  ;;  %v14952_v24 = vadd.f32 %v4502_v39, %v18486_v46  ;;  %v4639_v28 = vmul.f32 %v14928_v37, %v14887_v23  ;;  %v14966_v35 = vadd.f32 1.0, %v7901_v33 }
 0x628   : > { %v7905_v42 = vpop.eup %7904  ;;  %7916 = vpow2.f32 %v7126_v25  ;;  %v14973_v5 = vmul.f32 %v14942_v4, %v14895_v26  ;;  %v4612_v33 = vadd.f32 %v14890_v11, %v4611_v49  ;;  %v4626_v41 = vmul.f32 %v14914_v29, %v4625_v54  ;;  %v15031_v54 = vpop.f32.mrf.mxu3 }
 0x629   : > { %v14958_v20 = vpop.eup %7906  ;;  %7918 = vrcp.f32 %v14930_v22  ;;  %v14978_v48 = vadd.f32 1.0, %v7905_v42  ;;  %v4640_v10 = vsub.f32 1.0, %v4639_v28  ;;  %v14999_v17 = vor.u32 1.1754944e-38, %v4771_v1 }
 0x62a   : > { %v14969_v25 = vpop.eup %7908  ;;  %7920 = vpow2.f32 %v7127_v2  ;;  %v4619_v2 = vand.u32 2147483648, %v14866_v3  ;;  %v14992_v42 = vmul.f32 %v14958_v20, %v14903_v43  ;;  %vm15007_vm6 = vcmp.eq.f32.partialorder %v4617_v44, 8.507059e+37 }
 0x62b   : > { %v7911_v39 = vpop.eup %7910  ;;  %7922 = vrcp.f32 %v14934_v9  ;;  %v4786_v40 = vand.u32 2147483648, %v14966_v35  ;;  %v4616_v1 = vsel %vm15003_vm12, %v14890_v11, %v4612_v33  ;;  %v4627_v44 = vadd.f32 %v14914_v29, %v4626_v41 }
 0x62c   : > { %v7913_v46 = vpop.eup %7912  ;;  %7924 = vrcp.f32 %v14966_v35  ;;  %v14997_v36 = vadd.f32 1.0, %v7911_v39  ;;  %v4620_v12 = vor.u32 1.1754944e-38, %v4619_v2  ;;  %v4641_v50 = vmul.f32 %v14928_v37, %v4640_v10 }
 0x62d   : > { %v7915_v18 = vpop.eup %7914  ;;  %v15013_v3 = vadd.f32 1.0, %v7913_v46  ;;  %7926 = vrcp.f32 %v14978_v48  ;;  %v4634_v41 = vand.u32 2147483648, %v14873_v30  ;;  %v4632_v28 = vand.u32 2147483647, %v14873_v30 }
 0x62e   : > { %v7917_v49 = vpop.eup %7916  ;;  %v15020_v47 = vadd.f32 1.0, %v7915_v18  ;;  %7928 = vrcp.f32 %v14997_v36  ;;  %v15038_v18 = vsel %vm15007_vm6, %v4620_v12, %v4616_v1  ;;  %v4631_v12 = vsel %vm15050_vm2, %v14914_v29, %v4627_v44 }
 0x62f   : > { %v15011_v19 = vpop.eup %7918  ;;  %18494 = vst [vmem:[#allocation47_spill] sm:$0xff] %v15013_v3  ;;  %v15027_v53 = vadd.f32 1.0, %v7917_v49  ;;  %v15045_v49 = vor.u32 1.1754944e-38, %v4786_v40  ;;  %7930 = vrcp.f32 %v15013_v3  ;;  %v4487_v40 = vrot.slane %v15031_v54, 3 }
 0x630   : > { %v7921_v39 = vpop.eup %7920  ;;  %v4761_v11 = vmul.f32 %v15011_v19, %v14930_v22  ;;  %7932 = vrcp.f32 %v15020_v47  ;;  %vm4644_vm1 = vweird.f32 %v14928_v37  ;;  %v4491_v30 = vrot.slane %v15031_v54, 4 }
 0x631   : > { %v15024_v0 = vpop.eup %7922  ;;  %v15043_v2 = vadd.f32 1.0, %v7921_v39  ;;  %7934 = vrcp.f32 %v15027_v53  ;;  %v15065_v39 = vadd.f32 %v14928_v37, %v4641_v50  ;;  %v4635_v29 = vor.u32 1.1754944e-38, %v4634_v41  ;;  %vm15083_vm15 = vmor %vm4643_vm5, %vm4644_vm1 }
 0x632   : > { %v15041_v33 = vpop.eup %7924  ;;  %v4762_v46 = vsub.f32 1.0, %v4761_v11  ;;  %v4495_v44 = vrot.slane %v15031_v54, 5  ;;  %vm4633_vm0 = vcmp.eq.f32.partialorder %v4632_v28, 8.507059e+37  ;;  %v4499_v8 = vrot.slane %v15031_v54, 6  ;;  %v18499_v28 = vld [vmem:[#allocation23_spill] sm:$0xff] }
 0x633   : > { %v15061_v1 = vpop.eup %7926  ;;  %v4776_v10 = vmul.f32 %v15041_v33, %v14966_v35  ;;  %7936 = vrcp.f32 %v15043_v2  ;;  %v15079_v16 = vsel %vm4633_vm0, %v4635_v29, %v4631_v12  ;;  %v4503_v41 = vrot.slane %v15031_v54, 7  ;;  %v18500_v29 = vld [vmem:[#allocation26_spill] sm:$0xff] }
 0x634   : > { %v15075_v50 = vpop.eup %7928  ;;  %v4791_v62 = vmul.f32 %v15061_v1, %v14978_v48  ;;  %v4547_v13 = vadd.f32 %v4487_v40, %v18499_v28  ;;  %v4646_v61 = vsel %vm15083_vm15, %v14928_v37, %v15065_v39  ;;  %v4649_v12 = vand.u32 2147483648, %v14887_v23  ;;  %v18501_v40 = vld [vmem:[#allocation29_spill] sm:$0xff] }
 0x635   : > { %v15089_v57 = vpop.eup %7930  ;;  %7938 = vtanh.f32 %v14937_v32  ;;  %v4551_v34 = vadd.f32 %v4491_v30, %v18500_v29  ;;  %v15101_v14 = vmul.f32 %v15011_v19, %v4762_v46  ;;  %v4777_v38 = vsub.f32 1.0, %v4776_v10  ;;  %v18502_v32 = vld [vmem:[#allocation32_spill] sm:$0xff] }
 0x636   : > { %v15098_v63 = vpop.eup %7932  ;;  %7940 = vtanh.f32 %v14940_v59  ;;  %v4555_v28 = vadd.f32 %v4495_v44, %v18501_v40  ;;  %v15109_v37 = vmul.f32 %v15075_v50, %v14997_v36  ;;  %v4507_v23 = vrot.slane %v15031_v54, 1  ;;  %v18505_v59 = vld [vmem:[#allocation35_spill] sm:$0xff] }
 0x637   : > { %v15105_v52 = vpop.eup %7934  ;;  %7942 = vtanh.f32 %v14945_v60  ;;  %v4559_v39 = vadd.f32 %v4499_v8, %v18502_v32  ;;  %vm15114_vm14 = vcmp.eq.f32.partialorder %v4647_v31, 8.507059e+37  ;;  %v4563_v30 = vadd.f32 %v4503_v41, %v18505_v59 }
 0x638   : > { %7944 = vtanh.f32 %v14948_v56  ;;  %v7128_v10 = vmul.f32 -1.442695, %v4547_v13  ;;  %v4792_v11 = vsub.f32 1.0, %v4791_v62  ;;  %v4511_v60 = vrot.slane %v15031_v54, 2  ;;  %v18506_v62 = vld [vmem:[#allocation42_spill] sm:$0xff] }
 0x639   : > { %v15120_v44 = vpop.eup %7936  ;;  %7946 = vtanh.f32 %v14952_v24  ;;  %v7129_v40 = vmul.f32 -1.442695, %v4551_v34  ;;  %v15126_v8 = vmul.f32 %v15089_v57, %v15013_v3  ;;  %v4567_v31 = vadd.f32 %v15031_v54, %v18365_v51 }
 0x63a   : > { %7948 = vtanh.f32 %v14956_v6  ;;  %v7130_v56 = vmul.f32 -1.442695, %v4555_v28  ;;  %v4650_v13 = vor.u32 1.1754944e-38, %v4649_v12  ;;  %v4571_v59 = vadd.f32 %v4507_v23, %v18506_v62 }
 0x63b   : > { %v7939_v41 = vpop.eup %7938  ;;  %7950 = vtanh.f32 %v14983_v45  ;;  %v7131_v24 = vmul.f32 -1.442695, %v4559_v39  ;;  %v15134_v34 = vmul.f32 %v15041_v33, %v4777_v38  ;;  %v7132_v29 = vmul.f32 -1.442695, %v4563_v30  ;;  %v18508_v45 = vld [vmem:[#allocation44_spill] sm:$0xff] }
 0x63c   : > { %v7941_v32 = vpop.eup %7940  ;;  %7952 = vpow2.f32 %v7128_v10  ;;  %v18507_v7 = vsub.f32 1.0, %v14973_v5  ;;  %v15142_v28 = vmul.f32 %v15098_v63, %v15020_v47  ;;  %v4575_v12 = vadd.f32 %v4511_v60, %v18508_v45 }
 0x63d   : > { %v7943_v3 = vpop.eup %7942  ;;  %7954 = vpow2.f32 %v7129_v40  ;;  %v15148_v38 = vmul.f32 %v15061_v1, %v4792_v11  ;;  %v7133_v5 = vmul.f32 -1.442695, %v4567_v31  ;;  %v4651_v30 = vsel %vm15114_vm14, %v4650_v13, %v4646_v61 }
 0x63e   : > { %v4656_v6 = vmul.f32 %v14942_v4, %v18507_v7  ;;  %v15145_v23 = vpop.eup %7944  ;;  %7956 = vpow2.f32 %v7130_v56  ;;  %v7134_v10 = vmul.f32 -1.442695, %v4571_v59  ;;  %v18509_v54 = vsub.f32 1.0, %v14992_v42 }
 0x63f   : > { %v15151_v7 = vpop.eup %7946  ;;  %7958 = vpow2.f32 %v7131_v24  ;;  %vm4659_vm3 = vweird.f32 %v14942_v4  ;;  %v4699_v31 = vmul.f32 %v14969_v25, %v14911_v58  ;;  %v7135_v61 = vmul.f32 -1.442695, %v4575_v12 }
 0x640   : > { %v4671_v40 = vmul.f32 %v14958_v20, %v18509_v54  ;;  %v15158_v60 = vpop.eup %7948  ;;  %7960 = vpow2.f32 %v7132_v29  ;;  %v4657_v11 = vadd.f32 %v14942_v4, %v4656_v6  ;;  %v4664_v46 = vand.u32 2147483648, %v14895_v26 }
 0x641   : > { %v15164_v56 = vpop.eup %7950  ;;  %7962 = vtanh.f32 %v14986_v27  ;;  %v4685_v42 = vsub.f32 1.0, %v14964_v21  ;;  %v15170_v13 = vmul.f32 %v7939_v41, %v15038_v18  ;;  %vm4658_vm12 = vweird.f32 %v14895_v26 }
 0x642   : > { %v7953_v59 = vpop.eup %7952  ;;  %7964 = vpow2.f32 %v7133_v5  ;;  %v4662_v29 = vand.u32 2147483647, %v14895_v26  ;;  %v15175_v6 = vmul.f32 %v7941_v32, %v15079_v16  ;;  %vm15179_vm6 = vmor %vm4658_vm12, %vm4659_vm3  ;;  %v4672_v21 = vadd.f32 %v14958_v20, %v4671_v40 }
 0x643   : > { %v7955_v24 = vpop.eup %7954  ;;  %7966 = vpow2.f32 %v7134_v10  ;;  %vm4674_vm4 = vweird.f32 %v14958_v20  ;;  %v4661_v26 = vsel %vm15179_vm6, %v14942_v4, %v4657_v11  ;;  %vm4673_vm13 = vweird.f32 %v14903_v43 }
 0x644   : > { %v7957_v18 = vpop.eup %7956  ;;  %v4679_v16 = vand.u32 2147483648, %v14903_v43  ;;  %v4700_v32 = vsub.f32 1.0, %v4699_v31  ;;  %7968 = vpow2.f32 %v7135_v61  ;;  %v15190_v54 = vadd.f32 1.0, %v7953_v59  ;;  %vm15195_vm5 = vmor %vm4673_vm13, %vm4674_vm4 }
 0x645   : > { %v7959_v41 = vpop.eup %7958  ;;  %v4665_v12 = vor.u32 1.1754944e-38, %v4664_v46  ;;  %v4686_v5 = vmul.f32 %v14922_v15, %v4685_v42  ;;  %v15193_v40 = vadd.f32 1.0, %v7955_v24  ;;  %vm4663_vm2 = vcmp.eq.f32.partialorder %v4662_v29, 8.507059e+37 }
 0x646   : > { %v7961_v10 = vpop.eup %7960  ;;  %v4677_v4 = vand.u32 2147483647, %v14903_v43  ;;  %v4714_v11 = vmul.f32 %v15024_v0, %v14934_v9  ;;  %vm4766_vm1 = vweird.f32 %v15011_v19  ;;  %v15205_v61 = vmul.f32 %v7943_v3, %v4651_v30 }
 0x647   : > { %v15202_v31 = vpop.eup %7962  ;;  %v15207_v46 = vadd.f32 1.0, %v7957_v18  ;;  %v15209_v42 = vsel %vm4663_vm2, %v4665_v12, %v4661_v26  ;;  %v4676_v59 = vsel %vm15195_vm5, %v14958_v20, %v4672_v21  ;;  %vm4781_vm0 = vweird.f32 %v15041_v33 }
 0x648   : > { %v7965_v29 = vpop.eup %7964  ;;  %v15215_v43 = vadd.f32 1.0, %v7959_v41  ;;  %v4680_v24 = vor.u32 1.1754944e-38, %v4679_v16  ;;  %vm4689_vm15 = vweird.f32 %v14922_v15  ;;  %v4701_v27 = vmul.f32 %v14969_v25, %v4700_v32 }
 0x649   : > { %v7967_v3 = vpop.eup %7966  ;;  %vm4765_vm14 = vweird.f32 %v14930_v22  ;;  %v15220_v30 = vadd.f32 1.0, %v7961_v10  ;;  %7970 = vrcp.f32 %v15190_v54  ;;  %v4687_v39 = vadd.f32 %v14922_v15, %v4686_v5 }
 0x64a   : > { %v4694_v20 = vand.u32 2147483648, %v14881_v55  ;;  %vm4780_vm3 = vweird.f32 %v14966_v35  ;;  %7972 = vrcp.f32 %v15193_v40  ;;  %vm4678_vm12 = vcmp.eq.f32.partialorder %v4677_v4, 8.507059e+37  ;;  %v7969_v18 = vpop.eup %7968 }
 0x64b   : > { %vm4688_vm6 = vweird.f32 %v14881_v55  ;;  %v4715_v21 = vsub.f32 1.0, %v4714_v11  ;;  %v15228_v26 = vadd.f32 1.0, %v7965_v29  ;;  %7974 = vrcp.f32 %v15207_v46 }
 0x64c   : > { %v15231_v16 = vsel %vm4678_vm12, %v4680_v24, %v4676_v59  ;;  %v4692_v32 = vand.u32 2147483647, %v14881_v55  ;;  %v15234_v41 = vadd.f32 1.0, %v7967_v3  ;;  %7976 = vrcp.f32 %v15215_v43  ;;  %vm15239_vm4 = vmor %vm4688_vm6, %vm4689_vm15 }
 0x64d   : > { %v4702_v5 = vadd.f32 %v14969_v25, %v4701_v27  ;;  %vm4704_vm13 = vweird.f32 %v14969_v25  ;;  %7978 = vrcp.f32 %v15220_v30  ;;  %v4691_v55 = vsel %vm15239_vm4, %v14922_v15, %v4687_v39  ;;  %vm15287_vm6 = vmor %vm4765_vm14, %vm4766_vm1 }
 0x64e   : > { %v4695_v10 = vor.u32 1.1754944e-38, %v4694_v20  ;;  %v4709_v4 = vand.u32 2147483648, %v14911_v58  ;;  %vm4795_vm2 = vweird.f32 %v14978_v48  ;;  %v15251_v11 = vadd.f32 1.0, %v7969_v18 }
 0x64f   : > { %vm4703_vm5 = vweird.f32 %v14911_v58  ;;  %v4707_v59 = vand.u32 2147483647, %v14911_v58  ;;  %v4716_v29 = vmul.f32 %v15024_v0, %v4715_v21  ;;  %v15256_v24 = vpop.eup %7970  ;;  %7980 = vrcp.f32 %v15228_v26 }
 0x650   : > { %vm4693_vm15 = vcmp.eq.f32.partialorder %v4692_v32, 8.507059e+37  ;;  %vm15259_vm12 = vmor %vm4703_vm5, %vm4704_vm13  ;;  %v4722_v27 = vand.u32 2147483647, %v14934_v9  ;;  %v4764_v3 = vadd.f32 %v15011_v19, %v15101_v14  ;;  %v15266_v39 = vpop.eup %7972  ;;  %7982 = vrcp.f32 %v15234_v41 }
 0x651   : > { %v15269_v58 = vsel %vm4693_vm15, %v4695_v10, %v4691_v55  ;;  %v4706_v20 = vsel %vm15259_vm12, %v14969_v25, %v4702_v5  ;;  %v4779_v21 = vadd.f32 %v15041_v33, %v15134_v34  ;;  %v15276_v18 = vpop.eup %7974  ;;  %v4710_v32 = vor.u32 1.1754944e-38, %v4709_v4  ;;  %vm15300_vm5 = vmor %vm4780_vm3, %vm4781_vm0 }
 0x652   : > { %v4724_v12 = vand.u32 2147483648, %v14934_v9  ;;  %v4769_v14 = vand.u32 2147483647, %v14930_v22  ;;  %v4784_v45 = vand.u32 2147483647, %v14966_v35  ;;  %v15281_v62 = vpop.eup %7976  ;;  %7984 = vrcp.f32 %v15251_v11 }
 0x653   : > { %vm4708_vm4 = vcmp.eq.f32.partialorder %v4707_v59, 8.507059e+37  ;;  %v4717_v34 = vadd.f32 %v15024_v0, %v4716_v29  ;;  %vm4719_vm13 = vweird.f32 %v15024_v0  ;;  %v15294_v5 = vpop.eup %7978  ;;  %vm4718_vm1 = vweird.f32 %v14934_v9 }
 0x654   : > { %v15304_v22 = vsel %vm4708_vm4, %v4710_v32, %v4706_v20  ;;  %vm15307_vm14 = vcmp.eq.f32.partialorder %v4722_v27, 8.507059e+37  ;;  %v4768_v4 = vsel %vm15287_vm6, %v15011_v19, %v4764_v3  ;;  %v4783_v35 = vsel %vm15300_vm5, %v15041_v33, %v4779_v21  ;;  %vm15325_vm3 = vmor %vm4718_vm1, %vm4719_vm13 }
 0x655   : > { %v4794_v59 = vadd.f32 %v15061_v1, %v15148_v38  ;;  %vm4796_vm0 = vweird.f32 %v15061_v1  ;;  %v18524_v29 = vsub.f32 1.0, %v15109_v37  ;;  %v15323_v15 = vpop.eup %7980  ;;  %v4725_v19 = vor.u32 1.1754944e-38, %v4724_v12 }
 0x656   : > { %vm4770_vm15 = vcmp.eq.f32.partialorder %v4769_v14, 8.507059e+37  ;;  %vm4785_vm12 = vcmp.eq.f32.partialorder %v4784_v45, 8.507059e+37  ;;  %v4799_v33 = vand.u32 2147483647, %v14978_v48  ;;  %v15330_v3 = vpop.eup %7982  ;;  %v4721_v38 = vsel %vm15325_vm3, %v15024_v0, %v4717_v34  ;;  %vm15347_vm6 = vmor %vm4795_vm2, %vm4796_vm0 }
 0x657   : > { %v4808_v9 = vmul.f32 %v15075_v50, %v18524_v29  ;;  %v15336_v37 = vsel %vm4770_vm15, %v14999_v17, %v4768_v4  ;;  %v4801_v20 = vand.u32 2147483648, %v14978_v48  ;;  %v18527_v21 = vsub.f32 1.0, %v15126_v8 }
 0x658   : > { %v15343_v12 = vsel %vm4785_vm12, %v15045_v49, %v4783_v35  ;;  %v4814_v0 = vand.u32 2147483647, %v14997_v36  ;;  %v4837_v17 = vsub.f32 1.0, %v15142_v28  ;;  %v4851_v14 = vmul.f32 %v15105_v52, %v15027_v53  ;;  %v15355_v25 = vpop.eup %7984 }
 0x659   : > { %v4823_v32 = vmul.f32 %v15089_v57, %v18527_v21  ;;  %v4798_v49 = vsel %vm15347_vm6, %v15061_v1, %v4794_v59  ;;  %v4809_v8 = vadd.f32 %v15075_v50, %v4808_v9  ;;  %vm4810_vm2 = vweird.f32 %v14997_v36  ;;  %v18530_v1 = vld [vmem:[#allocation47_spill] sm:$0xff] }
 0x65a   : > { %vm4811_vm4 = vweird.f32 %v15075_v50  ;;  %v15365_v48 = vsel %vm15307_vm14, %v4725_v19, %v4721_v38  ;;  %vm4800_vm13 = vcmp.eq.f32.partialorder %v4799_v33, 8.507059e+37  ;;  %v4816_v28 = vand.u32 2147483648, %v14997_v36 }
 0x65b   : > { %v4866_v34 = vmul.f32 %v15120_v44, %v15043_v2  ;;  %v4802_v55 = vor.u32 1.1754944e-38, %v4801_v20  ;;  %v4824_v4 = vadd.f32 %v15089_v57, %v4823_v32  ;;  %vm4826_vm5 = vweird.f32 %v15089_v57  ;;  %vm15373_vm1 = vmor %vm4810_vm2, %vm4811_vm4 }
 0x65c   : > { %v4831_v35 = vand.u32 2147483648, %v18530_v1  ;;  %vm15377_vm0 = vcmp.eq.f32.partialorder %v4814_v0, 8.507059e+37  ;;  %v4838_v36 = vmul.f32 %v15098_v63, %v4837_v17  ;;  %v4852_v29 = vsub.f32 1.0, %v4851_v14 }
 0x65d   : > { %v4921_v9 = vmul.f32 %v15256_v24, %v15190_v54  ;;  %v15384_v27 = vsel %vm4800_vm13, %v4802_v55, %v4798_v49  ;;  %v4813_v19 = vsel %vm15373_vm1, %v15075_v50, %v4809_v8  ;;  %vm4825_vm14 = vweird.f32 %v18530_v1 }
 0x65e   : > { %v4829_v33 = vand.u32 2147483647, %v18530_v1  ;;  %v4817_v38 = vor.u32 1.1754944e-38, %v4816_v28  ;;  %vm15391_vm3 = vmor %vm4825_vm14, %vm4826_vm5  ;;  %vm4841_vm15 = vweird.f32 %v15098_v63  ;;  %v4844_v21 = vand.u32 2147483647, %v15020_v47 }
 0x65f   : > { %v4867_v32 = vsub.f32 1.0, %v4866_v34  ;;  %v4828_v45 = vsel %vm15391_vm3, %v15089_v57, %v4824_v4  ;;  %v4832_v0 = vor.u32 1.1754944e-38, %v4831_v35  ;;  %v4846_v50 = vand.u32 2147483648, %v15020_v47 }
 0x660   : > { %v4936_v17 = vmul.f32 %v15266_v39, %v15193_v40  ;;  %v4839_v14 = vadd.f32 %v15098_v63, %v4838_v36  ;;  %v4853_v49 = vmul.f32 %v15105_v52, %v4852_v29  ;;  %v4859_v8 = vand.u32 2147483647, %v15027_v53 }
 0x661   : > { %v4922_v28 = vsub.f32 1.0, %v4921_v9  ;;  %v15408_v34 = vsel %vm15377_vm0, %v4817_v38, %v4813_v19  ;;  %vm4830_vm12 = vcmp.eq.f32.partialorder %v4829_v33, 8.507059e+37  ;;  %vm4840_vm6 = vweird.f32 %v15020_v47 }
 0x662   : > { %v4951_v57 = vmul.f32 %v15276_v18, %v15207_v46  ;;  %v15413_v55 = vsel %vm4830_vm12, %v4832_v0, %v4828_v45  ;;  %vm15415_vm2 = vcmp.eq.f32.partialorder %v4844_v21, 8.507059e+37  ;;  %vm4855_vm4 = vweird.f32 %v15027_v53  ;;  %vm15423_vm13 = vmor %vm4840_vm6, %vm4841_vm15 }
 0x663   : > { %v4868_v1 = vmul.f32 %v15120_v44, %v4867_v32  ;;  %v4847_v47 = vor.u32 1.1754944e-38, %v4846_v50  ;;  %vm4856_vm5 = vweird.f32 %v15105_v52  ;;  %v4861_v59 = vand.u32 2147483648, %v15027_v53 }
 0x664   : > { %v4937_v10 = vsub.f32 1.0, %v4936_v17  ;;  %v4843_v36 = vsel %vm15423_vm13, %v15098_v63, %v4839_v14  ;;  %v4854_v29 = vadd.f32 %v15105_v52, %v4853_v49  ;;  %vm15433_vm1 = vcmp.eq.f32.partialorder %v4859_v8, 8.507059e+37  ;;  %vm15454_vm3 = vmor %vm4855_vm4, %vm4856_vm5 }
 0x665   : > { %v4923_v19 = vmul.f32 %v15256_v24, %v4922_v28  ;;  %v4874_v33 = vand.u32 2147483647, %v15043_v2  ;;  %v4876_v38 = vand.u32 2147483648, %v15043_v2  ;;  %v4952_v20 = vsub.f32 1.0, %v4951_v57 }
 0x666   : > { %v4966_v21 = vmul.f32 %v15281_v62, %v15215_v43  ;;  %v4869_v32 = vadd.f32 %v15120_v44, %v4868_v1  ;;  %vm4870_vm0 = vweird.f32 %v15043_v2  ;;  %vm4871_vm14 = vweird.f32 %v15120_v44 }
 0x667   : > { %v4929_v63 = vand.u32 2147483647, %v15190_v54  ;;  %v15448_v45 = vsel %vm15415_vm2, %v4847_v47, %v4843_v36  ;;  %v4862_v50 = vor.u32 1.1754944e-38, %v4861_v59  ;;  %v4931_v17 = vand.u32 2147483648, %v15190_v54  ;;  %vm15466_vm6 = vmor %vm4870_vm0, %vm4871_vm14 }
 0x668   : > { %v4938_v2 = vmul.f32 %v15266_v39, %v4937_v10  ;;  %v4858_v14 = vsel %vm15454_vm3, %v15105_v52, %v4854_v29  ;;  %v4924_v49 = vadd.f32 %v15256_v24, %v4923_v19  ;;  %vm4925_vm15 = vweird.f32 %v15190_v54 }
 0x669   : > { %vm4926_vm12 = vweird.f32 %v15256_v24  ;;  %vm15470_vm2 = vcmp.eq.f32.partialorder %v4874_v33, 8.507059e+37  ;;  %v4877_v28 = vor.u32 1.1754944e-38, %v4876_v38  ;;  %v4953_v57 = vmul.f32 %v15276_v18, %v4952_v20 }
 0x66a   : > { %v4967_v4 = vsub.f32 1.0, %v4966_v21  ;;  %v4873_v52 = vsel %vm15466_vm6, %v15120_v44, %v4869_v32  ;;  %vm15478_vm4 = vcmp.eq.f32.partialorder %v4929_v63, 8.507059e+37  ;;  %v4944_v1 = vand.u32 2147483647, %v15193_v40  ;;  %vm15486_vm13 = vmor %vm4925_vm15, %vm4926_vm12 }
 0x66b   : > { %v4946_v35 = vand.u32 2147483648, %v15193_v40  ;;  %v4863_v47 = vsel %vm15433_vm1, %v4862_v50, %v4858_v14  ;;  %v4932_v10 = vor.u32 1.1754944e-38, %v4931_v17  ;;  %v4939_v36 = vadd.f32 %v15266_v39, %v4938_v2  ;;  %v18573_v17 = vld [vmem:[#allocation53_spill] sm:$0xff] }
 0x66c   : > { %vm4941_vm5 = vweird.f32 %v15266_v39  ;;  %v4928_v44 = vsel %vm15486_vm13, %v15256_v24, %v4924_v49  ;;  %vm4940_vm0 = vweird.f32 %v15193_v40  ;;  %v4959_v29 = vand.u32 2147483647, %v15207_v46 }
 0x66d   : > { %v4981_v9 = vmul.f32 %v15294_v5, %v15220_v30  ;;  %v4878_v19 = vsel %vm15470_vm2, %v4877_v28, %v4873_v52  ;;  %v4954_v33 = vadd.f32 %v15276_v18, %v4953_v57  ;;  %vm4956_vm1 = vweird.f32 %v15276_v18  ;;  %vm15504_vm14 = vmor %vm4940_vm0, %vm4941_vm5 }
 0x66e   : > { %v4968_v38 = vmul.f32 %v15281_v62, %v4967_v4  ;;  %vm15508_vm3 = vcmp.eq.f32.partialorder %v4944_v1, 8.507059e+37  ;;  %v4947_v24 = vor.u32 1.1754944e-38, %v4946_v35  ;;  %vm4955_vm15 = vweird.f32 %v15207_v46  ;;  %v18563_v1 = vld [vmem:[#allocation49_spill] sm:$0xff] }
 0x66f   : > { %v4961_v21 = vand.u32 2147483648, %v15207_v46  ;;  %v15516_v32 = vsel %vm15478_vm4, %v4932_v10, %v4928_v44  ;;  %v4943_v63 = vsel %vm15504_vm14, %v15266_v39, %v4939_v36  ;;  %v4974_v0 = vand.u32 2147483647, %v15215_v43  ;;  %vm15523_vm12 = vmor %vm4955_vm15, %vm4956_vm1 }
 0x670   : > { %v4976_v50 = vand.u32 2147483648, %v15215_v43  ;;  %vm15527_vm6 = vcmp.eq.f32.partialorder %v4959_v29, 8.507059e+37  ;;  %vm4970_vm2 = vweird.f32 %v15215_v43  ;;  %vm4971_vm4 = vweird.f32 %v15281_v62  ;;  %v18567_v29 = vld [vmem:[#allocation50_spill] sm:$0xff] }
 0x671   : > { %v4982_v46 = vsub.f32 1.0, %v4981_v9  ;;  %v4958_v39 = vsel %vm15523_vm12, %v15276_v18, %v4954_v33  ;;  %v4969_v14 = vadd.f32 %v15281_v62, %v4968_v38  ;;  %v4991_v49 = vand.u32 2147483648, %v15220_v30  ;;  %vm15565_vm0 = vmor %vm4970_vm2, %vm4971_vm4  ;;  %v18569_v33 = vld [vmem:[#allocation54_spill] sm:$0xff] }
 0x672   : > { %v4996_v53 = vmul.f32 %v15323_v15, %v15228_v26  ;;  %v15542_v8 = vsel %vm15508_vm3, %v4947_v24, %v4943_v63  ;;  %v4962_v28 = vor.u32 1.1754944e-38, %v4961_v21  ;;  %vm4986_vm13 = vweird.f32 %v15294_v5  ;;  %v18571_v21 = vld [vmem:[#allocation51_spill] sm:$0xff] }
 0x673   : > { %v5011_v57 = vmul.f32 %v15330_v3, %v15234_v41  ;;  %vm15547_vm5 = vcmp.eq.f32.partialorder %v4974_v0, 8.507059e+37  ;;  %v4977_v18 = vor.u32 1.1754944e-38, %v4976_v50  ;;  %v4989_v52 = vand.u32 2147483647, %v15220_v30 }
 0x674   : > { %v5026_v54 = vmul.f32 %v15355_v25, %v15251_v11  ;;  %v18564_v35 = vrot.slane %v18563_v1, 7  ;;  %v15559_v10 = vsel %vm15527_vm6, %v4962_v28, %v4958_v39  ;;  %v4983_v44 = vmul.f32 %v15294_v5, %v4982_v46  ;;  %v18575_v39 = vld [vmem:[#allocation46_spill] sm:$0xff] }
 0x675   : > { %vm4985_vm1 = vweird.f32 %v15220_v30  ;;  %v18568_v9 = vrot.slane %v18567_v29, 7  ;;  %v18570_v38 = vrot.slane %v18569_v33, 7  ;;  %v4973_v43 = vsel %vm15565_vm0, %v15281_v62, %v4969_v14 }
 0x676   : > { %v5064_v59 = vmul.f32 %v18564_v35, %v15336_v37  ;;  %v4992_v40 = vor.u32 1.1754944e-38, %v4991_v49  ;;  %v4997_v24 = vsub.f32 1.0, %v4996_v53  ;;  %v18572_v63 = vrot.slane %v18571_v21, 7  ;;  %vm15641_vm12 = vmor %vm4985_vm1, %vm4986_vm13 }
 0x677   : > { %v5065_v37 = vmul.f32 %v18568_v9, %v15343_v12  ;;  %v5066_v20 = vmul.f32 %v18570_v38, %v15384_v27  ;;  %vm5001_vm14 = vweird.f32 %v15323_v15  ;;  %v5012_v50 = vsub.f32 1.0, %v5011_v57 }
 0x678   : > { %v5067_v0 = vmul.f32 %v18572_v63, %v15408_v34  ;;  %v18574_v12 = vrot.slane %v18573_v17, 7  ;;  %v5075_v27 = vmul.f32 %v15145_v23, %v15209_v42  ;;  %v5076_v46 = vmul.f32 %v15151_v7, %v15231_v16  ;;  %v18580_v23 = vld [vmem:[#allocation52_spill] sm:$0xff] }
 0x679   : > { %v5027_v62 = vsub.f32 1.0, %v5026_v54  ;;  %v18576_v14 = vrot.slane %v18575_v39, 7  ;;  %v5077_v34 = vmul.f32 %v15158_v60, %v15269_v58  ;;  %v15597_v53 = vadd.f32 %v15170_v13, %v5064_v59  ;;  %v18584_v58 = vld [vmem:[#allocation45_spill] sm:$0xff] }
 0x67a   : > { %v5068_v2 = vmul.f32 %v18574_v12, %v15413_v55  ;;  %vm15599_vm3 = vcmp.eq.f32.partialorder %v4989_v52, 8.507059e+37  ;;  %vm5000_vm15 = vweird.f32 %v15228_v26  ;;  %v18581_v42 = vrot.slane %v18580_v23, 7 }
 0x67b   : > { %v5069_v49 = vmul.f32 %v18576_v14, %v15448_v45  ;;  %18577 = vst [vmem:[#allocation48_spill] sm:$0xff] %v15597_v53  ;;  %v5078_v16 = vmul.f32 %v15164_v56, %v15304_v22  ;;  %v15609_v55 = vadd.f32 %v15175_v6, %v5065_v37  ;;  %v15612_v60 = vadd.f32 %v15205_v61, %v5066_v20 }
 0x67c   : > { %v5070_v7 = vmul.f32 %v18581_v42, %v4863_v47  ;;  %v5004_v13 = vand.u32 2147483647, %v15228_v26  ;;  %v18585_v45 = vrot.slane %v18584_v58, 7  ;;  %v5079_v52 = vmul.f32 %v15202_v31, %v15365_v48 }
 0x67d   : > { %18582 = vst [vmem:[#allocation47_spill] sm:$0xff] %v15609_v55  ;;  %v15619_v54 = vadd.f32 %v5075_v27, %v5067_v0  ;;  %v4984_v47 = vadd.f32 %v15294_v5, %v4983_v44  ;;  %v4998_v56 = vmul.f32 %v15323_v15, %v4997_v24  ;;  %v15623_v22 = vadd.f32 %v5076_v46, %v5068_v2 }
 0x67e   : > { %18583 = vst [vmem:[#allocation49_spill] sm:$0xff] %v15612_v60  ;;  %v5071_v57 = vmul.f32 %v18585_v45, %v4878_v19  ;;  %7986 = vtanh.f32 %v15597_v53  ;;  %v5006_v6 = vand.u32 2147483648, %v15228_v26  ;;  %v5013_v61 = vmul.f32 %v15330_v3, %v5012_v50  ;;  %v18608_v26 = vld [vmem:[#allocation17_spill] sm:$0xff] }
 0x67f   : > { %18586 = vst [vmem:[#allocation50_spill] sm:$0xff] %v15619_v54  ;;  %v15628_v1 = vadd.f32 %v5077_v34, %v5069_v49  ;;  %7988 = vtanh.f32 %v15609_v55  ;;  %v4978_v31 = vsel %vm15547_vm5, %v4977_v18, %v4973_v43  ;;  %v5028_v48 = vmul.f32 %v15355_v25, %v5027_v62  ;;  %vm15672_vm5 = vmor %vm5000_vm15, %vm5001_vm14 }
 0x680   : > { %18587 = vst [vmem:[#allocation54_spill] sm:$0xff] %v15623_v22  ;;  %v15634_v19 = vadd.f32 %v5078_v16, %v5070_v7  ;;  %7990 = vtanh.f32 %v15612_v60  ;;  %vm15645_vm6 = vcmp.eq.f32.partialorder %v5004_v13, 8.507059e+37  ;;  %vm5015_vm2 = vweird.f32 %v15234_v41 }
 0x681   : > { %18588 = vst [vmem:[#allocation51_spill] sm:$0xff] %v15628_v1  ;;  %v15650_v4 = vadd.f32 %v5079_v52, %v5071_v57  ;;  %7992 = vtanh.f32 %v15619_v54  ;;  %v4988_v18 = vsel %vm15641_vm12, %v15294_v5, %v4984_v47  ;;  %v4999_v30 = vadd.f32 %v15323_v15, %v4998_v56  ;;  %v18641_v54 = vld [vmem:[#allocation32_spill] sm:$0xff] }
 0x682   : > { %18589 = vst [vmem:[#allocation53_spill] sm:$0xff] %v15634_v19  ;;  %vm5016_vm4 = vweird.f32 %v15330_v3  ;;  %7994 = vtanh.f32 %v15623_v22  ;;  %v5007_v36 = vor.u32 1.1754944e-38, %v5006_v6  ;;  %v5014_v44 = vadd.f32 %v15330_v3, %v5013_v61 }
 0x683   : > { %18594 = vst [vmem:[#allocation46_spill] sm:$0xff] %v15650_v4  ;;  %v5019_v29 = vand.u32 2147483647, %v15234_v41  ;;  %7996 = vtanh.f32 %v15628_v1  ;;  %v5021_v37 = vand.u32 2147483648, %v15234_v41  ;;  %v5029_v33 = vadd.f32 %v15355_v25, %v5028_v48  ;;  %vm15686_vm0 = vmor %vm5015_vm2, %vm5016_vm4  ;;  %v18609_v41 = vld [vmem:[#allocation18_spill] sm:$0xff] }
 0x684   : > { %v7987_v9 = vpop.eup %7986  ;;  %vm5031_vm13 = vweird.f32 %v15355_v25  ;;  %7998 = vtanh.f32 %v15634_v19  ;;  %v4993_v38 = vsel %vm15599_vm3, %v4992_v40, %v4988_v18  ;;  %v5036_v43 = vand.u32 2147483648, %v15251_v11 }
 0x685   : > { %v7989_v5 = vpop.eup %7988  ;;  %8000 = vtanh.f32 %v15650_v4  ;;  %v5096_v24 = vmul.f32 %v7987_v9, %v15516_v32  ;;  %v5003_v63 = vsel %vm15672_vm5, %v15323_v15, %v4999_v30  ;;  %vm5030_vm1 = vweird.f32 %v15251_v11  ;;  %v18603_v30 = vld [vmem:[#allocation10_spill] sm:$0xff] }
 0x686   : > { %v7991_v21 = vpop.eup %7990  ;;  %v5034_v40 = vand.u32 2147483647, %v15251_v11  ;;  %v5097_v0 = vmul.f32 %v7989_v5, %v15542_v8  ;;  %v5018_v50 = vsel %vm15686_vm0, %v15330_v3, %v5014_v44  ;;  %vm5020_vm14 = vcmp.eq.f32.partialorder %v5019_v29, 8.507059e+37  ;;  %vm15698_vm3 = vmor %vm5030_vm1, %vm5031_vm13  ;;  %v18604_v44 = vld [vmem:[#allocation11_spill] sm:$0xff] }
 0x687   : > { %v7993_v32 = vpop.eup %7992  ;;  %v5098_v15 = vmul.f32 %v7991_v21, %v15559_v10  ;;  %v5112_v17 = vrot.slane %v5096_v24, 5  ;;  %v5022_v2 = vor.u32 1.1754944e-38, %v5021_v37  ;;  %v5033_v11 = vsel %vm15698_vm3, %v15355_v25, %v5029_v33  ;;  %v18605_v37 = vld [vmem:[#allocation19_spill] sm:$0xff]  ;;  %v18607_v21 = vld [vmem:[#allocation16_spill] sm:$0xff] }
 0x688   : > { %v7995_v12 = vpop.eup %7994  ;;  %v5099_v8 = vmul.f32 %v7993_v32, %v4978_v31  ;;  %v5113_v27 = vrot.slane %v5097_v0, 4  ;;  %v5008_v3 = vsel %vm15645_vm6, %v5007_v36, %v5003_v63  ;;  %v5037_v62 = vor.u32 1.1754944e-38, %v5036_v43  ;;  %v18606_v5 = vld [vmem:[#allocation15_spill] sm:$0xff] }
 0x689   : > { %v7997_v46 = vpop.eup %7996  ;;  %v5100_v39 = vmul.f32 %v7995_v12, %v4993_v38  ;;  %v5115_v14 = vrot.slane %v5098_v15, 3  ;;  %v5023_v34 = vsel %vm5020_vm14, %v5022_v2, %v5018_v50  ;;  %vm5035_vm15 = vcmp.eq.f32.partialorder %v5034_v40, 8.507059e+37 }
 0x68a   : > { %v7999_v49 = vpop.eup %7998  ;;  %v5114_v10 = vsel %vm17776_vm7, %v5113_v27, %v5112_v17  ;;  %v5117_v28 = vrot.slane %v5099_v8, 2  ;;  %v5038_v42 = vsel %vm5035_vm15, %v5037_v62, %v5033_v11  ;;  %v5101_v13 = vmul.f32 %v7997_v46, %v5008_v3  ;;  %v18610_v62 = vld [vmem:[#allocation20_spill] sm:$0xff] }
 0x68b   : > { %v8001_v23 = vpop.eup %8000  ;;  %v5102_v7 = vmul.f32 %v7999_v49, %v5023_v34  ;;  %v5116_v25 = vsel %vm17775_vm8, %v5115_v14, %v5114_v10  ;;  %v5119_v16 = vrot.slane %v5100_v39, 1  ;;  %vm18601_vm12 = vcmask 1046534   ;;  %v18611_v14 = vld [vmem:[#allocation22_spill] sm:$0xff] }
 0x68c   : > { %v5103_v58 = vmul.f32 %v8001_v23, %v5038_v42  ;;  %v5118_v45 = vsel %vm17774_vm9, %v5117_v28, %v5116_v25  ;;  %vm18602_vm6 = vcmask 1047559  }
 0x68d   : > { %v5120_v57 = vsel %vm17773_vm10, %v5119_v16, %v5118_v45  ;;  %v5122_v52 = vrot.slane %v5102_v7, 7  ;;  %v18612_v45 = vld [vmem:[#allocation24_spill] sm:$0xff]  ;;  %v18622_v16 = vld [vmem:[#allocation31_spill] sm:$0xff] }
 0x68e   : > { %v5121_v47 = vsel %vm17772_vm11, %v5101_v13, %v5120_v57  ;;  %v5124_v56 = vrot.slane %v5103_v58, 6 }
 0x68f   : > { %v5123_v6 = vsel %vm18601_vm12, %v5122_v52, %v5121_v47 }
 0x690   : > { %v5125_v61 = vsel %vm18602_vm6, %v5124_v56, %v5123_v6  ;;  %v18613_v6 = vld [vmem:[#allocation27_spill] sm:$0xff] }
 0x691   : > { %5143 = vmatmul.f32.vlgmr.msrb.gmra.mxu0 %v5125_v61  ;;  %5163 = vmatmul.f32.vlgmr.msrb.gmra.mxu1 %v5125_v61 }
 0x692   : > { %5183 = vmatmul.f32.vlgmr.msrb.gmra.mxu2 %v5125_v61  ;;  %5203 = vmatmul.f32.vlgmr.msrb.gmra.mxu3 %v5125_v61 }
 0x70e   : > { %v5144_v31 = vpop.f32.mrf.mxu0  ;;  %v15721_v32 = vpop.f32.mrf.mxu1 }
 0x70f   : > { %v5211_v48 = vrot.slane %v5144_v31, 2  ;;  %v5215_v35 = vrot.slane %v5144_v31, 3  ;;  %v5219_v59 = vrot.slane %v5144_v31, 4  ;;  %v5223_v18 = vrot.slane %v5144_v31, 5 }
 0x710   : > { %v5227_v9 = vrot.slane %v5144_v31, 6  ;;  %v5295_v33 = vadd.f32 %v5144_v31, %v18605_v37  ;;  %v5231_v24 = vrot.slane %v5144_v31, 7  ;;  %v5212_v12 = vrot.slane %v15721_v32, 2 }
 0x711   : > { %v5271_v36 = vadd.f32 %v5211_v48, %v18603_v30  ;;  %v5275_v29 = vadd.f32 %v5215_v35, %v18604_v44  ;;  %v5279_v38 = vadd.f32 %v5219_v59, %v18606_v5  ;;  %v5283_v63 = vadd.f32 %v5223_v18, %v18607_v21  ;;  %v18638_v5 = vld [vmem:[#allocation23_spill] sm:$0xff] }
 0x712   : > { %v5287_v40 = vadd.f32 %v5227_v9, %v18608_v26  ;;  %v7142_v0 = vmul.f32 -1.442695, %v5295_v33  ;;  %v5291_v15 = vadd.f32 %v5231_v24, %v18609_v41  ;;  %v5235_v2 = vrot.slane %v5144_v31, 1 }
 0x713   : > { %v7136_v20 = vmul.f32 -1.442695, %v5271_v36  ;;  %v7137_v43 = vmul.f32 -1.442695, %v5275_v29  ;;  %v7138_v50 = vmul.f32 -1.442695, %v5279_v38  ;;  %v5272_v39 = vadd.f32 %v5212_v12, %v18610_v62 }
 0x714   : > { %v7139_v17 = vmul.f32 -1.442695, %v5283_v63  ;;  %v7140_v11 = vmul.f32 -1.442695, %v5287_v40  ;;  %v7141_v27 = vmul.f32 -1.442695, %v5291_v15  ;;  %v5299_v49 = vadd.f32 %v5235_v2, %v18611_v14 }
 0x715   : > { %8002 = vpow2.f32 %v7136_v20  ;;  %v5216_v34 = vrot.slane %v15721_v32, 3  ;;  %v5220_v10 = vrot.slane %v15721_v32, 4  ;;  %v7144_v7 = vmul.f32 -1.442695, %v5272_v39  ;;  %v18614_v20 = vld [vmem:[#allocation30_spill] sm:$0xff]  ;;  %v18615_v63 = vld [vmem:[#allocation33_spill] sm:$0xff] }
 0x716   : > { %8004 = vpow2.f32 %v7137_v43  ;;  %v7143_v13 = vmul.f32 -1.442695, %v5299_v49  ;;  %v5224_v58 = vrot.slane %v15721_v32, 5  ;;  %v5228_v47 = vrot.slane %v15721_v32, 6  ;;  %v18617_v2 = vld [vmem:[#allocation39_spill] sm:$0xff] }
 0x717   : > { %8006 = vpow2.f32 %v7142_v0  ;;  %v5276_v57 = vadd.f32 %v5216_v34, %v18612_v45  ;;  %v5232_v56 = vrot.slane %v15721_v32, 7  ;;  %v5280_v61 = vadd.f32 %v5220_v10, %v18613_v6  ;;  %v18616_v0 = vld [vmem:[#allocation36_spill] sm:$0xff]  ;;  %v18618_v10 = vld [vmem:[#allocation41_spill] sm:$0xff] }
 0x718   : > { %8008 = vpow2.f32 %v7138_v50  ;;  %v5236_v38 = vrot.slane %v15721_v32, 1  ;;  %v5284_v43 = vadd.f32 %v5224_v58, %v18614_v20  ;;  %v5288_v40 = vadd.f32 %v5228_v47, %v18615_v63  ;;  %v18619_v34 = vld [vmem:[#allocation21_spill] sm:$0xff] }
 0x719   : > { %8010 = vpow2.f32 %v7139_v17  ;;  %v7145_v24 = vmul.f32 -1.442695, %v5276_v57  ;;  %v5292_v50 = vadd.f32 %v5232_v56, %v18616_v0  ;;  %v7146_v15 = vmul.f32 -1.442695, %v5280_v61 }
 0x71a   : > { %8012 = vpow2.f32 %v7140_v11  ;;  %v5296_v11 = vadd.f32 %v15721_v32, %v18617_v2  ;;  %v7148_v32 = vmul.f32 -1.442695, %v5288_v40  ;;  %v18626_v2 = vld [vmem:[#allocation43_spill] sm:$0xff] }
 0x71b   : > { %v8003_v8 = vpop.eup %8002 }
 0x71c   : > { %v15725_v46 = vadd.f32 1.0, %v8003_v8  ;;  %v8005_v3 = vpop.eup %8004  ;;  %v15765_v8 = vpop.f32.mrf.mxu2  ;;  %v7150_v47 = vmul.f32 -1.442695, %v5296_v11 }
 0x71d   : > { %v8007_v28 = vpop.eup %8006  ;;  %v15732_v23 = vadd.f32 1.0, %v8005_v3  ;;  %v5217_v56 = vrot.slane %v15765_v8, 3  ;;  %v5237_v11 = vrot.slane %v15765_v8, 1 }
 0x71e   : > { %8014 = vrcp.f32 %v15725_v46  ;;  %v8009_v42 = vpop.eup %8008  ;;  %v15737_v52 = vadd.f32 1.0, %v8007_v28  ;;  %v5300_v28 = vadd.f32 %v5236_v38, %v18618_v10  ;;  %v5225_v38 = vrot.slane %v15765_v8, 5 }
 0x71f   : > { %8016 = vpow2.f32 %v7141_v27  ;;  %v8011_v25 = vpop.eup %8010  ;;  %v15744_v59 = vadd.f32 1.0, %v8009_v42  ;;  %v7147_v42 = vmul.f32 -1.442695, %v5284_v43  ;;  %v15838_v0 = vadd.f32 %v5237_v11, %v18626_v2  ;;  %v15880_v11 = vpop.f32.mrf.mxu3 }
 0x720   : > { %v8013_v31 = vpop.eup %8012  ;;  %8018 = vrcp.f32 %v15732_v23  ;;  %v15751_v9 = vadd.f32 1.0, %v8011_v25  ;;  %v7149_v25 = vmul.f32 -1.442695, %v5292_v50  ;;  %v5229_v50 = vrot.slane %v15765_v8, 6 }
 0x721   : > { %8020 = vpow2.f32 %v7144_v7  ;;  %v15758_v17 = vadd.f32 1.0, %v8013_v31  ;;  %v15808_v10 = vadd.f32 %v5225_v38, %v18622_v16  ;;  %vm5340_vm4 = vweird.f32 %v15725_v46 }
 0x722   : > { %8022 = vpow2.f32 %v7143_v13  ;;  %v5213_v13 = vrot.slane %v15765_v8, 2  ;;  %vm5355_vm1 = vweird.f32 %v15732_v23  ;;  %v5218_v62 = vrot.slane %v15880_v11, 3 }
 0x723   : > { %8024 = vrcp.f32 %v15737_v52  ;;  %vm5370_vm12 = vweird.f32 %v15744_v59  ;;  %v5376_v19 = vand.u32 2147483648, %v15744_v59 }
 0x724   : > { %v15747_v18 = vpop.eup %8014  ;;  %8026 = vrcp.f32 %v15744_v59  ;;  %v15796_v3 = vadd.f32 %v5213_v13, %v18619_v34 }
 0x725   : > { %v8017_v33 = vpop.eup %8016  ;;  %v5336_v12 = vmul.f32 %v15747_v18, %v15725_v46  ;;  %8028 = vrcp.f32 %v15751_v9  ;;  %vm5341_vm2 = vweird.f32 %v15747_v18 }
 0x726   : > { %v15769_v39 = vadd.f32 1.0, %v8017_v33  ;;  %v15772_v49 = vpop.eup %8018  ;;  %8030 = vpow2.f32 %v7145_v24  ;;  %v5221_v33 = vrot.slane %v15765_v8, 4  ;;  %v7151_v24 = vmul.f32 -1.442695, %v5300_v28  ;;  %vm15853_vm13 = vmor %vm5340_vm4, %vm5341_vm2 }
 0x727   : > { %v8021_v7 = vpop.eup %8020  ;;  %8032 = vpow2.f32 %v7146_v15  ;;  %v5337_v57 = vsub.f32 1.0, %v5336_v12  ;;  %v5351_v31 = vmul.f32 %v15772_v49, %v15732_v23  ;;  %v5233_v12 = vrot.slane %v15765_v8, 7 }
 0x728   : > { %v8023_v58 = vpop.eup %8022  ;;  %8034 = vrcp.f32 %v15758_v17  ;;  %v15788_v40 = vadd.f32 1.0, %v8021_v7  ;;  %vm5356_vm0 = vweird.f32 %v15772_v49 }
 0x729   : > { %v15779_v61 = vpop.eup %8024  ;;  %8036 = vrcp.f32 %v15769_v39  ;;  %v15798_v29 = vadd.f32 1.0, %v8023_v58  ;;  %v5338_v7 = vmul.f32 %v15747_v18, %v5337_v57  ;;  %v5352_v35 = vsub.f32 1.0, %v5351_v31  ;;  %vm15901_vm14 = vmor %vm5355_vm1, %vm5356_vm0 }
 0x72a   : > { %v15786_v43 = vpop.eup %8026  ;;  %8038 = vpow2.f32 %v7147_v42  ;;  %v18620_v42 = vld [vmem:[#allocation25_spill] sm:$0xff]  ;;  %v5344_v31 = vand.u32 2147483647, %v15725_v46  ;;  %vm5400_vm0 = vweird.f32 %v15758_v17 }
 0x72b   : > { %v15791_v15 = vpop.eup %8028  ;;  %8040 = vpow2.f32 %v7148_v32  ;;  %v15801_v28 = vadd.f32 %v5217_v56, %v18620_v42  ;;  %v18621_v32 = vld [vmem:[#allocation28_spill] sm:$0xff]  ;;  %v5366_v58 = vmul.f32 %v15786_v43, %v15744_v59  ;;  %v18623_v56 = vld [vmem:[#allocation34_spill] sm:$0xff]  ;;  %v5339_v34 = vadd.f32 %v15747_v18, %v5338_v7 }
 0x72c   : > { %v8031_v27 = vpop.eup %8030  ;;  %8042 = vpow2.f32 %v7149_v25  ;;  %v15805_v48 = vadd.f32 %v5221_v33, %v18621_v32  ;;  %v5498_v25 = vand.u32 2147483648, %v15788_v40  ;;  %v15816_v42 = vadd.f32 %v5229_v50, %v18623_v56  ;;  %v18624_v32 = vld [vmem:[#allocation37_spill] sm:$0xff] }
 0x72d   : > { %v8033_v36 = vpop.eup %8032  ;;  %8044 = vpow2.f32 %v7150_v47  ;;  %v15820_v47 = vadd.f32 1.0, %v8031_v27  ;;  %v5346_v33 = vand.u32 2147483648, %v15725_v46  ;;  %v18625_v27 = vld [vmem:[#allocation40_spill] sm:$0xff]  ;;  %v5367_v20 = vsub.f32 1.0, %v5366_v58 }
 0x72e   : > { %v15810_v13 = vpop.eup %8034  ;;  %8046 = vpow2.f32 %v7151_v24  ;;  %v15825_v16 = vadd.f32 1.0, %v8033_v36  ;;  %v15828_v24 = vadd.f32 %v5233_v12, %v18624_v32  ;;  %v15835_v56 = vadd.f32 %v15765_v8, %v18625_v27 }
 0x72f   : > { %v15818_v57 = vpop.eup %8036  ;;  %8048 = vrcp.f32 %v15788_v40  ;;  %v5353_v36 = vmul.f32 %v15772_v49, %v5352_v35  ;;  %v15843_v12 = vmul.f32 %v15791_v15, %v15751_v9  ;;  %v15847_v7 = vmul.f32 %v15810_v13, %v15758_v17 }
 0x730   : > { %v8039_v38 = vpop.eup %8038  ;;  %8050 = vrcp.f32 %v15798_v29  ;;  %v15850_v8 = vor.u32 1.1754944e-38, %v5498_v25  ;;  %vm15857_vm5 = vcmp.eq.f32.partialorder %v5344_v31, 8.507059e+37  ;;  %v5347_v58 = vor.u32 1.1754944e-38, %v5346_v33 }
 0x731   : > { %v8041_v50 = vpop.eup %8040  ;;  %8052 = vrcp.f32 %v15820_v47  ;;  %v15861_v27 = vadd.f32 1.0, %v8039_v38  ;;  %v5513_v6 = vand.u32 2147483648, %v15820_v47  ;;  %v5343_v46 = vsel %vm15853_vm13, %v15747_v18, %v5339_v34 }
 0x732   : > { %v8043_v63 = vpop.eup %8042  ;;  %8054 = vrcp.f32 %v15825_v16  ;;  %v15870_v45 = vadd.f32 1.0, %v8041_v50  ;;  %v5354_v31 = vadd.f32 %v15772_v49, %v5353_v36  ;;  %v5359_v33 = vand.u32 2147483647, %v15732_v23 }
 0x733   : > { %v8045_v32 = vpop.eup %8044  ;;  %v15877_v37 = vadd.f32 1.0, %v8043_v63  ;;  %v5368_v41 = vmul.f32 %v15786_v43, %v5367_v20  ;;  %v15888_v50 = vsel %vm15857_vm5, %v5347_v58, %v5343_v46  ;;  %v5361_v36 = vand.u32 2147483648, %v15732_v23 }
 0x734   : > { %v8047_v2 = vpop.eup %8046  ;;  %v15884_v34 = vadd.f32 1.0, %v8045_v32  ;;  %v15896_v20 = vor.u32 1.1754944e-38, %v5513_v6  ;;  %8056 = vrcp.f32 %v15861_v27  ;;  %v5358_v23 = vsel %vm15901_vm14, %v15772_v49, %v5354_v31 }
 0x735   : > { %v15868_v25 = vpop.eup %8048  ;;  %v15892_v38 = vadd.f32 1.0, %v8047_v2  ;;  %8058 = vrcp.f32 %v15870_v45  ;;  %vm15911_vm3 = vcmp.eq.f32.partialorder %v5359_v33, 8.507059e+37  ;;  %v5214_v6 = vrot.slane %v15880_v11, 2  ;;  %v18639_v2 = vld [vmem:[#allocation26_spill] sm:$0xff] }
 0x736   : > { %v15882_v18 = vpop.eup %8050  ;;  %v5488_v63 = vmul.f32 %v15868_v25, %v15788_v40  ;;  %8060 = vrcp.f32 %v15877_v37  ;;  %v15920_v46 = vadd.f32 %v15786_v43, %v5368_v41  ;;  %vm5371_vm15 = vweird.f32 %v15786_v43 }
 0x737   : > { %18631 = vst [vmem:[#allocation52_spill] sm:$0xff] %v15892_v38  ;;  %v15905_v35 = vpop.eup %8052  ;;  %8062 = vrcp.f32 %v15884_v34  ;;  %v5362_v49 = vor.u32 1.1754944e-38, %v5361_v36  ;;  %v5222_v31 = vrot.slane %v15880_v11, 4  ;;  %v5226_v41 = vrot.slane %v15880_v11, 5  ;;  %vm15937_vm6 = vmor %vm5370_vm12, %vm5371_vm15 }
 0x738   : > { %v15916_v58 = vpop.eup %8054  ;;  %v5489_v33 = vsub.f32 1.0, %v5488_v63  ;;  %v5503_v32 = vmul.f32 %v15905_v35, %v15820_v47  ;;  %8064 = vrcp.f32 %v15892_v38  ;;  %v5374_v63 = vand.u32 2147483647, %v15744_v59 }
 0x739   : > { %v5518_v26 = vmul.f32 %v15916_v58, %v15825_v16  ;;  %v15935_v21 = vsel %vm15911_vm3, %v5362_v49, %v5358_v23  ;;  %v5274_v44 = vadd.f32 %v5214_v6, %v18638_v5  ;;  %8066 = vtanh.f32 %v15796_v3  ;;  %v18640_v5 = vld [vmem:[#allocation29_spill] sm:$0xff] }
 0x73a   : > { %v15943_v30 = vpop.eup %8056  ;;  %v5230_v23 = vrot.slane %v15880_v11, 6  ;;  %v5278_v49 = vadd.f32 %v5218_v62, %v18639_v2  ;;  %8068 = vtanh.f32 %v15801_v28  ;;  %v5234_v6 = vrot.slane %v15880_v11, 7 }
 0x73b   : > { %v15952_v4 = vpop.eup %8058  ;;  %v5282_v1 = vadd.f32 %v5222_v31, %v18640_v5  ;;  %v15961_v14 = vmul.f32 %v15868_v25, %v5489_v33  ;;  %v5504_v3 = vsub.f32 1.0, %v5503_v32  ;;  %8070 = vtanh.f32 %v15805_v48  ;;  %v18645_v48 = vld [vmem:[#allocation35_spill] sm:$0xff] }
 0x73c   : > { %v15958_v22 = vpop.eup %8060  ;;  %v5286_v62 = vadd.f32 %v5226_v41, %v18641_v54  ;;  %v15969_v59 = vmul.f32 %v15943_v30, %v15861_v27  ;;  %8072 = vtanh.f32 %v15808_v10  ;;  %v5238_v28 = vrot.slane %v15880_v11, 1 }
 0x73d   : > { %v15965_v2 = vpop.eup %8062  ;;  %v7152_v31 = vmul.f32 -1.442695, %v5274_v44  ;;  %v5519_v33 = vsub.f32 1.0, %v5518_v26  ;;  %vm15975_vm2 = vcmp.eq.f32.partialorder %v5374_v63, 8.507059e+37  ;;  %8074 = vtanh.f32 %v15816_v42  ;;  %v18646_v26 = vld [vmem:[#allocation42_spill] sm:$0xff] }
 0x73e   : > { %v15973_v5 = vpop.eup %8064  ;;  %v5290_v41 = vadd.f32 %v5230_v23, %v18645_v48  ;;  %v7153_v54 = vmul.f32 -1.442695, %v5278_v49  ;;  %v15983_v60 = vmul.f32 %v15952_v4, %v15870_v45  ;;  %8076 = vtanh.f32 %v15828_v24  ;;  %v18648_v24 = vld [vmem:[#allocation44_spill] sm:$0xff] }
 0x73f   : > { %18642 = vst [vmem:[#allocation45_spill] sm:$0xff] %v15973_v5  ;;  %v5294_v44 = vadd.f32 %v5234_v6, %v18365_v51  ;;  %v7154_v10 = vmul.f32 -1.442695, %v5282_v1  ;;  %v8067_v55 = vpop.eup %8066  ;;  %8078 = vtanh.f32 %v15835_v56  ;;  %v5298_v63 = vadd.f32 %v15880_v11, %v18646_v26 }
 0x740   : > { %v7155_v53 = vmul.f32 -1.442695, %v5286_v62  ;;  %v18647_v42 = vsub.f32 1.0, %v15843_v12  ;;  %v8069_v49 = vpop.eup %8068  ;;  %v15994_v48 = vmul.f32 %v15905_v35, %v5504_v3  ;;  %v5377_v5 = vor.u32 1.1754944e-38, %v5376_v19 }
 0x741   : > { %v5302_v38 = vadd.f32 %v5238_v28, %v18648_v24  ;;  %8080 = vpow2.f32 %v7152_v31  ;;  %v8071_v1 = vpop.eup %8070  ;;  %v5534_v6 = vsub.f32 1.0, %v15969_v59  ;;  %v7156_v56 = vmul.f32 -1.442695, %v5290_v41 }
 0x742   : > { %v5383_v23 = vmul.f32 %v15791_v15, %v18647_v42  ;;  %8082 = vpow2.f32 %v7153_v54  ;;  %v5411_v11 = vmul.f32 %v15818_v57, %v15769_v39  ;;  %v16000_v62 = vpop.eup %8072  ;;  %v16003_v12 = vmul.f32 %v15916_v58, %v5519_v33 }
 0x743   : > { %8084 = vpow2.f32 %v7154_v10  ;;  %v7157_v19 = vmul.f32 -1.442695, %v5294_v44  ;;  %v16006_v42 = vpop.eup %8074  ;;  %v7158_v28 = vmul.f32 -1.442695, %v5298_v63  ;;  %vm5386_vm4 = vweird.f32 %v15791_v15 }
 0x744   : > { %8086 = vpow2.f32 %v7155_v53  ;;  %v5384_v31 = vadd.f32 %v15791_v15, %v5383_v23  ;;  %v16010_v54 = vpop.eup %8076  ;;  %v7159_v41 = vmul.f32 -1.442695, %v5302_v38  ;;  %vm5385_vm13 = vweird.f32 %v15751_v9 }
 0x745   : > { %8088 = vtanh.f32 %v15838_v0  ;;  %v18649_v33 = vsub.f32 1.0, %v15847_v7  ;;  %v16017_v44 = vpop.eup %8078  ;;  %v5391_v53 = vand.u32 2147483648, %v15751_v9  ;;  %v5412_v63 = vsub.f32 1.0, %v5411_v11  ;;  %vm16034_vm5 = vmor %vm5385_vm13, %vm5386_vm4 }
 0x746   : > { %8090 = vpow2.f32 %v7156_v56  ;;  %v5426_v23 = vmul.f32 %v15779_v61, %v15737_v52  ;;  %v18650_v0 = vsel %vm15937_vm6, %v15786_v43, %v15920_v46  ;;  %v16030_v38 = vmul.f32 %v8067_v55, %v15888_v50 }
 0x747   : > { %v5398_v10 = vmul.f32 %v15810_v13, %v18649_v33  ;;  %v8081_v3 = vpop.eup %8080  ;;  %v5378_v7 = vsel %vm15975_vm2, %v5377_v5, %v18650_v0  ;;  %8092 = vpow2.f32 %v7157_v19  ;;  %v5389_v11 = vand.u32 2147483647, %v15751_v9 }
 0x748   : > { %v8083_v33 = vpop.eup %8082  ;;  %v16040_v36 = vmul.f32 %v8069_v49, %v15935_v21  ;;  %8094 = vpow2.f32 %v7158_v28  ;;  %v5388_v5 = vsel %vm16034_vm5, %v15791_v15, %v5384_v31  ;;  %vm5401_vm1 = vweird.f32 %v15810_v13 }
 0x749   : > { %v8085_v55 = vpop.eup %8084  ;;  %8096 = vpow2.f32 %v7159_v41  ;;  %v5399_v43 = vadd.f32 %v15810_v13, %v5398_v10  ;;  %v5406_v50 = vand.u32 2147483648, %v15758_v17  ;;  %v16049_v46 = vadd.f32 1.0, %v8081_v3  ;;  %vm16070_vm15 = vmor %vm5400_vm0, %vm5401_vm1 }
 0x74a   : > { %v8087_v9 = vpop.eup %8086  ;;  %v5392_v21 = vor.u32 1.1754944e-38, %v5391_v53  ;;  %v5413_v32 = vmul.f32 %v15818_v57, %v5412_v63  ;;  %v5427_v49 = vsub.f32 1.0, %v5426_v23  ;;  %vm5493_vm14 = vweird.f32 %v15868_v25 }
 0x74b   : > { %v16052_v19 = vpop.eup %8088  ;;  %v16055_v15 = vadd.f32 1.0, %v8083_v33  ;;  %vm5390_vm3 = vcmp.eq.f32.partialorder %v5389_v11, 8.507059e+37  ;;  %v5404_v28 = vand.u32 2147483647, %v15758_v17  ;;  %v5441_v31 = vmul.f32 %v15882_v18, %v15798_v29 }
 0x74c   : > { %v8091_v41 = vpop.eup %8090  ;;  %v16060_v10 = vmul.f32 %v8071_v1, %v5378_v7  ;;  %v16062_v3 = vadd.f32 1.0, %v8085_v55  ;;  %v16064_v53 = vsel %vm5390_vm3, %v5392_v21, %v5388_v5  ;;  %vm5415_vm12 = vweird.f32 %v15769_v39 }
 0x74d   : > { %v8093_v23 = vpop.eup %8092  ;;  %vm5492_vm6 = vweird.f32 %v15788_v40  ;;  %v16076_v0 = vadd.f32 1.0, %v8087_v9  ;;  %v5403_v1 = vsel %vm16070_vm15, %v15810_v13, %v5399_v43  ;;  %v5407_v7 = vor.u32 1.1754944e-38, %v5406_v50 }
 0x74e   : > { %v5421_v56 = vand.u32 2147483648, %v15769_v39  ;;  %v8095_v11 = vpop.eup %8094  ;;  %vm5508_vm2 = vweird.f32 %v15905_v35  ;;  %8098 = vrcp.f32 %v16049_v46  ;;  %v5414_v17 = vadd.f32 %v15818_v57, %v5413_v32 }
 0x74f   : > { %vm5416_vm4 = vweird.f32 %v15818_v57  ;;  %v5428_v33 = vmul.f32 %v15779_v61, %v5427_v49  ;;  %v8097_v5 = vpop.eup %8096  ;;  %v16087_v55 = vadd.f32 1.0, %v8091_v41  ;;  %8100 = vrcp.f32 %v16055_v15 }
 0x750   : > { %vm5405_vm13 = vcmp.eq.f32.partialorder %v5404_v28, 8.507059e+37  ;;  %v5442_v13 = vsub.f32 1.0, %v5441_v31  ;;  %vm5507_vm5 = vweird.f32 %v15820_v47  ;;  %v16091_v43 = vadd.f32 1.0, %v8093_v23  ;;  %vm16102_vm0 = vmor %vm5415_vm12, %vm5416_vm4 }
 0x751   : > { %8102 = vrcp.f32 %v16062_v3  ;;  %v16094_v50 = vsel %vm5405_vm13, %v5407_v7, %v5403_v1  ;;  %v5419_v9 = vand.u32 2147483647, %v15769_v39  ;;  %v16097_v21 = vadd.f32 1.0, %v8095_v11  ;;  %vm16144_vm13 = vmor %vm5492_vm6, %vm5493_vm14 }
 0x752   : > { %8104 = vrcp.f32 %v16076_v0  ;;  %v5422_v49 = vor.u32 1.1754944e-38, %v5421_v56  ;;  %vm5431_vm1 = vweird.f32 %v15779_v61  ;;  %v16107_v28 = vadd.f32 1.0, %v8097_v5 }
 0x753   : > { %v5418_v31 = vsel %vm16102_vm0, %v15818_v57, %v5414_v17  ;;  %v5429_v41 = vadd.f32 %v15779_v61, %v5428_v33  ;;  %v5434_v63 = vand.u32 2147483647, %v15737_v52  ;;  %8106 = vrcp.f32 %v16087_v55 }
 0x754   : > { %v5436_v39 = vand.u32 2147483648, %v15737_v52  ;;  %v5443_v23 = vmul.f32 %v15882_v18, %v5442_v13  ;;  %v5491_v1 = vadd.f32 %v15868_v25, %v15961_v14  ;;  %v16119_v7 = vpop.eup %8098  ;;  %vm5522_vm3 = vweird.f32 %v15825_v16 }
 0x755   : > { %8108 = vrcp.f32 %v16091_v43  ;;  %vm5420_vm15 = vcmp.eq.f32.partialorder %v5419_v9, 8.507059e+37  ;;  %vm5430_vm12 = vweird.f32 %v15737_v52  ;;  %v5449_v57 = vand.u32 2147483647, %v15798_v29  ;;  %v16125_v56 = vpop.eup %8100 }
 0x756   : > { %8110 = vrcp.f32 %v16097_v21  ;;  %v16128_v11 = vsel %vm5420_vm15, %v5422_v49, %v5418_v31  ;;  %vm16132_vm4 = vmor %vm5430_vm12, %vm5431_vm1  ;;  %v5451_v17 = vand.u32 2147483648, %v15798_v29  ;;  %v5496_v33 = vand.u32 2147483647, %v15788_v40 }
 0x757   : > { %v16138_v5 = vpop.eup %8102  ;;  %8112 = vrcp.f32 %v16107_v28  ;;  %v5433_v13 = vsel %vm16132_vm4, %v15779_v61, %v5429_v41  ;;  %vm5435_vm0 = vcmp.eq.f32.partialorder %v5434_v63, 8.507059e+37  ;;  %v5506_v9 = vadd.f32 %v15905_v35, %v15994_v48  ;;  %vm16176_vm15 = vmor %vm5507_vm5, %vm5508_vm2 }
 0x758   : > { %v16154_v32 = vpop.eup %8104  ;;  %v5437_v49 = vor.u32 1.1754944e-38, %v5436_v39  ;;  %v5444_v31 = vadd.f32 %v15882_v18, %v5443_v23  ;;  %vm5446_vm14 = vweird.f32 %v15882_v18  ;;  %v5495_v40 = vsel %vm16144_vm13, %v15868_v25, %v5491_v1 }
 0x759   : > { %vm5445_vm6 = vweird.f32 %v15798_v29  ;;  %vm16162_vm1 = vcmp.eq.f32.partialorder %v5449_v57, 8.507059e+37  ;;  %v5511_v61 = vand.u32 2147483647, %v15820_v47  ;;  %v5535_v48 = vmul.f32 %v15943_v30, %v5534_v6  ;;  %v16170_v41 = vpop.eup %8106 }
 0x75a   : > { %v16180_v29 = vsel %vm5435_vm0, %v5437_v49, %v5433_v13  ;;  %v5452_v63 = vor.u32 1.1754944e-38, %v5451_v17  ;;  %vm5497_vm12 = vcmp.eq.f32.partialorder %v5496_v33, 8.507059e+37  ;;  %v5563_v39 = vmul.f32 %v15958_v22, %v15877_v37  ;;  %vm16186_vm4 = vmor %vm5445_vm6, %vm5446_vm14 }
 0x75b   : > { %v16184_v59 = vpop.eup %8108  ;;  %v16191_v23 = vsel %vm5497_vm12, %v15850_v8, %v5495_v40  ;;  %v5510_v47 = vsel %vm16176_vm15, %v15905_v35, %v5506_v9  ;;  %v5521_v1 = vadd.f32 %v15916_v58, %v16003_v12  ;;  %vm5523_vm2 = vweird.f32 %v15916_v58 }
 0x75c   : > { %v16199_v57 = vpop.eup %8110  ;;  %v5448_v17 = vsel %vm16186_vm4, %v15882_v18, %v5444_v31  ;;  %v5526_v33 = vand.u32 2147483647, %v15825_v16  ;;  %v5528_v8 = vand.u32 2147483648, %v15825_v16  ;;  %v5578_v52 = vmul.f32 %v15965_v2, %v15884_v34  ;;  %vm16218_vm0 = vmor %vm5522_vm3, %vm5523_vm2 }
 0x75d   : > { %v16208_v13 = vpop.eup %8112  ;;  %vm5512_vm5 = vcmp.eq.f32.partialorder %v5511_v61, 8.507059e+37  ;;  %v5536_v35 = vadd.f32 %v15943_v30, %v5535_v48  ;;  %vm5538_vm13 = vweird.f32 %v15943_v30  ;;  %v5543_v12 = vand.u32 2147483648, %v15861_v27 }
 0x75e   : > { %v16214_v9 = vsel %vm5512_vm5, %v15896_v20, %v5510_v47  ;;  %vm5537_vm14 = vweird.f32 %v15861_v27  ;;  %v18669_v49 = vsub.f32 1.0, %v15983_v60  ;;  %v5564_v40 = vsub.f32 1.0, %v5563_v39 }
 0x75f   : > { %v16228_v61 = vsel %vm16162_vm1, %v5452_v63, %v5448_v17  ;;  %v5525_v20 = vsel %vm16218_vm0, %v15916_v58, %v5521_v1  ;;  %v5541_v16 = vand.u32 2147483647, %v15861_v27  ;;  %v5556_v48 = vand.u32 2147483647, %v15870_v45  ;;  %vm16235_vm6 = vmor %vm5537_vm14, %vm5538_vm13  ;;  %v18672_v58 = vld [vmem:[#allocation52_spill] sm:$0xff]  ;;  %v18673_v27 = vld [vmem:[#allocation45_spill] sm:$0xff] }
 0x760   : > { %v5550_v31 = vmul.f32 %v15952_v4, %v18669_v49  ;;  %vm5527_vm3 = vcmp.eq.f32.partialorder %v5526_v33, 8.507059e+37  ;;  %v5529_v25 = vor.u32 1.1754944e-38, %v5528_v8  ;;  %vm5552_vm15 = vweird.f32 %v15870_v45 }
 0x761   : > { %v5579_v60 = vsub.f32 1.0, %v5578_v52  ;;  %v5540_v14 = vsel %vm16235_vm6, %v15943_v30, %v5536_v35  ;;  %v5544_v63 = vor.u32 1.1754944e-38, %v5543_v12  ;;  %vm5553_vm1 = vweird.f32 %v15952_v4 }
 0x762   : > { %v5593_v39 = vmul.f32 %v18673_v27, %v18672_v58  ;;  %v5551_v47 = vadd.f32 %v15952_v4, %v5550_v31  ;;  %v5558_v1 = vand.u32 2147483648, %v15870_v45  ;;  %v5565_v17 = vmul.f32 %v15958_v22, %v5564_v40  ;;  %vm16266_vm5 = vmor %vm5552_vm15, %vm5553_vm1 }
 0x763   : > { %v5648_v33 = vmul.f32 %v16119_v7, %v16049_v46  ;;  %v16251_v8 = vsel %vm5527_vm3, %v5529_v25, %v5525_v20  ;;  %vm5542_vm12 = vcmp.eq.f32.partialorder %v5541_v16, 8.507059e+37  ;;  %vm16253_vm4 = vcmp.eq.f32.partialorder %v5556_v48, 8.507059e+37 }
 0x764   : > { %v5571_v52 = vand.u32 2147483647, %v15877_v37  ;;  %v16258_v35 = vsel %vm5542_vm12, %v5544_v63, %v5540_v14  ;;  %vm5567_vm2 = vweird.f32 %v15877_v37  ;;  %v5580_v12 = vmul.f32 %v15965_v2, %v5579_v60 }
 0x765   : > { %v5663_v18 = vmul.f32 %v16125_v56, %v16055_v15  ;;  %vm5568_vm13 = vweird.f32 %v15958_v22  ;;  %v5573_v31 = vand.u32 2147483648, %v15877_v37  ;;  %v5594_v40 = vsub.f32 1.0, %v5593_v39 }
 0x766   : > { %v5678_v20 = vmul.f32 %v16138_v5, %v16062_v3  ;;  %v5555_v16 = vsel %vm16266_vm5, %v15952_v4, %v5551_v47  ;;  %v5559_v48 = vor.u32 1.1754944e-38, %v5558_v1  ;;  %v5566_v25 = vadd.f32 %v15958_v22, %v5565_v17  ;;  %vm16296_vm6 = vmor %vm5567_vm2, %vm5568_vm13 }
 0x767   : > { %v5649_v45 = vsub.f32 1.0, %v5648_v33  ;;  %vm16278_vm0 = vcmp.eq.f32.partialorder %v5571_v52, 8.507059e+37  ;;  %vm5582_vm14 = vweird.f32 %v15884_v34  ;;  %vm5583_vm3 = vweird.f32 %v15965_v2 }
 0x768   : > { %v5586_v60 = vand.u32 2147483647, %v15884_v34  ;;  %v5581_v14 = vadd.f32 %v15965_v2, %v5580_v12  ;;  %v5588_v63 = vand.u32 2147483648, %v15884_v34  ;;  %v5601_v4 = vand.u32 2147483647, %v18672_v58  ;;  %vm16312_vm15 = vmor %vm5582_vm14, %vm5583_vm3 }
 0x769   : > { %v5664_v39 = vsub.f32 1.0, %v5663_v18  ;;  %v16290_v47 = vsel %vm16253_vm4, %v5559_v48, %v5555_v16  ;;  %v5574_v17 = vor.u32 1.1754944e-38, %v5573_v31  ;;  %v5595_v33 = vmul.f32 %v18673_v27, %v5594_v40  ;;  %v18706_v31 = vld [vmem:[#allocation50_spill] sm:$0xff] }
 0x76a   : > { %v5679_v52 = vsub.f32 1.0, %v5678_v20  ;;  %v5570_v12 = vsel %vm16296_vm6, %v15958_v22, %v5566_v25  ;;  %v5603_v30 = vand.u32 2147483648, %v18672_v58  ;;  %v5650_v18 = vmul.f32 %v16119_v7, %v5649_v45 }
 0x76b   : > { %v5693_v49 = vmul.f32 %v16154_v32, %v16076_v0  ;;  %vm16316_vm1 = vcmp.eq.f32.partialorder %v5586_v60, 8.507059e+37  ;;  %vm5597_vm12 = vweird.f32 %v18672_v58  ;;  %vm5598_vm4 = vweird.f32 %v18673_v27 }
 0x76c   : > { %v5656_v22 = vand.u32 2147483647, %v16049_v46  ;;  %v5585_v40 = vsel %vm16312_vm15, %v15965_v2, %v5581_v14  ;;  %v5589_v20 = vor.u32 1.1754944e-38, %v5588_v63  ;;  %vm16326_vm2 = vcmp.eq.f32.partialorder %v5601_v4, 8.507059e+37  ;;  %vm16354_vm3 = vmor %vm5597_vm12, %vm5598_vm4 }
 0x76d   : > { %v5665_v16 = vmul.f32 %v16125_v56, %v5664_v39  ;;  %v16333_v48 = vsel %vm16278_vm0, %v5574_v17, %v5570_v12  ;;  %v5596_v25 = vadd.f32 %v18673_v27, %v5595_v33  ;;  %vm5652_vm5 = vweird.f32 %v16049_v46  ;;  %v18696_v39 = vld [vmem:[#allocation48_spill] sm:$0xff] }
 0x76e   : > { %v5680_v45 = vmul.f32 %v16138_v5, %v5679_v52  ;;  %v5604_v60 = vor.u32 1.1754944e-38, %v5603_v30  ;;  %v5651_v2 = vadd.f32 %v16119_v7, %v5650_v18  ;;  %vm5653_vm13 = vweird.f32 %v16119_v7 }
 0x76f   : > { %v5694_v14 = vsub.f32 1.0, %v5693_v49  ;;  %v16342_v63 = vsel %vm16316_vm1, %v5589_v20, %v5585_v40  ;;  %vm16344_vm14 = vcmp.eq.f32.partialorder %v5656_v22, 8.507059e+37  ;;  %v5658_v4 = vand.u32 2147483648, %v16049_v46  ;;  %vm16367_vm15 = vmor %vm5652_vm5, %vm5653_vm13 }
 0x770   : > { %vm5667_vm0 = vweird.f32 %v16055_v15  ;;  %v5666_v1 = vadd.f32 %v16125_v56, %v5665_v16  ;;  %vm5668_vm6 = vweird.f32 %v16125_v56  ;;  %v5671_v17 = vand.u32 2147483647, %v16055_v15 }
 0x771   : > { %v5673_v33 = vand.u32 2147483648, %v16055_v15  ;;  %v5600_v52 = vsel %vm16354_vm3, %v18673_v27, %v5596_v25  ;;  %v5681_v12 = vadd.f32 %v16138_v5, %v5680_v45  ;;  %vm5683_vm1 = vweird.f32 %v16138_v5  ;;  %vm16383_vm12 = vmor %vm5667_vm0, %vm5668_vm6 }
 0x772   : > { %v5708_v30 = vmul.f32 %v16170_v41, %v16087_v55  ;;  %v5655_v18 = vsel %vm16367_vm15, %v16119_v7, %v5651_v2  ;;  %v5686_v49 = vand.u32 2147483647, %v16062_v3  ;;  %v5688_v27 = vand.u32 2147483648, %v16062_v3 }
 0x773   : > { %v5695_v46 = vmul.f32 %v16154_v32, %v5694_v14  ;;  %v5659_v37 = vor.u32 1.1754944e-38, %v5658_v4  ;;  %vm5682_vm4 = vweird.f32 %v16062_v3  ;;  %v5703_v22 = vand.u32 2147483648, %v16076_v0 }
 0x774   : > { %v5723_v7 = vmul.f32 %v16184_v59, %v16091_v43  ;;  %v5605_v40 = vsel %vm16326_vm2, %v5604_v60, %v5600_v52  ;;  %v5670_v20 = vsel %vm16383_vm12, %v16125_v56, %v5666_v1  ;;  %vm5672_vm5 = vcmp.eq.f32.partialorder %v5671_v17, 8.507059e+37  ;;  %vm5684_vm13 = vmor %vm5682_vm4, %vm5683_vm1 }
 0x775   : > { %v5674_v15 = vor.u32 1.1754944e-38, %v5673_v33  ;;  %v16400_v3 = vsel %vm16344_vm14, %v5659_v37, %v5655_v18  ;;  %v5685_v16 = vsel %vm5684_vm13, %v16138_v5, %v5681_v12  ;;  %v5701_v25 = vand.u32 2147483647, %v16076_v0  ;;  %v18702_v12 = vld [vmem:[#allocation47_spill] sm:$0xff] }
 0x776   : > { %v5709_v45 = vsub.f32 1.0, %v5708_v30  ;;  %vm5687_vm0 = vcmp.eq.f32.partialorder %v5686_v49, 8.507059e+37  ;;  %v5689_v34 = vor.u32 1.1754944e-38, %v5688_v27  ;;  %v5696_v60 = vadd.f32 %v16154_v32, %v5695_v46  ;;  %v18704_v49 = vld [vmem:[#allocation49_spill] sm:$0xff] }
 0x777   : > { %vm5698_vm2 = vweird.f32 %v16154_v32  ;;  %v16406_v56 = vsel %vm5672_vm5, %v5674_v15, %v5670_v20  ;;  %vm5697_vm3 = vweird.f32 %v16076_v0  ;;  %v5704_v2 = vor.u32 1.1754944e-38, %v5703_v22 }
 0x778   : > { %v5724_v14 = vsub.f32 1.0, %v5723_v7  ;;  %v16409_v6 = vsel %vm5687_vm0, %v5689_v34, %v5685_v16  ;;  %vm5713_vm14 = vweird.f32 %v16170_v41  ;;  %v5716_v5 = vand.u32 2147483647, %v16087_v55  ;;  %vm16418_vm6 = vmor %vm5697_vm3, %vm5698_vm2 }
 0x779   : > { %v5753_v4 = vmul.f32 %v16208_v13, %v16107_v28  ;;  %v18697_v1 = vrot.slane %v18696_v39, 7  ;;  %vm16422_vm15 = vcmp.eq.f32.partialorder %v5701_v25, 8.507059e+37  ;;  %v5710_v52 = vmul.f32 %v16170_v41, %v5709_v45  ;;  %v18710_v45 = vld [vmem:[#allocation51_spill] sm:$0xff]  ;;  %v18713_v39 = vld [vmem:[#allocation53_spill] sm:$0xff] }
 0x77a   : > { %v5718_v58 = vand.u32 2147483648, %v16087_v55  ;;  %v18703_v30 = vrot.slane %v18702_v12, 7  ;;  %v18705_v27 = vrot.slane %v18704_v49, 7  ;;  %v5700_v46 = vsel %vm16418_vm6, %v16154_v32, %v5696_v60 }
 0x77b   : > { %v5791_v17 = vmul.f32 %v18697_v1, %v16191_v23  ;;  %vm5712_vm1 = vweird.f32 %v16087_v55  ;;  %vm5728_vm12 = vweird.f32 %v16184_v59  ;;  %v5738_v37 = vmul.f32 %v16199_v57, %v16097_v21 }
 0x77c   : > { %v5792_v18 = vmul.f32 %v18703_v30, %v16214_v9  ;;  %v5793_v23 = vmul.f32 %v18705_v27, %v16251_v8  ;;  %v18707_v22 = vrot.slane %v18706_v31, 7  ;;  %v5725_v9 = vmul.f32 %v16184_v59, %v5724_v14  ;;  %v18708_v8 = vld [vmem:[#allocation54_spill] sm:$0xff]  ;;  %vm16506_vm13 = vmor %vm5712_vm1, %vm5713_vm14 }
 0x77d   : > { %vm5727_vm4 = vweird.f32 %v16091_v43  ;;  %v18709_v20 = vrot.slane %v18708_v8, 7  ;;  %v5802_v32 = vmul.f32 %v16000_v62, %v16064_v53  ;;  %v5803_v16 = vmul.f32 %v16006_v42, %v16094_v50 }
 0x77e   : > { %v5794_v7 = vmul.f32 %v18707_v22, %v16258_v35  ;;  %v5754_v25 = vsub.f32 1.0, %v5753_v4  ;;  %v18711_v34 = vrot.slane %v18710_v45, 7  ;;  %v5804_v35 = vmul.f32 %v16010_v54, %v16128_v11  ;;  %vm16524_vm14 = vmor %vm5727_vm4, %vm5728_vm12 }
 0x77f   : > { %v5795_v15 = vmul.f32 %v18709_v20, %v16290_v47  ;;  %v16459_v14 = vadd.f32 %v16030_v38, %v5791_v17  ;;  %v18714_v47 = vrot.slane %v18713_v39, 7  ;;  %v5805_v62 = vmul.f32 %v16017_v44, %v16180_v29 }
 0x780   : > { %v5796_v60 = vmul.f32 %v18711_v34, %v16333_v48  ;;  %v16467_v42 = vadd.f32 %v16040_v36, %v5792_v18  ;;  %v16470_v53 = vadd.f32 %v16060_v10, %v5793_v23  ;;  %v5739_v50 = vsub.f32 1.0, %v5738_v37  ;;  %v18717_v48 = vld [vmem:[#allocation46_spill] sm:$0xff] }
 0x781   : > { %18712 = vst [vmem:[#allocation52_spill] sm:$0xff] %v16459_v14  ;;  %v5797_v1 = vmul.f32 %v18714_v47, %v16342_v63  ;;  %v18718_v4 = vrot.slane %v18717_v48, 7  ;;  %v5806_v38 = vmul.f32 %v16052_v19, %v16228_v61  ;;  %v16476_v11 = vadd.f32 %v5802_v32, %v5794_v7 }
 0x782   : > { %18715 = vst [vmem:[#allocation45_spill] sm:$0xff] %v16467_v42  ;;  %vm16478_vm5 = vcmp.eq.f32.partialorder %v5716_v5, 8.507059e+37  ;;  %v5719_v44 = vor.u32 1.1754944e-38, %v5718_v58  ;;  %v5731_v36 = vand.u32 2147483647, %v16091_v43  ;;  %v16483_v29 = vadd.f32 %v5803_v16, %v5795_v15 }
 0x783   : > { %18716 = vst [vmem:[#allocation48_spill] sm:$0xff] %v16470_v53  ;;  %v5798_v54 = vmul.f32 %v18718_v4, %v5605_v40  ;;  %8114 = vtanh.f32 %v16459_v14  ;;  %v5711_v10 = vadd.f32 %v16170_v41, %v5710_v52  ;;  %v5733_v40 = vand.u32 2147483648, %v16091_v43 }
 0x784   : > { %18719 = vst [vmem:[#allocation47_spill] sm:$0xff] %v16476_v11  ;;  %v16488_v17 = vadd.f32 %v5804_v35, %v5796_v60  ;;  %8116 = vtanh.f32 %v16467_v42  ;;  %v5726_v19 = vadd.f32 %v16184_v59, %v5725_v9  ;;  %v5755_v61 = vmul.f32 %v16208_v13, %v5754_v25 }
 0x785   : > { %18722 = vst [vmem:[#allocation49_spill] sm:$0xff] %v16483_v29  ;;  %v16493_v5 = vadd.f32 %v5805_v62, %v5797_v1  ;;  %8118 = vtanh.f32 %v16470_v53  ;;  %v5705_v33 = vsel %vm16422_vm15, %v5704_v2, %v5700_v46  ;;  %v5740_v58 = vmul.f32 %v16199_v57, %v5739_v50 }
 0x786   : > { %18723 = vst [vmem:[#allocation50_spill] sm:$0xff] %v16488_v17  ;;  %v16499_v52 = vadd.f32 %v5806_v38, %v5798_v54  ;;  %8120 = vtanh.f32 %v16476_v11  ;;  %vm16510_vm0 = vcmp.eq.f32.partialorder %v5731_v36, 8.507059e+37  ;;  %vm5742_vm2 = vweird.f32 %v16097_v21 }
 0x787   : > { %18724 = vst [vmem:[#allocation54_spill] sm:$0xff] %v16493_v5  ;;  %vm5743_vm3 = vweird.f32 %v16199_v57  ;;  %8122 = vtanh.f32 %v16483_v29  ;;  %v5715_v2 = vsel %vm16506_vm13, %v16170_v41, %v5711_v10  ;;  %v5734_v0 = vor.u32 1.1754944e-38, %v5733_v40 }
 0x788   : > { %18725 = vst [vmem:[#allocation51_spill] sm:$0xff] %v16499_v52  ;;  %v5748_v18 = vand.u32 2147483648, %v16097_v21  ;;  %8124 = vtanh.f32 %v16488_v17  ;;  %v5730_v27 = vsel %vm16524_vm14, %v16184_v59, %v5726_v19  ;;  %v5756_v41 = vadd.f32 %v16208_v13, %v5755_v61  ;;  %vm16559_vm12 = vmor %vm5742_vm2, %vm5743_vm3 }
 0x789   : > { %v8115_v49 = vpop.eup %8114  ;;  %vm5758_vm6 = vweird.f32 %v16208_v13  ;;  %8126 = vtanh.f32 %v16493_v5  ;;  %v5741_v23 = vadd.f32 %v16199_v57, %v5740_v58  ;;  %v5763_v46 = vand.u32 2147483648, %v16107_v28 }
 0x78a   : > { %v8117_v43 = vpop.eup %8116  ;;  %8128 = vtanh.f32 %v16499_v52  ;;  %v5823_v37 = vmul.f32 %v8115_v49, %v16400_v3  ;;  %v5746_v22 = vand.u32 2147483647, %v16097_v21  ;;  %vm5757_vm15 = vweird.f32 %v16107_v28 }
 0x78b   : > { %v8119_v31 = vpop.eup %8118  ;;  %v5761_v59 = vand.u32 2147483647, %v16107_v28  ;;  %v5824_v7 = vmul.f32 %v8117_v43, %v16406_v56  ;;  %v5720_v8 = vsel %vm16478_vm5, %v5719_v44, %v5715_v2  ;;  %v5749_v20 = vor.u32 1.1754944e-38, %v5748_v18  ;;  %vm16548_vm1 = vmor %vm5757_vm15, %vm5758_vm6  ;;  %v18739_v43 = vld [vmem:[#allocation10_spill] sm:$0xff] }
 0x78c   : > { %v8121_v9 = vpop.eup %8120  ;;  %v5825_v3 = vmul.f32 %v8119_v31, %v16409_v6  ;;  %v5839_v32 = vrot.slane %v5823_v37, 6  ;;  %v5735_v28 = vsel %vm16510_vm0, %v5734_v0, %v5730_v27  ;;  %v5760_v25 = vsel %vm16548_vm1, %v16208_v13, %v5756_v41  ;;  %v18738_v27 = vld [vmem:[#allocation22_spill] sm:$0xff]  ;;  %v18741_v31 = vld [vmem:[#allocation15_spill] sm:$0xff] }
 0x78d   : > { %v8123_v16 = vpop.eup %8122  ;;  %v5826_v45 = vmul.f32 %v8121_v9, %v5705_v33  ;;  %v5840_v34 = vrot.slane %v5824_v7, 5  ;;  %v5745_v60 = vsel %vm16559_vm12, %v16199_v57, %v5741_v23  ;;  %v5764_v35 = vor.u32 1.1754944e-38, %v5763_v46  ;;  %v18740_v46 = vld [vmem:[#allocation11_spill] sm:$0xff]  ;;  %v18743_v9 = vld [vmem:[#allocation17_spill] sm:$0xff] }
 0x78e   : > { %v8125_v6 = vpop.eup %8124  ;;  %v5827_v39 = vmul.f32 %v8123_v16, %v5720_v8  ;;  %v5842_v47 = vrot.slane %v5825_v3, 4  ;;  %vm5762_vm4 = vcmp.eq.f32.partialorder %v5761_v59, 8.507059e+37  ;;  %vm5747_vm5 = vcmp.eq.f32.partialorder %v5746_v22, 8.507059e+37  ;;  %v18742_v59 = vld [vmem:[#allocation16_spill] sm:$0xff]  ;;  %v18745_v16 = vld [vmem:[#allocation19_spill] sm:$0xff] }
 0x78f   : > { %v8127_v1 = vpop.eup %8126  ;;  %v5828_v21 = vmul.f32 %v8125_v6, %v5735_v28  ;;  %v5841_v62 = vsel %vm17776_vm7, %v5840_v34, %v5839_v32  ;;  %v5844_v50 = vrot.slane %v5826_v45, 3  ;;  %v5765_v4 = vsel %vm5762_vm4, %v5764_v35, %v5760_v25 }
 0x790   : > { %v8129_v48 = vpop.eup %8128  ;;  %v5843_v13 = vsel %vm17775_vm8, %v5842_v47, %v5841_v62  ;;  %v5846_v54 = vrot.slane %v5827_v39, 2  ;;  %v5750_v38 = vsel %vm5747_vm5, %v5749_v20, %v5745_v60  ;;  %vm18736_vm13 = vcmask 1046534   ;;  %v18744_v20 = vld [vmem:[#allocation18_spill] sm:$0xff]  ;;  %v18746_v47 = vld [vmem:[#allocation20_spill] sm:$0xff] }
 0x791   : > { %v5830_v63 = vmul.f32 %v8129_v48, %v5765_v4  ;;  %v5845_v44 = vsel %vm17774_vm9, %v5844_v50, %v5843_v13  ;;  %v5848_v57 = vrot.slane %v5828_v21, 1  ;;  %v5829_v36 = vmul.f32 %v8127_v1, %v5750_v38 }
 0x792   : > { %v5847_v10 = vsel %vm17773_vm10, %v5846_v54, %v5845_v44  ;;  %vm18737_vm0 = vcmask 1047559  }
 0x793   : > { %v5849_v40 = vsel %vm17772_vm11, %v5848_v57, %v5847_v10  ;;  %v5851_v19 = vrot.slane %v5830_v63, 7 }
 0x794   : > { %v5850_v61 = vsel %vm18736_vm13, %v5829_v36, %v5849_v40 }
 0x795   : > { %v5852_v33 = vsel %vm18737_vm0, %v5851_v19, %v5850_v61  ;;  %v18747_v19 = vld [vmem:[#allocation24_spill] sm:$0xff] }
 0x796   : > { %5870 = vmatmul.f32.vlgmr.msra.gmra.mxu0 %v5852_v33  ;;  %5890 = vmatmul.f32.vlgmr.msra.gmra.mxu1 %v5852_v33 }
 0x797   : > { %5910 = vmatmul.f32.vlgmr.msra.gmra.mxu2 %v5852_v33  ;;  %5930 = vmatmul.f32.vlgmr.msra.gmra.mxu3 %v5852_v33 }
 0x813   : > { %v5871_v58 = vpop.f32.mrf.mxu0  ;;  %v5891_v32 = vpop.f32.mrf.mxu1 }
 0x814   : > { %v5938_v12 = vrot.slane %v5871_v58, 1  ;;  %v5942_v30 = vrot.slane %v5871_v58, 2  ;;  %v5946_v2 = vrot.slane %v5871_v58, 3  ;;  %v5950_v55 = vrot.slane %v5871_v58, 4 }
 0x815   : > { %v5954_v0 = vrot.slane %v5871_v58, 5  ;;  %v5958_v18 = vrot.slane %v5871_v58, 6  ;;  %v5962_v49 = vrot.slane %v5871_v58, 7  ;;  %v6026_v41 = vadd.f32 %v5871_v58, %v18738_v27 }
 0x816   : > { %v5998_v23 = vadd.f32 %v5938_v12, %v18739_v43  ;;  %v6002_v37 = vadd.f32 %v5942_v30, %v18740_v46  ;;  %v6006_v22 = vadd.f32 %v5946_v2, %v18741_v31  ;;  %v6010_v7 = vadd.f32 %v5950_v55, %v18742_v59  ;;  %v18748_v30 = vld [vmem:[#allocation27_spill] sm:$0xff] }
 0x817   : > { %v6014_v8 = vadd.f32 %v5954_v0, %v18743_v9  ;;  %v6018_v15 = vadd.f32 %v5958_v18, %v18744_v20  ;;  %v7167_v3 = vmul.f32 -1.442695, %v6026_v41  ;;  %v6022_v28 = vadd.f32 %v5962_v49, %v18745_v16  ;;  %v18749_v49 = vld [vmem:[#allocation30_spill] sm:$0xff] }
 0x818   : > { %v7160_v56 = vmul.f32 -1.442695, %v5998_v23  ;;  %v7161_v25 = vmul.f32 -1.442695, %v6002_v37  ;;  %v7162_v45 = vmul.f32 -1.442695, %v6006_v22 }
 0x819   : > { %v7163_v34 = vmul.f32 -1.442695, %v6010_v7  ;;  %8130 = vpow2.f32 %v7167_v3  ;;  %v7164_v6 = vmul.f32 -1.442695, %v6014_v8  ;;  %v5939_v60 = vrot.slane %v5891_v32, 1  ;;  %v18750_v23 = vld [vmem:[#allocation33_spill] sm:$0xff] }
 0x81a   : > { %8132 = vpow2.f32 %v7160_v56  ;;  %v7165_v35 = vmul.f32 -1.442695, %v6018_v15  ;;  %v7166_v39 = vmul.f32 -1.442695, %v6022_v28  ;;  %v5943_v21 = vrot.slane %v5891_v32, 2  ;;  %v18751_v37 = vld [vmem:[#allocation36_spill] sm:$0xff]  ;;  %v5911_v56 = vpop.f32.mrf.mxu2 }
 0x81b   : > { %8134 = vpow2.f32 %v7161_v25  ;;  %v5999_v1 = vadd.f32 %v5939_v60, %v18746_v47  ;;  %v5947_v50 = vrot.slane %v5891_v32, 3  ;;  %v5951_v54 = vrot.slane %v5891_v32, 4  ;;  %v18752_v7 = vld [vmem:[#allocation39_spill] sm:$0xff]  ;;  %v18753_v3 = vld [vmem:[#allocation41_spill] sm:$0xff] }
 0x81c   : > { %8136 = vpow2.f32 %v7162_v45  ;;  %v5955_v44 = vrot.slane %v5891_v32, 5  ;;  %v5959_v57 = vrot.slane %v5891_v32, 6  ;;  %v5963_v40 = vrot.slane %v5891_v32, 7 }
 0x81d   : > { %8138 = vpow2.f32 %v7163_v34  ;;  %v7168_v48 = vmul.f32 -1.442695, %v5999_v1  ;;  %v6003_v61 = vadd.f32 %v5943_v21, %v18747_v19  ;;  %v6007_v2 = vadd.f32 %v5947_v50, %v18748_v30 }
 0x81e   : > { %8140 = vpow2.f32 %v7164_v6  ;;  %v6011_v27 = vadd.f32 %v5951_v54, %v18749_v49  ;;  %v6015_v46 = vadd.f32 %v5955_v44, %v18750_v23  ;;  %v6019_v31 = vadd.f32 %v5959_v57, %v18751_v37 }
 0x81f   : > { %v8131_v62 = vpop.eup %8130  ;;  %8142 = vpow2.f32 %v7165_v35  ;;  %v6023_v9 = vadd.f32 %v5963_v40, %v18752_v7  ;;  %v7169_v8 = vmul.f32 -1.442695, %v6003_v61  ;;  %v6027_v16 = vadd.f32 %v5891_v32, %v18753_v3 }
 0x820   : > { %v8133_v4 = vpop.eup %8132  ;;  %8144 = vpow2.f32 %v7166_v39  ;;  %v16585_v13 = vadd.f32 1.0, %v8131_v62  ;;  %v7170_v28 = vmul.f32 -1.442695, %v6007_v2  ;;  %v7171_v6 = vmul.f32 -1.442695, %v6011_v27  ;;  %v18754_v2 = vld [vmem:[#allocation21_spill] sm:$0xff] }
 0x821   : > { %v8135_v38 = vpop.eup %8134  ;;  %v16587_v63 = vadd.f32 1.0, %v8133_v4  ;;  %8146 = vpow2.f32 %v7168_v48  ;;  %v7172_v32 = vmul.f32 -1.442695, %v6015_v46  ;;  %v7173_v1 = vmul.f32 -1.442695, %v6019_v31  ;;  %v18755_v46 = vld [vmem:[#allocation25_spill] sm:$0xff] }
 0x822   : > { %v8137_v36 = vpop.eup %8136  ;;  %v16589_v10 = vadd.f32 1.0, %v8135_v38  ;;  %8148 = vrcp.f32 %v16585_v13  ;;  %v7174_v21 = vmul.f32 -1.442695, %v6023_v9  ;;  %v5940_v62 = vrot.slane %v5911_v56, 1  ;;  %v18757_v31 = vld [vmem:[#allocation28_spill] sm:$0xff]  ;;  %v18759_v9 = vld [vmem:[#allocation31_spill] sm:$0xff] }
 0x823   : > { %v8139_v33 = vpop.eup %8138  ;;  %v16594_v12 = vadd.f32 1.0, %v8137_v36  ;;  %8150 = vrcp.f32 %v16587_v63  ;;  %v7175_v48 = vmul.f32 -1.442695, %v6027_v16  ;;  %v5944_v4 = vrot.slane %v5911_v56, 2  ;;  %v18763_v16 = vld [vmem:[#allocation37_spill] sm:$0xff] }
 0x824   : > { %v8141_v55 = vpop.eup %8140  ;;  %v16599_v18 = vadd.f32 1.0, %v8139_v33  ;;  %8152 = vrcp.f32 %v16589_v10  ;;  %v5948_v54 = vrot.slane %v5911_v56, 3  ;;  %v5952_v44 = vrot.slane %v5911_v56, 4 }
 0x825   : > { %v8143_v41 = vpop.eup %8142  ;;  %v16603_v43 = vadd.f32 1.0, %v8141_v55  ;;  %8154 = vrcp.f32 %v16594_v12  ;;  %v5956_v57 = vrot.slane %v5911_v56, 5  ;;  %v5960_v36 = vrot.slane %v5911_v56, 6 }
 0x826   : > { %v8145_v22 = vpop.eup %8144  ;;  %v16608_v59 = vadd.f32 1.0, %v8143_v41  ;;  %8156 = vrcp.f32 %v16599_v18  ;;  %v5964_v33 = vrot.slane %v5911_v56, 7  ;;  %v16641_v55 = vadd.f32 %v5940_v62, %v18754_v2 }
 0x827   : > { %v8147_v20 = vpop.eup %8146  ;;  %v16612_v15 = vadd.f32 1.0, %v8145_v22  ;;  %8158 = vrcp.f32 %v16603_v43  ;;  %v16652_v37 = vadd.f32 %v5944_v4, %v18755_v46  ;;  %v16655_v22 = vadd.f32 %v5948_v54, %v18757_v31 }
 0x828   : > { %v16616_v25 = vpop.eup %8148  ;;  %8160 = vrcp.f32 %v16608_v59  ;;  %v16636_v61 = vadd.f32 1.0, %v8147_v20  ;;  %v18761_v20 = vld [vmem:[#allocation34_spill] sm:$0xff]  ;;  %vm6067_vm2 = vweird.f32 %v16587_v63  ;;  %v6073_v11 = vand.u32 2147483648, %v16587_v63 }
 0x829   : > { %v16621_v60 = vpop.eup %8150  ;;  %8162 = vrcp.f32 %v16612_v15  ;;  %v16649_v23 = vmul.f32 %v16616_v25, %v16585_v13  ;;  %18756 = vst [vmem:[#allocation53_spill] sm:$0xff] %v16652_v37  ;;  %v16661_v3 = vadd.f32 %v5956_v57, %v18761_v20  ;;  %v18767_v57 = vld [vmem:[#allocation43_spill] sm:$0xff]  ;;  %vm6082_vm1 = vweird.f32 %v16589_v10 }
 0x82a   : > { %v16626_v47 = vpop.eup %8152  ;;  %8164 = vpow2.f32 %v7169_v8  ;;  %v6063_v19 = vmul.f32 %v16621_v60, %v16587_v63  ;;  %18758 = vst [vmem:[#allocation46_spill] sm:$0xff] %v16655_v22  ;;  %v16658_v8 = vadd.f32 %v5952_v44, %v18759_v9  ;;  %v6225_v44 = vand.u32 2147483648, %v16636_v61 }
 0x82b   : > { %v16628_v50 = vpop.eup %8154  ;;  %8166 = vpow2.f32 %v7170_v28  ;;  %18762 = vst [vmem:[#allocation10_spill] sm:$0xff] %v16661_v3  ;;  %v16664_v28 = vadd.f32 %v5960_v36, %v18763_v16  ;;  %v16680_v36 = vadd.f32 %v5911_v56, %v18767_v57  ;;  %vm6068_vm3 = vweird.f32 %v16621_v60 }
 0x82c   : > { %v16630_v38 = vpop.eup %8156  ;;  %8168 = vpow2.f32 %v7171_v6  ;;  %18760 = vst [vmem:[#allocation22_spill] sm:$0xff] %v16658_v8  ;;  %v16689_v31 = vmul.f32 %v16628_v50, %v16594_v12  ;;  %vm16760_vm14 = vmor %vm6067_vm2, %vm6068_vm3  ;;  %vm6083_vm15 = vweird.f32 %v16626_v47  ;;  %vm6098_vm4 = vweird.f32 %v16628_v50 }
 0x82d   : > { %v16632_v40 = vpop.eup %8158  ;;  %8170 = vpow2.f32 %v7172_v32  ;;  %18764 = vst [vmem:[#allocation11_spill] sm:$0xff] %v16664_v28  ;;  %v6064_v32 = vsub.f32 1.0, %v6063_v19  ;;  %vm16825_vm12 = vmor %vm6082_vm1, %vm6083_vm15  ;;  %vm6097_vm5 = vweird.f32 %v16594_v12  ;;  %vm6113_vm13 = vweird.f32 %v16630_v38 }
 0x82e   : > { %v16638_v30 = vpop.eup %8160  ;;  %8172 = vpow2.f32 %v7173_v1  ;;  %18768 = vst [vmem:[#allocation16_spill] sm:$0xff] %v16680_v36  ;;  %v16700_v20 = vmul.f32 %v16632_v40, %v16603_v43  ;;  %vm16861_vm3 = vmor %vm6097_vm5, %vm6098_vm4  ;;  %vm6219_vm15 = vweird.f32 %v16636_v61  ;;  %vm6128_vm4 = vweird.f32 %v16632_v40 }
 0x82f   : > { %v16645_v41 = vpop.eup %8162  ;;  %8174 = vpow2.f32 %v7174_v21  ;;  %v18765_v21 = vld [vmem:[#allocation40_spill] sm:$0xff]  ;;  %vm6143_vm11 = vweird.f32 %v16638_v30 }
 0x830   : > { %v8165_v7 = vpop.eup %8164  ;;  %8176 = vpow2.f32 %v7175_v48  ;;  %v16670_v62 = vadd.f32 %v5964_v33, %v18765_v21  ;;  %v16674_v48 = vmul.f32 %v16626_v47, %v16589_v10  ;;  %v16712_v57 = vmul.f32 %v16645_v41, %v16612_v15 }
 0x831   : > { %v8167_v6 = vpop.eup %8166  ;;  %v16666_v1 = vadd.f32 1.0, %v8165_v7  ;;  %8178 = vrcp.f32 %v16636_v61  ;;  %v16693_v7 = vmul.f32 %v16630_v38, %v16599_v18 }
 0x832   : > { %18766 = vst [vmem:[#allocation15_spill] sm:$0xff] %v16670_v62  ;;  %v8169_v4 = vpop.eup %8168  ;;  %v16676_v54 = vadd.f32 1.0, %v8167_v6  ;;  %v6065_v6 = vmul.f32 %v16621_v60, %v6064_v32  ;;  %v16722_v32 = vor.u32 1.1754944e-38, %v6225_v44  ;;  %v6071_v44 = vand.u32 2147483647, %v16587_v63 }
 0x833   : > { %v8171_v19 = vpop.eup %8170  ;;  %v16683_v46 = vadd.f32 1.0, %v8169_v4  ;;  %8180 = vrcp.f32 %v16666_v1  ;;  %v16708_v4 = vmul.f32 %v16638_v30, %v16608_v59  ;;  %v6240_v45 = vand.u32 2147483648, %v16666_v1 }
 0x834   : > { %v8173_v33 = vpop.eup %8172  ;;  %v16695_v56 = vadd.f32 1.0, %v8171_v19  ;;  %8182 = vrcp.f32 %v16676_v54  ;;  %vm16772_vm6 = vcmp.eq.f32.partialorder %v6071_v44, 8.507059e+37 }
 0x835   : > { %v8175_v9 = vpop.eup %8174  ;;  %v16702_v16 = vadd.f32 1.0, %v8173_v33  ;;  %8184 = vrcp.f32 %v16683_v46  ;;  %v6079_v33 = vsub.f32 1.0, %v16674_v48  ;;  %v6066_v48 = vadd.f32 %v16621_v60, %v6065_v6 }
 0x836   : > { %v8177_v21 = vpop.eup %8176  ;;  %v16714_v19 = vadd.f32 1.0, %v8175_v9  ;;  %8186 = vrcp.f32 %v16695_v56  ;;  %v6255_v6 = vand.u32 2147483648, %v16676_v54  ;;  %v6270_v24 = vand.u32 2147483648, %v16683_v46 }
 0x837   : > { %v16717_v39 = vpop.eup %8178  ;;  %v16720_v35 = vadd.f32 1.0, %v8177_v21  ;;  %8188 = vrcp.f32 %v16702_v16  ;;  %v6285_v51 = vand.u32 2147483648, %v16695_v56  ;;  %v6300_v52 = vand.u32 2147483648, %v16702_v16 }
 0x838   : > { %v6215_v9 = vmul.f32 %v16717_v39, %v16636_v61  ;;  %8190 = vrcp.f32 %v16714_v19  ;;  %v6315_v17 = vand.u32 2147483648, %v16714_v19  ;;  %v6070_v29 = vsel %vm16760_vm14, %v16621_v60, %v6066_v48 }
 0x839   : > { %v16730_v0 = vpop.eup %8180  ;;  %8192 = vrcp.f32 %v16720_v35  ;;  %v16777_v42 = vor.u32 1.1754944e-38, %v6240_v45  ;;  %v16783_v8 = vor.u32 1.1754944e-38, %v6255_v6  ;;  %v16785_v5 = vor.u32 1.1754944e-38, %v6270_v24 }
 0x83a   : > { %v16736_v21 = vpop.eup %8182  ;;  %v6230_v2 = vmul.f32 %v16730_v0, %v16666_v1  ;;  %v6216_v27 = vsub.f32 1.0, %v6215_v9  ;;  %v16790_v44 = vor.u32 1.1754944e-38, %v6285_v51  ;;  %v16792_v63 = vor.u32 1.1754944e-38, %v6300_v52 }
 0x83b   : > { %v16743_v34 = vpop.eup %8184  ;;  %v6245_v58 = vmul.f32 %v16736_v21, %v16676_v54  ;;  %v16798_v37 = vor.u32 1.1754944e-38, %v6315_v17  ;;  %v6080_v24 = vmul.f32 %v16626_v47, %v6079_v33  ;;  %vm6220_vm0 = vweird.f32 %v16717_v39 }
 0x83c   : > { %v16750_v26 = vpop.eup %8186  ;;  %v6260_v49 = vmul.f32 %v16743_v34, %v16683_v46  ;;  %v6231_v53 = vsub.f32 1.0, %v6230_v2  ;;  %v16788_v48 = vmul.f32 %v16717_v39, %v6216_v27  ;;  %18773 = vst [vmem:[#allocation17_spill] sm:$0xff] %v16792_v63  ;;  %vm6235_vm1 = vweird.f32 %v16730_v0 }
 0x83d   : > { %v16764_v36 = vpop.eup %8188  ;;  %v6275_v9 = vmul.f32 %v16750_v26, %v16695_v56  ;;  %v6246_v28 = vsub.f32 1.0, %v6245_v58  ;;  %18774 = vst [vmem:[#allocation18_spill] sm:$0xff] %v16798_v37  ;;  %v6081_v17 = vadd.f32 %v16626_v47, %v6080_v24  ;;  %v18778_v24 = vsub.f32 1.0, %v16689_v31 }
 0x83e   : > { %v6290_v14 = vmul.f32 %v16764_v36, %v16702_v16  ;;  %v16781_v3 = vpop.eup %8190  ;;  %v6261_v22 = vsub.f32 1.0, %v6260_v49  ;;  %v6330_v49 = vand.u32 2147483648, %v16720_v35  ;;  %v16803_v6 = vmul.f32 %v16730_v0, %v6231_v53 }
 0x83f   : > { %v6276_v60 = vsub.f32 1.0, %v6275_v9  ;;  %v6305_v58 = vmul.f32 %v16781_v3, %v16714_v19  ;;  %v16796_v45 = vpop.eup %8192  ;;  %v16806_v51 = vmul.f32 %v16736_v21, %v6246_v28  ;;  %v6074_v53 = vor.u32 1.1754944e-38, %v6073_v11 }
 0x840   : > { %v6291_v2 = vsub.f32 1.0, %v6290_v14  ;;  %v6320_v27 = vmul.f32 %v16796_v45, %v16720_v35  ;;  %v16811_v9 = vmul.f32 %v16743_v34, %v6261_v22  ;;  %v6088_v28 = vand.u32 2147483648, %v16589_v10 }
 0x841   : > { %v6306_v52 = vsub.f32 1.0, %v6305_v58  ;;  %v16814_v14 = vmul.f32 %v16750_v26, %v6276_v60  ;;  %v16823_v37 = vor.u32 1.1754944e-38, %v6330_v49  ;;  %v6086_v60 = vand.u32 2147483647, %v16589_v10 }
 0x842   : > { %v6321_v33 = vsub.f32 1.0, %v6320_v27  ;;  %v16821_v58 = vmul.f32 %v16764_v36, %v6291_v2  ;;  %v6095_v27 = vmul.f32 %v16628_v50, %v18778_v24  ;;  %v16838_v63 = vsel %vm16772_vm6, %v6074_v53, %v6070_v29 }
 0x843   : > { %18775 = vst [vmem:[#allocation19_spill] sm:$0xff] %v16823_v37  ;;  %v16834_v11 = vmul.f32 %v16781_v3, %v6306_v52  ;;  %v6085_v2 = vsel %vm16825_vm12, %v16626_v47, %v6081_v17  ;;  %v6101_v49 = vand.u32 2147483647, %v16594_v12  ;;  %v6103_v10 = vand.u32 2147483648, %v16594_v12 }
 0x844   : > { %v6096_v37 = vadd.f32 %v16628_v50, %v6095_v27  ;;  %v18779_v31 = vsub.f32 1.0, %v16693_v7  ;;  %v16851_v62 = vmul.f32 %v16796_v45, %v6321_v33  ;;  %v6089_v29 = vor.u32 1.1754944e-38, %v6088_v28 }
 0x845   : > { %vm6087_vm2 = vcmp.eq.f32.partialorder %v6086_v60, 8.507059e+37  ;;  %v6116_v17 = vand.u32 2147483647, %v16599_v18  ;;  %v6118_v53 = vand.u32 2147483648, %v16599_v18  ;;  %vm16865_vm14 = vcmp.eq.f32.partialorder %v6101_v49, 8.507059e+37 }
 0x846   : > { %v6110_v52 = vmul.f32 %v16630_v38, %v18779_v31  ;;  %v16859_v7 = vsel %vm6087_vm2, %v6089_v29, %v6085_v2  ;;  %vm6112_vm6 = vweird.f32 %v16599_v18  ;;  %v18784_v12 = vsub.f32 1.0, %v16700_v20 }
 0x847   : > { %v6100_v60 = vsel %vm16861_vm3, %v16628_v50, %v6096_v37  ;;  %v6104_v24 = vor.u32 1.1754944e-38, %v6103_v10  ;;  %vm16880_vm12 = vmor %vm6112_vm6, %vm6113_vm13  ;;  %v6131_v18 = vand.u32 2147483647, %v16603_v43  ;;  %vm6250_vm5 = vweird.f32 %v16736_v21 }
 0x848   : > { %v6111_v47 = vadd.f32 %v16630_v38, %v6110_v52  ;;  %v6125_v28 = vmul.f32 %v16632_v40, %v18784_v12  ;;  %v6133_v50 = vand.u32 2147483648, %v16603_v43  ;;  %v18787_v37 = vsub.f32 1.0, %v16708_v4 }
 0x849   : > { %vm6234_vm13 = vweird.f32 %v16666_v1  ;;  %vm6117_vm2 = vcmp.eq.f32.partialorder %v6116_v17, 8.507059e+37  ;;  %v6119_v10 = vor.u32 1.1754944e-38, %v6118_v53  ;;  %vm6127_vm3 = vweird.f32 %v16603_v43 }
 0x84a   : > { %v6115_v20 = vsel %vm16880_vm12, %v16630_v38, %v6111_v47  ;;  %v6126_v2 = vadd.f32 %v16632_v40, %v6125_v28  ;;  %v6140_v49 = vmul.f32 %v16638_v30, %v18787_v37  ;;  %v6146_v31 = vand.u32 2147483647, %v16608_v59  ;;  %vm16911_vm9 = vmor %vm6127_vm3, %vm6128_vm4 }
 0x84b   : > { %vm6249_vm6 = vweird.f32 %v16676_v54  ;;  %v16901_v38 = vsel %vm16865_vm14, %v6104_v24, %v6100_v60  ;;  %vm6142_vm12 = vweird.f32 %v16608_v59  ;;  %v16907_v4 = vsel %vm6117_vm2, %v6119_v10, %v6115_v20 }
 0x84c   : > { %v6141_v52 = vadd.f32 %v16638_v30, %v6140_v49  ;;  %vm16915_vm8 = vcmp.eq.f32.partialorder %v6131_v18, 8.507059e+37  ;;  %v6148_v47 = vand.u32 2147483648, %v16608_v59  ;;  %v18792_v17 = vsub.f32 1.0, %v16712_v57  ;;  %vm16936_vm10 = vmor %vm6142_vm12, %vm6143_vm11 }
 0x84d   : > { %v6130_v22 = vsel %vm16911_vm9, %v16632_v40, %v6126_v2  ;;  %v6134_v33 = vor.u32 1.1754944e-38, %v6133_v50  ;;  %vm16927_vm4 = vcmp.eq.f32.partialorder %v6146_v31, 8.507059e+37  ;;  %vm6158_vm2 = vweird.f32 %v16645_v41 }
 0x84e   : > { %v6155_v53 = vmul.f32 %v16645_v41, %v18792_v17  ;;  %v6161_v40 = vand.u32 2147483647, %v16612_v15  ;;  %v6163_v60 = vand.u32 2147483648, %v16612_v15  ;;  %v18797_v24 = vsub.f32 1.0, %v16649_v23 }
 0x84f   : > { %vm6279_vm9 = vweird.f32 %v16695_v56  ;;  %v6145_v59 = vsel %vm16936_vm10, %v16638_v30, %v6141_v52  ;;  %vm6157_vm11 = vweird.f32 %v16612_v15  ;;  %vm6173_vm12 = vweird.f32 %v16616_v25  ;;  %vm16972_vm10 = vmor %vm6219_vm15, %vm6220_vm0 }
 0x850   : > { %v6156_v28 = vadd.f32 %v16645_v41, %v6155_v53  ;;  %v6170_v27 = vmul.f32 %v16616_v25, %v18797_v24  ;;  %v6176_v18 = vand.u32 2147483647, %v16585_v13  ;;  %vm6294_vm14 = vweird.f32 %v16702_v16  ;;  %vm16962_vm7 = vmor %vm6157_vm11, %vm6158_vm2  ;;  %v18825_v24 = vld [vmem:[#allocation17_spill] sm:$0xff] }
 0x851   : > { %vm6325_vm3 = vweird.f32 %v16796_v45  ;;  %v16958_v23 = vsel %vm16915_vm8, %v6134_v33, %v6130_v22  ;;  %v6149_v20 = vor.u32 1.1754944e-38, %v6148_v47  ;;  %v6178_v30 = vand.u32 2147483648, %v16585_v13 }
 0x852   : > { %v6171_v15 = vadd.f32 %v16616_v25, %v6170_v27  ;;  %vm6309_vm8 = vweird.f32 %v16714_v19  ;;  %v6160_v37 = vsel %vm16962_vm7, %v16645_v41, %v6156_v28  ;;  %vm6172_vm2 = vweird.f32 %v16585_v13  ;;  %vm17001_vm7 = vmor %vm6234_vm13, %vm6235_vm1 }
 0x853   : > { %v6218_v49 = vadd.f32 %v16717_v39, %v16788_v48  ;;  %v6233_v10 = vadd.f32 %v16730_v0, %v16803_v6  ;;  %vm6324_vm11 = vweird.f32 %v16720_v35  ;;  %v16988_v31 = vsel %vm16927_vm4, %v6149_v20, %v6145_v59  ;;  %vm16992_vm15 = vmor %vm6172_vm2, %vm6173_vm12  ;;  %v17113_v59 = vpop.f32.mrf.mxu3  ;;  %v18828_v20 = vld [vmem:[#allocation19_spill] sm:$0xff] }
 0x854   : > { %vm6162_vm0 = vcmp.eq.f32.partialorder %v6161_v40, 8.507059e+37  ;;  %v6164_v52 = vor.u32 1.1754944e-38, %v6163_v60  ;;  %v6223_v13 = vand.u32 2147483647, %v16636_v61  ;;  %v6175_v6 = vsel %vm16992_vm15, %v16616_v25, %v6171_v15  ;;  %vm17015_vm12 = vmor %vm6249_vm6, %vm6250_vm5  ;;  %v18830_v15 = vld [vmem:[#allocation52_spill] sm:$0xff]  ;;  %v18837_v48 = vld [vmem:[#allocation47_spill] sm:$0xff] }
 0x855   : > { %vm6177_vm4 = vcmp.eq.f32.partialorder %v6176_v18, 8.507059e+37  ;;  %v6238_v43 = vand.u32 2147483647, %v16666_v1  ;;  %v6248_v29 = vadd.f32 %v16736_v21, %v16806_v51  ;;  %v6179_v17 = vor.u32 1.1754944e-38, %v6178_v30  ;;  %v18839_v61 = vld [vmem:[#allocation15_spill] sm:$0xff] }
 0x856   : > { %v17019_v47 = vsel %vm6162_vm0, %v6164_v52, %v6160_v37  ;;  %v6222_v25 = vsel %vm16972_vm10, %v16717_v39, %v6218_v49  ;;  %v6253_v1 = vand.u32 2147483647, %v16676_v54  ;;  %v6237_v51 = vsel %vm17001_vm7, %v16730_v0, %v6233_v10  ;;  %v18833_v37 = vld [vmem:[#allocation45_spill] sm:$0xff]  ;;  %v18835_v52 = vld [vmem:[#allocation48_spill] sm:$0xff] }
 0x857   : > { %v6252_v53 = vsel %vm17015_vm12, %v16736_v21, %v6248_v29  ;;  %v6263_v22 = vadd.f32 %v16743_v34, %v16811_v9  ;;  %v6268_v33 = vand.u32 2147483647, %v16683_v46  ;;  %v17034_v12 = vsel %vm6177_vm4, %v6179_v17, %v6175_v6  ;;  %v18840_v17 = vld [vmem:[#allocation49_spill] sm:$0xff] }
 0x858   : > { %vm6224_vm1 = vcmp.eq.f32.partialorder %v6223_v13, 8.507059e+37  ;;  %v6278_v39 = vadd.f32 %v16750_v26, %v16814_v14  ;;  %v6293_v54 = vadd.f32 %v16764_v36, %v16821_v58  ;;  %vm18808_vm5 = vweird.f32 %v16743_v34 }
 0x859   : > { %vm18809_vm13 = vweird.f32 %v16683_v46  ;;  %v6227_v21 = vsel %vm6224_vm1, %v16722_v32, %v6222_v25  ;;  %vm6239_vm10 = vcmp.eq.f32.partialorder %v6238_v43, 8.507059e+37  ;;  %vm6254_vm2 = vcmp.eq.f32.partialorder %v6253_v1, 8.507059e+37 }
 0x85a   : > { %vm17044_vm6 = vmor %vm18809_vm13, %vm18808_vm5  ;;  %v6283_v9 = vand.u32 2147483647, %v16695_v56  ;;  %vm18812_vm0 = vweird.f32 %v16750_v26  ;;  %v6242_v46 = vsel %vm6239_vm10, %v16777_v42, %v6237_v51  ;;  %v6257_v58 = vsel %vm6254_vm2, %v16783_v8, %v6252_v53  ;;  %v18842_v51 = vld [vmem:[#allocation50_spill] sm:$0xff] }
 0x85b   : > { %vm17054_vm15 = vmor %vm6279_vm9, %vm18812_vm0  ;;  %v6267_v32 = vsel %vm17044_vm6, %v16743_v34, %v6263_v22  ;;  %v6298_v57 = vand.u32 2147483647, %v16702_v16  ;;  %vm18815_vm7 = vweird.f32 %v16764_v36  ;;  %vm6269_vm9 = vcmp.eq.f32.partialorder %v6268_v33, 8.507059e+37 }
 0x85c   : > { %vm17068_vm4 = vmor %vm6294_vm14, %vm18815_vm7  ;;  %v6282_v42 = vsel %vm17054_vm15, %v16750_v26, %v6278_v39  ;;  %v6308_v8 = vadd.f32 %v16781_v3, %v16834_v11  ;;  %v6313_v34 = vand.u32 2147483647, %v16714_v19  ;;  %vm18818_vm12 = vweird.f32 %v16781_v3 }
 0x85d   : > { %vm17082_vm1 = vmor %vm6309_vm8, %vm18818_vm12  ;;  %v6297_v28 = vsel %vm17068_vm4, %v16764_v36, %v6293_v54  ;;  %v6323_v26 = vadd.f32 %v16796_v45, %v16851_v62  ;;  %v6328_v40 = vand.u32 2147483647, %v16720_v35  ;;  %8194 = vtanh.f32 %v16641_v55  ;;  %v18823_v62 = vld [vmem:[#allocation53_spill] sm:$0xff]  ;;  %v18824_v55 = vld [vmem:[#allocation46_spill] sm:$0xff] }
 0x85e   : > { %vm17097_vm14 = vmor %vm6324_vm11, %vm6325_vm3  ;;  %v6272_v11 = vsel %vm6269_vm9, %v16785_v5, %v6267_v32  ;;  %vm6284_vm8 = vcmp.eq.f32.partialorder %v6283_v9, 8.507059e+37  ;;  %v6312_v36 = vsel %vm17082_vm1, %v16781_v3, %v6308_v8  ;;  %8196 = vtanh.f32 %v18823_v62  ;;  %v18826_v5 = vld [vmem:[#allocation22_spill] sm:$0xff]  ;;  %v18844_v54 = vld [vmem:[#allocation16_spill] sm:$0xff] }
 0x85f   : > { %v6287_v60 = vsel %vm6284_vm8, %v16790_v44, %v6282_v42  ;;  %vm6299_vm5 = vcmp.eq.f32.partialorder %v6298_v57, 8.507059e+37  ;;  %v6327_v35 = vsel %vm17097_vm14, %v16796_v45, %v6323_v26  ;;  %8198 = vtanh.f32 %v18824_v55  ;;  %v18827_v3 = vld [vmem:[#allocation18_spill] sm:$0xff]  ;;  %v18832_v45 = vld [vmem:[#allocation11_spill] sm:$0xff] }
 0x860   : > { %v6302_v27 = vsel %vm6299_vm5, %v18825_v24, %v6297_v28  ;;  %vm6314_vm3 = vcmp.eq.f32.partialorder %v6313_v34, 8.507059e+37  ;;  %vm6329_vm11 = vcmp.eq.f32.partialorder %v6328_v40, 8.507059e+37  ;;  %8200 = vtanh.f32 %v18826_v5  ;;  %v18829_v44 = vld [vmem:[#allocation10_spill] sm:$0xff]  ;;  %v18847_v57 = vld [vmem:[#allocation51_spill] sm:$0xff]  ;;  %v18851_v5 = vld [vmem:[#allocation29_spill] sm:$0xff] }
 0x861   : > { %v6317_v18 = vsel %vm6314_vm3, %v18827_v3, %v6312_v36  ;;  %v6332_v2 = vsel %vm6329_vm11, %v18828_v20, %v6327_v35  ;;  %8202 = vtanh.f32 %v18829_v44  ;;  %v18831_v30 = vrot.slane %v18830_v15, 7 }
 0x862   : > { %8204 = vtanh.f32 %v18832_v45  ;;  %v18834_v49 = vrot.slane %v18833_v37, 7  ;;  %v18836_v41 = vrot.slane %v18835_v52, 7  ;;  %v18838_v6 = vrot.slane %v18837_v48, 7 }
 0x863   : > { %v6518_v50 = vmul.f32 %v18831_v30, %v6227_v21  ;;  %v8195_v29 = vpop.eup %8194  ;;  %8206 = vtanh.f32 %v18839_v61  ;;  %v18841_v25 = vrot.slane %v18840_v17, 7  ;;  %v18843_v53 = vrot.slane %v18842_v51, 7 }
 0x864   : > { %v6519_v10 = vmul.f32 %v18834_v49, %v6242_v46  ;;  %v6520_v13 = vmul.f32 %v18836_v41, %v6257_v58  ;;  %v6521_v43 = vmul.f32 %v18838_v6, %v6272_v11  ;;  %v5941_v33 = vrot.slane %v17113_v59, 1  ;;  %v8197_v39 = vpop.eup %8196  ;;  %v18845_v46 = vld [vmem:[#allocation54_spill] sm:$0xff]  ;;  %v18853_v49 = vld [vmem:[#allocation35_spill] sm:$0xff] }
 0x865   : > { %v6522_v1 = vmul.f32 %v18841_v25, %v6287_v60  ;;  %v6523_v22 = vmul.f32 %v18843_v53, %v6302_v27  ;;  %8208 = vtanh.f32 %v18844_v54  ;;  %v6526_v0 = vmul.f32 %v8195_v29, %v16838_v63  ;;  %v8199_v14 = vpop.eup %8198  ;;  %v18849_v60 = vld [vmem:[#allocation23_spill] sm:$0xff]  ;;  %v18850_v27 = vld [vmem:[#allocation26_spill] sm:$0xff] }
 0x866   : > { %v5945_v21 = vrot.slane %v17113_v59, 2  ;;  %v5949_v9 = vrot.slane %v17113_v59, 3  ;;  %v18846_v58 = vrot.slane %v18845_v46, 7  ;;  %v18848_v56 = vrot.slane %v18847_v57, 7  ;;  %v8201_v16 = vpop.eup %8200 }
 0x867   : > { %v6527_v8 = vmul.f32 %v8197_v39, %v16859_v7  ;;  %v5953_v34 = vrot.slane %v17113_v59, 4  ;;  %v6528_v28 = vmul.f32 %v8199_v14, %v16901_v38  ;;  %v6534_v26 = vadd.f32 %v6526_v0, %v6518_v50  ;;  %v8203_v19 = vpop.eup %8202 }
 0x868   : > { %v6524_v32 = vmul.f32 %v18846_v58, %v6317_v18  ;;  %v6525_v42 = vmul.f32 %v18848_v56, %v6332_v2  ;;  %v5957_v63 = vrot.slane %v17113_v59, 5  ;;  %v5961_v40 = vrot.slane %v17113_v59, 6  ;;  %v8205_v55 = vpop.eup %8204 }
 0x869   : > { %v6529_v11 = vmul.f32 %v8201_v16, %v16907_v4  ;;  %v6535_v36 = vadd.f32 %v6527_v8, %v6519_v10  ;;  %v5965_v62 = vrot.slane %v17113_v59, 7  ;;  %v6001_v35 = vadd.f32 %v5941_v33, %v18849_v60  ;;  %6606 = vst [vmem:[#allocation3 - $0x7] sm:$0x80] %v6534_v26  ;;  %v8207_v18 = vpop.eup %8206  ;;  %v18852_v4 = vld [vmem:[#allocation32_spill] sm:$0xff] }
 0x86a   : > { %v6530_v7 = vmul.f32 %v8203_v19, %v16958_v23  ;;  %v6536_v24 = vadd.f32 %v6528_v28, %v6520_v13  ;;  %v6005_v38 = vadd.f32 %v5945_v21, %v18850_v27  ;;  %v6009_v3 = vadd.f32 %v5949_v9, %v18851_v5  ;;  %v18854_v13 = vld [vmem:[#allocation38_spill] sm:$0xff]  ;;  %v18862_v9 = vld [vmem:[#allocation44_spill] sm:$0xff] }
 0x86b   : > { %v6531_v20 = vmul.f32 %v8205_v55, %v16988_v31  ;;  %v6537_v2 = vadd.f32 %v6529_v11, %v6521_v43  ;;  %v6591_v44 = vrot.slane %v6535_v36, 7  ;;  %v6013_v15 = vadd.f32 %v5953_v34, %v18852_v4  ;;  %v8209_v30 = vpop.eup %8208 }
 0x86c   : > { %v6532_v50 = vmul.f32 %v8207_v18, %v17019_v47  ;;  %v6538_v45 = vadd.f32 %v6530_v7, %v6522_v1  ;;  %v6592_v37 = vrot.slane %v6536_v24, 6  ;;  %v6017_v23 = vadd.f32 %v5957_v63, %v18853_v49 }
 0x86d   : > { %v6533_v10 = vmul.f32 %v8209_v30, %v17034_v12  ;;  %v6539_v52 = vadd.f32 %v6531_v20, %v6523_v22  ;;  %v6594_v41 = vrot.slane %v6537_v2, 5  ;;  %v6021_v48 = vadd.f32 %v5961_v40, %v18854_v13  ;;  %v18858_v12 = vld [vmem:[#allocation42_spill] sm:$0xff] }
 0x86e   : > { %v6540_v6 = vadd.f32 %v6532_v50, %v6524_v32  ;;  %8210 = vtanh.f32 %v6534_v26  ;;  %vm18855_vm13 = vcmask 1041409   ;;  %v6596_v43 = vrot.slane %v6538_v45, 4 }
 0x86f   : > { %v6593_v31 = vsel %vm18855_vm13, %v6592_v37, %v6591_v44  ;;  %v17159_v29 = vadd.f32 %v6533_v10, %v6525_v42  ;;  %8212 = vtanh.f32 %v6535_v36  ;;  %vm18856_vm6 = vcmask 1042434  }
 0x870   : > { %v6595_v47 = vsel %vm18856_vm6, %v6594_v41, %v6593_v31  ;;  %v6598_v61 = vrot.slane %v6539_v52, 3  ;;  %8214 = vtanh.f32 %v6536_v24  ;;  %vm18857_vm10 = vcmask 1043459  }
 0x871   : > { %v6597_v17 = vsel %vm18857_vm10, %v6596_v43, %v6595_v47  ;;  %v6600_v25 = vrot.slane %v6540_v6, 2  ;;  %v6025_v1 = vadd.f32 %v5965_v62, %v18858_v12  ;;  %8216 = vtanh.f32 %v6537_v2 }
 0x872   : > { %vm18859_vm2 = vcmask 1044484   ;;  %v6602_v53 = vrot.slane %v17159_v29, 1  ;;  %v7176_v22 = vmul.f32 -1.442695, %v6001_v35  ;;  %vm18860_vm0 = vcmask 1045509  }
 0x873   : > { %v6599_v51 = vsel %vm18859_vm2, %v6598_v61, %v6597_v17  ;;  %v7177_v39 = vmul.f32 -1.442695, %v6005_v38  ;;  %v7178_v54 = vmul.f32 -1.442695, %v6009_v3  ;;  %v7179_v0 = vmul.f32 -1.442695, %v6013_v15 }
 0x874   : > { %v6601_v33 = vsel %vm18860_vm0, %v6600_v25, %v6599_v51  ;;  %vm18861_vm15 = vcmask 1046534   ;;  %v6029_v14 = vadd.f32 %v17113_v59, %v18862_v9  ;;  %8218 = vpow2.f32 %v7176_v22  ;;  %v17170_v58 = vpop.eup %8210 }
 0x875   : > { %v6603_v21 = vsel %vm18861_vm15, %v6602_v53, %v6601_v33  ;;  %v7180_v46 = vmul.f32 -1.442695, %v6017_v23  ;;  %8220 = vpow2.f32 %v7177_v39  ;;  %v7181_v32 = vmul.f32 -1.442695, %v6021_v48  ;;  %v17172_v57 = vpop.eup %8212 }
 0x876   : > { %6607 = vst [vmem:[#allocation3 + $0x1] sm:$0x7f] %v6603_v21  ;;  %8222 = vpow2.f32 %v7178_v54  ;;  %v17174_v56 = vpop.eup %8214  ;;  %v7182_v42 = vmul.f32 -1.442695, %v6025_v1  ;;  %v7183_v34 = vmul.f32 -1.442695, %v6029_v14 }
 0x877   : > { %8224 = vpow2.f32 %v7179_v0  ;;  %v17176_v8 = vpop.eup %8216 }
 0x878   : > { %8226 = vpow2.f32 %v7180_v46 }
 0x879   : > { %8228 = vpow2.f32 %v7181_v32 }
 0x87a   : > { %v8219_v59 = vpop.eup %8218  ;;  %8230 = vtanh.f32 %v6538_v45 }
 0x87b   : > { %v8221_v16 = vpop.eup %8220  ;;  %8232 = vpow2.f32 %v7182_v42  ;;  %v17178_v28 = vadd.f32 1.0, %v8219_v59 }
 0x87c   : > { %v8223_v26 = vpop.eup %8222  ;;  %8234 = vpow2.f32 %v7183_v34  ;;  %v17180_v63 = vadd.f32 1.0, %v8221_v16 }
 0x87d   : > { %v8225_v40 = vpop.eup %8224  ;;  %v17182_v19 = vadd.f32 1.0, %v8223_v26  ;;  %8236 = vrcp.f32 %v17178_v28  ;;  %v6385_v55 = vand.u32 2147483648, %v17178_v28  ;;  %vm6379_vm7 = vweird.f32 %v17178_v28 }
 0x87e   : > { %v8227_v11 = vpop.eup %8226  ;;  %v17185_v36 = vadd.f32 1.0, %v8225_v40  ;;  %8238 = vrcp.f32 %v17180_v63  ;;  %v6400_v24 = vand.u32 2147483648, %v17180_v63  ;;  %v6383_v3 = vand.u32 2147483647, %v17178_v28 }
 0x87f   : > { %v8229_v62 = vpop.eup %8228  ;;  %8240 = vtanh.f32 %v6539_v52  ;;  %v17188_v60 = vadd.f32 1.0, %v8227_v11  ;;  %v17207_v2 = vor.u32 1.1754944e-38, %v6385_v55  ;;  %vm6394_vm4 = vweird.f32 %v17180_v63 }
 0x880   : > { %v17190_v35 = vpop.eup %8230  ;;  %8242 = vrcp.f32 %v17182_v19  ;;  %v17195_v38 = vadd.f32 1.0, %v8229_v62  ;;  %v6398_v44 = vand.u32 2147483647, %v17180_v63  ;;  %v6415_v4 = vand.u32 2147483648, %v17182_v19 }
 0x881   : > { %v8233_v7 = vpop.eup %8232  ;;  %8244 = vtanh.f32 %v6540_v6  ;;  %v17218_v45 = vor.u32 1.1754944e-38, %v6400_v24  ;;  %v6430_v37 = vand.u32 2147483648, %v17185_v36  ;;  %vm6409_vm9 = vweird.f32 %v17182_v19 }
 0x882   : > { %v8235_v27 = vpop.eup %8234  ;;  %8246 = vrcp.f32 %v17185_v36  ;;  %v17214_v30 = vadd.f32 1.0, %v8233_v7  ;;  %v6413_v52 = vand.u32 2147483647, %v17182_v19  ;;  %vm6424_vm1 = vweird.f32 %v17185_v36 }
 0x883   : > { %v17198_v5 = vpop.eup %8236  ;;  %8248 = vrcp.f32 %v17188_v60  ;;  %v17223_v23 = vadd.f32 1.0, %v8235_v27  ;;  %v6428_v6 = vand.u32 2147483647, %v17185_v36  ;;  %vm17238_vm14 = vcmp.eq.f32.partialorder %v6383_v3, 8.507059e+37 }
 0x884   : > { %v17203_v18 = vpop.eup %8238  ;;  %v6375_v20 = vmul.f32 %v17198_v5, %v17178_v28  ;;  %8250 = vrcp.f32 %v17195_v38  ;;  %vm6380_vm12 = vweird.f32 %v17198_v5  ;;  %vm17243_vm5 = vcmp.eq.f32.partialorder %v6398_v44, 8.507059e+37 }
 0x885   : > { %v17212_v15 = vpop.eup %8240  ;;  %v6390_v50 = vmul.f32 %v17203_v18, %v17180_v63  ;;  %vm6395_vm8 = vweird.f32 %v17203_v18  ;;  %v6416_v17 = vor.u32 1.1754944e-38, %v6415_v4  ;;  %vm6439_vm3 = vweird.f32 %v17188_v60  ;;  %vm17270_vm10 = vmor %vm6379_vm7, %vm6380_vm12 }
 0x886   : > { %v17221_v49 = vpop.eup %8242  ;;  %v6376_v10 = vsub.f32 1.0, %v6375_v20  ;;  %v6431_v53 = vor.u32 1.1754944e-38, %v6430_v37  ;;  %vm17252_vm11 = vcmp.eq.f32.partialorder %v6413_v52, 8.507059e+37  ;;  %v6443_v54 = vand.u32 2147483647, %v17188_v60  ;;  %vm17281_vm0 = vmor %vm6394_vm4, %vm6395_vm8 }
 0x887   : > { %v17228_v41 = vpop.eup %8244  ;;  %v6391_v13 = vsub.f32 1.0, %v6390_v50  ;;  %v6405_v48 = vmul.f32 %v17221_v49, %v17182_v19  ;;  %v6445_v0 = vand.u32 2147483648, %v17188_v60  ;;  %vm6410_vm13 = vweird.f32 %v17221_v49 }
 0x888   : > { %v17235_v31 = vpop.eup %8246  ;;  %v6377_v43 = vmul.f32 %v17198_v5, %v6376_v10  ;;  %vm17262_vm6 = vcmp.eq.f32.partialorder %v6428_v6, 8.507059e+37  ;;  %v6458_v59 = vand.u32 2147483647, %v17195_v38  ;;  %8252 = vrcp.f32 %v17214_v30  ;;  %vm17299_vm7 = vmor %vm6409_vm9, %vm6410_vm13 }
 0x889   : > { %v8249_v25 = vpop.eup %8248  ;;  %v6392_v12 = vmul.f32 %v17203_v18, %v6391_v13  ;;  %v6406_v1 = vsub.f32 1.0, %v6405_v48  ;;  %v6420_v51 = vmul.f32 %v17235_v31, %v17185_v36  ;;  %vm6425_vm2 = vweird.f32 %v17235_v31 }
 0x88a   : > { %v6378_v22 = vadd.f32 %v17198_v5, %v6377_v43  ;;  %v6435_v39 = vmul.f32 %v8249_v25, %v17188_v60  ;;  %v8251_v32 = vpop.eup %8250  ;;  %vm6440_vm15 = vweird.f32 %v8249_v25  ;;  %v6460_v40 = vand.u32 2147483648, %v17195_v38  ;;  %vm17316_vm9 = vmor %vm6424_vm1, %vm6425_vm2 }
 0x88b   : > { %v6393_v21 = vadd.f32 %v17203_v18, %v6392_v12  ;;  %v6407_v9 = vmul.f32 %v17221_v49, %v6406_v1  ;;  %v6421_v14 = vsub.f32 1.0, %v6420_v51  ;;  %v6450_v55 = vmul.f32 %v8251_v32, %v17195_v38  ;;  %vm17336_vm1 = vmor %vm6439_vm3, %vm6440_vm15 }
 0x88c   : > { %v6436_v34 = vsub.f32 1.0, %v6435_v39  ;;  %v6382_v11 = vsel %vm17270_vm10, %v17198_v5, %v6378_v22  ;;  %vm17304_vm4 = vcmp.eq.f32.partialorder %v6443_v54, 8.507059e+37  ;;  %v6446_v5 = vor.u32 1.1754944e-38, %v6445_v0 }
 0x88d   : > { %v6408_v28 = vadd.f32 %v17221_v49, %v6407_v9  ;;  %v6422_v26 = vmul.f32 %v17235_v31, %v6421_v14  ;;  %v6397_v62 = vsel %vm17281_vm0, %v17203_v18, %v6393_v21  ;;  %vm6454_vm12 = vweird.f32 %v17195_v38 }
 0x88e   : > { %v6437_v63 = vmul.f32 %v8249_v25, %v6436_v34  ;;  %v6451_v20 = vsub.f32 1.0, %v6450_v55  ;;  %vm17320_vm8 = vcmp.eq.f32.partialorder %v6458_v59, 8.507059e+37  ;;  %v6387_v4 = vsel %vm17238_vm14, %v17207_v2, %v6382_v11 }
 0x88f   : > { %v6423_v24 = vadd.f32 %v17235_v31, %v6422_v26  ;;  %v6412_v3 = vsel %vm17299_vm7, %v17221_v49, %v6408_v28  ;;  %v6402_v50 = vsel %vm17243_vm5, %v17218_v45, %v6397_v62  ;;  %8254 = vrcp.f32 %v17223_v23  ;;  %v8253_v49 = vpop.eup %8252 }
 0x890   : > { %v6438_v18 = vadd.f32 %v8249_v25, %v6437_v63  ;;  %v6452_v10 = vmul.f32 %v8251_v32, %v6451_v20  ;;  %vm6455_vm14 = vweird.f32 %v8251_v32  ;;  %v6461_v45 = vor.u32 1.1754944e-38, %v6460_v40 }
 0x891   : > { %v6427_v36 = vsel %vm17316_vm9, %v17235_v31, %v6423_v24  ;;  %v6417_v52 = vsel %vm17252_vm11, %v6416_v17, %v6412_v3  ;;  %v6465_v13 = vmul.f32 %v8253_v49, %v17214_v30  ;;  %v6473_v60 = vand.u32 2147483647, %v17214_v30  ;;  %vm6456_vm5 = vmor %vm6454_vm12, %vm6455_vm14 }
 0x892   : > { %v6442_v2 = vsel %vm17336_vm1, %v8249_v25, %v6438_v18  ;;  %v6475_v48 = vand.u32 2147483648, %v17214_v30  ;;  %v6432_v6 = vsel %vm17262_vm6, %v6431_v53, %v6427_v36  ;;  %v6453_v31 = vadd.f32 %v8251_v32, %v6452_v10 }
 0x893   : > { %v17351_v43 = vmul.f32 %v17170_v58, %v6387_v4  ;;  %v6551_v47 = vmul.f32 %v17172_v57, %v6402_v50  ;;  %v6447_v61 = vsel %vm17304_vm4, %v6446_v5, %v6442_v2  ;;  %v6466_v17 = vsub.f32 1.0, %v6465_v13 }
 0x894   : > { %v6552_v25 = vmul.f32 %v17174_v56, %v6417_v52  ;;  %v6553_v12 = vmul.f32 %v17176_v8, %v6432_v6  ;;  %v6457_v1 = vsel %vm6456_vm5, %v8251_v32, %v6453_v31  ;;  %vm6470_vm3 = vweird.f32 %v8253_v49 }
 0x895   : > { %v6554_v51 = vmul.f32 %v17190_v35, %v6447_v61  ;;  %v6566_v53 = vrot.slane %v6551_v47, 7  ;;  %6581 = vst [vmem:[#allocation2 - $0x7] sm:$0x80] %v17351_v43  ;;  %v8255_v58 = vpop.eup %8254  ;;  %v6462_v57 = vsel %vm17320_vm8, %v6461_v45, %v6457_v1  ;;  %v6467_v22 = vmul.f32 %v8253_v49, %v6466_v17 }
 0x896   : > { %v6567_v33 = vrot.slane %v6552_v25, 6  ;;  %v6569_v38 = vrot.slane %v6553_v12, 5  ;;  %8256 = vtanh.f32 %v17159_v29  ;;  %vm6469_vm11 = vweird.f32 %v17214_v30 }
 0x897   : > { %v6480_v56 = vmul.f32 %v8255_v58, %v17223_v23  ;;  %v6555_v8 = vmul.f32 %v17212_v15, %v6462_v57  ;;  %v6468_v39 = vadd.f32 %v8253_v49, %v6467_v22  ;;  %vm6474_vm13 = vcmp.eq.f32.partialorder %v6473_v60, 8.507059e+37  ;;  %vm6471_vm10 = vmor %vm6469_vm11, %vm6470_vm3 }
 0x898   : > { %vm18885_vm6 = vcmask 1041409   ;;  %v6571_v54 = vrot.slane %v6554_v51, 4  ;;  %v6476_v0 = vor.u32 1.1754944e-38, %v6475_v48  ;;  %vm18886_vm2 = vcmask 1042434  }
 0x899   : > { %v6568_v35 = vsel %vm18885_vm6, %v6567_v33, %v6566_v53  ;;  %v6481_v21 = vsub.f32 1.0, %v6480_v56  ;;  %v6573_v14 = vrot.slane %v6555_v8, 3  ;;  %v6472_v46 = vsel %vm6471_vm10, %v8253_v49, %v6468_v39 }
 0x89a   : > { %v6570_v9 = vsel %vm18886_vm2, %v6569_v38, %v6568_v35  ;;  %v6488_v29 = vand.u32 2147483647, %v17223_v23  ;;  %v6490_v30 = vand.u32 2147483648, %v17223_v23  ;;  %vm18887_vm0 = vcmask 1043459  }
 0x89b   : > { %v6572_v32 = vsel %vm18887_vm0, %v6571_v54, %v6570_v9  ;;  %v6477_v15 = vsel %vm6474_vm13, %v6476_v0, %v6472_v46  ;;  %v6482_v42 = vmul.f32 %v8255_v58, %v6481_v21  ;;  %vm6485_vm15 = vweird.f32 %v8255_v58 }
 0x89c   : > { %vm18888_vm7 = vcmask 1044484   ;;  %v6556_v59 = vmul.f32 %v17228_v41, %v6477_v15  ;;  %v8257_v16 = vpop.eup %8256  ;;  %vm6484_vm4 = vweird.f32 %v17223_v23  ;;  %v6491_v26 = vor.u32 1.1754944e-38, %v6490_v30 }
 0x89d   : > { %v6574_v34 = vsel %vm18888_vm7, %v6573_v14, %v6572_v32  ;;  %v6483_v28 = vadd.f32 %v8255_v58, %v6482_v42  ;;  %vm6486_vm12 = vmor %vm6484_vm4, %vm6485_vm15  ;;  %vm6489_vm9 = vcmp.eq.f32.partialorder %v6488_v29, 8.507059e+37  ;;  %vm18889_vm8 = vcmask 1045509  }
 0x89e   : > { %v6575_v40 = vrot.slane %v6556_v59, 2  ;;  %vm18890_vm1 = vcmask 1046534  }
 0x89f   : > { %v6487_v11 = vsel %vm6486_vm12, %v8255_v58, %v6483_v28 }
 0x8a0   : > { %v6492_v62 = vsel %vm6489_vm9, %v6491_v26, %v6487_v11  ;;  %v6576_v63 = vsel %vm18889_vm8, %v6575_v40, %v6574_v34 }
 0x8a1   : > { %v6557_v55 = vmul.f32 %v8257_v16, %v6492_v62 }
 0x8a2   : > { %6611 = sbr.rel (%p7184_p10) target bundleno = 2674 (0xa72), region = 106 }
 0x8a3   : > { %v6577_v7 = vrot.slane %v6557_v55, 1 }
 0x8a5   : > { %v17379_v24 = vsel %vm18890_vm1, %v6577_v7, %v6576_v63 }
 0x8a6   : > { %6582 = vst [vmem:[#allocation2 + $0x1] sm:$0x7f] %v17379_v24 }
 0x8a7   : > { %v6621_v23 = vld [vmem:[%s17619_s4 + $0x60] sm:$0xff]  ;;  %v18891_v27 = vld [vmem:[#allocation5_spill] sm:$0xff]  ;;  %v18892_v3 = vld [vmem:[#allocation6_spill] sm:$0xff]  ;;  %vm18896_vm14 = vcmask 1041409   ;;  %vm18898_vm5 = vcmask 1042434   ;;  %vm18900_vm3 = vcmask 1043459  }
 0x8a8   : > { %v6618_v41 = vld [vmem:[%s17619_s4 + $0x40] sm:$0xff]  ;;  %v6632_v5 = vrot.slane %v18891_v27, 7  ;;  %v6633_v19 = vrot.slane %v18892_v3, 6  ;;  %6660 = vmatpush.msra.mxu2 %v6621_v23  ;;  %v18894_v44 = vld [vmem:[#allocation8_spill] sm:$0xff]  ;;  %v18895_v50 = vld [vmem:[#allocation9_spill] sm:$0xff]  ;;  %vm18901_vm11 = vcmask 1044484  }
 0x8a9   : > { %v18893_v18 = vld [vmem:[#allocation7_spill] sm:$0xff]  ;;  %v6637_v4 = vrot.slane %v18894_v44, 4  ;;  %v6639_v36 = vrot.slane %v18895_v50, 3  ;;  %v18897_v2 = vld [vmem:[#allocation12_spill] sm:$0xff]  ;;  %v18899_v52 = vld [vmem:[#allocation13_spill] sm:$0xff]  ;;  %vm18902_vm13 = vcmask 1045509  }
 0x8aa   : > { %v6635_v20 = vrot.slane %v18893_v18, 5  ;;  %v6615_v37 = vld [vmem:[%s17619_s4 + $0x20] sm:$0xff]  ;;  %v6634_v49 = vsel %vm18896_vm14, %v6633_v19, %v6632_v5  ;;  %v6641_v10 = vrot.slane %v18897_v2, 2  ;;  %6661 = vmatpush.msra.mxu2 %v6618_v41  ;;  %v6643_v13 = vrot.slane %v18899_v52, 1  ;;  %v6622_v31 = vld [vmem:[%s17619_s4 + $0x70] sm:$0xff]  ;;  %v18904_v25 = vld [vmem:[#allocation14_spill] sm:$0xff] }
 0x8ab   : > { %v6612_v60 = vld [vmem:[%s17619_s4] sm:$0xff]  ;;  %vm18903_vm6 = vcmask 1046534   ;;  %v6619_v17 = vld [vmem:[%s17619_s4 + $0x50] sm:$0xff]  ;;  %vm18905_vm10 = vcmask 1047559   ;;  %vm18906_vm2 = vcmask 261120   ;;  %v6623_v53 = vld [vmem:[%s17619_s4 + $0x78] sm:$0xff] }
 0x8ac   : > { %v6636_v45 = vsel %vm18898_vm5, %v6635_v20, %v6634_v49  ;;  %6662 = vmatpush.msra.mxu2 %v6615_v37  ;;  %v6616_v1 = vld [vmem:[%s17619_s4 + $0x30] sm:$0xff]  ;;  %v6620_v58 = vld [vmem:[%s17619_s4 + $0x58] sm:$0xff]  ;;  %vm18907_vm0 = vmmov %vm18906_vm2  ;;  %vm6795_vm7 = vcmask 1040384  }
 0x8ad   : > { %v6638_v48 = vsel %vm18900_vm3, %v6637_v4, %v6636_v45  ;;  %v6613_v51 = vld [vmem:[%s17619_s4 + $0x10] sm:$0xff]  ;;  %v6617_v57 = vld [vmem:[%s17619_s4 + $0x38] sm:$0xff]  ;;  %vm18908_vm15 = vmmov %vm18907_vm0 }
 0x8ae   : > { %v6640_v6 = vsel %vm18901_vm11, %v6639_v36, %v6638_v48  ;;  %6663 = vmatpush.msra.mxu2 %v6612_v60  ;;  %v6614_v22 = vld [vmem:[%s17619_s4 + $0x18] sm:$0xff]  ;;  %v6770_v38 = vld [vmem:[%s17621_s6 + $0x70] sm:$0xff]  ;;  %v6769_v56 = vld [vmem:[%s17621_s6 + $0x68] sm:$0xff]  ;;  %vm6883_vm11 = vcmask 31744  }
 0x8af   : > { %v6642_v47 = vsel %vm18902_vm13, %v6641_v10, %v6640_v6  ;;  %v6771_v33 = vld [vmem:[%s17621_s6 + $0x78] sm:$0xff]  ;;  %v17449_v8 = vld [vmem:[%s17620_s5] sm:$0xf]  ;;  %v6766_v21 = vld [vmem:[%s17621_s6 + $0x50] sm:$0xff] }
 0x8b0   : > { %v6644_v61 = vsel %vm18903_vm6, %v6643_v13, %v6642_v47  ;;  %6680 = vmatpush.msrb.mxu2 %v6622_v31  ;;  %6803 = vmatpush.msra.mxu3 %v6771_v33  ;;  %v6768_v39 = vld [vmem:[%s17621_s6 + $0x60] sm:$0xff]  ;;  %v6767_v35 = vld [vmem:[%s17621_s6 + $0x58] sm:$0xff]  ;;  %v6626_v0 = vperm.slane %v17449_v8, 0  ;;  %v6786_v9 = vld [vmem:[%s17621_s6 + $0xf0] sm:$0xff]  ;;  %v6628_v3 = vperm.slane %v17449_v8, 3  ;;  %v6627_v60 = vperm.slane %v17449_v8, 2 }
 0x8b1   : > { %v6645_v12 = vsel %vm18905_vm10, %v18904_v25, %v6644_v61  ;;  %v6787_v54 = vld [vmem:[%s17621_s6 + $0xf8] sm:$0xff]  ;;  %v6765_v46 = vld [vmem:[%s17621_s6 + $0x48] sm:$0xff]  ;;  %v6764_v32 = vld [vmem:[%s17621_s6 + $0x40] sm:$0xff] }
 0x8b2   : > { %7185 = vmatmul.msk.f32.vlgmr.msra.gmra.mxu2 %vm18906_vm2, %v6645_v12  ;;  %6804 = vmatpush.msra.mxu3 %v6770_v38  ;;  %v6785_v29 = vld [vmem:[%s17621_s6 + $0xe8] sm:$0xff]  ;;  %v6784_v15 = vld [vmem:[%s17621_s6 + $0xe0] sm:$0xff]  ;;  %v6763_v34 = vld [vmem:[%s17621_s6 + $0x38] sm:$0xff] }
 0x8b3   : > { %6681 = vmatpush.msrb.mxu2 %v6619_v17  ;;  %6823 = vmatpush.msra.mxu0 %v6787_v54  ;;  %v6783_v59 = vld [vmem:[%s17621_s6 + $0xd8] sm:$0xff]  ;;  %v6762_v16 = vld [vmem:[%s17621_s6 + $0x30] sm:$0xff]  ;;  %v6761_v26 = vld [vmem:[%s17621_s6 + $0x28] sm:$0xff] }
 0x8b4   : > { %6805 = vmatpush.msra.mxu3 %v6769_v56  ;;  %v6782_v28 = vld [vmem:[%s17621_s6 + $0xd0] sm:$0xff]  ;;  %v6781_v40 = vld [vmem:[%s17621_s6 + $0xc8] sm:$0xff]  ;;  %v6760_v62 = vld [vmem:[%s17621_s6 + $0x20] sm:$0xff] }
 0x8b5   : > { %6682 = vmatpush.msrb.mxu2 %v6616_v1  ;;  %6824 = vmatpush.msra.mxu0 %v6786_v9  ;;  %v6780_v63 = vld [vmem:[%s17621_s6 + $0xc0] sm:$0xff]  ;;  %v6759_v55 = vld [vmem:[%s17621_s6 + $0x18] sm:$0xff]  ;;  %v6758_v41 = vld [vmem:[%s17621_s6 + $0x10] sm:$0xff] }
 0x8b6   : > { %6806 = vmatpush.msra.mxu3 %v6768_v39  ;;  %v6778_v27 = vld [vmem:[%s17621_s6 + $0xb0] sm:$0xff]  ;;  %v6757_v18 = vld [vmem:[%s17621_s6 + $0x8] sm:$0xff]  ;;  %v6756_v50 = vld [vmem:[%s17621_s6] sm:$0xff] }
 0x8b7   : > { %6683 = vmatpush.msrb.mxu2 %v6613_v51  ;;  %6825 = vmatpush.msra.mxu0 %v6785_v29  ;;  %v6777_v20 = vld [vmem:[%s17621_s6 + $0xa8] sm:$0xff]  ;;  %v6776_v36 = vld [vmem:[%s17621_s6 + $0xa0] sm:$0xff]  ;;  %v6775_v2 = vld [vmem:[%s17621_s6 + $0x98] sm:$0xff] }
 0x8b8   : > { %6807 = vmatpush.msra.mxu3 %v6767_v35  ;;  %v6774_v52 = vld [vmem:[%s17621_s6 + $0x90] sm:$0xff]  ;;  %v6773_v48 = vld [vmem:[%s17621_s6 + $0x88] sm:$0xff]  ;;  %v6772_v31 = vld [vmem:[%s17621_s6 + $0x80] sm:$0xff] }
 0x8b9   : > { %6700 = vmatpush.msra.mxu2 %v6623_v53  ;;  %6826 = vmatpush.msra.mxu0 %v6784_v15  ;;  %v6858_v53 = vld [vmem:[%s17623_s8 + $0x78] sm:$0xff]  ;;  %v6855_v38 = vld [vmem:[%s17623_s8 + $0x60] sm:$0xff]  ;;  %v6852_v9 = vld [vmem:[%s17623_s8 + $0x48] sm:$0xff] }
 0x8ba   : > { %7186 = vmatmul.msk.f32.vlgmr.msrb.gmra.mxu2 %vm18907_vm0, %v6645_v12  ;;  %6808 = vmatpush.msra.mxu3 %v6766_v21  ;;  %v6854_v8 = vld [vmem:[%s17623_s8 + $0x58] sm:$0xff]  ;;  %v6851_v29 = vld [vmem:[%s17623_s8 + $0x40] sm:$0xff] }
 0x8bb   : > { %6701 = vmatpush.msra.mxu2 %v6620_v58  ;;  %6827 = vmatpush.msra.mxu0 %v6783_v59  ;;  %v6857_v58 = vld [vmem:[%s17623_s8 + $0x70] sm:$0xff]  ;;  %v6850_v15 = vld [vmem:[%s17623_s8 + $0x38] sm:$0xff] }
 0x8bc   : > { %6809 = vmatpush.msra.mxu3 %v6765_v46  ;;  %6863 = vmatpush.msra.mxu1 %v6858_v53  ;;  %v6849_v59 = vld [vmem:[%s17623_s8 + $0x30] sm:$0xff] }
 0x8bd   : > { %6702 = vmatpush.msra.mxu2 %v6617_v57  ;;  %6828 = vmatpush.msra.mxu0 %v6782_v28 }
 0x8be   : > { %6810 = vmatpush.msra.mxu3 %v6764_v32  ;;  %6864 = vmatpush.msra.mxu1 %v6857_v58 }
 0x8bf   : > { %6703 = vmatpush.msra.mxu2 %v6614_v22  ;;  %6829 = vmatpush.msra.mxu0 %v6781_v40  ;;  %v6856_v22 = vld [vmem:[%s17623_s8 + $0x68] sm:$0xff] }
 0x8c0   : > { %6811 = vmatpush.msra.mxu3 %v6763_v34  ;;  %6865 = vmatpush.msra.mxu1 %v6856_v22  ;;  %v6848_v40 = vld [vmem:[%s17623_s8 + $0x28] sm:$0xff] }
 0x8c1   : > { %6830 = vmatpush.msra.mxu0 %v6780_v63 }
 0x8c2   : > { %7187 = vmatmul.msk.f32.vlgmr.msra.gmra.mxu2 %vm18908_vm15, %v6645_v12  ;;  %6812 = vmatpush.msra.mxu3 %v6762_v16 }
 0x8c3   : > { %6866 = vmatpush.msra.mxu1 %v6855_v38 }
 0x8c4   : > { %6813 = vmatpush.msra.mxu3 %v6761_v26 }
 0x8c5   : > { %6867 = vmatpush.msra.mxu1 %v6854_v8 }
 0x8c6   : > { %6814 = vmatpush.msra.mxu3 %v6760_v62  ;;  %v6847_v62 = vld [vmem:[%s17623_s8 + $0x20] sm:$0xff] }
 0x8c8   : > { %6815 = vmatpush.msra.mxu3 %v6759_v55  ;;  %v6846_v55 = vld [vmem:[%s17623_s8 + $0x18] sm:$0xff] }
 0x8ca   : > { %6816 = vmatpush.msra.mxu3 %v6758_v41  ;;  %v6843_v41 = vld [vmem:[%s17623_s8] sm:$0xff] }
 0x8cc   : > { %6817 = vmatpush.msra.mxu3 %v6757_v18 }
 0x8ce   : > { %6818 = vmatpush.msra.mxu3 %v6756_v50 }
 0x935   : > { %v6665_v14 = vpop.f32.mrf.mxu2 }
 0x936   : > { %v6666_v30 = vadd.f32 %v6665_v14, %v6626_v0  ;;  %v6853_v0 = vld [vmem:[%s17623_s8 + $0x50] sm:$0xff] }
 0x937   : > { %6868 = vmatpush.msra.mxu1 %v6853_v0 }
 0x938   : > { %v7188_v42 = vmul.f32 -1.442695, %v6666_v30 }
 0x939   : > { %6869 = vmatpush.msra.mxu1 %v6852_v9 }
 0x93a   : > { %8580 = vpow2.f32 %v7188_v42 }
 0x93b   : > { %8582 = vtanh.f32 %v17351_v43  ;;  %v6779_v43 = vld [vmem:[%s17621_s6 + $0xb8] sm:$0xff]  ;;  %6870 = vmatpush.msra.mxu1 %v6851_v29 }
 0x93c   : > { %8584 = vtanh.f32 %v17379_v24  ;;  %6831 = vmatpush.msra.mxu0 %v6779_v43 }
 0x93d   : > { %v6685_v11 = vpop.f32.mrf.mxu2  ;;  %6871 = vmatpush.msra.mxu1 %v6850_v15 }
 0x93e   : > { %6832 = vmatpush.msra.mxu0 %v6778_v27  ;;  %v6686_v47 = vadd.f32 %v6685_v11, %v6627_v60  ;;  %v8578_v27 = vld [vmem:[%s17622_s7] ss:$0 sm:$0xff] }
 0x93f   : > { %6872 = vmatpush.msra.mxu1 %v6849_v59 }
 0x940   : > { %v8581_v7 = vpop.eup %8580  ;;  %6833 = vmatpush.msra.mxu0 %v6777_v20  ;;  %v8579_v20 = vld [vmem:[%s17624_s9] ss:$0 sm:$0xff] }
 0x941   : > { %v8583_v24 = vpop.eup %8582  ;;  %v6711_v23 = vadd.f32 1.0, %v8581_v7  ;;  %6873 = vmatpush.msra.mxu1 %v6848_v40 }
 0x942   : > { %v8585_v5 = vpop.eup %8584  ;;  %v6796_v19 = vrot.slane %v8583_v24, 7  ;;  %6834 = vmatpush.msra.mxu0 %v6776_v36  ;;  %v6845_v24 = vld [vmem:[%s17623_s8 + $0x10] sm:$0xff] }
 0x943   : > { %8586 = vrcp.f32 %v6711_v23  ;;  %v6797_v44 = vrot.slane %v8585_v5, 7  ;;  %v6723_v12 = vand.u32 2147483648, %v6711_v23  ;;  %vm6717_vm12 = vweird.f32 %v6711_v23  ;;  %6874 = vmatpush.msra.mxu1 %v6847_v62 }
 0x944   : > { %6835 = vmatpush.msra.mxu0 %v6775_v2  ;;  %v6721_v1 = vand.u32 2147483647, %v6711_v23 }
 0x945   : > { %v6705_v4 = vpop.f32.mrf.mxu2  ;;  %v6798_v49 = vsel %vm6795_vm7, %v6796_v19, %v6797_v44  ;;  %v6724_v33 = vor.u32 1.1754944e-38, %v6723_v12  ;;  %6875 = vmatpush.msra.mxu1 %v6846_v55 }
 0x946   : > { %v6706_v37 = vadd.f32 %v6705_v4, %v6628_v3  ;;  %6819 = vmatmul.f32.vlgmr.msra.gmra.mxu3 %v6798_v49  ;;  %6836 = vmatpush.msra.mxu0 %v6774_v52  ;;  %vm6722_vm8 = vcmp.eq.f32.partialorder %v6721_v1, 8.507059e+37 }
 0x947   : > { %6876 = vmatpush.msra.mxu1 %v6845_v24 }
 0x948   : > { %v7189_v10 = vmul.f32 -1.442695, %v6706_v37  ;;  %6837 = vmatpush.msra.mxu0 %v6773_v48 }
 0x949   : > { %v8587_v45 = vpop.eup %8586 }
 0x94a   : > { %v6713_v13 = vmul.f32 %v8587_v45, %v6711_v23  ;;  %8588 = vpow2.f32 %v7189_v10  ;;  %vm6718_vm4 = vweird.f32 %v8587_v45  ;;  %6838 = vmatpush.msra.mxu0 %v6772_v31  ;;  %v6844_v23 = vld [vmem:[%s17623_s8 + $0x8] sm:$0xff] }
 0x94b   : > { %vm6719_vm9 = vmor %vm6717_vm12, %vm6718_vm4  ;;  %8590 = vtanh.f32 %v6686_v47  ;;  %6877 = vmatpush.msra.mxu1 %v6844_v23 }
 0x94c   : > { %v6714_v6 = vsub.f32 1.0, %v6713_v13 }
 0x94d   : > { %6878 = vmatpush.msra.mxu1 %v6843_v41 }
 0x94e   : > { %v6715_v61 = vmul.f32 %v8587_v45, %v6714_v6 }
 0x950   : > { %v8589_v17 = vpop.eup %8588  ;;  %v6716_v25 = vadd.f32 %v8587_v45, %v6715_v61 }
 0x951   : > { %v6731_v51 = vadd.f32 1.0, %v8589_v17  ;;  %v8591_v39 = vpop.eup %8590 }
 0x952   : > { %v6720_v57 = vsel %vm6719_vm9, %v8587_v45, %v6716_v25 }
 0x953   : > { %8592 = vrcp.f32 %v6731_v51  ;;  %v6725_v56 = vsel %vm6722_vm8, %v6724_v33, %v6720_v57  ;;  %v6743_v46 = vand.u32 2147483648, %v6731_v51  ;;  %v6741_v32 = vand.u32 2147483647, %v6731_v51 }
 0x954   : > { %v6747_v54 = vmul.f32 %v8591_v39, %v6725_v56  ;;  %vm6737_vm14 = vweird.f32 %v6731_v51 }
 0x955   : > { %v6744_v34 = vor.u32 1.1754944e-38, %v6743_v46  ;;  %vm6742_vm3 = vcmp.eq.f32.partialorder %v6741_v32, 8.507059e+37 }
 0x956   : > { %8594 = vtanh.f32 %v6747_v54 }
 0x959   : > { %v8593_v35 = vpop.eup %8592 }
 0x95a   : > { %v6733_v21 = vmul.f32 %v8593_v35, %v6731_v51  ;;  %vm6738_vm1 = vweird.f32 %v8593_v35 }
 0x95b   : > { %vm6739_vm5 = vmor %vm6737_vm14, %vm6738_vm1 }
 0x95c   : > { %v6734_v14 = vsub.f32 1.0, %v6733_v21  ;;  %v8595_v28 = vpop.eup %8594 }
 0x95e   : > { %v6735_v30 = vmul.f32 %v8593_v35, %v6734_v14 }
 0x960   : > { %v6736_v42 = vadd.f32 %v8593_v35, %v6735_v30 }
 0x962   : > { %v6740_v16 = vsel %vm6739_vm5, %v8593_v35, %v6736_v42 }
 0x963   : > { %v6745_v26 = vsel %vm6742_vm3, %v6744_v34, %v6740_v16 }
 0x964   : > { %v6749_v11 = vmul.f32 %v8595_v28, %v6745_v26 }
 0x966   : > { %v6751_v63 = vrot.slane %v6749_v11, 1 }
 0x968   : > { %8596 = vtanh.f32 %v6751_v63 }
 0x96e   : > { %v8597_v43 = vpop.eup %8596 }
 0x96f   : > { %v6799_v7 = vrot.slane %v8597_v43, 7 }
 0x971   : > { %6839 = vmatmul.f32.vlgmr.msra.gmra.mxu0 %v6799_v7 }
 0x9c9   : > { %v6820_v5 = vpop.f32.mrf.mxu3 }
 0x9ca   : > { %v6821_v3 = vadd.f32 %v8578_v27, %v6820_v5 }
 0x9ee   : > { %v6840_v19 = vpop.f32.mrf.mxu0 }
 0x9ef   : > { %v6841_v18 = vadd.f32 %v6840_v19, %v6821_v3 }
 0x9f1   : > { %6879 = vmatmul.f32.vlgmr.msra.gmra.mxu1 %v6841_v18 }
 0xa6e   : > { %v6880_v44 = vpop.f32.mrf.mxu1 }
 0xa6f   : > { %v6881_v4 = vadd.f32 %v8579_v20, %v6880_v44 }
 0xa71   : > { %6884 = vst.msk [vmem:[%s17625_s10] sm:$0xff] %vm6883_vm11, %v6881_v4 }
 0xa72 PF: > { %s20_s17 = sadd.s32 1, %s8636_s17   ;;  %s18909_s13 = smov %s8624_s14 }
 0xa73   : > { %p17_p11 = scmp.ge.s32.totalorder %s20_s17, 4   ;;  %s18910_s14 = smov %s8729_s21 }
 0xa74   : > { %s18911_s15 = smov %s8632_s16  ;;  %s18912_s16 = smov %s18914_s18 }
 0xa75   :  { %19 = sbr.rel (!%p17_p11) target bundleno = 3 (0x3), region = 141 }

</bundles_post_ra>
